<compile_context>
chip_gen: v5e
topology: v5e:2x2
jax: 0.10.0
libtpu: 0.0.40
codegen_flags: <defaults>
</compile_context>

<pallas_src>
import functools

import jax
import jax.numpy as jnp
from jax.experimental import pallas as pl
from jax.experimental.pallas import tpu as pltpu

FEAT_C = 2560        # efficientnet-b7 feature channels (b4=False, b2=False path)
HIDDEN = 250         # true hidden width of the nn.Module
HIDDEN_PAD = 256     # padded to a multiple of 128 for lane-dense tiles
OUT_SIZE = 1
OUT_PAD = 128        # padded output lanes; sliced back to OUT_SIZE in wrapper
BN_EPS = 1e-5

# Rows of the packed (16, HIDDEN_PAD) bias/scale/shift slab.
_BV_ROWS = ("b1", "s1", "t1", "b2", "s2", "t2", "b3", "s3", "t3", "bc1", "bc2")

_FEAT_VMEM_BUDGET = 24 << 20     # double-buffered feature-stream budget (bytes)
_VMEM_LIMIT = 48 << 20           # v7x-safe (64 MiB physical); > v5e/v6e defaults


def _cdiv(a, b):
    return -(-a // b)


def _round_up(n, m):
    return _cdiv(n, m) * m


# -----------------------------------------------------------------------------
# Kernel bodies
# -----------------------------------------------------------------------------
def _csv_mlp_and_head(pooled, x, bv_ref, w1_ref, wsq_ref, wci_ref, out_ref):
    """csv MLP (Linear->BN(eval)->ReLU->Dropout(id)) x3 + classification head."""
    Hp = HIDDEN_PAD
    b1, s1, t1 = bv_ref[0:1, :], bv_ref[1:2, :], bv_ref[2:3, :]
    b2, s2, t2 = bv_ref[3:4, :], bv_ref[4:5, :], bv_ref[5:6, :]
    b3, s3, t3 = bv_ref[6:7, :], bv_ref[7:8, :], bv_ref[8:9, :]
    bc1 = bv_ref[9:10, :]
    bc2 = bv_ref[10:11, 0:OUT_PAD]

    def lin_bn_relu(v, w, b, s, t):
        h = jnp.dot(v, w, preferred_element_type=jnp.float32) + b
        return jnp.maximum(h * s + t, 0.0)   # folded eval BN; Dropout = identity

    x = lin_bn_relu(x, w1_ref[...], b1, s1, t1)
    x = lin_bn_relu(x, wsq_ref[0:Hp, :], b2, s2, t2)
    x = lin_bn_relu(x, wsq_ref[Hp:2 * Hp, :], b3, s3, t3)

    # out = classification(cat([image, csv], dim=1)): the Linear(2560+250, 250)
    # is split into two matmuls (identical math, no lane-axis concatenate).
    h = (jnp.dot(pooled, wci_ref[...], preferred_element_type=jnp.float32)
         + jnp.dot(x, wsq_ref[2 * Hp:3 * Hp, :], preferred_element_type=jnp.float32)
         + bc1)
    out_ref[0] = (jnp.dot(h, wsq_ref[3 * Hp:4 * Hp, 0:OUT_PAD],
                          preferred_element_type=jnp.float32) + bc2)


def _head_kernel_fullhw(feat_ref, csv_ref, bv_ref, w1_ref, wsq_ref, wci_ref,
                        out_ref, *, hw_total):
    # Whole (b_tile, C, HW) feature block per step: contiguous DMA, one pool,
    # no accumulator / ragged mask.  Native-dtype (bf16) load, f32 accumulate.
    feat = feat_ref[...].astype(jnp.float32)
    pooled = jnp.sum(feat, axis=-1) * (1.0 / hw_total)   # (b_tile, C), C on lanes
    _csv_mlp_and_head(pooled, csv_ref[0], bv_ref, w1_ref, wsq_ref, wci_ref, out_ref)


def _head_kernel_hwtiled(feat_ref, csv_ref, bv_ref, w1_ref, wsq_ref, wci_ref,
                         out_ref, acc_ref, *, hw_total, hw_tile):
    # Fallback when the full-HW block exceeds the VMEM budget.
    hw = pl.program_id(1)
    last = pl.num_programs(1) - 1

    @pl.when(hw == 0)
    def _():
        acc_ref[...] = jnp.zeros_like(acc_ref)

    feat = feat_ref[...].astype(jnp.float32)              # (b_tile, C, hw_tile)
    if hw_total % hw_tile == 0:
        acc_ref[...] += jnp.sum(feat, axis=-1)
    else:
        # Mask only the ragged tail tile; full tiles take the unmasked path.
        @pl.when(hw != last)
        def _():
            acc_ref[...] += jnp.sum(feat, axis=-1)

        @pl.when(hw == last)
        def _():
            col = jax.lax.broadcasted_iota(jnp.int32, feat.shape, 2)
            acc_ref[...] += jnp.sum(
                jnp.where(col + hw * hw_tile < hw_total, feat, 0.0), axis=-1)

    @pl.when(hw == last)
    def _():
        pooled = acc_ref[...] * (1.0 / hw_total)
        _csv_mlp_and_head(pooled, csv_ref[0], bv_ref, w1_ref, wsq_ref, wci_ref,
                          out_ref)


# -----------------------------------------------------------------------------
# Parameters (synthetic, true module shapes) + packing into resident slabs
# -----------------------------------------------------------------------------
def init_params(key, no_columns):
    """Deterministic synthetic parameters (shapes match the nn.Module)."""
    ks = iter(jax.random.split(key, 16))
    p = {}

    def linear(k, fan_in, fan_out):
        bound = 1.0 / jnp.sqrt(jnp.float32(fan_in))
        w = jax.random.uniform(k, (fan_in, fan_out), jnp.float32, -bound, bound)
        b = jax.random.uniform(jax.random.fold_in(k, 1), (1, fan_out),
                               jnp.float32, -bound, bound)
        return w, b

    def bn_folded(k, n):
        gamma = jax.random.uniform(k, (1, n), jnp.float32, 0.8, 1.2)
        beta = jax.random.uniform(jax.random.fold_in(k, 1), (1, n),
                                  jnp.float32, -0.1, 0.1)
        rmean = jax.random.uniform(jax.random.fold_in(k, 2), (1, n),
                                   jnp.float32, -0.1, 0.1)
        rvar = jax.random.uniform(jax.random.fold_in(k, 3), (1, n),
                                  jnp.float32, 0.5, 1.5)
        scale = gamma / jnp.sqrt(rvar + BN_EPS)
        shift = beta - rmean * scale
        return scale, shift

    p["w1"], p["b1"] = linear(next(ks), no_columns, HIDDEN)
    p["s1"], p["t1"] = bn_folded(next(ks), HIDDEN)
    p["w2"], p["b2"] = linear(next(ks), HIDDEN, HIDDEN)
    p["s2"], p["t2"] = bn_folded(next(ks), HIDDEN)
    p["w3"], p["b3"] = linear(next(ks), HIDDEN, HIDDEN)
    p["s3"], p["t3"] = bn_folded(next(ks), HIDDEN)
    # classification head: Linear(2560 + 250, 250) split into two weight slabs
    wc1, bc1 = linear(next(ks), FEAT_C + HIDDEN, HIDDEN)
    p["wci"], p["wcc"], p["bc1"] = wc1[:FEAT_C], wc1[FEAT_C:], bc1
    p["wc2"], p["bc2"] = linear(next(ks), HIDDEN, OUT_SIZE)
    return p


def _pad2(x, rows, cols):
    return jnp.pad(x, ((0, rows - x.shape[0]), (0, cols - x.shape[1])))


def _pack_params(params):
    """Zero-pad to lane-friendly shapes and pack into 4 resident slabs."""
    ncol_pad = _round_up(params["w1"].shape[0], 128)
    w1 = _pad2(params["w1"], ncol_pad, HIDDEN_PAD)                  # (ncol,256)
    wsq = jnp.concatenate([
        _pad2(params["w2"], HIDDEN_PAD, HIDDEN_PAD),
        _pad2(params["w3"], HIDDEN_PAD, HIDDEN_PAD),
        _pad2(params["wcc"], HIDDEN_PAD, HIDDEN_PAD),
        _pad2(params["wc2"], HIDDEN_PAD, HIDDEN_PAD),
    ], axis=0)                                                      # (1024,256)
    wci = _pad2(params["wci"], FEAT_C, HIDDEN_PAD)                  # (2560,256)
    rows = [_pad2(params[k], 1, HIDDEN_PAD) for k in _BV_ROWS]
    rows.append(jnp.zeros((16 - len(rows), HIDDEN_PAD), jnp.float32))
    bvecs = jnp.concatenate(rows, axis=0)                           # (16,256)
    return bvecs, w1, wsq, wci, ncol_pad


# -----------------------------------------------------------------------------
# Wrapper
# -----------------------------------------------------------------------------
def efficient_network_forward(feat_nchw, csv_data, params, *, force_hw_tile=None):
    """feat_nchw: (B, 2560, H, W) backbone features, streamed in native dtype
    (feed bf16 from the backbone for half the HBM traffic); csv_data: (B, cols)."""
    B, C, H, W = feat_nchw.shape
    assert C == FEAT_C
    HW = H * W

    # Free reshape (no transpose / copy / dtype change): (B, C, H*W).  The pool
    # reduces the lane axis so pooled (B, C) lands with C on lanes for the head.
    feat = feat_nchw.reshape(B, C, HW)
    feat_item = feat.dtype.itemsize

    bvecs, w1, wsq, wci, ncol_pad = _pack_params(params)

    # ---- tile plan -----------------------------------------------------------
    # Batch tiles <= 8 rows, and >= 2 batch programs when B > 1 so the
    # "parallel" grid axis can shard across v7x's two TensorCores.
    b_tile = min(8, B)
    if B > 1:
        b_tile = min(b_tile, _cdiv(B, 2))
    # Shrink b_tile until the double-buffered full-HW feature block fits.
    while b_tile > 1 and 2 * b_tile * FEAT_C * HW * feat_item > _FEAT_VMEM_BUDGET:
        b_tile = max(1, b_tile // 2)

    if force_hw_tile is not None:
        hw_tile, multi_hw = force_hw_tile, True
    elif 2 * b_tile * FEAT_C * HW * feat_item <= _FEAT_VMEM_BUDGET:
        hw_tile, multi_hw = HW, False          # contiguous full-HW rows
    else:
        hw_tile = 128                          # fallback: HW-tiled accumulation
        while (hw_tile * 2 <= HW and
               2 * b_tile * FEAT_C * hw_tile * 2 * feat_item <= _FEAT_VMEM_BUDGET):
            hw_tile *= 2
        multi_hw = True

    nb = _cdiv(B, b_tile)
    b_pad = nb * b_tile

    # csv / out carried as (nb, b_tile, lanes): batch is a leading (untiled)
    # dim, so the last-two-dims (8,128) rule holds for any b_tile.
    csv = jnp.pad(csv_data.astype(jnp.float32),
                  ((0, b_pad - B), (0, ncol_pad - csv_data.shape[1])))
    csv = csv.reshape(nb, b_tile, ncol_pad)

    consts = (bvecs, w1, wsq, wci)
    out_shape = jax.ShapeDtypeStruct((nb, b_tile, OUT_PAD), jnp.float32)

    if not multi_hw:
        kernel = functools.partial(_head_kernel_fullhw, hw_total=HW)
        grid = (nb,)
        in_specs = ([pl.BlockSpec((b_tile, FEAT_C, HW), lambda b: (b, 0, 0)),
                     pl.BlockSpec((1, b_tile, ncol_pad), lambda b: (b, 0, 0))]
                    + [pl.BlockSpec(c.shape, lambda b: (0, 0)) for c in consts])
        out_spec = pl.BlockSpec((1, b_tile, OUT_PAD), lambda b: (b, 0, 0))
        scratch = []
        dims = ("parallel",)
    else:
        kernel = functools.partial(_head_kernel_hwtiled,
                                   hw_total=HW, hw_tile=hw_tile)
        grid = (nb, _cdiv(HW, hw_tile))
        in_specs = ([pl.BlockSpec((b_tile, FEAT_C, hw_tile),
                                  lambda b, h: (b, 0, h)),
                     pl.BlockSpec((1, b_tile, ncol_pad), lambda b, h: (b, 0, 0))]
                    + [pl.BlockSpec(c.shape, lambda b, h: (0, 0)) for c in consts])
        out_spec = pl.BlockSpec((1, b_tile, OUT_PAD), lambda b, h: (b, 0, 0))
        scratch = [pltpu.VMEM((b_tile, FEAT_C), jnp.float32)]
        dims = ("parallel", "arbitrary")       # batch ||, HW reduction last

    out = pl.pallas_call(
        kernel,
        out_shape=out_shape,
        grid_spec=pltpu.PrefetchScalarGridSpec(
            num_scalar_prefetch=0,
            grid=grid,
            in_specs=in_specs,
            out_specs=out_spec,
            scratch_shapes=scratch,
        ),
        compiler_params=pltpu.CompilerParams(
            dimension_semantics=dims,
            vmem_limit_bytes=_VMEM_LIMIT,
        ),
    )(feat, csv, *consts)

    return out.reshape(b_pad, OUT_PAD)[:B, :OUT_SIZE]


# Pure-JAX reference of the same (eval-mode) math, on the unpadded params.
def reference_forward(feat_nchw, csv_data, params):
    B, C, H, W = feat_nchw.shape
    pooled = jnp.mean(feat_nchw.astype(jnp.float32).reshape(B, C, H * W), axis=-1)
    x = csv_data.astype(jnp.float32)
    for i in ("1", "2", "3"):
        x = (x @ params["w" + i] + params["b" + i]) * params["s" + i] + params["t" + i]
        x = jnp.maximum(x, 0.0)
    h = pooled @ params["wci"] + x @ params["wcc"] + params["bc1"]
    return h @ params["wc2"] + params["bc2"]


if __name__ == "__main__":
    B = 2
    NO_COLUMNS = 10
    H = W = 4   # small stand-in spatial size for the backbone output

    key = jax.random.PRNGKey(0)
    k_feat, k_feat2, k_csv, k_param = jax.random.split(key, 4)

    # Backbone features streamed as bf16 (halves HBM bytes on the dominant input).
    feat_nchw = jax.random.normal(k_feat, (B, FEAT_C, H, W),
                                  jnp.float32).astype(jnp.bfloat16)
    csv_data = jax.random.normal(k_csv, (B, NO_COLUMNS), jnp.float32)
    params = init_params(k_param, NO_COLUMNS)

    out = efficient_network_forward(feat_nchw, csv_data, params)
    out = jax.block_until_ready(out)
    assert out.shape == (B, OUT_SIZE) and out.dtype == jnp.float32
    ref = reference_forward(feat_nchw, csv_data, params)
    assert bool(jnp.all(jnp.isfinite(out)))
    assert bool(jnp.allclose(out, ref, rtol=1e-2, atol=1e-2))

    # Also exercise the HW-tiled fallback (accumulator + ragged-tail mask).
    feat2 = jax.random.normal(k_feat2, (B, FEAT_C, 12, 12),
                              jnp.float32).astype(jnp.bfloat16)
    out2 = jax.block_until_ready(
        efficient_network_forward(feat2, csv_data, params, force_hw_tile=128))
    ref2 = reference_forward(feat2, csv_data, params)
    assert bool(jnp.allclose(out2, ref2, rtol=1e-2, atol=1e-2))

    print("KERNEL_OK")
</pallas_src>

<mosaic_0001>
module attributes {stable_mosaic.version = 11 : i64} {
  func.func @_head_kernel_fullhw(%arg0: i32, %arg1: memref<1x2560x16xbf16, #tpu.memory_space<vmem>>, %arg2: memref<1x1x128xf32, #tpu.memory_space<vmem>>, %arg3: memref<16x256xf32, #tpu.memory_space<vmem>>, %arg4: memref<128x256xf32, #tpu.memory_space<vmem>>, %arg5: memref<1024x256xf32, #tpu.memory_space<vmem>>, %arg6: memref<2560x256xf32, #tpu.memory_space<vmem>>, %arg7: memref<1x1x128xf32, #tpu.memory_space<vmem>>) attributes {dimension_semantics = [#tpu.dimension_semantics<parallel>], iteration_bounds = array<i64: 2>, scalar_prefetch = 0 : i64, scratch_operands = 0 : i64, tpu.core_type = #tpu.core_type<tc>, window_params = [{transform_indices = @transform_0, window_bounds = array<i64: 1, 2560, 16>}, {transform_indices = @transform_1, window_bounds = array<i64: 1, 1, 128>}, {pipeline_mode = #tpu.pipeline_mode<synchronous>, transform_indices = @transform_2, window_bounds = array<i64: 16, 256>}, {pipeline_mode = #tpu.pipeline_mode<synchronous>, transform_indices = @transform_3, window_bounds = array<i64: 128, 256>}, {pipeline_mode = #tpu.pipeline_mode<synchronous>, transform_indices = @transform_4, window_bounds = array<i64: 1024, 256>}, {pipeline_mode = #tpu.pipeline_mode<synchronous>, transform_indices = @transform_5, window_bounds = array<i64: 2560, 256>}, {transform_indices = @transform_6, window_bounds = array<i64: 1, 1, 128>}]} {
    %c0 = arith.constant 0 : index
    %c0_0 = arith.constant 0 : index
    %c0_1 = arith.constant 0 : index
    %0 = vector.load %arg1[%c0, %c0_0, %c0_1] : memref<1x2560x16xbf16, #tpu.memory_space<vmem>>, vector<1x2560x16xbf16>
    %1 = arith.extf %0 : vector<1x2560x16xbf16> to vector<1x2560x16xf32>
    %cst = arith.constant dense<0.000000e+00> : vector<1x2560xf32>
    %2 = vector.multi_reduction <add>, %1, %cst [2] : vector<1x2560x16xf32> to vector<1x2560xf32>
    %cst_2 = arith.constant 6.250000e-02 : f32
    %3 = vector.broadcast %cst_2 : f32 to vector<1x2560xf32>
    %4 = arith.mulf %2, %3 : vector<1x2560xf32>
    %c0_3 = arith.constant 0 : index
    %c0_4 = arith.constant 0 : index
    %c0_5 = arith.constant 0 : index
    %5 = vector.load %arg2[%c0_3, %c0_4, %c0_5] : memref<1x1x128xf32, #tpu.memory_space<vmem>>, vector<1x1x128xf32>
    %6 = vector.shape_cast %5 : vector<1x1x128xf32> to vector<1x128xf32>
    %c0_6 = arith.constant 0 : index
    %c0_7 = arith.constant 0 : index
    %7 = vector.load %arg3[%c0_6, %c0_7] : memref<16x256xf32, #tpu.memory_space<vmem>>, vector<1x256xf32>
    %c1 = arith.constant 1 : index
    %c0_8 = arith.constant 0 : index
    %8 = vector.load %arg3[%c1, %c0_8] : memref<16x256xf32, #tpu.memory_space<vmem>>, vector<1x256xf32>
    %c2 = arith.constant 2 : index
    %c0_9 = arith.constant 0 : index
    %9 = vector.load %arg3[%c2, %c0_9] : memref<16x256xf32, #tpu.memory_space<vmem>>, vector<1x256xf32>
    %c3 = arith.constant 3 : index
    %c0_10 = arith.constant 0 : index
    %10 = vector.load %arg3[%c3, %c0_10] : memref<16x256xf32, #tpu.memory_space<vmem>>, vector<1x256xf32>
    %c4 = arith.constant 4 : index
    %c0_11 = arith.constant 0 : index
    %11 = vector.load %arg3[%c4, %c0_11] : memref<16x256xf32, #tpu.memory_space<vmem>>, vector<1x256xf32>
    %c5 = arith.constant 5 : index
    %c0_12 = arith.constant 0 : index
    %12 = vector.load %arg3[%c5, %c0_12] : memref<16x256xf32, #tpu.memory_space<vmem>>, vector<1x256xf32>
    %c6 = arith.constant 6 : index
    %c0_13 = arith.constant 0 : index
    %13 = vector.load %arg3[%c6, %c0_13] : memref<16x256xf32, #tpu.memory_space<vmem>>, vector<1x256xf32>
    %c7 = arith.constant 7 : index
    %c0_14 = arith.constant 0 : index
    %14 = vector.load %arg3[%c7, %c0_14] : memref<16x256xf32, #tpu.memory_space<vmem>>, vector<1x256xf32>
    %c8 = arith.constant 8 : index
    %c0_15 = arith.constant 0 : index
    %15 = vector.load %arg3[%c8, %c0_15] : memref<16x256xf32, #tpu.memory_space<vmem>>, vector<1x256xf32>
    %c9 = arith.constant 9 : index
    %c0_16 = arith.constant 0 : index
    %16 = vector.load %arg3[%c9, %c0_16] : memref<16x256xf32, #tpu.memory_space<vmem>>, vector<1x256xf32>
    %c10 = arith.constant 10 : index
    %c0_17 = arith.constant 0 : index
    %17 = vector.load %arg3[%c10, %c0_17] : memref<16x256xf32, #tpu.memory_space<vmem>>, vector<1x128xf32>
    %c0_18 = arith.constant 0 : index
    %c0_19 = arith.constant 0 : index
    %18 = vector.load %arg4[%c0_18, %c0_19] : memref<128x256xf32, #tpu.memory_space<vmem>>, vector<128x256xf32>
    %cst_20 = arith.constant dense<0.000000e+00> : vector<1x256xf32>
    %19 = tpu.matmul %6, %18, %cst_20 {dimension_numbers = #tpu.dot_dimension_numbers<[1], [0], [0], [1], [0, 0, 1, 1], [], []>} : vector<1x128xf32>, vector<128x256xf32>, vector<1x256xf32> -> vector<1x256xf32>
    %20 = arith.addf %19, %7 : vector<1x256xf32>
    %21 = arith.mulf %20, %8 : vector<1x256xf32>
    %22 = arith.addf %21, %9 : vector<1x256xf32>
    %cst_21 = arith.constant 0.000000e+00 : f32
    %23 = vector.broadcast %cst_21 : f32 to vector<1x256xf32>
    %24 = arith.maximumf %22, %23 : vector<1x256xf32>
    %c0_22 = arith.constant 0 : index
    %c0_23 = arith.constant 0 : index
    %25 = vector.load %arg5[%c0_22, %c0_23] : memref<1024x256xf32, #tpu.memory_space<vmem>>, vector<256x256xf32>
    %cst_24 = arith.constant dense<0.000000e+00> : vector<1x256xf32>
    %26 = tpu.matmul %24, %25, %cst_24 {dimension_numbers = #tpu.dot_dimension_numbers<[1], [0], [0], [1], [0, 0, 1, 1], [], []>} : vector<1x256xf32>, vector<256x256xf32>, vector<1x256xf32> -> vector<1x256xf32>
    %27 = arith.addf %26, %10 : vector<1x256xf32>
    %28 = arith.mulf %27, %11 : vector<1x256xf32>
    %29 = arith.addf %28, %12 : vector<1x256xf32>
    %cst_25 = arith.constant 0.000000e+00 : f32
    %30 = vector.broadcast %cst_25 : f32 to vector<1x256xf32>
    %31 = arith.maximumf %29, %30 : vector<1x256xf32>
    %c256 = arith.constant 256 : index
    %c0_26 = arith.constant 0 : index
    %32 = vector.load %arg5[%c256, %c0_26] : memref<1024x256xf32, #tpu.memory_space<vmem>>, vector<256x256xf32>
    %cst_27 = arith.constant dense<0.000000e+00> : vector<1x256xf32>
    %33 = tpu.matmul %31, %32, %cst_27 {dimension_numbers = #tpu.dot_dimension_numbers<[1], [0], [0], [1], [0, 0, 1, 1], [], []>} : vector<1x256xf32>, vector<256x256xf32>, vector<1x256xf32> -> vector<1x256xf32>
    %34 = arith.addf %33, %13 : vector<1x256xf32>
    %35 = arith.mulf %34, %14 : vector<1x256xf32>
    %36 = arith.addf %35, %15 : vector<1x256xf32>
    %cst_28 = arith.constant 0.000000e+00 : f32
    %37 = vector.broadcast %cst_28 : f32 to vector<1x256xf32>
    %38 = arith.maximumf %36, %37 : vector<1x256xf32>
    %c0_29 = arith.constant 0 : index
    %c0_30 = arith.constant 0 : index
    %39 = vector.load %arg6[%c0_29, %c0_30] : memref<2560x256xf32, #tpu.memory_space<vmem>>, vector<2560x256xf32>
    %cst_31 = arith.constant dense<0.000000e+00> : vector<1x256xf32>
    %40 = tpu.matmul %4, %39, %cst_31 {dimension_numbers = #tpu.dot_dimension_numbers<[1], [0], [0], [1], [0, 0, 1, 1], [], []>} : vector<1x2560xf32>, vector<2560x256xf32>, vector<1x256xf32> -> vector<1x256xf32>
    %c512 = arith.constant 512 : index
    %c0_32 = arith.constant 0 : index
    %41 = vector.load %arg5[%c512, %c0_32] : memref<1024x256xf32, #tpu.memory_space<vmem>>, vector<256x256xf32>
    %cst_33 = arith.constant dense<0.000000e+00> : vector<1x256xf32>
    %42 = tpu.matmul %38, %41, %cst_33 {dimension_numbers = #tpu.dot_dimension_numbers<[1], [0], [0], [1], [0, 0, 1, 1], [], []>} : vector<1x256xf32>, vector<256x256xf32>, vector<1x256xf32> -> vector<1x256xf32>
    %43 = arith.addf %40, %42 : vector<1x256xf32>
    %44 = arith.addf %43, %16 : vector<1x256xf32>
    %c768 = arith.constant 768 : index
    %c0_34 = arith.constant 0 : index
    %45 = vector.load %arg5[%c768, %c0_34] : memref<1024x256xf32, #tpu.memory_space<vmem>>, vector<256x128xf32>
    %cst_35 = arith.constant dense<0.000000e+00> : vector<1x128xf32>
    %46 = tpu.matmul %44, %45, %cst_35 {dimension_numbers = #tpu.dot_dimension_numbers<[1], [0], [0], [1], [0, 0, 1, 1], [], []>} : vector<1x256xf32>, vector<256x128xf32>, vector<1x128xf32> -> vector<1x128xf32>
    %47 = arith.addf %46, %17 : vector<1x128xf32>
    %c0_36 = arith.constant 0 : index
    %c0_37 = arith.constant 0 : index
    %c0_38 = arith.constant 0 : index
    %48 = vector.load %arg7[%c0_36, %c0_37, %c0_38] : memref<1x1x128xf32, #tpu.memory_space<vmem>>, vector<1x1x128xf32>
    %49 = vector.shape_cast %48 : vector<1x1x128xf32> to vector<1x128xf32>
    %50 = vector.shape_cast %47 : vector<1x128xf32> to vector<1x1x128xf32>
    tpu.vector_store %arg7[%c0_36, %c0_37, %c0_38], %50 {strides = array<i32>} : memref<1x1x128xf32, #tpu.memory_space<vmem>>, vector<1x1x128xf32>,
    return
  }
  func.func @transform_0(%arg0: i32) -> (i32, i32, i32) {
    %c0_i32 = arith.constant 0 : i32
    %c0_i32_0 = arith.constant 0 : i32
    %c0_i32_1 = arith.constant 0 : i32
    return %arg0, %c0_i32, %c0_i32_0 : i32, i32, i32
  }
  func.func @transform_1(%arg0: i32) -> (i32, i32, i32) {
    %c0_i32 = arith.constant 0 : i32
    %c0_i32_0 = arith.constant 0 : i32
    %c0_i32_1 = arith.constant 0 : i32
    return %arg0, %c0_i32, %c0_i32_0 : i32, i32, i32
  }
  func.func @transform_2(%arg0: i32) -> (i32, i32) {
    %c0_i32 = arith.constant 0 : i32
    %c0_i32_0 = arith.constant 0 : i32
    %c0_i32_1 = arith.constant 0 : i32
    return %c0_i32, %c0_i32_0 : i32, i32
  }
  func.func @transform_3(%arg0: i32) -> (i32, i32) {
    %c0_i32 = arith.constant 0 : i32
    %c0_i32_0 = arith.constant 0 : i32
    %c0_i32_1 = arith.constant 0 : i32
    return %c0_i32, %c0_i32_0 : i32, i32
  }
  func.func @transform_4(%arg0: i32) -> (i32, i32) {
    %c0_i32 = arith.constant 0 : i32
    %c0_i32_0 = arith.constant 0 : i32
    %c0_i32_1 = arith.constant 0 : i32
    return %c0_i32, %c0_i32_0 : i32, i32
  }
  func.func @transform_5(%arg0: i32) -> (i32, i32) {
    %c0_i32 = arith.constant 0 : i32
    %c0_i32_0 = arith.constant 0 : i32
    %c0_i32_1 = arith.constant 0 : i32
    return %c0_i32, %c0_i32_0 : i32, i32
  }
  func.func @transform_6(%arg0: i32) -> (i32, i32, i32) {
    %c0_i32 = arith.constant 0 : i32
    %c0_i32_0 = arith.constant 0 : i32
    %c0_i32_1 = arith.constant 0 : i32
    return %arg0, %c0_i32, %c0_i32_0 : i32, i32, i32
  }
}

</mosaic_0001>

<bundles_post_ra>
// kernel: tpu_custom_call.1
= control target key start
LH: loop header
LB: loop body
LE: loop exit
PB: predicated region body
PF: predicated region fallthrough
CT: control target
= control target key end

     0   :  { %11 = vsyncpa [#allocation3], 0  ;;  %s9205_s0 = inlined_call_operand.vmem [shape: bf16[2,2560,16], index: 0, kind: input, shape index: {}]   ;;  %s9206_s1 = inlined_call_operand.hbm [shape: f32[2,1,128], index: 1, kind: input, shape index: {}]   ;;  %s9207_s2 = inlined_call_operand.hbm [shape: f32[16,256], index: 2, kind: input, shape index: {}]   ;;  %s9208_s3 = inlined_call_operand.hbm [shape: f32[128,256], index: 3, kind: input, shape index: {}]   ;;  %s9209_s4 = inlined_call_operand.hbm [shape: f32[1024,256], index: 4, kind: input, shape index: {}]   ;;  %s9210_s5 = inlined_call_operand.hbm [shape: f32[2560,256], index: 5, kind: input, shape index: {}]   ;;  %s9211_s6 = inlined_call_operand.hbm [shape: f32[2,1,128], index: 6, kind: output, shape index: {}]  }
   0x1   :  { %13 = vsyncpa [#allocation3 + $0x1], 0 }
   0x2   :  { %14 = vsyncpa [#allocation6], 0 }
   0x3   :  { %15 = vsyncpa [#allocation9], 0 }
   0x4   :  { %16 = vsyncpa [#allocation4], 0 }
   0x5   :  { %18 = vsyncpa [#allocation4 + $0x1], 0  ;;  %s6667_s21 = smov 0   ;;  %s6669_s22 = smov 0  }
   0x6   :  { %s6671_s23 = smov 0   ;;  %s6673_s24 = smov 0  }
   0x7 LB: > { %s202_s27 = sshll.u32 %s9207_s2, 4  ;;  %s6691_s28 = sadd.s32 4294967295, %s6624_s24   ;;  %s6624_s24 = sphi %s6673_s24, %s9376_s24   ;;  %s6620_s23 = sphi %s6671_s23, %s9375_s23   ;;  %s6616_s22 = sphi %s6669_s22, %s9374_s22   ;;  %s6612_s21 = sphi %s6667_s21, %s9373_s21   ;;  %s203_s27 = int_to_ptr.hbm [resolvable:$true] %s202_s27 }
   0x8   : > { %p5497_p0 = scmp.ge.s32.totalorder %s6624_s24, 1  ;;  %p71_p1 = scmp.eq.s32.totalorder %s6691_s28, 0 }
   0x9   : > { %p191_p2 = scmp.lt.s32.totalorder %s6624_s24, 3  ;;  %s6626_s30 = smov [#allocation5]  }
   0xa   : > { %s204_s7 = sshll.u32 %s6626_s30, 4  ;;  %s230_s10 = sshll.u32 %s9209_s4, 4  ;;  %s205_s7 = int_to_ptr.vmem [resolvable:$true] %s204_s7  ;;  %s231_s10 = int_to_ptr.hbm [resolvable:$true] %s230_s10 }
   0xb   : > { %p6696_p3 = pnand %p5497_p0, %p191_p2  ;;  %s216_s14 = sshll.u32 %s9208_s3, 4  ;;  %s217_s14 = int_to_ptr.hbm [resolvable:$true] %s216_s14 }
   0xc   : > { %s6627_s15 = smov [#allocation8]   ;;  %s6628_s17 = smov 256  }
   0xd   : > { %p6331_p4 = pneg %p6696_p3  ;;  %s232_s16 = sshll.u32 %s6627_s15, 4  ;;  %s233_s16 = int_to_ptr.vmem [resolvable:$true] %s232_s16 }
   0xe   : > { %s6629_s18 = smov 16   ;;  %s244_s25 = sshll.u32 %s9210_s5, 4  ;;  %s245_s25 = int_to_ptr.hbm [resolvable:$true] %s244_s25 }
   0xf   : > { %p6708_p6 = pnand %p6331_p4, %p71_p1  ;;  %s6630_s26 = smov [#allocation7]  }
  0x10   : > { %s218_s30 = sshll.u32 %s6630_s26, 4  ;;  %s5496_s8 = sadd.s32 4294967294, %s6624_s24   ;;  %s219_s30 = int_to_ptr.vmem [resolvable:$true] %s218_s30 }
  0x11   : > { %6334 = dma.hbm_to_vmem [thread:$0]  (!%p6708_p6), %s203_s27, 512, %s205_s7, [#allocation6], %s6628_s17, %s6628_s17, %s6629_s18  }
  0x12   : > { %6340 = dma.hbm_to_vmem [thread:$0]  (!%p6708_p6), %s231_s10, 32768, %s233_s16, [#allocation9], %s6628_s17, %s6628_s17, %s6629_s18  }
  0x13   : > { %6337 = dma.hbm_to_vmem [thread:$0]  (!%p6708_p6), %s217_s14, 4096, %s219_s30, [#allocation6], %s6628_s17, %s6628_s17, %s6629_s18  }
  0x14   : > { %s6631_s27 = smov [#allocation10]   ;;  %s6728_s9 = sadd.s32 1, %s6624_s24  }
  0x15   : > { %s246_s7 = sshll.u32 %s6631_s27, 4  ;;  %s54_s10 = ssub.s32 %s6624_s24, %s6728_s9  ;;  %s247_s7 = int_to_ptr.vmem [resolvable:$true] %s246_s7 }
  0x16   : > { %6343 = dma.hbm_to_vmem [thread:$0]  (!%p6708_p6), %s245_s25, 81920, %s247_s7, [#allocation9], %s6628_s17, %s6628_s17, %s6629_s18  }
  0x17   : > { %s57_s12 = sadd.s32 1, %s6620_s23  ;;  %p55_p7 = scmp.eq.s32.totalorder %s54_s10, 0 }
  0x18   : > { %p64_p8 = scmp.ne.s32.totalorder %s6620_s23, %s6616_s22  ;;  %p65_p9 = scmp.eq.s32.totalorder %s6624_s24, 0 }
  0x19   : > { %p70_p10 = scmp.ne.s32.totalorder %s6616_s22, %s6612_s21  ;;  %p178_p13 = scmp.eq.s32.totalorder %s6691_s28, 1 }
  0x1a   : > { %s6739_s13 = scalar_select %p55_p7, %s6620_s23, %s57_s12  }
  0x1b   : > { %p6741_p11 = por %p65_p9, %p64_p8  ;;  %p6747_p12 = por %p71_p1, %p70_p10 }
  0x1c   : > { %p184_p0 = scmp.eq.s32.totalorder %s5496_s8, 1  ;;  %p6356_p2 = scmp.lt.s32.totalorder %s6624_s24, 2 }
  0x1d   : > { %s268_s15 = sand.u32 1, %s6620_s23   ;;  %p6754_p4 = por %p178_p13, %p64_p8 }
  0x1e   : > { %p6758_p6 = por %p184_p0, %p70_p10  ;;  %s274_s20 = scalar_lea.hbm %s9206_s1, %s6624_s24 }
  0x1f   : > { %s271_s25 = scalar_lea.vmem [#allocation2], %s268_s15  ;;  %s276_s30 = sshll.u32 %s274_s20, 4  ;;  %s277_s30 = int_to_ptr.hbm [resolvable:$true] %s276_s30 }
  0x20   : > { %s278_s26 = sshll.u32 %s271_s25, 4  ;;  %p6768_p7 = pnand %p6356_p2, %p6741_p11  ;;  %s279_s26 = int_to_ptr.vmem [resolvable:$true] %s278_s26 }
  0x21   : > { %s269_s7 = scalar_lea.sflag [#allocation3], %s268_s15  ;;  %s6520_s8 = sshra.s32 %s277_s30, 4  ;;  %s6521_s8 = int_to_ptr.hbm [resolvable:$true] %s6520_s8 }
  0x22   : > { %s6522_s10 = scalar_lea.hbm %s6521_s8, 1  ;;  %p6524_p9 = pneg %p6768_p7 }
  0x23   : > { %p6523_p8 = scmp.ne.s32.totalorder %s6521_s8, %s6522_s10  ;;  %s6527_s19 = scalar_lea.hbm %s9206_s1, 2 }
  0x24   : > { %p6528_p11 = scmp.lt.s32.totalorder %s6521_s8, %s9206_s1  ;;  %p6529_p0 = scmp.lt.s32.totalorder %s6527_s19, %s6522_s10 }
  0x25   : > { %p6525_p10 = pnand %p6524_p9, %p6523_p8 }
  0x26   : > { %p6530_p2 = por %p6529_p0, %p6528_p11 }
  0x27   : > { %p6526_p13 = pneg %p6525_p10 }
  0x29   : > { %p6531_p5 = pnand %p6530_p2, %p6526_p13 }
  0x2b   : > { %6534 = shalt.err (!%p6531_p5)
}
  0x2c   : > { %6347 = dma.hbm_to_vmem [thread:$0]  (!%p6768_p7), %s277_s30, 16, %s279_s26, %s269_s7  }
  0x2d   : > { %287 = sbr.rel (%p6696_p3) target bundleno = 1451 (0x5ab), region = 44 }
  0x32   : > { %s6785_s15 = sand.u32 1, %s6616_s22  }
  0x33   : > { %s290_s25 = scalar_lea.sflag [#allocation3], %s6785_s15  ;;  %s292_s12 = scalar_lea.vmem [#allocation2], %s6785_s15 }
  0x34   : > { %6595 = dma.done.wait (%p6747_p12), %s290_s25, 16  }
  0x35   : > { %6597 = vsyncadd (%p6747_p12), %s290_s25, 4294967280 }
  0x36   : > { %6599 = dma.done.wait (%p71_p1), [#allocation6], 4608  }
  0x37   : > { %6601 = vsyncadd (%p71_p1), [#allocation6], 4294962688 }
  0x38   : > { %6603 = dma.done.wait (%p71_p1), [#allocation9], 114688  }
  0x39   : > { %6605 = vsyncadd (%p71_p1), [#allocation9], 4294852608  ;;  %p345_p3 = scmp.lt.s32.totalorder %s6691_s28, 1  ;;  %v2322_v0 = vld [vmem:[#allocation7 + $0xf0] sm:$0xff]  ;;  %v2320_v1 = vld [vmem:[#allocation7 + $0xe0] sm:$0xff]  ;;  %vm990_vm0 = vcmask 130048   ;;  %s5380_s10 = scalar_lea.hbm %s9211_s6, %s6691_s28 }
  0x3a   : > { %v2323_v2 = vld [vmem:[#allocation7 + $0xf8] sm:$0xff]  ;;  %2329 = vmatpush.msra.mxu0 %v2322_v0  ;;  %v2321_v9 = vld [vmem:[#allocation7 + $0xe8] sm:$0xff]  ;;  %v2318_v10 = vld [vmem:[#allocation7 + $0xd0] sm:$0xff]  ;;  %vm3824_vm1 = vcmask 130112   ;;  %vm3828_vm2 = vcmask 195712   ;;  %vm3832_vm3 = vcmask 261312  }
  0x3b   : > { %s346_s29 = scalar_select %p345_p3, %s6691_s28, 1  ;;  %2349 = vmatpush.msra.mxu1 %v2323_v2  ;;  %v2319_v14 = vld [vmem:[#allocation7 + $0xd8] sm:$0xff]  ;;  %v2316_v15 = vld [vmem:[#allocation7 + $0xc0] sm:$0xff]  ;;  %v2317_v16 = vld [vmem:[#allocation7 + $0xc8] sm:$0xff]  ;;  %vm3836_vm4 = vcmask 326912   ;;  %vm3840_vm5 = vcmask 392512  }
  0x3c   : > { %2330 = vmatpush.msra.mxu0 %v2320_v1  ;;  %v2314_v19 = vld [vmem:[#allocation7 + $0xb0] sm:$0xff]  ;;  %v2315_v21 = vld [vmem:[#allocation7 + $0xb8] sm:$0xff]  ;;  %v2312_v22 = vld [vmem:[#allocation7 + $0xa0] sm:$0xff]  ;;  %vm3844_vm6 = vcmask 458112   ;;  %vm3848_vm7 = vcmask 523712   ;;  %vm3852_vm8 = vcmask 589312  }
  0x3d   : > { %s6310_s26 = smul.u32 1280, %s346_s29  ;;  %2350 = vmatpush.msra.mxu1 %v2321_v9  ;;  %v2310_v26 = vld [vmem:[#allocation7 + $0x90] sm:$0xff]  ;;  %v2313_v28 = vld [vmem:[#allocation7 + $0xa8] sm:$0xff]  ;;  %v2308_v30 = vld [vmem:[#allocation7 + $0x80] sm:$0xff]  ;;  %vm3856_vm9 = vcmask 654912   ;;  %vm3860_vm10 = vcmask 720512  }
  0x3e   : > { %2331 = vmatpush.msra.mxu0 %v2318_v10  ;;  %v2311_v31 = vld [vmem:[#allocation7 + $0x98] sm:$0xff]  ;;  %v2306_v33 = vld [vmem:[#allocation7 + $0x70] sm:$0xff]  ;;  %v2309_v36 = vld [vmem:[#allocation7 + $0x88] sm:$0xff]  ;;  %vm3864_vm11 = vcmask 786112   ;;  %vm3868_vm12 = vcmask 851712   ;;  %vm3872_vm13 = vcmask 917312  }
  0x3f   : > { %s6806_s27 = scalar_lea.vmem %s9205_s0, %s6310_s26  ;;  %2351 = vmatpush.msra.mxu1 %v2319_v14  ;;  %v2304_v37 = vld [vmem:[#allocation7 + $0x60] sm:$0xff]  ;;  %v2307_v38 = vld [vmem:[#allocation7 + $0x78] sm:$0xff]  ;;  %v2302_v42 = vld [vmem:[#allocation7 + $0x50] sm:$0xff]  ;;  %vm3876_vm14 = vcmask 982912   ;;  %vm3880_vm15 = vcmask 1048512   ;;  %s344_s18 = scalar_lea.vmem [#allocation11], %s6785_s15 }
  0x40   : > { %v6152_v3 = vld [vmem:[%s6806_s27 + $0x10] sm:$0xff]   ;;  %v6151_v4 = vld [vmem:[%s6806_s27 + $0x8] sm:$0xff]   ;;  %v5512_v5 = vld [vmem:[%s6806_s27] sm:$0xff]   ;;  %2332 = vmatpush.msra.mxu0 %v2316_v15  ;;  %s5382_s19 = sshll.u32 %s344_s18, 4  ;;  %s5384_s20 = sshll.u32 %s5380_s10, 4  ;;  %s5383_s19 = int_to_ptr.vmem [resolvable:$true] %s5382_s19  ;;  %s5385_s20 = int_to_ptr.hbm [resolvable:$true] %s5384_s20 }
  0x41   : > { %v5521_v6 = vunpack.c.l.bf16 %v6152_v3  ;;  %v5517_v7 = vunpack.c.l.bf16 %v6151_v4  ;;  %v5513_v8 = vunpack.c.l.bf16 %v5512_v5  ;;  %v5522_v17 = vunpack.c.h.bf16 %v6152_v3  ;;  %2352 = vmatpush.msra.mxu1 %v2317_v16  ;;  %v6154_v27 = vld [vmem:[%s6806_s27 + $0x20] sm:$0xff]   ;;  %v6153_v29 = vld [vmem:[%s6806_s27 + $0x18] sm:$0xff]   ;;  %v2305_v43 = vld [vmem:[#allocation7 + $0x68] sm:$0xff]  ;;  %s5372_s14 = scalar_lea.sflag [#allocation4], %s6785_s15  ;;  %s6564_s25 = sshra.s32 %s5385_s20, 4  ;;  %s6565_s25 = int_to_ptr.hbm [resolvable:$true] %s6564_s25 }
  0x42   : > { %v5518_v18 = vunpack.c.h.bf16 %v6151_v4  ;;  %v5514_v20 = vunpack.c.h.bf16 %v5512_v5  ;;  %2333 = vmatpush.msra.mxu0 %v2314_v19  ;;  %v5529_v32 = vunpack.c.l.bf16 %v6154_v27  ;;  %v5526_v34 = vunpack.c.h.bf16 %v6153_v29  ;;  %v6155_v44 = vld [vmem:[%s6806_s27 + $0x28] sm:$0xff]   ;;  %v2303_v46 = vld [vmem:[#allocation7 + $0x58] sm:$0xff]  ;;  %v2298_v49 = vld [vmem:[#allocation7 + $0x30] sm:$0xff]  ;;  %s6570_s26 = scalar_lea.hbm %s9211_s6, 2  ;;  %p6571_p7 = scmp.lt.s32.totalorder %s6565_s25, %s9211_s6 }
  0x43   : > { %v1003_v11 = vsel %vm990_vm0, %v5521_v6, 0.0  ;;  %v997_v12 = vsel %vm990_vm0, %v5517_v7, 0.0  ;;  %v991_v13 = vsel %vm990_vm0, %v5513_v8, 0.0  ;;  %v1006_v23 = vsel %vm990_vm0, %v5522_v17, 0.0  ;;  %2353 = vmatpush.msra.mxu1 %v2315_v21  ;;  %v2300_v45 = vld [vmem:[#allocation7 + $0x40] sm:$0xff]  ;;  %v2301_v50 = vld [vmem:[#allocation7 + $0x48] sm:$0xff] }
  0x44   : > { %1004 = vadd.xlane.f32.xlu2 %v1003_v11  ;;  %998 = vadd.xlane.f32.xlu1 %v997_v12  ;;  %v1000_v24 = vsel %vm990_vm0, %v5518_v18, 0.0  ;;  %v994_v25 = vsel %vm990_vm0, %v5514_v20, 0.0  ;;  %v5525_v35 = vunpack.c.l.bf16 %v6153_v29  ;;  %v1015_v39 = vsel %vm990_vm0, %v5529_v32, 0.0  ;;  %v2296_v52 = vld [vmem:[#allocation7 + $0x20] sm:$0xff]  ;;  %v2299_v53 = vld [vmem:[#allocation7 + $0x38] sm:$0xff]  ;;  %v2294_v57 = vld [vmem:[#allocation7 + $0x10] sm:$0xff] }
  0x45   : > { %992 = vadd.xlane.f32.xlu0 %v991_v13  ;;  %2334 = vmatpush.msra.mxu0 %v2312_v22  ;;  %v1012_v40 = vsel %vm990_vm0, %v5526_v34, 0.0  ;;  %v5534_v47 = vunpack.c.h.bf16 %v6155_v44  ;;  %v5533_v48 = vunpack.c.l.bf16 %v6155_v44  ;;  %v5530_v51 = vunpack.c.h.bf16 %v6154_v27  ;;  %v6157_v58 = vld [vmem:[%s6806_s27 + $0x38] sm:$0xff]   ;;  %v6156_v59 = vld [vmem:[%s6806_s27 + $0x30] sm:$0xff]   ;;  %v2292_v61 = vld [vmem:[#allocation7] sm:$0xff] }
  0x46   : > { %2354 = vmatpush.msra.mxu1 %v2313_v28  ;;  %v1009_v41 = vsel %vm990_vm0, %v5525_v35, 0.0  ;;  %v2297_v60 = vld [vmem:[#allocation7 + $0x28] sm:$0xff]  ;;  %v2295_v62 = vld [vmem:[#allocation7 + $0x18] sm:$0xff]  ;;  %v5541_v0 = vunpack.c.l.bf16 %v6157_v58  ;;  %v5538_v1 = vunpack.c.h.bf16 %v6156_v59  ;;  %v5537_v2 = vunpack.c.l.bf16 %v6156_v59 }
  0x47   : > { %2335 = vmatpush.msra.mxu0 %v2310_v26  ;;  %v1024_v54 = vsel %vm990_vm0, %v5534_v47, 0.0  ;;  %v1021_v55 = vsel %vm990_vm0, %v5533_v48, 0.0  ;;  %v1018_v56 = vsel %vm990_vm0, %v5530_v51, 0.0  ;;  %v2271_v63 = vld [vmem:[%s292_s12] sm:$0x1]  ;;  %v2293_v3 = vld [vmem:[#allocation7 + $0x8] sm:$0xff]  ;;  %v5542_v10 = vunpack.c.h.bf16 %v6157_v58 }
  0x48   : > { %2355 = vmatpush.msra.mxu1 %v2311_v31  ;;  %v1033_v4 = vsel %vm990_vm0, %v5541_v0, 0.0  ;;  %v1030_v5 = vsel %vm990_vm0, %v5538_v1, 0.0  ;;  %v1027_v6 = vsel %vm990_vm0, %v5537_v2, 0.0  ;;  %v6158_v7 = vld [vmem:[%s6806_s27 + $0x40] sm:$0xff]   ;;  %v6160_v14 = vld [vmem:[%s6806_s27 + $0x50] sm:$0xff]   ;;  %v6159_v15 = vld [vmem:[%s6806_s27 + $0x48] sm:$0xff]  }
  0x49   : > { %2336 = vmatpush.msra.mxu0 %v2308_v30  ;;  %v5546_v8 = vunpack.c.h.bf16 %v6158_v7  ;;  %v5545_v9 = vunpack.c.l.bf16 %v6158_v7  ;;  %v1036_v13 = vsel %vm990_vm0, %v5542_v10, 0.0  ;;  %v5553_v16 = vunpack.c.l.bf16 %v6160_v14  ;;  %v6161_v22 = vld [vmem:[%s6806_s27 + $0x58] sm:$0xff]   ;;  %v6163_v29 = vld [vmem:[%s6806_s27 + $0x68] sm:$0xff]   ;;  %v6162_v30 = vld [vmem:[%s6806_s27 + $0x60] sm:$0xff]   ;;  %s6566_s12 = scalar_lea.hbm %s6565_s25, 1 }
  0x4a   : > { %2356 = vmatpush.msra.mxu1 %v2309_v36  ;;  %v5550_v17 = vunpack.c.h.bf16 %v6159_v15  ;;  %v5549_v18 = vunpack.c.l.bf16 %v6159_v15  ;;  %v5565_v31 = vunpack.c.l.bf16 %v6163_v29  ;;  %v5562_v32 = vunpack.c.h.bf16 %v6162_v30  ;;  %v6166_v44 = vld [vmem:[%s6806_s27 + $0x80] sm:$0xff]   ;;  %v6169_v59 = vld [vmem:[%s6806_s27 + $0x98] sm:$0xff]   ;;  %p6567_p1 = scmp.ne.s32.totalorder %s6565_s25, %s6566_s12  ;;  %p6572_p8 = scmp.lt.s32.totalorder %s6570_s26, %s6566_s12 }
  0x4b   : > { %2337 = vmatpush.msra.mxu0 %v2306_v33  ;;  %v1042_v11 = vsel %vm990_vm0, %v5546_v8, 0.0  ;;  %v1039_v12 = vsel %vm990_vm0, %v5545_v9, 0.0  ;;  %v1051_v19 = vsel %vm990_vm0, %v5553_v16, 0.0  ;;  %v5561_v33 = vunpack.c.l.bf16 %v6162_v30  ;;  %v2415_v7 = vld [vmem:[#allocation8 + $0xf0] sm:$0xff]  ;;  %v2413_v10 = vld [vmem:[#allocation8 + $0xe0] sm:$0xff] }
  0x4c   : > { %1007 = vadd.xlane.f32.xlu2 %v1006_v23  ;;  %1001 = vadd.xlane.f32.xlu1 %v1000_v24  ;;  %v1048_v20 = vsel %vm990_vm0, %v5550_v17, 0.0  ;;  %v1045_v21 = vsel %vm990_vm0, %v5549_v18, 0.0  ;;  %v5558_v23 = vunpack.c.h.bf16 %v6161_v22  ;;  %v5557_v24 = vunpack.c.l.bf16 %v6161_v22  ;;  %v2411_v15 = vld [vmem:[#allocation8 + $0xd0] sm:$0xff]  ;;  %v2445_v16 = vld [vmem:[#allocation8 + $0x1e0] sm:$0xff]  ;;  %p6568_p5 = pnand %p6567_p1, %p6754_p4  ;;  %p6573_p9 = por %p6572_p8, %p6571_p7 }
  0x4d   : > { %995 = vadd.xlane.f32.xlu0 %v994_v25  ;;  %2338 = vmatpush.msra.mxu0 %v2304_v37  ;;  %v5554_v25 = vunpack.c.h.bf16 %v6160_v14  ;;  %v1069_v34 = vsel %vm990_vm0, %v5565_v31, 0.0  ;;  %v1066_v35 = vsel %vm990_vm0, %v5562_v32, 0.0  ;;  %v1063_v36 = vsel %vm990_vm0, %v5561_v33, 0.0  ;;  %v6164_v37 = vld [vmem:[%s6806_s27 + $0x70] sm:$0xff]   ;;  %v6171_v14 = vld [vmem:[%s6806_s27 + $0xa8] sm:$0xff]   ;;  %v6173_v30 = vld [vmem:[%s6806_s27 + $0xb8] sm:$0xff]  }
  0x4e   : > { %2357 = vmatpush.msra.mxu1 %v2307_v38  ;;  %v1060_v26 = vsel %vm990_vm0, %v5558_v23, 0.0  ;;  %v1057_v27 = vsel %vm990_vm0, %v5557_v24, 0.0  ;;  %v5570_v38 = vunpack.c.h.bf16 %v6164_v37  ;;  %2454 = vmatpush.msra.mxu2 %v2415_v7  ;;  %v5598_v18 = vunpack.c.h.bf16 %v6171_v14  ;;  %v2407_v22 = vld [vmem:[#allocation8 + $0xb0] sm:$0xff]  ;;  %v2416_v23 = vld [vmem:[#allocation8 + $0xf8] sm:$0xff]  ;;  %v2441_v24 = vld [vmem:[#allocation8 + $0x1c0] sm:$0xff]  ;;  %p6569_p12 = pneg %p6568_p5 }
  0x4f   : > { %2339 = vmatpush.msra.mxu0 %v2302_v42  ;;  %v1054_v28 = vsel %vm990_vm0, %v5554_v25, 0.0  ;;  %v2439_v31 = vld [vmem:[#allocation8 + $0x1b0] sm:$0xff]  ;;  %v2448_v32 = vld [vmem:[#allocation8 + $0x1f8] sm:$0xff] }
  0x50   : > { %2358 = vmatpush.msra.mxu1 %v2305_v43  ;;  %2455 = vmatpush.msra.mxu2 %v2413_v10  ;;  %v2403_v33 = vld [vmem:[#allocation8 + $0x90] sm:$0xff]  ;;  %p6574_p10 = pnand %p6573_p9, %p6569_p12 }
  0x51   : > { %2340 = vmatpush.msra.mxu0 %v2300_v45  ;;  %v6165_v45 = vld [vmem:[%s6806_s27 + $0x78] sm:$0xff]  }
  0x52   : > { %2359 = vmatpush.msra.mxu1 %v2303_v46  ;;  %v5577_v46 = vunpack.c.l.bf16 %v6166_v44  ;;  %v5574_v47 = vunpack.c.h.bf16 %v6165_v45  ;;  %v5573_v48 = vunpack.c.l.bf16 %v6165_v45  ;;  %2456 = vmatpush.msra.mxu2 %v2411_v15  ;;  %v2444_v45 = vld [vmem:[#allocation8 + $0x1d8] sm:$0xff]  ;;  %v2427_v7 = vld [vmem:[#allocation8 + $0x150] sm:$0xff]  ;;  %v2425_v15 = vld [vmem:[#allocation8 + $0x140] sm:$0xff] }
  0x53   : > { %2341 = vmatpush.msra.mxu0 %v2298_v49  ;;  %v2391_v10 = vld [vmem:[#allocation8 + $0x30] sm:$0xff] }
  0x54   : > { %1016 = vadd.xlane.f32.xlu2 %v1015_v39  ;;  %1013 = vadd.xlane.f32.xlu1 %v1012_v40  ;;  %v5569_v39 = vunpack.c.l.bf16 %v6164_v37  ;;  %v5566_v40 = vunpack.c.h.bf16 %v6163_v29  ;;  %v1087_v49 = vsel %vm990_vm0, %v5577_v46, 0.0  ;;  %v1081_v51 = vsel %vm990_vm0, %v5573_v48, 0.0  ;;  %v2408_v48 = vld [vmem:[#allocation8 + $0xb8] sm:$0xff] }
  0x55   : > { %1010 = vadd.xlane.f32.xlu0 %v1009_v41  ;;  %2360 = vmatpush.msra.mxu1 %v2301_v50  ;;  %v1078_v41 = vsel %vm990_vm0, %v5570_v38, 0.0  ;;  %v1084_v50 = vsel %vm990_vm0, %v5574_v47, 0.0  ;;  %v5606_v37 = vunpack.c.h.bf16 %v6173_v30  ;;  %v5605_v38 = vunpack.c.l.bf16 %v6173_v30  ;;  %v2399_v47 = vld [vmem:[#allocation8 + $0x70] sm:$0xff]  ;;  %v2396_v30 = vld [vmem:[#allocation8 + $0x58] sm:$0xff] }
  0x56   : > { %2342 = vmatpush.msra.mxu0 %v2296_v52  ;;  %v1075_v42 = vsel %vm990_vm0, %v5569_v39, 0.0  ;;  %v1072_v43 = vsel %vm990_vm0, %v5566_v40, 0.0  ;;  %v6167_v52 = vld [vmem:[%s6806_s27 + $0x88] sm:$0xff]  }
  0x57   : > { %2361 = vmatpush.msra.mxu1 %v2299_v53  ;;  %v5582_v53 = vunpack.c.h.bf16 %v6167_v52  ;;  %v2401_v39 = vld [vmem:[#allocation8 + $0x80] sm:$0xff]  ;;  %v2410_v40 = vld [vmem:[#allocation8 + $0xc8] sm:$0xff] }
  0x58   : > { %2343 = vmatpush.msra.mxu0 %v2294_v57 }
  0x59   : > { %2362 = vmatpush.msra.mxu1 %v2297_v60  ;;  %v6168_v60 = vld [vmem:[%s6806_s27 + $0x90] sm:$0xff]  }
  0x5a   : > { %2344 = vmatpush.msra.mxu0 %v2292_v61  ;;  %v5589_v61 = vunpack.c.l.bf16 %v6169_v59 }
  0x5b   : > { %2363 = vmatpush.msra.mxu1 %v2295_v62  ;;  %2345 = vmatmul.f32.vlgmr.msra.gmra.mxu0 %v2271_v63  ;;  %v5586_v62 = vunpack.c.h.bf16 %v6168_v60 }
  0x5c   : > { %1025 = vadd.xlane.f32.xlu2 %v1024_v54  ;;  %1022 = vadd.xlane.f32.xlu1 %v1021_v55  ;;  %v5581_v54 = vunpack.c.l.bf16 %v6167_v52  ;;  %v5578_v55 = vunpack.c.h.bf16 %v6166_v44  ;;  %v1105_v0 = vsel %vm990_vm0, %v5589_v61, 0.0  ;;  %v2435_v44 = vld [vmem:[#allocation8 + $0x190] sm:$0xff]  ;;  %v1129_v52 = vsel %vm990_vm0, %v5605_v38, 0.0 }
  0x5d   : > { %1019 = vadd.xlane.f32.xlu0 %v1018_v56  ;;  %2364 = vmatpush.msra.mxu1 %v2293_v3  ;;  %v1096_v56 = vsel %vm990_vm0, %v5582_v53, 0.0  ;;  %v1102_v1 = vsel %vm990_vm0, %v5586_v62, 0.0  ;;  %v6170_v3 = vld [vmem:[%s6806_s27 + $0xa0] sm:$0xff]   ;;  %v6177_v38 = vld [vmem:[%s6806_s27 + $0xd8] sm:$0xff]  }
  0x5e   : > { %2365 = vmatmul.f32.vlgmr.msra.gmra.mxu1 %v2271_v63  ;;  %v1093_v57 = vsel %vm990_vm0, %v5581_v54, 0.0  ;;  %v1090_v58 = vsel %vm990_vm0, %v5578_v55, 0.0  ;;  %v5585_v63 = vunpack.c.l.bf16 %v6168_v60  ;;  %2494 = vmatpush.msrb.mxu0 %v2416_v23  ;;  %v6893_v54 = vld [vmem:[%s6806_s27 + $0xc8] sm:$0xff]   ;;  %v6174_v55 = vld [vmem:[%s6806_s27 + $0xc0] sm:$0xff]   ;;  %v2395_v60 = vld [vmem:[#allocation8 + $0x50] sm:$0xff] }
  0x5f   : > { %2514 = vmatpush.msrb.mxu1 %v2448_v32  ;;  %v5613_v61 = vunpack.c.l.bf16 %v6893_v54  ;;  %v5610_v62 = vunpack.c.h.bf16 %v6174_v55  ;;  %v2432_v23 = vld [vmem:[#allocation8 + $0x178] sm:$0xff]  ;;  %v2385_v32 = vld [vmem:[#allocation8] sm:$0xff] }
  0x60   : > { %v1099_v2 = vsel %vm990_vm0, %v5585_v63, 0.0  ;;  %v2429_v63 = vld [vmem:[#allocation8 + $0x160] sm:$0xff] }
  0x64   : > { %1034 = vadd.xlane.f32.xlu2 %v1033_v4  ;;  %1031 = vadd.xlane.f32.xlu1 %v1030_v5  ;;  %v5594_v4 = vunpack.c.h.bf16 %v6170_v3  ;;  %v5593_v5 = vunpack.c.l.bf16 %v6170_v3  ;;  %v5609_v3 = vunpack.c.l.bf16 %v6174_v55  ;;  %v2388_v55 = vld [vmem:[#allocation8 + $0x18] sm:$0xff] }
  0x65   : > { %1028 = vadd.xlane.f32.xlu0 %v1027_v6  ;;  %v5590_v6 = vunpack.c.h.bf16 %v6169_v59  ;;  %v2440_v59 = vld [vmem:[#allocation8 + $0x1b8] sm:$0xff] }
  0x66   : > { %v1114_v8 = vsel %vm990_vm0, %v5594_v4, 0.0  ;;  %v1111_v9 = vsel %vm990_vm0, %v5593_v5, 0.0  ;;  %v2438_v4 = vld [vmem:[#allocation8 + $0x1a8] sm:$0xff]  ;;  %v2393_v5 = vld [vmem:[#allocation8 + $0x40] sm:$0xff] }
  0x6c   : > { %1043 = vadd.xlane.f32.xlu2 %v1042_v11  ;;  %1040 = vadd.xlane.f32.xlu1 %v1039_v12  ;;  %v2447_v11 = vld [vmem:[#allocation8 + $0x1f0] sm:$0xff]  ;;  %v1108_v12 = vsel %vm990_vm0, %v5590_v6, 0.0 }
  0x6d   : > { %1037 = vadd.xlane.f32.xlu0 %v1036_v13  ;;  %v6874_v13 = vld [vmem:[%s6806_s27 + $0xb0] sm:$0xff]   ;;  %2474 = vmatpush.msra.mxu3 %v2447_v11  ;;  %v1141_v11 = vsel %vm990_vm0, %v5613_v61, 0.0 }
  0x6e   : > { %v5601_v17 = vunpack.c.l.bf16 %v6874_v13  ;;  %v2386_v61 = vld [vmem:[#allocation8 + $0x8] sm:$0xff] }
  0x6f   : > { %2475 = vmatpush.msra.mxu3 %v2445_v16  ;;  %v2400_v16 = vld [vmem:[#allocation8 + $0x78] sm:$0xff] }
  0x70   : > { %v1123_v25 = vsel %vm990_vm0, %v5601_v17, 0.0  ;;  %v2434_v17 = vld [vmem:[#allocation8 + $0x188] sm:$0xff] }
  0x74   : > { %1052 = vadd.xlane.f32.xlu2 %v1051_v19  ;;  %1049 = vadd.xlane.f32.xlu1 %v1048_v20  ;;  %v2409_v19 = vld [vmem:[#allocation8 + $0xc0] sm:$0xff]  ;;  %v2443_v20 = vld [vmem:[#allocation8 + $0x1d0] sm:$0xff] }
  0x75   : > { %1046 = vadd.xlane.f32.xlu0 %v1045_v21  ;;  %v5597_v21 = vunpack.c.l.bf16 %v6171_v14  ;;  %2457 = vmatpush.msra.mxu2 %v2409_v19  ;;  %v6176_v14 = vld [vmem:[%s6806_s27 + $0xd0] sm:$0xff]  }
  0x76   : > { %2476 = vmatpush.msra.mxu3 %v2443_v20  ;;  %v2423_v19 = vld [vmem:[#allocation8 + $0x130] sm:$0xff]  ;;  %v5618_v20 = vunpack.c.h.bf16 %v6176_v14 }
  0x77   : > { %2458 = vmatpush.msra.mxu2 %v2407_v22  ;;  %v1117_v29 = vsel %vm990_vm0, %v5597_v21, 0.0  ;;  %v5617_v21 = vunpack.c.l.bf16 %v6176_v14  ;;  %v2398_v22 = vld [vmem:[#allocation8 + $0x68] sm:$0xff] }
  0x78   : > { %2477 = vmatpush.msra.mxu3 %v2441_v24 }
  0x7a   : > { %2478 = vmatpush.msra.mxu3 %v2439_v31  ;;  %v2430_v31 = vld [vmem:[#allocation8 + $0x168] sm:$0xff] }
  0x7c   : > { %1061 = vadd.xlane.f32.xlu2 %v1060_v26  ;;  %1058 = vadd.xlane.f32.xlu1 %v1057_v27  ;;  %v1120_v26 = vsel %vm990_vm0, %v5598_v18, 0.0  ;;  %v2405_v27 = vld [vmem:[#allocation8 + $0xa0] sm:$0xff] }
  0x7d   : > { %1055 = vadd.xlane.f32.xlu0 %v1054_v28  ;;  %v2414_v28 = vld [vmem:[#allocation8 + $0xe8] sm:$0xff]  ;;  %2459 = vmatpush.msra.mxu2 %v2405_v27  ;;  %v2389_v18 = vld [vmem:[#allocation8 + $0x20] sm:$0xff] }
  0x7e   : > { %2495 = vmatpush.msrb.mxu0 %v2414_v28  ;;  %v2421_v27 = vld [vmem:[#allocation8 + $0x120] sm:$0xff] }
  0x7f   : > { %2460 = vmatpush.msra.mxu2 %v2403_v33  ;;  %v2419_v33 = vld [vmem:[#allocation8 + $0x110] sm:$0xff] }
  0x81   : > { %2461 = vmatpush.msra.mxu2 %v2401_v39  ;;  %v2394_v39 = vld [vmem:[#allocation8 + $0x48] sm:$0xff] }
  0x83   : > { %2462 = vmatpush.msra.mxu2 %v2399_v47  ;;  %v5622_v47 = vunpack.c.h.bf16 %v6177_v38 }
  0x84   : > { %1070 = vadd.xlane.f32.xlu2 %v1069_v34  ;;  %1067 = vadd.xlane.f32.xlu1 %v1066_v35  ;;  %v2412_v34 = vld [vmem:[#allocation8 + $0xd8] sm:$0xff]  ;;  %v2437_v35 = vld [vmem:[#allocation8 + $0x1a0] sm:$0xff] }
  0x85   : > { %1064 = vadd.xlane.f32.xlu0 %v1063_v36  ;;  %v2446_v36 = vld [vmem:[#allocation8 + $0x1e8] sm:$0xff]  ;;  %2496 = vmatpush.msrb.mxu0 %v2412_v34  ;;  %v1150_v34 = vsel %vm990_vm0, %v5618_v20, 0.0 }
  0x86   : > { %2479 = vmatpush.msra.mxu3 %v2437_v35  ;;  %2515 = vmatpush.msrb.mxu1 %v2446_v36  ;;  %v1147_v35 = vsel %vm990_vm0, %v5617_v21, 0.0 }
  0x87   : > { %2497 = vmatpush.msrb.mxu0 %v2410_v40  ;;  %v2428_v40 = vld [vmem:[#allocation8 + $0x158] sm:$0xff] }
  0x88   : > { %2480 = vmatpush.msra.mxu3 %v2435_v44  ;;  %2516 = vmatpush.msrb.mxu1 %v2444_v45  ;;  %v2392_v44 = vld [vmem:[#allocation8 + $0x38] sm:$0xff] }
  0x89   : > { %2498 = vmatpush.msrb.mxu0 %v2408_v48  ;;  %v2426_v48 = vld [vmem:[#allocation8 + $0x148] sm:$0xff] }
  0x8c   : > { %1079 = vadd.xlane.f32.xlu2 %v1078_v41  ;;  %1076 = vadd.xlane.f32.xlu1 %v1075_v42 }
  0x8d   : > { %1073 = vadd.xlane.f32.xlu0 %v1072_v43  ;;  %v5602_v43 = vunpack.c.h.bf16 %v6874_v13  ;;  %v1135_v13 = vsel %vm990_vm0, %v5609_v3, 0.0 }
  0x8f   : > { %v1126_v53 = vsel %vm990_vm0, %v5602_v43, 0.0  ;;  %v2417_v43 = vld [vmem:[#allocation8 + $0x100] sm:$0xff] }
  0x94   : > { %1088 = vadd.xlane.f32.xlu2 %v1087_v49  ;;  %1085 = vadd.xlane.f32.xlu1 %v1084_v50  ;;  %v2433_v49 = vld [vmem:[#allocation8 + $0x180] sm:$0xff]  ;;  %v2442_v50 = vld [vmem:[#allocation8 + $0x1c8] sm:$0xff] }
  0x95   : > { %1082 = vadd.xlane.f32.xlu0 %v1081_v51  ;;  %v1132_v51 = vsel %vm990_vm0, %v5606_v37, 0.0  ;;  %2481 = vmatpush.msra.mxu3 %v2433_v49  ;;  %v6178_v37 = vld [vmem:[%s6806_s27 + $0xe0] sm:$0xff]   ;;  %v5621_v49 = vunpack.c.l.bf16 %v6177_v38 }
  0x96   : > { %2517 = vmatpush.msrb.mxu1 %v2442_v50  ;;  %v5625_v45 = vunpack.c.l.bf16 %v6178_v37  ;;  %v2390_v50 = vld [vmem:[#allocation8 + $0x28] sm:$0xff]  ;;  %v5626_v3 = vunpack.c.h.bf16 %v6178_v37 }
  0x98   : > { %2518 = vmatpush.msrb.mxu1 %v2440_v59  ;;  %v6179_v59 = vld [vmem:[%s6806_s27 + $0xe8] sm:$0xff]  }
  0x9a   : > { %2519 = vmatpush.msrb.mxu1 %v2438_v4  ;;  %v2418_v4 = vld [vmem:[#allocation8 + $0x108] sm:$0xff] }
  0x9c   : > { %1097 = vadd.xlane.f32.xlu2 %v1096_v56  ;;  %1094 = vadd.xlane.f32.xlu1 %v1093_v57  ;;  %v2397_v56 = vld [vmem:[#allocation8 + $0x60] sm:$0xff]  ;;  %v2431_v57 = vld [vmem:[#allocation8 + $0x170] sm:$0xff] }
  0x9d   : > { %1091 = vadd.xlane.f32.xlu0 %v1090_v58  ;;  %v2406_v58 = vld [vmem:[#allocation8 + $0xa8] sm:$0xff]  ;;  %2463 = vmatpush.msra.mxu2 %v2397_v56  ;;  %v1159_v56 = vsel %vm990_vm0, %v5625_v45, 0.0 }
  0x9e   : > { %2482 = vmatpush.msra.mxu3 %v2431_v57  ;;  %2499 = vmatpush.msrb.mxu0 %v2406_v58  ;;  %v1156_v57 = vsel %vm990_vm0, %v5622_v47, 0.0  ;;  %v1153_v58 = vsel %vm990_vm0, %v5621_v49, 0.0 }
  0x9f   : > { %2464 = vmatpush.msra.mxu2 %v2395_v60  ;;  %v2422_v60 = vld [vmem:[#allocation8 + $0x128] sm:$0xff] }
  0xa0   : > { %2483 = vmatpush.msra.mxu3 %v2429_v63  ;;  %v5630_v63 = vunpack.c.h.bf16 %v6179_v59 }
  0xa1   : > { %2465 = vmatpush.msra.mxu2 %v2393_v5 }
  0xa2   : > { %2484 = vmatpush.msra.mxu3 %v2427_v7 }
  0xa3   : > { %2466 = vmatpush.msra.mxu2 %v2391_v10  ;;  %v1168_v10 = vsel %vm990_vm0, %v5630_v63, 0.0 }
  0xa4   : > { %1106 = vadd.xlane.f32.xlu2 %v1105_v0  ;;  %1103 = vadd.xlane.f32.xlu1 %v1102_v1  ;;  %v2404_v0 = vld [vmem:[#allocation8 + $0x98] sm:$0xff] }
  0xa5   : > { %1100 = vadd.xlane.f32.xlu0 %v1099_v2  ;;  %2500 = vmatpush.msrb.mxu0 %v2404_v0  ;;  %v5629_v0 = vunpack.c.l.bf16 %v6179_v59 }
  0xa6   : > { %2485 = vmatpush.msra.mxu3 %v2425_v15  ;;  %2467 = vmatpush.msra.mxu2 %v2389_v18  ;;  %v6181_v15 = vld [vmem:[%s6806_s27 + $0xf8] sm:$0xff]  }
  0xa7   : > { %v5637_v21 = vunpack.c.l.bf16 %v6181_v15 }
  0xa8   : > { %2486 = vmatpush.msra.mxu3 %v2423_v19 }
  0xaa   : > { %2487 = vmatpush.msra.mxu3 %v2421_v27 }
  0xac   : > { %1115 = vadd.xlane.f32.xlu2 %v1114_v8  ;;  %1112 = vadd.xlane.f32.xlu1 %v1111_v9  ;;  %v2402_v8 = vld [vmem:[#allocation8 + $0x88] sm:$0xff]  ;;  %v2436_v9 = vld [vmem:[#allocation8 + $0x198] sm:$0xff] }
  0xad   : > { %1109 = vadd.xlane.f32.xlu0 %v1108_v12  ;;  %v1138_v12 = vsel %vm990_vm0, %v5610_v62, 0.0  ;;  %2501 = vmatpush.msrb.mxu0 %v2402_v8  ;;  %v2420_v62 = vld [vmem:[#allocation8 + $0x118] sm:$0xff]  ;;  %v2272_v8 = vld [vmem:[#allocation5] ss:$8 sm:$0x3] }
  0xae   : > { %2520 = vmatpush.msrb.mxu1 %v2436_v9  ;;  %2488 = vmatpush.msra.mxu3 %v2419_v33  ;;  %v2325_v14 = vperm.slane %v2272_v8, 0  ;;  %v2326_v20 = vperm.slane %v2272_v8, 1 }
  0xaf   : > { %2502 = vmatpush.msrb.mxu0 %v2400_v16  ;;  %v6180_v16 = vld [vmem:[%s6806_s27 + $0xf0] sm:$0xff]  }
  0xb0   : > { %2521 = vmatpush.msrb.mxu1 %v2434_v17  ;;  %2489 = vmatpush.msra.mxu3 %v2417_v43  ;;  %v2276_v17 = vld [vmem:[#allocation5 + $0x2] ss:$8 sm:$0x3] }
  0xb1   : > { %2503 = vmatpush.msrb.mxu0 %v2398_v22  ;;  %v5634_v22 = vunpack.c.h.bf16 %v6180_v16  ;;  %v2378_v38 = vperm.slane %v2276_v17, 1  ;;  %v6182_v43 = vld [vmem:[%s6806_s27 + $0x100] sm:$0xff]  }
  0xb2   : > { %2522 = vmatpush.msrb.mxu1 %v2432_v23  ;;  %v5641_v49 = vunpack.c.l.bf16 %v6182_v43 }
  0xb3   : > { %2504 = vmatpush.msrb.mxu0 %v2396_v30  ;;  %v1174_v37 = vsel %vm990_vm0, %v5634_v22, 0.0 }
  0xb4   : > { %1124 = vadd.xlane.f32.xlu2 %v1123_v25  ;;  %1121 = vadd.xlane.f32.xlu1 %v1120_v26  ;;  %v5614_v25 = vunpack.c.h.bf16 %v6893_v54  ;;  %v2387_v26 = vld [vmem:[#allocation8 + $0x10] sm:$0xff]  ;;  %v1183_v59 = vsel %vm990_vm0, %v5641_v49, 0.0 }
  0xb5   : > { %1118 = vadd.xlane.f32.xlu0 %v1117_v29  ;;  %2468 = vmatpush.msra.mxu2 %v2387_v26  ;;  %v2377_v26 = vperm.slane %v2276_v17, 0 }
  0xb6   : > { %v1144_v36 = vsel %vm990_vm0, %v5614_v25, 0.0  ;;  %2523 = vmatpush.msrb.mxu1 %v2430_v31  ;;  %2505 = vmatpush.msrb.mxu0 %v2394_v39  ;;  %v5633_v25 = vunpack.c.l.bf16 %v6180_v16 }
  0xb7   : > { %v6882_v41 = vpop.xlane.xlu2 %1004  ;;  %v6884_v42 = vpop.xlane.xlu1 %998  ;;  %2469 = vmatpush.msra.mxu2 %v2385_v32 }
  0xb8   : > { %v6887_v46 = vpop.xlane.xlu0 %992  ;;  %2524 = vmatpush.msrb.mxu1 %v2428_v40  ;;  %2506 = vmatpush.msrb.mxu0 %v2392_v44  ;;  %v1171_v39 = vsel %vm990_vm0, %v5633_v25, 0.0  ;;  %v6187_v25 = vld [vmem:[%s6806_s27 + $0x128] sm:$0xff]  }
  0xba   : > { %2525 = vmatpush.msrb.mxu1 %v2426_v48  ;;  %2507 = vmatpush.msrb.mxu0 %v2390_v50  ;;  %v5642_v48 = vunpack.c.h.bf16 %v6182_v43  ;;  %v5638_v50 = vunpack.c.h.bf16 %v6181_v15  ;;  %v6188_v43 = vld [vmem:[%s6806_s27 + $0x130] sm:$0xff]  }
  0xbc   : > { %1133 = vadd.xlane.f32.xlu2 %v1132_v51  ;;  %1130 = vadd.xlane.f32.xlu1 %v1129_v52 }
  0xbd   : > { %1127 = vadd.xlane.f32.xlu0 %v1126_v53  ;;  %v2424_v53 = vld [vmem:[#allocation8 + $0x138] sm:$0xff]  ;;  %2508 = vmatpush.msrb.mxu0 %v2388_v55 }
  0xbe   : > { %2526 = vmatpush.msrb.mxu1 %v2424_v53 }
  0xbf   : > { %v6897_v1 = vpop.xlane.xlu2 %1007  ;;  %v6899_v2 = vpop.xlane.xlu1 %1001  ;;  %2509 = vmatpush.msrb.mxu0 %v2386_v61  ;;  %v6184_v61 = vld [vmem:[%s6806_s27 + $0x110] sm:$0xff]  }
  0xc0   : > { %v6901_v6 = vpop.xlane.xlu0 %995  ;;  %2527 = vmatpush.msrb.mxu1 %v2422_v60  ;;  %v1180_v60 = vsel %vm990_vm0, %v5638_v50, 0.0  ;;  %v5649_v63 = vunpack.c.l.bf16 %v6184_v61  ;;  %v5650_v17 = vunpack.c.h.bf16 %v6184_v61  ;;  %v6189_v61 = vld [vmem:[%s6806_s27 + $0x138] sm:$0xff]  }
  0xc2   : > { %2528 = vmatpush.msrb.mxu1 %v2420_v62  ;;  %v6183_v62 = vld [vmem:[%s6806_s27 + $0x108] sm:$0xff]  }
  0xc4   : > { %1142 = vadd.xlane.f32.xlu2 %v1141_v11  ;;  %1139 = vadd.xlane.f32.xlu1 %v1138_v12  ;;  %v1165_v11 = vsel %vm990_vm0, %v5629_v0, 0.0  ;;  %v2274_v12 = vld [vmem:[#allocation5 + $0x1] ss:$8 sm:$0x3]  ;;  %v5646_v0 = vunpack.c.h.bf16 %v6183_v62 }
  0xc5   : > { %1136 = vadd.xlane.f32.xlu0 %v1135_v13  ;;  %2529 = vmatpush.msrb.mxu1 %v2418_v4  ;;  %v1162_v13 = vsel %vm990_vm0, %v5626_v3, 0.0  ;;  %v2370_v18 = vperm.slane %v2274_v12, 0  ;;  %v2371_v27 = vperm.slane %v2274_v12, 1  ;;  %v5645_v3 = vunpack.c.l.bf16 %v6183_v62 }
  0xc6   : > { %v1192_v12 = vsel %vm990_vm0, %v5646_v0, 0.0  ;;  %v5669_v0 = vunpack.c.l.bf16 %v6189_v61 }
  0xc7   : > { %v6907_v24 = vpop.xlane.xlu2 %1016  ;;  %v6910_v28 = vpop.xlane.xlu1 %1013 }
  0xc8   : > { %v6912_v29 = vpop.xlane.xlu0 %1010 }
  0xcc   : > { %1151 = vadd.xlane.f32.xlu2 %v1150_v34  ;;  %1148 = vadd.xlane.f32.xlu1 %v1147_v35 }
  0xcd   : > { %1145 = vadd.xlane.f32.xlu0 %v1144_v36  ;;  %v1177_v36 = vsel %vm990_vm0, %v5637_v21, 0.0 }
  0xcf   : > { %v6919_v51 = vpop.xlane.xlu2 %1025  ;;  %v6921_v52 = vpop.xlane.xlu1 %1022 }
  0xd0   : > { %v6923_v54 = vpop.xlane.xlu0 %1019 }
  0xd4   : > { %1160 = vadd.xlane.f32.xlu2 %v1159_v56  ;;  %1157 = vadd.xlane.f32.xlu1 %v1156_v57 }
  0xd5   : > { %1154 = vadd.xlane.f32.xlu0 %v1153_v58  ;;  %v1186_v58 = vsel %vm990_vm0, %v5642_v48, 0.0 }
  0xd7   : > { %v6929_v5 = vpop.xlane.xlu2 %1034  ;;  %v6931_v7 = vpop.xlane.xlu1 %1031 }
  0xd8   : > { %v6933_v9 = vpop.xlane.xlu0 %1028  ;;  %v2346_v19 = vpop.f32.mrf.mxu0 }
  0xd9   : > { %v2347_v23 = vadd.f32 %v2346_v19, %v2325_v14  ;;  %v6185_v14 = vld [vmem:[%s6806_s27 + $0x118] sm:$0xff]  }
  0xda   : > { %v5654_v15 = vunpack.c.h.bf16 %v6185_v14  ;;  %v5653_v16 = vunpack.c.l.bf16 %v6185_v14 }
  0xdb   : > { %v2374_v32 = vmul.f32 %v2370_v18, %v2347_v23  ;;  %v2366_v33 = vpop.f32.mrf.mxu1  ;;  %v1198_v23 = vsel %vm990_vm0, %v5650_v17, 0.0 }
  0xdc   : > { %1169 = vadd.xlane.f32.xlu2 %v1168_v10  ;;  %1166 = vadd.xlane.f32.xlu1 %v1165_v11  ;;  %v2367_v35 = vadd.f32 %v2366_v33, %v2326_v20  ;;  %v1195_v11 = vsel %vm990_vm0, %v5649_v63, 0.0  ;;  %v1204_v21 = vsel %vm990_vm0, %v5654_v15, 0.0  ;;  %v1201_v22 = vsel %vm990_vm0, %v5653_v16, 0.0  ;;  %v6191_v16 = vld [vmem:[%s6806_s27 + $0x148] sm:$0xff]  }
  0xdd   : > { %1163 = vadd.xlane.f32.xlu0 %v1162_v13  ;;  %v2381_v40 = vadd.f32 %v2377_v26, %v2374_v32  ;;  %v1189_v13 = vsel %vm990_vm0, %v5645_v3, 0.0  ;;  %v6186_v26 = vld [vmem:[%s6806_s27 + $0x120] sm:$0xff]   ;;  %v5670_v63 = vunpack.c.h.bf16 %v6189_v61  ;;  %v1225_v15 = vsel %vm990_vm0, %v5669_v0, 0.0 }
  0xde   : > { %v2375_v44 = vmul.f32 %v2371_v27, %v2367_v35  ;;  %v5661_v27 = vunpack.c.l.bf16 %v6187_v25  ;;  %v5658_v32 = vunpack.c.h.bf16 %v6186_v26  ;;  %v5657_v33 = vunpack.c.l.bf16 %v6186_v26  ;;  %v6194_v61 = vld [vmem:[%s6806_s27 + $0x160] sm:$0xff]  }
  0xdf   : > { %v6940_v30 = vpop.xlane.xlu2 %1043  ;;  %v6942_v31 = vpop.xlane.xlu1 %1040  ;;  %v2383_v45 = vmax.f32 %v2381_v40, 0.0  ;;  %v1228_v14 = vsel %vm990_vm0, %v5670_v63, 0.0  ;;  %v5678_v17 = vunpack.c.h.bf16 %v6191_v16  ;;  %v5689_v63 = vunpack.c.l.bf16 %v6194_v61 }
  0xe0   : > { %v6944_v34 = vpop.xlane.xlu0 %1037  ;;  %v2382_v47 = vadd.f32 %v2378_v38, %v2375_v44  ;;  %v1213_v38 = vsel %vm990_vm0, %v5661_v27, 0.0  ;;  %v1207_v40 = vsel %vm990_vm0, %v5657_v33, 0.0  ;;  %v5666_v44 = vunpack.c.h.bf16 %v6188_v43 }
  0xe1   : > { %9227 = vst [vmem:[#allocation16_spill] sm:$0xff] %v6944_v34  ;;  %2470 = vmatmul.f32.vlgmr.msra.gmra.mxu2 %v2383_v45  ;;  %2510 = vmatmul.f32.vlgmr.msrb.gmra.mxu0 %v2383_v45  ;;  %v5665_v45 = vunpack.c.l.bf16 %v6188_v43  ;;  %v1240_v27 = vsel %vm990_vm0, %v5678_v17, 0.0  ;;  %v1255_v17 = vsel %vm990_vm0, %v5689_v63, 0.0  ;;  %v2580_v63 = vld [vmem:[#allocation8 + $0x2f0] sm:$0xff] }
  0xe2   : > { %v2384_v56 = vmax.f32 %v2382_v47, 0.0  ;;  %v5662_v47 = vunpack.c.h.bf16 %v6187_v25  ;;  %2619 = vmatpush.msrb.mxu2 %v2580_v63  ;;  %v2577_v63 = vld [vmem:[#allocation8 + $0x2d8] sm:$0xff] }
  0xe4   : > { %1178 = vadd.xlane.f32.xlu2 %v1177_v36  ;;  %1175 = vadd.xlane.f32.xlu1 %v1174_v37 }
  0xe5   : > { %1172 = vadd.xlane.f32.xlu0 %v1171_v39  ;;  %2490 = vmatmul.f32.vlgmr.msra.gmra.mxu3 %v2384_v56  ;;  %v1210_v39 = vsel %vm990_vm0, %v5658_v32, 0.0 }
  0xe6   : > { %2530 = vmatmul.f32.vlgmr.msrb.gmra.mxu1 %v2384_v56  ;;  %v1222_v56 = vsel %vm990_vm0, %v5666_v44, 0.0 }
  0xe7   : > { %v6950_v53 = vpop.xlane.xlu2 %1052  ;;  %v6952_v55 = vpop.xlane.xlu1 %1049 }
  0xe8   : > { %v6954_v57 = vpop.xlane.xlu0 %1046 }
  0xec   : > { %1187 = vadd.xlane.f32.xlu2 %v1186_v58  ;;  %1184 = vadd.xlane.f32.xlu1 %v1183_v59  ;;  %v1219_v58 = vsel %vm990_vm0, %v5665_v45, 0.0  ;;  %v1216_v59 = vsel %vm990_vm0, %v5662_v47, 0.0 }
  0xed   : > { %1181 = vadd.xlane.f32.xlu0 %v1180_v60  ;;  %v6190_v60 = vld [vmem:[%s6806_s27 + $0x140] sm:$0xff]  }
  0xee   : > { %v5673_v62 = vunpack.c.l.bf16 %v6190_v60 }
  0xef   : > { %v6961_v4 = vpop.xlane.xlu2 %1061  ;;  %v6963_v8 = vpop.xlane.xlu1 %1058 }
  0xf0   : > { %v6965_v10 = vpop.xlane.xlu0 %1055 }
  0xf4   : > { %1196 = vadd.xlane.f32.xlu2 %v1195_v11  ;;  %1193 = vadd.xlane.f32.xlu1 %v1192_v12 }
  0xf5   : > { %1190 = vadd.xlane.f32.xlu0 %v1189_v13  ;;  %v1231_v13 = vsel %vm990_vm0, %v5673_v62, 0.0  ;;  %v5690_v62 = vunpack.c.h.bf16 %v6194_v61 }
  0xf7   : > { %v6971_v18 = vpop.xlane.xlu2 %1070  ;;  %v6973_v19 = vpop.xlane.xlu1 %1067 }
  0xf8   : > { %v6975_v20 = vpop.xlane.xlu0 %1064 }
  0xfc   : > { %1205 = vadd.xlane.f32.xlu2 %v1204_v21  ;;  %1202 = vadd.xlane.f32.xlu1 %v1201_v22  ;;  %v5677_v21 = vunpack.c.l.bf16 %v6191_v16  ;;  %v5674_v22 = vunpack.c.h.bf16 %v6190_v60  ;;  %v1258_v16 = vsel %vm990_vm0, %v5690_v62, 0.0 }
  0xfd   : > { %1199 = vadd.xlane.f32.xlu0 %v1198_v23 }
  0xfe   : > { %v1237_v32 = vsel %vm990_vm0, %v5677_v21, 0.0  ;;  %v1234_v33 = vsel %vm990_vm0, %v5674_v22, 0.0  ;;  %v6196_v22 = vld [vmem:[%s6806_s27 + $0x170] sm:$0xff]  }
  0xff   : > { %v6982_v35 = vpop.xlane.xlu2 %1079  ;;  %v6984_v36 = vpop.xlane.xlu1 %1076 }
 0x100   : > { %9228 = vst [vmem:[#allocation17_spill] sm:$0xff] %v6982_v35  ;;  %v6986_v37 = vpop.xlane.xlu0 %1073 }
 0x101   : > { %9229 = vst [vmem:[#allocation18_spill] sm:$0xff] %v6984_v36 }
 0x104   : > { %1214 = vadd.xlane.f32.xlu2 %v1213_v38  ;;  %1211 = vadd.xlane.f32.xlu1 %v1210_v39  ;;  %v6193_v38 = vld [vmem:[%s6806_s27 + $0x158] sm:$0xff]   ;;  %v6192_v39 = vld [vmem:[%s6806_s27 + $0x150] sm:$0xff]  }
 0x105   : > { %1208 = vadd.xlane.f32.xlu0 %v1207_v40  ;;  %v5685_v40 = vunpack.c.l.bf16 %v6193_v38  ;;  %v5682_v43 = vunpack.c.h.bf16 %v6192_v39  ;;  %v5681_v44 = vunpack.c.l.bf16 %v6192_v39  ;;  %v5686_v0 = vunpack.c.h.bf16 %v6193_v38 }
 0x107   : > { %v6992_v48 = vpop.xlane.xlu2 %1088  ;;  %v6994_v49 = vpop.xlane.xlu1 %1085  ;;  %v1243_v60 = vsel %vm990_vm0, %v5681_v44, 0.0  ;;  %v1252_v21 = vsel %vm990_vm0, %v5686_v0, 0.0  ;;  %v2581_v0 = vld [vmem:[#allocation8 + $0x2f8] sm:$0xff] }
 0x108   : > { %9230 = vst [vmem:[#allocation19_spill] sm:$0xff] %v6994_v49  ;;  %v6996_v50 = vpop.xlane.xlu0 %1082  ;;  %2659 = vmatpush.msra.mxu0 %v2581_v0  ;;  %v2573_v49 = vld [vmem:[#allocation8 + $0x2b8] sm:$0xff] }
 0x109   : > { %9231 = vst [vmem:[#allocation20_spill] sm:$0xff] %v6996_v50  ;;  %v2606_v50 = vld [vmem:[#allocation8 + $0x3c0] sm:$0xff] }
 0x10c   : > { %1223 = vadd.xlane.f32.xlu2 %v1222_v56  ;;  %1220 = vadd.xlane.f32.xlu1 %v1219_v58  ;;  %v1249_v58 = vsel %vm990_vm0, %v5685_v40, 0.0 }
 0x10d   : > { %1217 = vadd.xlane.f32.xlu0 %v1216_v59  ;;  %v1246_v59 = vsel %vm990_vm0, %v5682_v43, 0.0 }
 0x10f   : > { %v7003_v3 = vpop.xlane.xlu2 %1097  ;;  %v7005_v11 = vpop.xlane.xlu1 %1094 }
 0x110   : > { %v7007_v12 = vpop.xlane.xlu0 %1091 }
 0x114   : > { %1232 = vadd.xlane.f32.xlu2 %v1231_v13  ;;  %1229 = vadd.xlane.f32.xlu1 %v1228_v14 }
 0x115   : > { %1226 = vadd.xlane.f32.xlu0 %v1225_v15 }
 0x117   : > { %v7013_v23 = vpop.xlane.xlu2 %1106  ;;  %v7015_v25 = vpop.xlane.xlu1 %1103 }
 0x118   : > { %v7017_v26 = vpop.xlane.xlu0 %1100 }
 0x11c   : > { %1241 = vadd.xlane.f32.xlu2 %v1240_v27  ;;  %1238 = vadd.xlane.f32.xlu1 %v1237_v32  ;;  %v6195_v27 = vld [vmem:[%s6806_s27 + $0x168] sm:$0xff]   ;;  %v5697_v32 = vunpack.c.l.bf16 %v6196_v22 }
 0x11d   : > { %1235 = vadd.xlane.f32.xlu0 %v1234_v33  ;;  %v5694_v33 = vunpack.c.h.bf16 %v6195_v27  ;;  %v5693_v38 = vunpack.c.l.bf16 %v6195_v27  ;;  %v2579_v27 = vld [vmem:[#allocation8 + $0x2e8] sm:$0xff] }
 0x11e   : > { %v1267_v44 = vsel %vm990_vm0, %v5697_v32, 0.0  ;;  %2660 = vmatpush.msra.mxu0 %v2579_v27  ;;  %v2608_v27 = vld [vmem:[#allocation8 + $0x3d0] sm:$0xff] }
 0x11f   : > { %v7024_v45 = vpop.xlane.xlu2 %1115  ;;  %v7026_v47 = vpop.xlane.xlu1 %1112 }
 0x120   : > { %9232 = vst [vmem:[#allocation21_spill] sm:$0xff] %v7024_v45  ;;  %v7028_v56 = vpop.xlane.xlu0 %1109  ;;  %2661 = vmatpush.msra.mxu0 %v2577_v63  ;;  %v2603_v45 = vld [vmem:[#allocation8 + $0x3a8] sm:$0xff] }
 0x121   : > { %9233 = vst [vmem:[#allocation22_spill] sm:$0xff] %v7026_v47  ;;  %v6207_v47 = vld [vmem:[%s6806_s27 + $0x1c8] sm:$0xff]  }
 0x124   : > { %1250 = vadd.xlane.f32.xlu2 %v1249_v58  ;;  %1247 = vadd.xlane.f32.xlu1 %v1246_v59  ;;  %v1264_v58 = vsel %vm990_vm0, %v5694_v33, 0.0  ;;  %v1261_v59 = vsel %vm990_vm0, %v5693_v38, 0.0  ;;  %v2613_v38 = vld [vmem:[#allocation8 + $0x3f8] sm:$0xff] }
 0x125   : > { %1244 = vadd.xlane.f32.xlu0 %v1243_v60  ;;  %v6197_v60 = vld [vmem:[%s6806_s27 + $0x178] sm:$0xff]   ;;  %2679 = vmatpush.msra.mxu1 %v2613_v38 }
 0x126   : > { %v5702_v61 = vunpack.c.h.bf16 %v6197_v60  ;;  %v5701_v62 = vunpack.c.l.bf16 %v6197_v60  ;;  %v2610_v60 = vld [vmem:[#allocation8 + $0x3e0] sm:$0xff] }
 0x127   : > { %v7034_v13 = vpop.xlane.xlu2 %1124  ;;  %v7036_v14 = vpop.xlane.xlu1 %1121 }
 0x128   : > { %9234 = vst [vmem:[#allocation23_spill] sm:$0xff] %v7034_v13  ;;  %v7038_v15 = vpop.xlane.xlu0 %1118 }
 0x129   : > { %9235 = vst [vmem:[#allocation24_spill] sm:$0xff] %v7036_v14 }
 0x12a   : > { %9236 = vst [vmem:[#allocation25_spill] sm:$0xff] %v7038_v15  ;;  %v6200_v15 = vld [vmem:[%s6806_s27 + $0x190] sm:$0xff]  }
 0x12c   : > { %1259 = vadd.xlane.f32.xlu2 %v1258_v16  ;;  %1256 = vadd.xlane.f32.xlu1 %v1255_v17  ;;  %v5698_v16 = vunpack.c.h.bf16 %v6196_v22  ;;  %v2578_v17 = vld [vmem:[#allocation8 + $0x2e0] sm:$0xff]  ;;  %v1273_v22 = vsel %vm990_vm0, %v5701_v62, 0.0 }
 0x12d   : > { %1253 = vadd.xlane.f32.xlu0 %v1252_v21  ;;  %v2612_v21 = vld [vmem:[#allocation8 + $0x3f0] sm:$0xff]  ;;  %2620 = vmatpush.msrb.mxu2 %v2578_v17  ;;  %v2574_v17 = vld [vmem:[#allocation8 + $0x2c0] sm:$0xff] }
 0x12e   : > { %2639 = vmatpush.msrb.mxu3 %v2612_v21  ;;  %v1270_v0 = vsel %vm990_vm0, %v5698_v16, 0.0  ;;  %v2611_v21 = vld [vmem:[#allocation8 + $0x3e8] sm:$0xff]  ;;  %v2572_v16 = vld [vmem:[#allocation8 + $0x2b0] sm:$0xff] }
 0x12f   : > { %v7045_v39 = vpop.xlane.xlu2 %1133  ;;  %v7047_v40 = vpop.xlane.xlu1 %1130  ;;  %2680 = vmatpush.msra.mxu1 %v2611_v21 }
 0x130   : > { %9237 = vst [vmem:[#allocation26_spill] sm:$0xff] %v7045_v39  ;;  %v7049_v43 = vpop.xlane.xlu0 %1127  ;;  %v7065_v39 = vld [vmem:[%s6806_s27 + $0x188] sm:$0xff]   ;;  %2640 = vmatpush.msrb.mxu3 %v2610_v60 }
 0x131   : > { %9238 = vst [vmem:[#allocation27_spill] sm:$0xff] %v7047_v40  ;;  %v6198_v40 = vld [vmem:[%s6806_s27 + $0x180] sm:$0xff]   ;;  %v5709_v62 = vunpack.c.l.bf16 %v7065_v39 }
 0x132   : > { %9239 = vst [vmem:[#allocation28_spill] sm:$0xff] %v7049_v43  ;;  %v2575_v43 = vld [vmem:[#allocation8 + $0x2c8] sm:$0xff]  ;;  %v5706_v38 = vunpack.c.h.bf16 %v6198_v40  ;;  %v5705_v13 = vunpack.c.l.bf16 %v6198_v40  ;;  %2641 = vmatpush.msrb.mxu3 %v2608_v27  ;;  %v2570_v60 = vld [vmem:[#allocation8 + $0x2a0] sm:$0xff]  ;;  %v2568_v27 = vld [vmem:[#allocation8 + $0x290] sm:$0xff] }
 0x133   : > { %2662 = vmatpush.msra.mxu0 %v2575_v43  ;;  %v1285_v40 = vsel %vm990_vm0, %v5709_v62, 0.0  ;;  %v5714_v62 = vunpack.c.h.bf16 %v6200_v15 }
 0x134   : > { %1268 = vadd.xlane.f32.xlu2 %v1267_v44  ;;  %1265 = vadd.xlane.f32.xlu1 %v1264_v58  ;;  %v1276_v58 = vsel %vm990_vm0, %v5702_v61, 0.0  ;;  %v2609_v61 = vld [vmem:[#allocation8 + $0x3d8] sm:$0xff]  ;;  %v1282_v43 = vsel %vm990_vm0, %v5706_v38, 0.0  ;;  %v1279_v14 = vsel %vm990_vm0, %v5705_v13, 0.0  ;;  %v5713_v38 = vunpack.c.l.bf16 %v6200_v15 }
 0x135   : > { %1262 = vadd.xlane.f32.xlu0 %v1261_v59  ;;  %v2576_v59 = vld [vmem:[#allocation8 + $0x2d0] sm:$0xff]  ;;  %2681 = vmatpush.msra.mxu1 %v2609_v61  ;;  %v2602_v61 = vld [vmem:[#allocation8 + $0x3a0] sm:$0xff]  ;;  %v5710_v13 = vunpack.c.h.bf16 %v7065_v39 }
 0x136   : > { %2621 = vmatpush.msrb.mxu2 %v2576_v59  ;;  %v2607_v59 = vld [vmem:[#allocation8 + $0x3c8] sm:$0xff]  ;;  %2642 = vmatpush.msrb.mxu3 %v2606_v50  ;;  %v2600_v50 = vld [vmem:[#allocation8 + $0x390] sm:$0xff] }
 0x137   : > { %v7055_v32 = vpop.xlane.xlu2 %1142  ;;  %v7057_v33 = vpop.xlane.xlu1 %1139  ;;  %2663 = vmatpush.msra.mxu0 %v2573_v49  ;;  %2682 = vmatpush.msra.mxu1 %v2607_v59  ;;  %v2566_v49 = vld [vmem:[#allocation8 + $0x280] sm:$0xff]  ;;  %v2567_v59 = vld [vmem:[#allocation8 + $0x288] sm:$0xff]  ;;  %v2596_v39 = vld [vmem:[#allocation8 + $0x370] sm:$0xff] }
 0x138   : > { %v7059_v44 = vpop.xlane.xlu0 %1136  ;;  %2622 = vmatpush.msrb.mxu2 %v2574_v17  ;;  %v2605_v17 = vld [vmem:[#allocation8 + $0x3b8] sm:$0xff] }
 0x139   : > { %2683 = vmatpush.msra.mxu1 %v2605_v17 }
 0x13a   : > { %2623 = vmatpush.msrb.mxu2 %v2572_v16  ;;  %v2569_v16 = vld [vmem:[#allocation8 + $0x298] sm:$0xff] }
 0x13b   : > { %2684 = vmatpush.msra.mxu1 %v2603_v45  ;;  %v1294_v45 = vsel %vm990_vm0, %v5714_v62, 0.0  ;;  %v2561_v62 = vld [vmem:[#allocation8 + $0x258] sm:$0xff] }
 0x13c   : > { %1277 = vadd.xlane.f32.xlu2 %v1276_v58  ;;  %1274 = vadd.xlane.f32.xlu1 %v1273_v22  ;;  %v2604_v58 = vld [vmem:[#allocation8 + $0x3b0] sm:$0xff]  ;;  %v2571_v22 = vld [vmem:[#allocation8 + $0x2a8] sm:$0xff] }
 0x13d   : > { %1271 = vadd.xlane.f32.xlu0 %v1270_v0  ;;  %2624 = vmatpush.msrb.mxu2 %v2570_v60  ;;  %v2601_v60 = vld [vmem:[#allocation8 + $0x398] sm:$0xff] }
 0x13e   : > { %2643 = vmatpush.msrb.mxu3 %v2604_v58  ;;  %2664 = vmatpush.msra.mxu0 %v2571_v22  ;;  %v2564_v58 = vld [vmem:[#allocation8 + $0x270] sm:$0xff]  ;;  %v2598_v22 = vld [vmem:[#allocation8 + $0x380] sm:$0xff] }
 0x13f   : > { %v7069_v63 = vpop.xlane.xlu2 %1151  ;;  %v7071_v21 = vpop.xlane.xlu1 %1148  ;;  %2625 = vmatpush.msrb.mxu2 %v2568_v27  ;;  %2685 = vmatpush.msra.mxu1 %v2601_v60  ;;  %v2560_v60 = vld [vmem:[#allocation8 + $0x250] sm:$0xff] }
 0x140   : > { %9240 = vst [vmem:[#allocation29_spill] sm:$0xff] %v7069_v63  ;;  %v7073_v0 = vpop.xlane.xlu0 %1145  ;;  %2644 = vmatpush.msrb.mxu3 %v2602_v61  ;;  %2665 = vmatpush.msra.mxu0 %v2569_v16  ;;  %v1291_v61 = vsel %vm990_vm0, %v5713_v38, 0.0  ;;  %v1288_v16 = vsel %vm990_vm0, %v5710_v13, 0.0  ;;  %v2595_v13 = vld [vmem:[#allocation8 + $0x368] sm:$0xff]  ;;  %v2557_v63 = vld [vmem:[#allocation8 + $0x238] sm:$0xff] }
 0x141   : > { %9241 = vst [vmem:[#allocation30_spill] sm:$0xff] %v7071_v21  ;;  %2626 = vmatpush.msrb.mxu2 %v2566_v49  ;;  %v6201_v49 = vld [vmem:[%s6806_s27 + $0x198] sm:$0xff]  }
 0x142   : > { %2645 = vmatpush.msrb.mxu3 %v2600_v50  ;;  %2666 = vmatpush.msra.mxu0 %v2567_v59  ;;  %v2563_v50 = vld [vmem:[#allocation8 + $0x268] sm:$0xff]  ;;  %v2597_v59 = vld [vmem:[#allocation8 + $0x378] sm:$0xff] }
 0x143   : > { %2627 = vmatpush.msrb.mxu2 %v2564_v58  ;;  %v5718_v58 = vunpack.c.h.bf16 %v6201_v49 }
 0x144   : > { %1286 = vadd.xlane.f32.xlu2 %v1285_v40  ;;  %1283 = vadd.xlane.f32.xlu1 %v1282_v43  ;;  %v2599_v40 = vld [vmem:[#allocation8 + $0x388] sm:$0xff]  ;;  %v2562_v43 = vld [vmem:[#allocation8 + $0x260] sm:$0xff] }
 0x145   : > { %1280 = vadd.xlane.f32.xlu0 %v1279_v14  ;;  %v2565_v14 = vld [vmem:[#allocation8 + $0x278] sm:$0xff]  ;;  %2646 = vmatpush.msrb.mxu3 %v2598_v22  ;;  %v2558_v22 = vld [vmem:[#allocation8 + $0x240] sm:$0xff] }
 0x146   : > { %2667 = vmatpush.msra.mxu0 %v2565_v14  ;;  %2686 = vmatpush.msra.mxu1 %v2599_v40  ;;  %v2592_v14 = vld [vmem:[#allocation8 + $0x350] sm:$0xff]  ;;  %v2559_v40 = vld [vmem:[#allocation8 + $0x248] sm:$0xff] }
 0x147   : > { %v7080_v17 = vpop.xlane.xlu2 %1160  ;;  %v7082_v27 = vpop.xlane.xlu1 %1157  ;;  %2628 = vmatpush.msrb.mxu2 %v2562_v43  ;;  %2647 = vmatpush.msrb.mxu3 %v2596_v39 }
 0x148   : > { %9242 = vst [vmem:[#allocation31_spill] sm:$0xff] %v7080_v17  ;;  %v7084_v15 = vpop.xlane.xlu0 %1154  ;;  %v7090_v17 = vld [vmem:[%s6806_s27 + $0x1a0] sm:$0xff]   ;;  %2668 = vmatpush.msra.mxu0 %v2563_v50  ;;  %2687 = vmatpush.msra.mxu1 %v2597_v59  ;;  %v1300_v59 = vsel %vm990_vm0, %v5718_v58, 0.0  ;;  %v2552_v58 = vld [vmem:[#allocation8 + $0x210] sm:$0xff] }
 0x149   : > { %9243 = vst [vmem:[#allocation32_spill] sm:$0xff] %v7082_v27  ;;  %v2594_v27 = vld [vmem:[#allocation8 + $0x360] sm:$0xff]  ;;  %v5721_v38 = vunpack.c.l.bf16 %v7090_v17  ;;  %2629 = vmatpush.msrb.mxu2 %v2560_v60 }
 0x14a   : > { %9244 = vst [vmem:[#allocation33_spill] sm:$0xff] %v7084_v15  ;;  %v5717_v15 = vunpack.c.l.bf16 %v6201_v49  ;;  %2648 = vmatpush.msrb.mxu3 %v2594_v27  ;;  %2669 = vmatpush.msra.mxu0 %v2561_v62  ;;  %v2590_v50 = vld [vmem:[#allocation8 + $0x340] sm:$0xff]  ;;  %v2591_v27 = vld [vmem:[#allocation8 + $0x348] sm:$0xff] }
 0x14b   : > { %2688 = vmatpush.msra.mxu1 %v2595_v13  ;;  %2630 = vmatpush.msrb.mxu2 %v2558_v22  ;;  %v1303_v49 = vsel %vm990_vm0, %v5721_v38, 0.0  ;;  %v2554_v62 = vld [vmem:[#allocation8 + $0x220] sm:$0xff]  ;;  %v2555_v13 = vld [vmem:[#allocation8 + $0x228] sm:$0xff]  ;;  %v2589_v22 = vld [vmem:[#allocation8 + $0x338] sm:$0xff] }
 0x14c   : > { %1295 = vadd.xlane.f32.xlu2 %v1294_v45  ;;  %1292 = vadd.xlane.f32.xlu1 %v1291_v61  ;;  %v2593_v45 = vld [vmem:[#allocation8 + $0x358] sm:$0xff]  ;;  %v2556_v61 = vld [vmem:[#allocation8 + $0x230] sm:$0xff]  ;;  %v1297_v60 = vsel %vm990_vm0, %v5717_v15, 0.0  ;;  %v5722_v15 = vunpack.c.h.bf16 %v7090_v17 }
 0x14d   : > { %1289 = vadd.xlane.f32.xlu0 %v1288_v16  ;;  %2649 = vmatpush.msrb.mxu3 %v2592_v14  ;;  %v2586_v14 = vld [vmem:[#allocation8 + $0x320] sm:$0xff]  ;;  %v2585_v17 = vld [vmem:[#allocation8 + $0x318] sm:$0xff] }
 0x14e   : > { %2670 = vmatpush.msra.mxu0 %v2559_v40  ;;  %2689 = vmatpush.msra.mxu1 %v2593_v45  ;;  %v2553_v40 = vld [vmem:[#allocation8 + $0x218] sm:$0xff]  ;;  %v2587_v45 = vld [vmem:[#allocation8 + $0x328] sm:$0xff] }
 0x14f   : > { %v7094_v43 = vpop.xlane.xlu2 %1169  ;;  %v7096_v39 = vpop.xlane.xlu1 %1166  ;;  %2631 = vmatpush.msrb.mxu2 %v2556_v61  ;;  %2650 = vmatpush.msrb.mxu3 %v2590_v50  ;;  %v2550_v50 = vld [vmem:[#allocation8 + $0x200] sm:$0xff] }
 0x150   : > { %9245 = vst [vmem:[#allocation34_spill] sm:$0xff] %v7094_v43  ;;  %v7098_v16 = vpop.xlane.xlu0 %1163  ;;  %v6203_v43 = vld [vmem:[%s6806_s27 + $0x1a8] sm:$0xff]   ;;  %2671 = vmatpush.msra.mxu0 %v2557_v63  ;;  %2690 = vmatpush.msra.mxu1 %v2591_v27  ;;  %v1306_v27 = vsel %vm990_vm0, %v5722_v15, 0.0 }
 0x151   : > { %9246 = vst [vmem:[#allocation35_spill] sm:$0xff] %v7096_v39  ;;  %v2588_v39 = vld [vmem:[#allocation8 + $0x330] sm:$0xff]  ;;  %v5726_v38 = vunpack.c.h.bf16 %v6203_v43  ;;  %2632 = vmatpush.msrb.mxu2 %v2554_v62 }
 0x152   : > { %9247 = vst [vmem:[#allocation36_spill] sm:$0xff] %v7098_v16  ;;  %v5725_v16 = vunpack.c.l.bf16 %v6203_v43  ;;  %2651 = vmatpush.msrb.mxu3 %v2588_v39  ;;  %2672 = vmatpush.msra.mxu0 %v2555_v13  ;;  %v6205_v62 = vld [vmem:[%s6806_s27 + $0x1b8] sm:$0xff]   ;;  %v2582_v13 = vld [vmem:[#allocation8 + $0x300] sm:$0xff] }
 0x153   : > { %2691 = vmatpush.msra.mxu1 %v2589_v22  ;;  %2633 = vmatpush.msrb.mxu2 %v2552_v58  ;;  %v1312_v39 = vsel %vm990_vm0, %v5726_v38, 0.0  ;;  %v2583_v22 = vld [vmem:[#allocation8 + $0x308] sm:$0xff]  ;;  %v5733_v58 = vunpack.c.l.bf16 %v6205_v62 }
 0x154   : > { %1304 = vadd.xlane.f32.xlu2 %v1303_v49  ;;  %1301 = vadd.xlane.f32.xlu1 %v1300_v59  ;;  %v2584_v49 = vld [vmem:[#allocation8 + $0x310] sm:$0xff]  ;;  %v2551_v59 = vld [vmem:[#allocation8 + $0x208] sm:$0xff] }
 0x155   : > { %1298 = vadd.xlane.f32.xlu0 %v1297_v60  ;;  %2652 = vmatpush.msrb.mxu3 %v2586_v14  ;;  %v1309_v60 = vsel %vm990_vm0, %v5725_v16, 0.0 }
 0x156   : > { %2673 = vmatpush.msra.mxu0 %v2553_v40  ;;  %2692 = vmatpush.msra.mxu1 %v2587_v45  ;;  %v2278_v40 = vld [vmem:[#allocation5 + $0x3] ss:$8 sm:$0x3] }
 0x157   : > { %v7105_v61 = vpop.xlane.xlu2 %1178  ;;  %v7107_v63 = vpop.xlane.xlu1 %1175  ;;  %2634 = vmatpush.msrb.mxu2 %v2550_v50  ;;  %2653 = vmatpush.msrb.mxu3 %v2584_v49  ;;  %v2451_v50 = vperm.slane %v2278_v40, 1  ;;  %v1321_v49 = vsel %vm990_vm0, %v5733_v58, 0.0  ;;  %v2282_v58 = vld [vmem:[#allocation5 + $0x5] ss:$8 sm:$0x3] }
 0x158   : > { %9248 = vst [vmem:[#allocation37_spill] sm:$0xff] %v7105_v61  ;;  %v7109_v43 = vpop.xlane.xlu0 %1172  ;;  %v6204_v61 = vld [vmem:[%s6806_s27 + $0x1b0] sm:$0xff]   ;;  %2674 = vmatpush.msra.mxu0 %v2551_v59  ;;  %2693 = vmatpush.msra.mxu1 %v2585_v17  ;;  %v2543_v35 = vperm.slane %v2282_v58, 1 }
 0x159   : > { %9249 = vst [vmem:[#allocation38_spill] sm:$0xff] %v7107_v63  ;;  %v5730_v38 = vunpack.c.h.bf16 %v6204_v61  ;;  %2654 = vmatpush.msrb.mxu3 %v2582_v13  ;;  %v5729_v16 = vunpack.c.l.bf16 %v6204_v61  ;;  %v2280_v61 = vld [vmem:[#allocation5 + $0x4] ss:$8 sm:$0x3] }
 0x15a   : > { %9250 = vst [vmem:[#allocation39_spill] sm:$0xff] %v7109_v43  ;;  %2694 = vmatpush.msra.mxu1 %v2583_v22  ;;  %v2536_v63 = vperm.slane %v2280_v61, 1  ;;  %v2450_v43 = vperm.slane %v2278_v40, 0  ;;  %v2535_v21 = vperm.slane %v2280_v61, 0 }
 0x15b   : > { %v1318_v59 = vsel %vm990_vm0, %v5730_v38, 0.0  ;;  %v1315_v17 = vsel %vm990_vm0, %v5729_v16, 0.0 }
 0x15c   : > { %1313 = vadd.xlane.f32.xlu2 %v1312_v39  ;;  %1310 = vadd.xlane.f32.xlu1 %v1309_v60  ;;  %v6206_v39 = vld [vmem:[%s6806_s27 + $0x1c0] sm:$0xff]  }
 0x15d   : > { %1307 = vadd.xlane.f32.xlu0 %v1306_v27  ;;  %v5738_v13 = vunpack.c.h.bf16 %v6206_v39  ;;  %v5737_v22 = vunpack.c.l.bf16 %v6206_v39 }
 0x15e   : > { %v2511_v60 = vpop.f32.mrf.mxu0 }
 0x15f   : > { %v7116_v14 = vpop.xlane.xlu2 %1187  ;;  %v7118_v15 = vpop.xlane.xlu1 %1184  ;;  %v2512_v27 = vadd.f32 %v2511_v60, %v2451_v50  ;;  %v1330_v50 = vsel %vm990_vm0, %v5738_v13, 0.0 }
 0x160   : > { %9251 = vst [vmem:[#allocation40_spill] sm:$0xff] %v7116_v14  ;;  %v7120_v45 = vpop.xlane.xlu0 %1181 }
 0x161   : > { %9252 = vst [vmem:[#allocation41_spill] sm:$0xff] %v7118_v15 }
 0x162   : > { %9253 = vst [vmem:[#allocation42_spill] sm:$0xff] %v7120_v45  ;;  %v5734_v45 = vunpack.c.h.bf16 %v6205_v62  ;;  %v6208_v62 = vld [vmem:[%s6806_s27 + $0x1d0] sm:$0xff]  }
 0x163   : > { %v2531_v15 = vpop.f32.mrf.mxu1 }
 0x164   : > { %1322 = vadd.xlane.f32.xlu2 %v1321_v49  ;;  %1319 = vadd.xlane.f32.xlu1 %v1318_v59  ;;  %v2532_v16 = vadd.f32 %v2531_v15, %v2512_v27  ;;  %v2471_v59 = vpop.f32.mrf.mxu2  ;;  %v1324_v40 = vsel %vm990_vm0, %v5734_v45, 0.0  ;;  %v2542_v15 = vperm.slane %v2282_v58, 0 }
 0x165   : > { %1316 = vadd.xlane.f32.xlu0 %v1315_v17  ;;  %v1327_v17 = vsel %vm990_vm0, %v5737_v22, 0.0  ;;  %v2472_v60 = vadd.f32 %v2471_v59, %v2450_v43  ;;  %v5741_v43 = vunpack.c.l.bf16 %v6207_v47 }
 0x166   : > { %v2540_v39 = vmul.f32 %v2536_v63, %v2532_v16 }
 0x167   : > { %v7126_v14 = vpop.xlane.xlu2 %1196  ;;  %v7128_v38 = vpop.xlane.xlu1 %1193 }
 0x168   : > { %9254 = vst [vmem:[#allocation43_spill] sm:$0xff] %v7126_v14  ;;  %v7130_v49 = vpop.xlane.xlu0 %1190  ;;  %v2547_v36 = vadd.f32 %v2543_v35, %v2540_v39  ;;  %v2491_v14 = vpop.f32.mrf.mxu3  ;;  %v6211_v39 = vld [vmem:[%s6806_s27 + $0x1e8] sm:$0xff]  }
 0x169   : > { %9255 = vst [vmem:[#allocation44_spill] sm:$0xff] %v7128_v38  ;;  %v2492_v27 = vadd.f32 %v2491_v14, %v2472_v60  ;;  %v5745_v38 = vunpack.c.l.bf16 %v6208_v62  ;;  %v6209_v14 = vld [vmem:[%s6806_s27 + $0x1d8] sm:$0xff]   ;;  %v6210_v60 = vld [vmem:[%s6806_s27 + $0x1e0] sm:$0xff]  }
 0x16a   : > { %9256 = vst [vmem:[#allocation45_spill] sm:$0xff] %v7130_v49  ;;  %v5742_v49 = vunpack.c.h.bf16 %v6207_v47  ;;  %v2549_v13 = vmax.f32 %v2547_v36, 0.0  ;;  %v1333_v36 = vsel %vm990_vm0, %v5741_v43, 0.0  ;;  %v5750_v47 = vunpack.c.h.bf16 %v6209_v14 }
 0x16b   : > { %v2539_v34 = vmul.f32 %v2535_v21, %v2492_v27  ;;  %v1339_v61 = vsel %vm990_vm0, %v5745_v38, 0.0  ;;  %v5749_v21 = vunpack.c.l.bf16 %v6209_v14  ;;  %v5746_v38 = vunpack.c.h.bf16 %v6208_v62  ;;  %v6212_v14 = vld [vmem:[%s6806_s27 + $0x1f0] sm:$0xff]  }
 0x16c   : > { %1331 = vadd.xlane.f32.xlu2 %v1330_v50  ;;  %1328 = vadd.xlane.f32.xlu1 %v1327_v17  ;;  %v1336_v58 = vsel %vm990_vm0, %v5742_v49, 0.0  ;;  %v1348_v49 = vsel %vm990_vm0, %v5750_v47, 0.0  ;;  %v5754_v27 = vunpack.c.h.bf16 %v6210_v60  ;;  %v5753_v62 = vunpack.c.l.bf16 %v6210_v60 }
 0x16d   : > { %1325 = vadd.xlane.f32.xlu0 %v1324_v40  ;;  %2655 = vmatmul.f32.vlgmr.msrb.gmra.mxu3 %v2549_v13  ;;  %v2546_v35 = vadd.f32 %v2542_v15, %v2539_v34  ;;  %v1345_v17 = vsel %vm990_vm0, %v5749_v21, 0.0  ;;  %v1342_v40 = vsel %vm990_vm0, %v5746_v38, 0.0  ;;  %v5757_v15 = vunpack.c.l.bf16 %v6211_v39 }
 0x16e   : > { %2695 = vmatmul.f32.vlgmr.msra.gmra.mxu1 %v2549_v13  ;;  %v5761_v47 = vunpack.c.l.bf16 %v6212_v14 }
 0x16f   : > { %v7137_v22 = vpop.xlane.xlu2 %1205  ;;  %v7139_v63 = vpop.xlane.xlu1 %1202  ;;  %v2548_v16 = vmax.f32 %v2546_v35, 0.0 }
 0x170   : > { %9257 = vst [vmem:[#allocation46_spill] sm:$0xff] %v7137_v22  ;;  %v7141_v45 = vpop.xlane.xlu0 %1199 }
 0x171   : > { %9258 = vst [vmem:[#allocation47_spill] sm:$0xff] %v7139_v63  ;;  %2635 = vmatmul.f32.vlgmr.msrb.gmra.mxu2 %v2548_v16  ;;  %2675 = vmatmul.f32.vlgmr.msra.gmra.mxu0 %v2548_v16  ;;  %v1351_v16 = vsel %vm990_vm0, %v5753_v62, 0.0  ;;  %v3375_v63 = vld [vmem:[#allocation8 + $0x4a0] sm:$0xff] }
 0x174   : > { %1340 = vadd.xlane.f32.xlu2 %v1339_v61  ;;  %1337 = vadd.xlane.f32.xlu1 %v1336_v58  ;;  %v1357_v61 = vsel %vm990_vm0, %v5757_v15, 0.0  ;;  %v1354_v58 = vsel %vm990_vm0, %v5754_v27, 0.0  ;;  %v6214_v15 = vld [vmem:[%s6806_s27 + $0x200] sm:$0xff]   ;;  %v6213_v27 = vld [vmem:[%s6806_s27 + $0x1f8] sm:$0xff]  }
 0x175   : > { %1334 = vadd.xlane.f32.xlu0 %v1333_v36  ;;  %v5762_v36 = vunpack.c.h.bf16 %v6212_v14 }
 0x177   : > { %v7147_v59 = vpop.xlane.xlu2 %1214  ;;  %v7149_v34 = vpop.xlane.xlu1 %1211  ;;  %v1366_v60 = vsel %vm990_vm0, %v5762_v36, 0.0 }
 0x178   : > { %9259 = vst [vmem:[#allocation48_spill] sm:$0xff] %v7147_v59  ;;  %v7151_v50 = vpop.xlane.xlu0 %1208 }
 0x179   : > { %9260 = vst [vmem:[#allocation49_spill] sm:$0xff] %v7149_v34 }
 0x17a   : > { %9261 = vst [vmem:[#allocation50_spill] sm:$0xff] %v7151_v50  ;;  %v3385_v50 = vld [vmem:[#allocation8 + $0x4f0] sm:$0xff] }
 0x17b   : > { %3419 = vmatpush.msra.mxu2 %v3385_v50  ;;  %v1957_v50 = vmul.f32 0.0625, %v6912_v29  ;;  %v7261_v29 = vld [vmem:[%s6806_s27 + $0x228] sm:$0xff]  }
 0x17c   : > { %1349 = vadd.xlane.f32.xlu2 %v1348_v49  ;;  %1346 = vadd.xlane.f32.xlu1 %v1345_v17  ;;  %v5758_v49 = vunpack.c.h.bf16 %v6211_v39  ;;  %v5765_v39 = vunpack.c.l.bf16 %v6213_v27 }
 0x17d   : > { %1343 = vadd.xlane.f32.xlu0 %v1342_v40  ;;  %v1363_v40 = vsel %vm990_vm0, %v5761_v47, 0.0 }
 0x17e   : > { %v1360_v62 = vsel %vm990_vm0, %v5758_v49, 0.0  ;;  %v1369_v49 = vsel %vm990_vm0, %v5765_v39, 0.0  ;;  %v7200_v39 = vld [vmem:[%s6806_s27 + $0x218] sm:$0xff]  }
 0x17f   : > { %v7158_v13 = vpop.xlane.xlu2 %1223  ;;  %v7160_v43 = vpop.xlane.xlu1 %1220 }
 0x180   : > { %9262 = vst [vmem:[#allocation51_spill] sm:$0xff] %v7158_v13  ;;  %v7162_v35 = vpop.xlane.xlu0 %1217 }
 0x181   : > { %9263 = vst [vmem:[#allocation52_spill] sm:$0xff] %v7160_v43 }
 0x182   : > { %9264 = vst [vmem:[#allocation53_spill] sm:$0xff] %v7162_v35  ;;  %v5770_v35 = vunpack.c.h.bf16 %v6214_v15 }
 0x184   : > { %1358 = vadd.xlane.f32.xlu2 %v1357_v61  ;;  %1355 = vadd.xlane.f32.xlu1 %v1354_v58  ;;  %v5769_v61 = vunpack.c.l.bf16 %v6214_v15  ;;  %v5766_v58 = vunpack.c.h.bf16 %v6213_v27  ;;  %v1951_v15 = vmul.f32 0.0625, %v6887_v46  ;;  %v1953_v46 = vmul.f32 0.0625, %v6884_v42 }
 0x185   : > { %1352 = vadd.xlane.f32.xlu0 %v1351_v16 }
 0x186   : > { %v1375_v36 = vsel %vm990_vm0, %v5769_v61, 0.0  ;;  %v1372_v47 = vsel %vm990_vm0, %v5766_v58, 0.0 }
 0x187   : > { %v7168_v21 = vpop.xlane.xlu2 %1232  ;;  %v7170_v38 = vpop.xlane.xlu1 %1229 }
 0x188   : > { %9265 = vst [vmem:[#allocation54_spill] sm:$0xff] %v7168_v21  ;;  %v7172_v17 = vpop.xlane.xlu0 %1226  ;;  %v7258_v21 = vld [vmem:[%s6806_s27 + $0x230] sm:$0xff]  }
 0x189   : > { %9266 = vst [vmem:[#allocation55_spill] sm:$0xff] %v7170_v38 }
 0x18a   : > { %9267 = vst [vmem:[#allocation56_spill] sm:$0xff] %v7172_v17  ;;  %v6215_v17 = vld [vmem:[%s6806_s27 + $0x208] sm:$0xff]  }
 0x18c   : > { %1367 = vadd.xlane.f32.xlu2 %v1366_v60  ;;  %1364 = vadd.xlane.f32.xlu1 %v1363_v40  ;;  %v3819_v60 = vlaneseq  ;;  %v5774_v40 = vunpack.c.h.bf16 %v6215_v17 }
 0x18d   : > { %1361 = vadd.xlane.f32.xlu0 %v1360_v62  ;;  %v5773_v62 = vunpack.c.l.bf16 %v6215_v17  ;;  %v1952_v17 = vmul.f32 0.0625, %v6901_v6 }
 0x18e   : > { %v7195_v61 = vand.u32 127, %v3819_v60  ;;  %v1384_v58 = vsel %vm990_vm0, %v5774_v40, 0.0  ;;  %v5781_v60 = vunpack.c.l.bf16 %v7200_v39  ;;  %v3417_v40 = vld [vmem:[#allocation8 + $0x5f0] sm:$0xff] }
 0x18f   : > { %v7179_v14 = vpop.xlane.xlu2 %1241  ;;  %v7181_v16 = vpop.xlane.xlu1 %1238  ;;  %v1381_v59 = vsel %vm990_vm0, %v5773_v62, 0.0  ;;  %v3418_v62 = vld [vmem:[#allocation8 + $0x5f8] sm:$0xff]  ;;  %3439 = vmatpush.msra.mxu3 %v3417_v40  ;;  %v3415_v40 = vld [vmem:[#allocation8 + $0x5e0] sm:$0xff] }
 0x190   : > { %9268 = vst [vmem:[#allocation57_spill] sm:$0xff] %v7179_v14  ;;  %v7183_v38 = vpop.xlane.xlu0 %1235  ;;  %3479 = vmatpush.msrb.mxu1 %v3418_v62  ;;  %v3416_v62 = vld [vmem:[#allocation8 + $0x5e8] sm:$0xff]  ;;  %v7234_v22 = vadd.s32 4294967264, %v7195_v61 }
 0x191   : > { %9269 = vst [vmem:[#allocation58_spill] sm:$0xff] %v7181_v16  ;;  %3440 = vmatpush.msra.mxu3 %v3415_v40  ;;  %v3413_v16 = vld [vmem:[#allocation8 + $0x5d0] sm:$0xff]  ;;  %v3411_v40 = vld [vmem:[#allocation8 + $0x5c0] sm:$0xff] }
 0x192   : > { %9270 = vst [vmem:[#allocation59_spill] sm:$0xff] %v7183_v38  ;;  %3480 = vmatpush.msrb.mxu1 %v3416_v62  ;;  %v3386_v62 = vld [vmem:[#allocation8 + $0x4f8] sm:$0xff] }
 0x193   : > { %3441 = vmatpush.msra.mxu3 %v3413_v16  ;;  %v1956_v16 = vmul.f32 0.0625, %v6897_v1  ;;  %3459 = vmatpush.msrb.mxu0 %v3386_v62  ;;  %v3381_v62 = vld [vmem:[#allocation8 + $0x4d0] sm:$0xff] }
 0x194   : > { %1376 = vadd.xlane.f32.xlu2 %v1375_v36  ;;  %1373 = vadd.xlane.f32.xlu1 %v1372_v47  ;;  %v6216_v36 = vld [vmem:[%s6806_s27 + $0x210] sm:$0xff]   ;;  %v7204_v47 = vadd.s32 4294967288, %v7195_v61 }
 0x195   : > { %1370 = vadd.xlane.f32.xlu0 %v1369_v49  ;;  %v1378_v49 = vsel %vm990_vm0, %v5770_v35, 0.0  ;;  %v5777_v6 = vunpack.c.l.bf16 %v6216_v36  ;;  %v7220_v35 = vadd.s32 4294967272, %v7195_v61  ;;  %3442 = vmatpush.msra.mxu3 %v3411_v40 }
 0x197   : > { %v7189_v13 = vpop.xlane.xlu2 %1250  ;;  %v7191_v27 = vpop.xlane.xlu1 %1247  ;;  %v1387_v34 = vsel %vm990_vm0, %v5777_v6, 0.0 }
 0x198   : > { %9271 = vst [vmem:[#allocation60_spill] sm:$0xff] %v7189_v13  ;;  %v7193_v43 = vpop.xlane.xlu0 %1244  ;;  %v5778_v13 = vunpack.c.h.bf16 %v6216_v36 }
 0x199   : > { %9272 = vst [vmem:[#allocation61_spill] sm:$0xff] %v7191_v27  ;;  %v3823_v27 = vperm.slane %v1952_v17, %v7204_v47  ;;  %v3821_v17 = vperm.slane %v1951_v15, %v7195_v61 }
 0x19a   : > { %9273 = vst [vmem:[#allocation62_spill] sm:$0xff] %v7193_v43  ;;  %v1390_v36 = vsel %vm990_vm0, %v5778_v13, 0.0 }
 0x19b   : > { %v3825_v42 = vsel %vm3824_vm1, %v3823_v27, %v3821_v17  ;;  %v1955_v27 = vmul.f32 0.0625, %v6882_v41  ;;  %v3409_v17 = vld [vmem:[#allocation8 + $0x5b0] sm:$0xff]  ;;  %v3384_v41 = vld [vmem:[#allocation8 + $0x4e8] sm:$0xff] }
 0x19c   : > { %1385 = vadd.xlane.f32.xlu2 %v1384_v58  ;;  %1382 = vadd.xlane.f32.xlu1 %v1381_v59  ;;  %v7216_v59 = vadd.s32 4294967280, %v7195_v61 }
 0x19d   : > { %1379 = vadd.xlane.f32.xlu0 %v1378_v49  ;;  %v1954_v49 = vmul.f32 0.0625, %v6899_v2  ;;  %3443 = vmatpush.msra.mxu3 %v3409_v17  ;;  %v3835_v38 = vperm.slane %v1955_v27, %v7234_v22  ;;  %v3405_v27 = vld [vmem:[#allocation8 + $0x590] sm:$0xff] }
 0x19e   : > { %v3827_v15 = vperm.slane %v1953_v46, %v7216_v59  ;;  %v3383_v46 = vld [vmem:[#allocation8 + $0x4e0] sm:$0xff]  ;;  %3460 = vmatpush.msrb.mxu0 %v3384_v41 }
 0x19f   : > { %v7211_v43 = vpop.xlane.xlu2 %1259  ;;  %v7213_v14 = vpop.xlane.xlu1 %1256  ;;  %v3831_v2 = vperm.slane %v1954_v49, %v7220_v35  ;;  %3420 = vmatpush.msra.mxu2 %v3383_v46  ;;  %v3379_v46 = vld [vmem:[#allocation8 + $0x4c0] sm:$0xff] }
 0x1a0   : > { %9274 = vst [vmem:[#allocation63_spill] sm:$0xff] %v7211_v43  ;;  %v7222_v58 = vpop.xlane.xlu0 %1253  ;;  %v1393_v43 = vsel %vm990_vm0, %v5781_v60, 0.0  ;;  %v3829_v6 = vsel %vm3828_vm2, %v3827_v15, %v3825_v42  ;;  %v3410_v42 = vld [vmem:[#allocation8 + $0x5b8] sm:$0xff] }
 0x1a1   : > { %9275 = vst [vmem:[#allocation64_spill] sm:$0xff] %v7213_v14  ;;  %v6218_v14 = vld [vmem:[%s6806_s27 + $0x220] sm:$0xff]   ;;  %v3833_v1 = vsel %vm3832_vm3, %v3831_v2, %v3829_v6  ;;  %3421 = vmatpush.msra.mxu2 %v3381_v62  ;;  %v5793_v62 = vunpack.c.l.bf16 %v7258_v21 }
 0x1a2   : > { %9276 = vst [vmem:[#allocation65_spill] sm:$0xff] %v7222_v58  ;;  %v3414_v58 = vld [vmem:[#allocation8 + $0x5d8] sm:$0xff]  ;;  %v5786_v60 = vunpack.c.h.bf16 %v6218_v14  ;;  %v5785_v13 = vunpack.c.l.bf16 %v6218_v14  ;;  %v7239_v14 = vadd.s32 4294967256, %v7195_v61  ;;  %v3837_v17 = vsel %vm3836_vm4, %v3835_v38, %v3833_v1 }
 0x1a3   : > { %3481 = vmatpush.msrb.mxu1 %v3414_v58  ;;  %3422 = vmatpush.msra.mxu2 %v3379_v46  ;;  %v3378_v38 = vld [vmem:[#allocation8 + $0x4b8] sm:$0xff]  ;;  %v7277_v1 = vmul.f32 0.0625, %v6907_v24  ;;  %v5789_v46 = vunpack.c.l.bf16 %v7261_v29  ;;  %v7288_v24 = vmul.f32 0.0625, %v6940_v30  ;;  %v7301_v30 = vadd.s32 4294967224, %v7195_v61 }
 0x1a4   : > { %1394 = vadd.xlane.f32.xlu2 %v1393_v43  ;;  %1391 = vadd.xlane.f32.xlu1 %v1390_v36  ;;  %v3412_v43 = vld [vmem:[#allocation8 + $0x5c8] sm:$0xff]  ;;  %v5782_v36 = vunpack.c.h.bf16 %v7200_v39  ;;  %v1402_v39 = vsel %vm990_vm0, %v5786_v60, 0.0  ;;  %v1399_v40 = vsel %vm990_vm0, %v5785_v13, 0.0  ;;  %v3839_v2 = vperm.slane %v1956_v16, %v7239_v14  ;;  %v3406_v16 = vld [vmem:[#allocation8 + $0x598] sm:$0xff] }
 0x1a5   : > { %1388 = vadd.xlane.f32.xlu0 %v1387_v34  ;;  %v7248_v34 = vadd.s32 4294967248, %v7195_v61  ;;  %3482 = vmatpush.msrb.mxu1 %v3412_v43  ;;  %v3408_v43 = vld [vmem:[#allocation8 + $0x5a8] sm:$0xff]  ;;  %v7265_v60 = vadd.s32 4294967240, %v7195_v61  ;;  %v1958_v13 = vmul.f32 0.0625, %v6910_v28  ;;  %v5790_v28 = vunpack.c.h.bf16 %v7261_v29  ;;  %v3402_v29 = vld [vmem:[#allocation8 + $0x578] sm:$0xff] }
 0x1a6   : > { %v1396_v6 = vsel %vm990_vm0, %v5782_v36, 0.0  ;;  %v7274_v36 = vadd.s32 4294967232, %v7195_v61 }
 0x1a7   : > { %v7242_v58 = vpop.xlane.xlu2 %1268  ;;  %v7244_v49 = vpop.xlane.xlu1 %1265  ;;  %3483 = vmatpush.msrb.mxu1 %v3410_v42  ;;  %v3843_v41 = vperm.slane %v1957_v50, %v7248_v34  ;;  %v3380_v42 = vld [vmem:[#allocation8 + $0x4c8] sm:$0xff] }
 0x1a8   : > { %9277 = vst [vmem:[#allocation66_spill] sm:$0xff] %v7242_v58  ;;  %v7251_v15 = vpop.xlane.xlu0 %1262  ;;  %v3407_v58 = vld [vmem:[#allocation8 + $0x5a0] sm:$0xff]  ;;  %v3404_v50 = vld [vmem:[#allocation8 + $0x588] sm:$0xff] }
 0x1a9   : > { %9278 = vst [vmem:[#allocation67_spill] sm:$0xff] %v7244_v49  ;;  %v3382_v49 = vld [vmem:[#allocation8 + $0x4d8] sm:$0xff]  ;;  %3444 = vmatpush.msra.mxu3 %v3407_v58  ;;  %3484 = vmatpush.msrb.mxu1 %v3408_v43  ;;  %v3377_v58 = vld [vmem:[#allocation8 + $0x4b0] sm:$0xff] }
 0x1aa   : > { %9279 = vst [vmem:[#allocation68_spill] sm:$0xff] %v7251_v15  ;;  %3461 = vmatpush.msrb.mxu0 %v3382_v49  ;;  %v3403_v49 = vld [vmem:[#allocation8 + $0x580] sm:$0xff]  ;;  %3423 = vmatpush.msra.mxu2 %v3377_v58  ;;  %v6221_v58 = vld [vmem:[%s6806_s27 + $0x238] sm:$0xff]  }
 0x1ab   : > { %3445 = vmatpush.msra.mxu3 %v3405_v27  ;;  %3485 = vmatpush.msrb.mxu1 %v3406_v16  ;;  %v1411_v16 = vsel %vm990_vm0, %v5793_v62, 0.0 }
 0x1ac   : > { %1403 = vadd.xlane.f32.xlu2 %v1402_v39  ;;  %1400 = vadd.xlane.f32.xlu1 %v1399_v40  ;;  %v3847_v39 = vperm.slane %v1958_v13, %v7265_v60  ;;  %v3841_v40 = vsel %vm3840_vm5, %v3839_v2, %v3837_v17  ;;  %v7291_v13 = vmul.f32 0.0625, %v6942_v31  ;;  %v3376_v17 = vld [vmem:[#allocation8 + $0x4a8] sm:$0xff]  ;;  %v7304_v31 = vmul.f32 0.0625, %v6923_v54 }
 0x1ad   : > { %1397 = vadd.xlane.f32.xlu0 %v1396_v6  ;;  %3462 = vmatpush.msrb.mxu0 %v3380_v42  ;;  %v3401_v6 = vld [vmem:[#allocation8 + $0x570] sm:$0xff]  ;;  %v3845_v27 = vsel %vm3844_vm6, %v3843_v41, %v3841_v40  ;;  %v7296_v42 = vmul.f32 0.0625, %v6954_v57  ;;  %v1408_v41 = vsel %vm990_vm0, %v5790_v28, 0.0  ;;  %v3399_v40 = vld [vmem:[#allocation8 + $0x560] sm:$0xff]  ;;  %v3851_v57 = vperm.slane %v7277_v1, %v7274_v36 }
 0x1ae   : > { %3446 = vmatpush.msra.mxu3 %v3403_v49  ;;  %3486 = vmatpush.msrb.mxu1 %v3404_v50  ;;  %v3373_v49 = vld [vmem:[#allocation8 + $0x490] sm:$0xff]  ;;  %v3849_v62 = vsel %vm3848_vm7, %v3847_v39, %v3845_v27  ;;  %v7311_v28 = vadd.s32 4294967216, %v7195_v61  ;;  %v3374_v50 = vld [vmem:[#allocation8 + $0x498] sm:$0xff]  ;;  %v7315_v54 = vmul.f32 0.0625, %v6921_v52  ;;  %v7322_v1 = vmul.f32 0.0625, %v6952_v55  ;;  %v3400_v39 = vld [vmem:[#allocation8 + $0x568] sm:$0xff] }
 0x1af   : > { %v7281_v15 = vpop.xlane.xlu2 %1277  ;;  %v7283_v43 = vpop.xlane.xlu1 %1274  ;;  %3463 = vmatpush.msrb.mxu0 %v3378_v38  ;;  %3424 = vmatpush.msra.mxu2 %v3375_v63  ;;  %v1405_v38 = vsel %vm990_vm0, %v5789_v46, 0.0  ;;  %v3883_v63 = vperm.slane %v7288_v24, %v7204_v47  ;;  %v3371_v27 = vld [vmem:[#allocation8 + $0x480] sm:$0xff]  ;;  %v7325_v46 = vadd.s32 4294967208, %v7195_v61  ;;  %v3885_v52 = vperm.slane %v7296_v42, %v7216_v59  ;;  %v3397_v24 = vld [vmem:[#allocation8 + $0x550] sm:$0xff] }
 0x1b0   : > { %9280 = vst [vmem:[#allocation69_spill] sm:$0xff] %v7281_v15  ;;  %v7293_v2 = vpop.xlane.xlu0 %1271  ;;  %3447 = vmatpush.msra.mxu3 %v3401_v6  ;;  %3487 = vmatpush.msrb.mxu1 %v3402_v29  ;;  %v3882_v6 = vperm.slane %v7291_v13, %v7195_v61  ;;  %v5797_v29 = vunpack.c.l.bf16 %v6221_v58  ;;  %v3372_v15 = vld [vmem:[#allocation8 + $0x488] sm:$0xff]  ;;  %v3855_v55 = vperm.slane %v7304_v31, %v7301_v30  ;;  %v7332_v13 = vadd.s32 4294967200, %v7195_v61 }
 0x1b1   : > { %9281 = vst [vmem:[#allocation70_spill] sm:$0xff] %v7283_v43  ;;  %3464 = vmatpush.msrb.mxu0 %v3376_v17  ;;  %v5798_v17 = vunpack.c.h.bf16 %v6221_v58  ;;  %3425 = vmatpush.msra.mxu2 %v3373_v49  ;;  %v7335_v42 = vmul.f32 0.0625, %v6919_v51  ;;  %v3853_v58 = vsel %vm3852_vm8, %v3851_v57, %v3849_v62  ;;  %v7339_v49 = vmul.f32 0.0625, %v6950_v53 }
 0x1b2   : > { %9282 = vst [vmem:[#allocation71_spill] sm:$0xff] %v7293_v2  ;;  %3448 = vmatpush.msra.mxu3 %v3399_v40  ;;  %v5794_v31 = vunpack.c.h.bf16 %v7258_v21  ;;  %3488 = vmatpush.msrb.mxu1 %v3400_v39  ;;  %v3859_v51 = vperm.slane %v7315_v54, %v7311_v28  ;;  %v3884_v2 = vsel %vm3824_vm1, %v3883_v63, %v3882_v6  ;;  %v7352_v57 = vmul.f32 0.0625, %v6965_v10  ;;  %v3396_v21 = vld [vmem:[#allocation8 + $0x548] sm:$0xff]  ;;  %v3367_v39 = vld [vmem:[#allocation8 + $0x460] sm:$0xff] }
 0x1b3   : > { %3465 = vmatpush.msrb.mxu0 %v3374_v50  ;;  %3426 = vmatpush.msra.mxu2 %v3371_v27  ;;  %v3370_v50 = vld [vmem:[#allocation8 + $0x478] sm:$0xff]  ;;  %v3887_v53 = vperm.slane %v7322_v1, %v7220_v35  ;;  %v7357_v27 = vmul.f32 0.0625, %v6933_v9  ;;  %v3886_v54 = vsel %vm3828_vm2, %v3885_v52, %v3884_v2  ;;  %v1420_v63 = vsel %vm990_vm0, %v5798_v17, 0.0  ;;  %v7363_v1 = vld [vmem:[%s6806_s27 + $0x248] sm:$0xff]   ;;  %v3393_v2 = vld [vmem:[#allocation8 + $0x530] sm:$0xff] }
 0x1b4   : > { %1412 = vadd.xlane.f32.xlu2 %v1411_v16  ;;  %1409 = vadd.xlane.f32.xlu1 %v1408_v41  ;;  %v3398_v16 = vld [vmem:[#allocation8 + $0x558] sm:$0xff]  ;;  %v3369_v41 = vld [vmem:[#allocation8 + $0x470] sm:$0xff]  ;;  %v1417_v6 = vsel %vm990_vm0, %v5797_v29, 0.0  ;;  %v3857_v10 = vsel %vm3856_vm9, %v3855_v55, %v3853_v58  ;;  %v3368_v52 = vld [vmem:[#allocation8 + $0x468] sm:$0xff]  ;;  %v3889_v17 = vperm.slane %v7339_v49, %v7234_v22  ;;  %v7378_v29 = vmul.f32 0.0625, %v6963_v8 }
 0x1b5   : > { %1406 = vadd.xlane.f32.xlu0 %v1405_v38  ;;  %v3395_v38 = vld [vmem:[#allocation8 + $0x540] sm:$0xff]  ;;  %3449 = vmatpush.msra.mxu3 %v3397_v24  ;;  %v7367_v24 = vadd.s32 4294967184, %v7195_v61  ;;  %v1414_v55 = vsel %vm990_vm0, %v5794_v31, 0.0  ;;  %v7384_v58 = vmul.f32 0.0625, %v6931_v7  ;;  %v3365_v8 = vld [vmem:[#allocation8 + $0x450] sm:$0xff]  ;;  %v3861_v31 = vsel %vm3860_vm10, %v3859_v51, %v3857_v10  ;;  %v3366_v7 = vld [vmem:[#allocation8 + $0x458] sm:$0xff] }
 0x1b6   : > { %3466 = vmatpush.msrb.mxu0 %v3372_v15  ;;  %3489 = vmatpush.msrb.mxu1 %v3398_v16  ;;  %v7370_v15 = vadd.s32 4294967192, %v7195_v61  ;;  %v7373_v9 = vld [vmem:[%s6806_s27 + $0x240] sm:$0xff]  }
 0x1b7   : > { %v7341_v40 = vpop.xlane.xlu2 %1286  ;;  %v7343_v43 = vpop.xlane.xlu1 %1283  ;;  %3427 = vmatpush.msra.mxu2 %v3369_v41  ;;  %9283 = vst [vmem:[#allocation72_spill] sm:$0xff] %v7367_v24  ;;  %3450 = vmatpush.msra.mxu3 %v3395_v38  ;;  %v3394_v16 = vld [vmem:[#allocation8 + $0x538] sm:$0xff]  ;;  %v3863_v41 = vperm.slane %v7335_v42, %v7325_v46  ;;  %v3888_v38 = vsel %vm3832_vm3, %v3887_v53, %v3886_v54  ;;  %v3391_v49 = vld [vmem:[#allocation8 + $0x520] sm:$0xff]  ;;  %v5802_v42 = vunpack.c.h.bf16 %v7373_v9  ;;  %v3392_v53 = vld [vmem:[#allocation8 + $0x528] sm:$0xff]  ;;  %v7395_v54 = vmul.f32 0.0625, %v6961_v4 }
 0x1b8   : > { %v7354_v62 = vpop.xlane.xlu0 %1280  ;;  %9284 = vst [vmem:[#allocation73_spill] sm:$0xff] %v7370_v15  ;;  %3467 = vmatpush.msrb.mxu0 %v3370_v50  ;;  %3490 = vmatpush.msrb.mxu1 %v3396_v21  ;;  %v3891_v50 = vperm.slane %v7352_v57, %v7239_v14  ;;  %v3867_v21 = vperm.slane %v7357_v27, %v7332_v13  ;;  %v7398_v57 = vmul.f32 0.0625, %v6992_v48  ;;  %v3363_v51 = vld [vmem:[#allocation8 + $0x440] sm:$0xff]  ;;  %v3389_v27 = vld [vmem:[#allocation8 + $0x510] sm:$0xff] }
 0x1b9   : > { %3428 = vmatpush.msra.mxu2 %v3367_v39  ;;  %v5805_v39 = vunpack.c.l.bf16 %v7363_v1  ;;  %3451 = vmatpush.msra.mxu3 %v3393_v2  ;;  %v3890_v10 = vsel %vm3836_vm4, %v3889_v17, %v3888_v38  ;;  %v7407_v2 = vmul.f32 0.0625, %v6975_v20  ;;  %v3865_v17 = vsel %vm3864_vm11, %v3863_v41, %v3861_v31 }
 0x1ba   : > { %3468 = vmatpush.msrb.mxu0 %v3368_v52  ;;  %3491 = vmatpush.msrb.mxu1 %v3394_v16  ;;  %v3364_v52 = vld [vmem:[#allocation8 + $0x448] sm:$0xff]  ;;  %v7415_v16 = vmul.f32 0.0625, %v6929_v5  ;;  %v3892_v20 = vsel %vm3840_vm5, %v3891_v50, %v3890_v10  ;;  %v3895_v41 = vperm.slane %v7395_v54, %v7265_v60  ;;  %v7432_v50 = vmul.f32 0.0625, %v6973_v19  ;;  %v2777_v19 = vld [vmem:[#allocation10 + $0x1f0] sm:$0xff] }
 0x1bb   : > { %3429 = vmatpush.msra.mxu2 %v3365_v8  ;;  %3452 = vmatpush.msra.mxu3 %v3391_v49  ;;  %v3387_v8 = vld [vmem:[#allocation8 + $0x500] sm:$0xff]  ;;  %v3869_v49 = vsel %vm3868_vm12, %v3867_v21, %v3865_v17  ;;  %v1429_v5 = vsel %vm990_vm0, %v5805_v39, 0.0  ;;  %v3913_v31 = vperm.slane %v7398_v57, %v7195_v61  ;;  %v3362_v39 = vld [vmem:[#allocation8 + $0x438] sm:$0xff] }
 0x1bc   : > { %1421 = vadd.xlane.f32.xlu2 %v1420_v63  ;;  %1418 = vadd.xlane.f32.xlu1 %v1417_v6  ;;  %v7401_v63 = vmul.f32 0.0625, %v7007_v12  ;;  %v3893_v6 = vperm.slane %v7378_v29, %v7248_v34  ;;  %v5801_v12 = vunpack.c.l.bf16 %v7373_v9  ;;  %v3871_v29 = vperm.slane %v7384_v58, %v7370_v15  ;;  %v3361_v9 = vld [vmem:[#allocation8 + $0x430] sm:$0xff] }
 0x1bd   : > { %1415 = vadd.xlane.f32.xlu0 %v1414_v55  ;;  %v3390_v55 = vld [vmem:[#allocation8 + $0x518] sm:$0xff]  ;;  %3469 = vmatpush.msrb.mxu0 %v3366_v7  ;;  %v1426_v58 = vsel %vm990_vm0, %v5802_v42, 0.0  ;;  %v3388_v7 = vld [vmem:[#allocation8 + $0x508] sm:$0xff]  ;;  %v3875_v57 = vperm.slane %v7415_v16, %v7367_v24  ;;  %v7455_v16 = vmul.f32 0.0625, %v6971_v18  ;;  %v3899_v17 = vperm.slane %v7432_v50, %v7301_v30  ;;  %v2773_v50 = vld [vmem:[#allocation10 + $0x1d0] sm:$0xff] }
 0x1be   : > { %3492 = vmatpush.msrb.mxu1 %v3392_v53  ;;  %3430 = vmatpush.msra.mxu2 %v3363_v51  ;;  %v3914_v21 = vperm.slane %v7401_v63, %v7204_v47  ;;  %v3894_v42 = vsel %vm3844_vm6, %v3893_v6, %v3892_v20  ;;  %v3897_v53 = vperm.slane %v7407_v2, %v7274_v36  ;;  %v1423_v54 = vsel %vm990_vm0, %v5801_v12, 0.0  ;;  %v2841_v51 = vld [vmem:[#allocation10 + $0x3f0] sm:$0xff] }
 0x1bf   : > { %v7409_v4 = vpop.xlane.xlu2 %1295  ;;  %v7411_v48 = vpop.xlane.xlu1 %1292  ;;  %3453 = vmatpush.msra.mxu3 %v3389_v27  ;;  %3470 = vmatpush.msrb.mxu0 %v3364_v52  ;;  %v7446_v63 = vmul.f32 0.0625, %v7003_v3  ;;  %v3359_v27 = vld [vmem:[#allocation8 + $0x420] sm:$0xff]  ;;  %v3873_v6 = vsel %vm3872_vm13, %v3871_v29, %v3869_v49  ;;  %v7452_v2 = vmul.f32 0.0625, %v7017_v26  ;;  %v3896_v29 = vsel %vm3848_vm7, %v3895_v41, %v3894_v42  ;;  %v3358_v41 = vld [vmem:[#allocation8 + $0x418] sm:$0xff] }
 0x1c0   : > { %9285 = vst [vmem:[#allocation74_spill] sm:$0xff] %v7409_v4  ;;  %v7421_v38 = vpop.xlane.xlu0 %1289  ;;  %v7425_v4 = vmul.f32 0.0625, %v7005_v11  ;;  %v6224_v11 = vld [vmem:[%s6806_s27 + $0x250] sm:$0xff]   ;;  %3493 = vmatpush.msrb.mxu1 %v3390_v55  ;;  %3431 = vmatpush.msra.mxu2 %v3361_v9  ;;  %v2775_v3 = vld [vmem:[#allocation10 + $0x1e0] sm:$0xff]  ;;  %v3915_v20 = vsel %vm3824_vm1, %v3914_v21, %v3913_v31  ;;  %v3898_v9 = vsel %vm3852_vm8, %v3897_v53, %v3896_v29  ;;  %v7466_v49 = vmul.f32 0.0625, %v7059_v44 }
 0x1c1   : > { %3454 = vmatpush.msra.mxu3 %v3387_v8  ;;  %v5810_v12 = vunpack.c.h.bf16 %v6224_v11  ;;  %v5809_v52 = vunpack.c.l.bf16 %v6224_v11  ;;  %3471 = vmatpush.msrb.mxu0 %v3362_v39  ;;  %v3360_v55 = vld [vmem:[#allocation8 + $0x428] sm:$0xff]  ;;  %v2839_v26 = vld [vmem:[#allocation10 + $0x3e0] sm:$0xff]  ;;  %v7463_v8 = vmul.f32 0.0625, %v7057_v33  ;;  %v7474_v31 = vadd.s32 4294967176, %v7195_v61 }
 0x1c2   : > { %v3916_v10 = vperm.slane %v7425_v4, %v7216_v59  ;;  %3494 = vmatpush.msrb.mxu1 %v3388_v7  ;;  %v3357_v4 = vld [vmem:[#allocation8 + $0x410] sm:$0xff]  ;;  %3432 = vmatpush.msra.mxu2 %v3359_v27  ;;  %v3918_v33 = vperm.slane %v7446_v63, %v7220_v35  ;;  %v7479_v44 = vmul.f32 0.0625, %v7015_v25  ;;  %v3355_v11 = vld [vmem:[#allocation8 + $0x400] sm:$0xff]  ;;  %v7484_v39 = vsel %vm3876_vm14, %v3875_v57, %v3873_v6  ;;  %v3356_v6 = vld [vmem:[#allocation8 + $0x408] sm:$0xff] }
 0x1c3   : > { %4511 = vmatpush.msrb.mxu3 %v2777_v19  ;;  %9287 = vst [vmem:[#allocation76_spill] sm:$0xff] %v7474_v31  ;;  %3472 = vmatpush.msrb.mxu0 %v3360_v55  ;;  %v3920_v42 = vperm.slane %v7452_v2, %v7234_v22  ;;  %v1438_v53 = vsel %vm990_vm0, %v5810_v12, 0.0  ;;  %v1435_v25 = vsel %vm990_vm0, %v5809_v52, 0.0  ;;  %v3901_v19 = vperm.slane %v7455_v16, %v7311_v28  ;;  %v7504_v27 = vld [vmem:[%s6806_s27 + $0x258] sm:$0xff]   ;;  %v2835_v29 = vld [vmem:[#allocation10 + $0x3c0] sm:$0xff] }
 0x1c4   : > { %1430 = vadd.xlane.f32.xlu2 %v1429_v5  ;;  %1427 = vadd.xlane.f32.xlu1 %v1426_v58  ;;  %v5806_v58 = vunpack.c.h.bf16 %v7363_v1  ;;  %v2837_v1 = vld [vmem:[#allocation10 + $0x3d0] sm:$0xff]  ;;  %v3917_v7 = vsel %vm3828_vm2, %v3916_v10, %v3915_v20  ;;  %v3900_v63 = vsel %vm3856_vm9, %v3899_v17, %v3898_v9  ;;  %v7498_v57 = vmul.f32 0.0625, %v7013_v23  ;;  %v9288_v20 = vld [vmem:[#allocation16_spill] sm:$0xff] }
 0x1c5   : > { %1424 = vadd.xlane.f32.xlu0 %v1423_v54  ;;  %4551 = vmatpush.msra.mxu1 %v2841_v51  ;;  %v7492_v54 = vld [vmem:[%s6806_s27 + $0x260] sm:$0xff]   ;;  %v7501_v51 = vmul.f32 0.0625, %v7055_v32  ;;  %v2745_v10 = vld [vmem:[#allocation10 + $0xf0] sm:$0xff]  ;;  %v3945_v2 = vperm.slane %v7463_v8, %v7204_v47  ;;  %v3944_v12 = vperm.slane %v7466_v49, %v7195_v61  ;;  %v7511_v52 = vmul.f32 0.0625, %v7073_v0 }
 0x1c6   : > { %4512 = vmatpush.msrb.mxu3 %v2775_v3  ;;  %3433 = vmatpush.msra.mxu2 %v3357_v4  ;;  %v1432_v23 = vsel %vm990_vm0, %v5806_v58, 0.0  ;;  %v2771_v32 = vld [vmem:[#allocation10 + $0x1c0] sm:$0xff]  ;;  %v7515_v55 = vmul.f32 0.0625, %v6986_v37  ;;  %v3922_v3 = vperm.slane %v7479_v44, %v7239_v14  ;;  %v3919_v16 = vsel %vm3832_vm3, %v3918_v33, %v3917_v7  ;;  %v2809_v0 = vld [vmem:[#allocation10 + $0x2f0] sm:$0xff] }
 0x1c7   : > { %v7468_v18 = vpop.xlane.xlu2 %1304  ;;  %v7470_v5 = vpop.xlane.xlu1 %1301  ;;  %4552 = vmatpush.msra.mxu1 %v2839_v26  ;;  %3473 = vmatpush.msrb.mxu0 %v3358_v41  ;;  %v7521_v17 = vmul.f32 0.0625, %v7028_v56  ;;  %v7524_v26 = vmul.f32 0.0625, %v9288_v20  ;;  %v3921_v4 = vsel %vm3836_vm4, %v3920_v42, %v3919_v16  ;;  %v5817_v37 = vunpack.c.l.bf16 %v7492_v54  ;;  %v2743_v8 = vld [vmem:[#allocation10 + $0xe0] sm:$0xff]  ;;  %v2769_v49 = vld [vmem:[#allocation10 + $0x1b0] sm:$0xff] }
 0x1c8   : > { %9286 = vst [vmem:[#allocation75_spill] sm:$0xff] %v7468_v18  ;;  %v7481_v21 = vpop.xlane.xlu0 %1298  ;;  %4513 = vmatpush.msrb.mxu3 %v2773_v50  ;;  %3434 = vmatpush.msra.mxu2 %v3355_v11  ;;  %v5814_v9 = vunpack.c.h.bf16 %v7504_v27  ;;  %v9289_v58 = vld [vmem:[#allocation18_spill] sm:$0xff]  ;;  %v3902_v41 = vsel %vm3860_vm10, %v3901_v19, %v3900_v63  ;;  %v3947_v50 = vperm.slane %v7501_v51, %v7216_v59  ;;  %v5813_v63 = vunpack.c.l.bf16 %v7504_v27  ;;  %v9295_v16 = vld [vmem:[#allocation17_spill] sm:$0xff] }
 0x1c9   : > { %4553 = vmatpush.msra.mxu1 %v2837_v1  ;;  %3474 = vmatpush.msrb.mxu0 %v3356_v6  ;;  %v7530_v56 = vmul.f32 0.0625, %v9289_v58  ;;  %v9290_v33 = vld [vmem:[#allocation30_spill] sm:$0xff]  ;;  %v2807_v1 = vld [vmem:[#allocation10 + $0x2e0] sm:$0xff]  ;;  %v3924_v7 = vperm.slane %v7498_v57, %v7248_v34  ;;  %v3946_v42 = vsel %vm3824_vm1, %v3945_v2, %v3944_v12  ;;  %v3923_v57 = vsel %vm3840_vm5, %v3922_v3, %v3921_v4 }
 0x1ca   : > { %4491 = vmatpush.msrb.mxu2 %v2745_v10  ;;  %v7536_v44 = vmul.f32 0.0625, %v9290_v33  ;;  %4514 = vmatpush.msrb.mxu3 %v2771_v32  ;;  %v2833_v11 = vld [vmem:[#allocation10 + $0x3b0] sm:$0xff]  ;;  %v2767_v6 = vld [vmem:[#allocation10 + $0x1a0] sm:$0xff]  ;;  %v3903_v10 = vperm.slane %v7515_v55, %v7325_v46  ;;  %v3926_v12 = vperm.slane %v7521_v17, %v7265_v60  ;;  %v1447_v3 = vsel %vm990_vm0, %v5817_v37, 0.0 }
 0x1cb   : > { %4531 = vmatpush.msra.mxu0 %v2809_v0  ;;  %4554 = vmatpush.msra.mxu1 %v2835_v29  ;;  %v2741_v51 = vld [vmem:[#allocation10 + $0xd0] sm:$0xff]  ;;  %v2831_v32 = vld [vmem:[#allocation10 + $0x3a0] sm:$0xff]  ;;  %v7559_v0 = vmul.f32 0.0625, %v9295_v16  ;;  %v1444_v20 = vsel %vm990_vm0, %v5814_v9, 0.0  ;;  %v3905_v17 = vperm.slane %v7530_v56, %v7332_v13 }
 0x1cc   : > { %1439 = vadd.xlane.f32.xlu2 %v1438_v53  ;;  %1436 = vadd.xlane.f32.xlu1 %v1435_v25  ;;  %v3949_v53 = vperm.slane %v7511_v52, %v7220_v35  ;;  %v2805_v27 = vld [vmem:[#allocation10 + $0x2d0] sm:$0xff]  ;;  %v3951_v4 = vperm.slane %v7536_v44, %v7234_v22  ;;  %v6227_v33 = vld [vmem:[%s6806_s27 + $0x268] sm:$0xff]   ;;  %v3904_v44 = vsel %vm3864_vm11, %v3903_v10, %v3902_v41 }
 0x1cd   : > { %1433 = vadd.xlane.f32.xlu0 %v1432_v23  ;;  %v9293_v23 = vld [vmem:[#allocation22_spill] sm:$0xff]  ;;  %4492 = vmatpush.msrb.mxu2 %v2743_v8  ;;  %v9296_v29 = vld [vmem:[#allocation29_spill] sm:$0xff]  ;;  %v3948_v8 = vsel %vm3828_vm2, %v3947_v50, %v3946_v42  ;;  %v2803_v50 = vld [vmem:[#allocation10 + $0x2c0] sm:$0xff]  ;;  %v5821_v41 = vunpack.c.l.bf16 %v6227_v33 }
 0x1ce   : > { %v7552_v2 = vmul.f32 0.0625, %v9293_v23  ;;  %4515 = vmatpush.msrb.mxu3 %v2769_v49  ;;  %v7562_v55 = vmul.f32 0.0625, %v9296_v29  ;;  %4532 = vmatpush.msra.mxu0 %v2807_v1  ;;  %v9297_v49 = vld [vmem:[#allocation33_spill] sm:$0xff]  ;;  %v2739_v23 = vld [vmem:[#allocation10 + $0xc0] sm:$0xff]  ;;  %v3925_v1 = vsel %vm3844_vm6, %v3924_v7, %v3923_v57  ;;  %v3950_v56 = vsel %vm3832_vm3, %v3949_v53, %v3948_v8 }
 0x1cf   : > { %v7543_v25 = vpop.xlane.xlu2 %1313  ;;  %v7545_v19 = vpop.xlane.xlu1 %1310  ;;  %4555 = vmatpush.msra.mxu1 %v2833_v11  ;;  %v7572_v58 = vmul.f32 0.0625, %v9297_v49  ;;  %4493 = vmatpush.msrb.mxu2 %v2741_v51  ;;  %v2765_v37 = vld [vmem:[#allocation10 + $0x190] sm:$0xff]  ;;  %v1441_v11 = vsel %vm990_vm0, %v5813_v63, 0.0  ;;  %v3927_v51 = vsel %vm3848_vm7, %v3926_v12, %v3925_v1  ;;  %v9300_v63 = vld [vmem:[#allocation32_spill] sm:$0xff]  ;;  %v3879_v12 = vperm.slane %v7524_v26, %v7474_v31 }
 0x1d0   : > { %9291 = vst [vmem:[#allocation16_spill] sm:$0xff] %v7543_v25  ;;  %v7556_v52 = vpop.xlane.xlu0 %1307  ;;  %4516 = vmatpush.msrb.mxu3 %v2767_v6  ;;  %v9298_v16 = vld [vmem:[#allocation21_spill] sm:$0xff]  ;;  %4533 = vmatpush.msra.mxu0 %v2805_v27  ;;  %v3928_v42 = vperm.slane %v7552_v2, %v7274_v36  ;;  %v3953_v53 = vperm.slane %v7562_v55, %v7239_v14  ;;  %v7591_v27 = vmul.f32 0.0625, %v9300_v63  ;;  %v2763_v10 = vld [vmem:[#allocation10 + $0x180] sm:$0xff]  ;;  %v5818_v26 = vunpack.c.h.bf16 %v7492_v54 }
 0x1d1   : > { %9292 = vst [vmem:[#allocation18_spill] sm:$0xff] %v7545_v19  ;;  %v7576_v9 = vmul.f32 0.0625, %v9298_v16  ;;  %4556 = vmatpush.msra.mxu1 %v2831_v32  ;;  %v9299_v6 = vld [vmem:[#allocation25_spill] sm:$0xff]  ;;  %v5822_v32 = vunpack.c.h.bf16 %v6227_v33  ;;  %4494 = vmatpush.msrb.mxu2 %v2739_v23  ;;  %v2827_v55 = vld [vmem:[#allocation10 + $0x380] sm:$0xff]  ;;  %v3907_v49 = vperm.slane %v7559_v0, %v7370_v15  ;;  %v3906_v16 = vsel %vm3868_vm12, %v3905_v17, %v3904_v44  ;;  %v9321_v19 = vld [vmem:[#allocation26_spill] sm:$0xff] }
 0x1d2   : > { %9294 = vst [vmem:[#allocation30_spill] sm:$0xff] %v7556_v52  ;;  %v7586_v29 = vmul.f32 0.0625, %v9299_v6  ;;  %v2829_v7 = vld [vmem:[#allocation10 + $0x390] sm:$0xff]  ;;  %4517 = vmatpush.msrb.mxu3 %v2765_v37  ;;  %4534 = vmatpush.msra.mxu0 %v2803_v50  ;;  %v2735_v8 = vld [vmem:[#allocation10 + $0xa0] sm:$0xff]  ;;  %v3929_v1 = vsel %vm3852_vm8, %v3928_v42, %v3927_v51  ;;  %v3957_v17 = vperm.slane %v7591_v27, %v7265_v60  ;;  %v1453_v51 = vsel %vm990_vm0, %v5821_v41, 0.0 }
 0x1d3   : > { %v2737_v57 = vld [vmem:[#allocation10 + $0xb0] sm:$0xff]  ;;  %v3930_v33 = vperm.slane %v7576_v9, %v7301_v30  ;;  %4557 = vmatpush.msra.mxu1 %v2829_v7  ;;  %v1456_v42 = vsel %vm990_vm0, %v5822_v32, 0.0  ;;  %v9306_v63 = vld [vmem:[#allocation36_spill] sm:$0xff]  ;;  %v9307_v32 = vld [vmem:[#allocation23_spill] sm:$0xff]  ;;  %v7727_v52 = vmul.f32 0.0625, %v9321_v19  ;;  %v7739_v19 = vmul.f32 0.0625, %v7141_v45 }
 0x1d4   : > { %1448 = vadd.xlane.f32.xlu2 %v1447_v3  ;;  %1445 = vadd.xlane.f32.xlu1 %v1444_v20  ;;  %v2801_v2 = vld [vmem:[#allocation10 + $0x2b0] sm:$0xff]  ;;  %v3952_v3 = vsel %vm3836_vm4, %v3951_v4, %v3950_v56  ;;  %v3955_v20 = vperm.slane %v7572_v58, %v7248_v34  ;;  %v2799_v58 = vld [vmem:[#allocation10 + $0x2a0] sm:$0xff]  ;;  %v3932_v9 = vperm.slane %v7586_v29, %v7311_v28  ;;  %v7639_v41 = vmul.f32 0.0625, %v9307_v32 }
 0x1d5   : > { %1442 = vadd.xlane.f32.xlu0 %v1441_v11  ;;  %4495 = vmatpush.msrb.mxu2 %v2737_v57  ;;  %v2761_v4 = vld [vmem:[#allocation10 + $0x170] sm:$0xff]  ;;  %v9303_v56 = vld [vmem:[#allocation24_spill] sm:$0xff]  ;;  %v9304_v11 = vld [vmem:[#allocation31_spill] sm:$0xff]  ;;  %v3954_v44 = vsel %vm3840_vm5, %v3953_v53, %v3952_v3  ;;  %v7636_v53 = vsel %vm3880_vm15, %v3879_v12, %v7484_v39  ;;  %v3931_v3 = vsel %vm3856_vm9, %v3930_v33, %v3929_v1 }
 0x1d6   : > { %v7610_v0 = vmul.f32 0.0625, %v9303_v56  ;;  %v7615_v50 = vmul.f32 0.0625, %v9304_v11  ;;  %4518 = vmatpush.msrb.mxu3 %v2763_v10  ;;  %4535 = vmatpush.msra.mxu0 %v2801_v2  ;;  %v2825_v6 = vld [vmem:[#allocation10 + $0x370] sm:$0xff]  ;;  %v3956_v57 = vsel %vm3844_vm6, %v3955_v20, %v3954_v44  ;;  %v7629_v10 = vmul.f32 0.0625, %v9306_v63  ;;  %v2759_v27 = vld [vmem:[#allocation10 + $0x160] sm:$0xff] }
 0x1d7   : > { %v7602_v23 = vpop.xlane.xlu2 %1322  ;;  %v7604_v37 = vpop.xlane.xlu1 %1319  ;;  %v2733_v7 = vld [vmem:[#allocation10 + $0x90] sm:$0xff]  ;;  %4558 = vmatpush.msra.mxu1 %v2827_v55  ;;  %4496 = vmatpush.msrb.mxu2 %v2735_v8  ;;  %v1450_v20 = vsel %vm990_vm0, %v5818_v26, 0.0  ;;  %v2823_v55 = vld [vmem:[#allocation10 + $0x360] sm:$0xff]  ;;  %v7644_v8 = vsel %vm3872_vm13, %v3907_v49, %v3906_v16  ;;  %v3958_v26 = vsel %vm3848_vm7, %v3957_v17, %v3956_v57 }
 0x1d8   : > { %9301 = vst [vmem:[#allocation22_spill] sm:$0xff] %v7602_v23  ;;  %v7617_v54 = vpop.xlane.xlu0 %1316  ;;  %v7625_v29 = vld [vmem:[%s6806_s27 + $0x278] sm:$0xff]   ;;  %v7632_v2 = vld [vmem:[%s6806_s27 + $0x270] sm:$0xff]   ;;  %4519 = vmatpush.msrb.mxu3 %v2761_v4  ;;  %4536 = vmatpush.msra.mxu0 %v2799_v58  ;;  %v3934_v4 = vperm.slane %v7610_v0, %v7325_v46  ;;  %v3933_v58 = vsel %vm3860_vm10, %v3932_v9, %v3931_v3  ;;  %v2731_v12 = vld [vmem:[#allocation10 + $0x80] sm:$0xff] }
 0x1d9   : > { %9302 = vst [vmem:[#allocation17_spill] sm:$0xff] %v7604_v37  ;;  %v2797_v56 = vld [vmem:[#allocation10 + $0x290] sm:$0xff]  ;;  %4559 = vmatpush.msra.mxu1 %v2825_v6  ;;  %4497 = vmatpush.msrb.mxu2 %v2733_v7  ;;  %v3959_v39 = vperm.slane %v7615_v50, %v7274_v36  ;;  %v9308_v1 = vld [vmem:[#allocation35_spill] sm:$0xff]  ;;  %v5829_v49 = vunpack.c.l.bf16 %v7625_v29  ;;  %v5826_v16 = vunpack.c.h.bf16 %v7632_v2  ;;  %v9310_v50 = vld [vmem:[#allocation20_spill] sm:$0xff]  ;;  %v3961_v17 = vperm.slane %v7629_v10, %v7301_v30 }
 0x1da   : > { %9305 = vst [vmem:[#allocation29_spill] sm:$0xff] %v7617_v54  ;;  %v2757_v33 = vld [vmem:[#allocation10 + $0x150] sm:$0xff]  ;;  %v7653_v11 = vmul.f32 0.0625, %v9308_v1  ;;  %4520 = vmatpush.msrb.mxu3 %v2759_v27  ;;  %4537 = vmatpush.msra.mxu0 %v2797_v56  ;;  %v2795_v0 = vld [vmem:[#allocation10 + $0x280] sm:$0xff]  ;;  %v7661_v44 = vmul.f32 0.0625, %v9310_v50  ;;  %v3936_v27 = vperm.slane %v7639_v41, %v7332_v13 }
 0x1db   : > { %v2821_v9 = vld [vmem:[#allocation10 + $0x350] sm:$0xff]  ;;  %v9309_v6 = vld [vmem:[#allocation19_spill] sm:$0xff]  ;;  %4560 = vmatpush.msra.mxu1 %v2823_v55  ;;  %v9312_v56 = vld [vmem:[#allocation40_spill] sm:$0xff]  ;;  %4498 = vmatpush.msrb.mxu2 %v2731_v12  ;;  %v3935_v55 = vsel %vm3864_vm11, %v3934_v4, %v3933_v58  ;;  %v1462_v58 = vsel %vm990_vm0, %v5826_v16, 0.0 }
 0x1dc   : > { %1457 = vadd.xlane.f32.xlu2 %v1456_v42  ;;  %1454 = vadd.xlane.f32.xlu1 %v1453_v51  ;;  %v7658_v7 = vmul.f32 0.0625, %v9309_v6  ;;  %v9311_v42 = vld [vmem:[#allocation28_spill] sm:$0xff]  ;;  %v2729_v57 = vld [vmem:[#allocation10 + $0x70] sm:$0xff]  ;;  %v7671_v32 = vmul.f32 0.0625, %v9312_v56  ;;  %v3960_v56 = vsel %vm3852_vm8, %v3959_v39, %v3958_v26  ;;  %v9317_v25 = vld [vmem:[#allocation39_spill] sm:$0xff] }
 0x1dd   : > { %v7664_v51 = vmul.f32 0.0625, %v9311_v42  ;;  %1451 = vadd.xlane.f32.xlu0 %v1450_v20  ;;  %v2755_v63 = vld [vmem:[#allocation10 + $0x140] sm:$0xff]  ;;  %v9313_v3 = vld [vmem:[#allocation41_spill] sm:$0xff]  ;;  %v5825_v42 = vunpack.c.l.bf16 %v7632_v2  ;;  %4521 = vmatpush.msrb.mxu3 %v2757_v33  ;;  %v9314_v23 = vld [vmem:[#allocation34_spill] sm:$0xff]  ;;  %v3963_v33 = vperm.slane %v7653_v11, %v7311_v28  ;;  %v7694_v4 = vmul.f32 0.0625, %v9317_v25 }
 0x1de   : > { %v7674_v1 = vmul.f32 0.0625, %v9313_v3  ;;  %v2793_v10 = vld [vmem:[#allocation10 + $0x270] sm:$0xff]  ;;  %v2819_v20 = vld [vmem:[#allocation10 + $0x340] sm:$0xff]  ;;  %v7683_v41 = vmul.f32 0.0625, %v9314_v23  ;;  %4538 = vmatpush.msra.mxu0 %v2795_v0  ;;  %4561 = vmatpush.msra.mxu1 %v2821_v9  ;;  %v1465_v23 = vsel %vm990_vm0, %v5829_v49, 0.0  ;;  %v3962_v11 = vsel %vm3856_vm9, %v3961_v17, %v3960_v56 }
 0x1df   : > { %v7676_v6 = vpop.xlane.xlu2 %1331  ;;  %v7678_v50 = vpop.xlane.xlu1 %1328  ;;  %v9315_v37 = vld [vmem:[#allocation45_spill] sm:$0xff]  ;;  %v2727_v2 = vld [vmem:[#allocation10 + $0x60] sm:$0xff]  ;;  %4499 = vmatpush.msrb.mxu2 %v2729_v57  ;;  %4522 = vmatpush.msrb.mxu3 %v2755_v63  ;;  %v3938_v0 = vperm.slane %v7664_v51, %v7370_v15  ;;  %v3976_v16 = vperm.slane %v7671_v32, %v7204_v47 }
 0x1e0   : > { %v7687_v3 = vmul.f32 0.0625, %v9315_v37  ;;  %v7689_v54 = vpop.xlane.xlu0 %1325  ;;  %v2753_v12 = vld [vmem:[#allocation10 + $0x130] sm:$0xff]  ;;  %v9318_v39 = vld [vmem:[#allocation27_spill] sm:$0xff]  ;;  %4539 = vmatpush.msra.mxu0 %v2793_v10  ;;  %4562 = vmatpush.msra.mxu1 %v2819_v20  ;;  %v3975_v57 = vperm.slane %v7674_v1, %v7195_v61  ;;  %v9319_v63 = vld [vmem:[#allocation44_spill] sm:$0xff]  ;;  %v3965_v17 = vperm.slane %v7683_v41, %v7325_v46 }
 0x1e1   : > { %9316 = vst [vmem:[#allocation33_spill] sm:$0xff] %v7689_v54  ;;  %v7701_v26 = vmul.f32 0.0625, %v9318_v39  ;;  %v6230_v9 = vld [vmem:[%s6806_s27 + $0x280] sm:$0xff]   ;;  %v2817_v49 = vld [vmem:[#allocation10 + $0x330] sm:$0xff]  ;;  %v7712_v37 = vmul.f32 0.0625, %v9319_v63  ;;  %v1459_v39 = vsel %vm990_vm0, %v5825_v42, 0.0  ;;  %4500 = vmatpush.msrb.mxu2 %v2727_v2  ;;  %4523 = vmatpush.msrb.mxu3 %v2753_v12  ;;  %v3937_v63 = vsel %vm3868_vm12, %v3936_v27, %v3935_v55 }
 0x1e2   : > { %v2791_v25 = vld [vmem:[#allocation10 + $0x260] sm:$0xff]  ;;  %v2725_v51 = vld [vmem:[#allocation10 + $0x50] sm:$0xff]  ;;  %v3978_v32 = vperm.slane %v7687_v3, %v7216_v59  ;;  %v3964_v42 = vsel %vm3860_vm10, %v3963_v33, %v3962_v11  ;;  %v3967_v2 = vperm.slane %v7694_v4, %v7332_v13  ;;  %v5834_v12 = vunpack.c.h.bf16 %v6230_v9  ;;  %4563 = vmatpush.msra.mxu1 %v2817_v49 }
 0x1e3   : > { %v9320_v10 = vld [vmem:[#allocation38_spill] sm:$0xff]  ;;  %v2751_v1 = vld [vmem:[#allocation10 + $0x120] sm:$0xff]  ;;  %v5833_v54 = vunpack.c.l.bf16 %v6230_v9  ;;  %4540 = vmatpush.msra.mxu0 %v2791_v25  ;;  %v3940_v3 = vperm.slane %v7701_v26, %v7367_v24  ;;  %4501 = vmatpush.msrb.mxu2 %v2725_v51  ;;  %v3939_v33 = vsel %vm3872_vm13, %v3938_v0, %v3937_v63  ;;  %v3977_v4 = vsel %vm3824_vm1, %v3976_v16, %v3975_v57  ;;  %v9323_v0 = vld [vmem:[#allocation37_spill] sm:$0xff] }
 0x1e4   : > { %v7718_v20 = vmul.f32 0.0625, %v9320_v10  ;;  %1466 = vadd.xlane.f32.xlu2 %v1465_v23  ;;  %1463 = vadd.xlane.f32.xlu1 %v1462_v58  ;;  %v2789_v56 = vld [vmem:[#allocation10 + $0x250] sm:$0xff]  ;;  %v2815_v41 = vld [vmem:[#allocation10 + $0x320] sm:$0xff]  ;;  %v3980_v11 = vperm.slane %v7712_v37, %v7220_v35  ;;  %v5830_v25 = vunpack.c.h.bf16 %v7625_v29  ;;  %v7747_v51 = vmul.f32 0.0625, %v9323_v0 }
 0x1e5   : > { %v2723_v10 = vld [vmem:[#allocation10 + $0x40] sm:$0xff]  ;;  %1460 = vadd.xlane.f32.xlu0 %v1459_v39  ;;  %v2749_v27 = vld [vmem:[#allocation10 + $0x110] sm:$0xff]  ;;  %4524 = vmatpush.msrb.mxu3 %v2751_v1  ;;  %v3966_v45 = vsel %vm3864_vm11, %v3965_v17, %v3964_v42  ;;  %v3979_v16 = vsel %vm3828_vm2, %v3978_v32, %v3977_v4  ;;  %v3911_v1 = vperm.slane %v7658_v7, %v7474_v31 }
 0x1e6   : > { %v9322_v23 = vld [vmem:[#allocation43_spill] sm:$0xff]  ;;  %4541 = vmatpush.msra.mxu0 %v2789_v56  ;;  %v2813_v49 = vld [vmem:[#allocation10 + $0x310] sm:$0xff]  ;;  %v3969_v37 = vperm.slane %v7718_v20, %v7370_v15  ;;  %4564 = vmatpush.msra.mxu1 %v2815_v41  ;;  %v3968_v56 = vsel %vm3868_vm12, %v3967_v2, %v3966_v45  ;;  %v1471_v20 = vsel %vm990_vm0, %v5833_v54, 0.0  ;;  %v3942_v17 = vperm.slane %v7727_v52, %v7474_v31  ;;  %v7769_v41 = vld [vmem:[%s6806_s27 + $0x288] sm:$0xff]  }
 0x1e7   : > { %v7732_v58 = vmul.f32 0.0625, %v9322_v23  ;;  %v2787_v55 = vld [vmem:[#allocation10 + $0x240] sm:$0xff]  ;;  %v7741_v9 = vpop.xlane.xlu2 %1340  ;;  %v7743_v26 = vpop.xlane.xlu1 %1337  ;;  %v2721_v39 = vld [vmem:[#allocation10 + $0x30] sm:$0xff]  ;;  %4502 = vmatpush.msrb.mxu2 %v2723_v10  ;;  %v1474_v23 = vsel %vm990_vm0, %v5834_v12, 0.0  ;;  %4525 = vmatpush.msrb.mxu3 %v2749_v27  ;;  %v9325_v54 = vperm.slane %v7661_v44, %v7367_v24  ;;  %v3981_v27 = vsel %vm3832_vm3, %v3980_v11, %v3979_v16 }
 0x1e8   : > { %v2747_v57 = vld [vmem:[#allocation10 + $0x100] sm:$0xff]  ;;  %v2785_v29 = vld [vmem:[#allocation10 + $0x230] sm:$0xff]  ;;  %v7756_v63 = vpop.xlane.xlu0 %1334  ;;  %4542 = vmatpush.msra.mxu0 %v2787_v55  ;;  %4565 = vmatpush.msra.mxu1 %v2813_v49  ;;  %v3984_v52 = vperm.slane %v7739_v19, %v7239_v14  ;;  %v3941_v4 = vsel %vm3876_vm14, %v3940_v3, %v3939_v33  ;;  %v3971_v49 = vperm.slane %v7747_v51, %v7367_v24  ;;  %v5838_v33 = vunpack.c.h.bf16 %v7769_v41 }
 0x1e9   : > { %v7761_v0 = vld [vmem:[%s6806_s27 + $0x290] sm:$0xff]   ;;  %v3982_v32 = vperm.slane %v7732_v58, %v7234_v22  ;;  %v9324_v42 = vld [vmem:[#allocation47_spill] sm:$0xff]  ;;  %4503 = vmatpush.msrb.mxu2 %v2721_v39  ;;  %v3910_v10 = vsel %vm3876_vm14, %v9325_v54, %v7644_v8  ;;  %v1468_v58 = vsel %vm990_vm0, %v5830_v25, 0.0  ;;  %4526 = vmatpush.msrb.mxu3 %v2747_v57  ;;  %v3970_v19 = vsel %vm3872_vm13, %v3969_v37, %v3968_v56 }
 0x1ea   : > { %v2021_v7 = vmul.f32 0.0625, %v9324_v42  ;;  %v2811_v2 = vld [vmem:[#allocation10 + $0x300] sm:$0xff]  ;;  %4543 = vmatpush.msra.mxu0 %v2785_v29  ;;  %v9326_v39 = vld [vmem:[#allocation54_spill] sm:$0xff]  ;;  %v5841_v3 = vunpack.c.l.bf16 %v7761_v0  ;;  %v7798_v56 = vsel %vm3880_vm15, %v3911_v1, %v3910_v10  ;;  %v3972_v10 = vsel %vm3876_vm14, %v3971_v49, %v3970_v19  ;;  %v9333_v49 = vld [vmem:[#allocation49_spill] sm:$0xff] }
 0x1eb   : > { %v2719_v12 = vld [vmem:[#allocation10 + $0x20] sm:$0xff]  ;;  %v2031_v45 = vmul.f32 0.0625, %v9326_v39  ;;  %v2717_v11 = vld [vmem:[#allocation10 + $0x10] sm:$0xff]  ;;  %4566 = vmatpush.msra.mxu1 %v2811_v2  ;;  %v2024_v19 = vmul.f32 0.0625, %v9333_v49 }
 0x1ec   : > { %v2783_v55 = vld [vmem:[#allocation10 + $0x220] sm:$0xff]  ;;  %1475 = vadd.xlane.f32.xlu2 %v1474_v23  ;;  %1472 = vadd.xlane.f32.xlu1 %v1471_v20  ;;  %v9328_v25 = vld [vmem:[#allocation42_spill] sm:$0xff]  ;;  %v3986_v23 = vperm.slane %v2021_v7, %v7248_v34  ;;  %v3983_v20 = vsel %vm3836_vm4, %v3982_v32, %v3981_v27  ;;  %v5837_v32 = vunpack.c.l.bf16 %v7769_v41 }
 0x1ed   : > { %v9327_v44 = vld [vmem:[#allocation59_spill] sm:$0xff]  ;;  %v7785_v8 = vld [vmem:[#allocation5 + $0x6] ss:$8 sm:$0x3]  ;;  %v7789_v16 = vmul.f32 0.0625, %v9328_v25  ;;  %v9329_v57 = vld [vmem:[#allocation46_spill] sm:$0xff]  ;;  %4504 = vmatpush.msrb.mxu2 %v2719_v12  ;;  %1469 = vadd.xlane.f32.xlu0 %v1468_v58  ;;  %v4006_v27 = vperm.slane %v2031_v45, %v7195_v61 }
 0x1ee   : > { %v2032_v42 = vmul.f32 0.0625, %v9327_v44  ;;  %v2022_v29 = vmul.f32 0.0625, %v9329_v57  ;;  %v2781_v51 = vld [vmem:[#allocation10 + $0x210] sm:$0xff]  ;;  %4544 = vmatpush.msra.mxu0 %v2783_v55  ;;  %v2715_v37 = vld [vmem:[#allocation10] sm:$0xff]  ;;  %v3985_v44 = vsel %vm3840_vm5, %v3984_v52, %v3983_v20  ;;  %v2616_v7 = vperm.slane %v7785_v8, 1 }
 0x1ef   : > { %v9330_v54 = vld [vmem:[#allocation50_spill] sm:$0xff]  ;;  %v7802_v24 = vpop.xlane.xlu2 %1349  ;;  %v7804_v2 = vpop.xlane.xlu1 %1346  ;;  %4505 = vmatpush.msrb.mxu2 %v2717_v11  ;;  %v2779_v12 = vld [vmem:[#allocation10 + $0x200] sm:$0xff]  ;;  %v7814_v52 = vsel %vm3880_vm15, %v3942_v17, %v3941_v4  ;;  %v3973_v55 = vperm.slane %v7789_v16, %v7474_v31  ;;  %v1483_v45 = vsel %vm990_vm0, %v5841_v3, 0.0  ;;  %v9334_v4 = vld [vmem:[#allocation57_spill] sm:$0xff] }
 0x1f0   : > { %v2023_v39 = vmul.f32 0.0625, %v9330_v54  ;;  %v9331_v25 = vld [vmem:[#allocation58_spill] sm:$0xff]  ;;  %v4007_v58 = vperm.slane %v2032_v42, %v7204_v47  ;;  %v7810_v1 = vld [vmem:[#allocation5 + $0x7] ss:$8 sm:$0x3]  ;;  %4545 = vmatpush.msra.mxu0 %v2781_v51  ;;  %9332 = vst [vmem:[#allocation21_spill] sm:$0xff] %v7814_v52  ;;  %v3988_v41 = vperm.slane %v2022_v29, %v7265_v60  ;;  %v7819_v11 = vpop.xlane.xlu0 %1343  ;;  %v3987_v51 = vsel %vm3844_vm6, %v3986_v23, %v3985_v44  ;;  %v2676_v16 = vpop.f32.mrf.mxu0 }
 0x1f1   : > { %v2033_v57 = vmul.f32 0.0625, %v9331_v25  ;;  %v7821_v20 = vld [vmem:[#allocation5 + $0x10] ss:$8 sm:$0x3]  ;;  %v1480_v42 = vsel %vm990_vm0, %v5838_v33, 0.0  ;;  %4506 = vmatpush.msrb.mxu2 %v2715_v37  ;;  %v2034_v54 = vmul.f32 0.0625, %v9334_v4  ;;  %v2696_v25 = vpop.f32.mrf.mxu1  ;;  %v2677_v15 = vadd.f32 %v2676_v16, %v2616_v7 }
 0x1f2   : > { %v3990_v17 = vperm.slane %v2023_v39, %v7274_v36  ;;  %v6233_v29 = vld [vmem:[%s6806_s27 + $0x298] sm:$0xff]   ;;  %4546 = vmatpush.msra.mxu0 %v2779_v12  ;;  %v2701_v3 = vperm.slane %v7810_v1, 1  ;;  %v1477_v33 = vsel %vm990_vm0, %v5837_v32, 0.0  ;;  %v9335_v37 = vld [vmem:[#allocation48_spill] sm:$0xff]  ;;  %v4008_v23 = vsel %vm3824_vm1, %v4007_v58, %v4006_v27 }
 0x1f3   : > { %v4009_v31 = vperm.slane %v2033_v57, %v7216_v59  ;;  %v2025_v18 = vmul.f32 0.0625, %v9335_v37  ;;  %v9336_v44 = vld [vmem:[#allocation62_spill] sm:$0xff]  ;;  %v2708_v39 = vperm.slane %v7821_v20, 1  ;;  %v2697_v4 = vadd.f32 %v2696_v25, %v2677_v15 }
 0x1f4   : > { %v2035_v49 = vmul.f32 0.0625, %v9336_v44  ;;  %1484 = vadd.xlane.f32.xlu2 %v1483_v45  ;;  %1481 = vadd.xlane.f32.xlu1 %v1480_v42  ;;  %v2615_v12 = vperm.slane %v7785_v8, 0  ;;  %v5846_v52 = vunpack.c.h.bf16 %v6233_v29  ;;  %v5845_v57 = vunpack.c.l.bf16 %v6233_v29  ;;  %v9337_v42 = vld [vmem:[#allocation61_spill] sm:$0xff]  ;;  %v9338_v44 = vld [vmem:[#allocation52_spill] sm:$0xff] }
 0x1f5   : > { %v3992_v7 = vperm.slane %v2024_v19, %v7301_v30  ;;  %v3989_v16 = vsel %vm3848_vm7, %v3988_v41, %v3987_v51  ;;  %v4011_v32 = vperm.slane %v2034_v54, %v7220_v35  ;;  %1478 = vadd.xlane.f32.xlu0 %v1477_v33  ;;  %v7842_v27 = vsel %vm3880_vm15, %v3973_v55, %v3972_v10  ;;  %v2636_v51 = vpop.f32.mrf.mxu2  ;;  %v2656_v54 = vpop.f32.mrf.mxu3 }
 0x1f6   : > { %v3991_v58 = vsel %vm3852_vm8, %v3990_v17, %v3989_v16  ;;  %v4010_v45 = vsel %vm3828_vm2, %v4009_v31, %v4008_v23  ;;  %v2036_v15 = vmul.f32 0.0625, %v9337_v42  ;;  %v2705_v25 = vmul.f32 %v2701_v3, %v2697_v4  ;;  %v2905_v42 = vld [vmem:[#allocation10 + $0x5f0] sm:$0xff] }
 0x1f7   : > { %v7847_v8 = vpop.xlane.xlu2 %1358  ;;  %v7849_v29 = vpop.xlane.xlu1 %1355  ;;  %v3994_v19 = vperm.slane %v2025_v18, %v7311_v28  ;;  %v4013_v41 = vperm.slane %v2035_v49, %v7234_v22  ;;  %v2700_v10 = vperm.slane %v7810_v1, 0  ;;  %v5842_v55 = vunpack.c.h.bf16 %v7761_v0  ;;  %v9339_v49 = vld [vmem:[#allocation60_spill] sm:$0xff] }
 0x1f8   : > { %v2712_v17 = vadd.f32 %v2708_v39, %v2705_v25  ;;  %v2637_v33 = vadd.f32 %v2636_v51, %v2615_v12  ;;  %v7855_v31 = vpop.xlane.xlu0 %1352  ;;  %v1492_v3 = vsel %vm990_vm0, %v5846_v52, 0.0  ;;  %v1489_v37 = vsel %vm990_vm0, %v5845_v57, 0.0  ;;  %v2969_v52 = vld [vmem:[#allocation10 + $0x7f0] sm:$0xff] }
 0x1f9   : > { %v3993_v23 = vsel %vm3856_vm9, %v3992_v7, %v3991_v58  ;;  %v7861_v18 = vmul.f32 0.0625, %v9338_v44  ;;  %v7864_v4 = vmul.f32 0.0625, %v9339_v49  ;;  %v4012_v1 = vsel %vm3832_vm3, %v4011_v32, %v4010_v45  ;;  %v9340_v45 = vld [vmem:[#allocation53_spill] sm:$0xff] }
 0x1fa   : > { %v4015_v0 = vperm.slane %v2036_v15, %v7239_v14  ;;  %v2714_v39 = vmax.f32 %v2712_v17, 0.0  ;;  %v2657_v12 = vadd.f32 %v2656_v54, %v2637_v33  ;;  %v2707_v16 = vperm.slane %v7821_v20, 0  ;;  %v7889_v17 = vld [vmem:[%s6806_s27 + $0x2a8] sm:$0xff]  }
 0x1fb   : > { %v4014_v57 = vsel %vm3836_vm4, %v4013_v41, %v4012_v1  ;;  %v2064_v7 = vmul.f32 0.0625, %v7676_v6  ;;  %v2063_v58 = vmul.f32 0.0625, %v7678_v50  ;;  %v1486_v25 = vsel %vm990_vm0, %v5842_v55, 0.0  ;;  %v2903_v6 = vld [vmem:[#allocation10 + $0x5e0] sm:$0xff] }
 0x1fc   : > { %1493 = vadd.xlane.f32.xlu2 %v1492_v3  ;;  %1490 = vadd.xlane.f32.xlu1 %v1489_v37  ;;  %v7874_v32 = vsel %vm3860_vm10, %v3994_v19, %v3993_v23  ;;  %v7877_v15 = vmul.f32 0.0625, %v9340_v45  ;;  %v7880_v20 = vmul.f32 0.0625, %v7756_v63  ;;  %v2704_v41 = vmul.f32 %v2700_v10, %v2657_v12  ;;  %v2967_v50 = vld [vmem:[#allocation10 + $0x7e0] sm:$0xff]  ;;  %v9342_v37 = vld [vmem:[#allocation65_spill] sm:$0xff] }
 0x1fd   : > { %3455 = vmatmul.f32.vlgmr.msra.gmra.mxu3 %v2714_v39  ;;  %3495 = vmatmul.f32.vlgmr.msrb.gmra.mxu1 %v2714_v39  ;;  %v4017_v54 = vperm.slane %v7864_v4, %v7248_v34  ;;  %v2048_v19 = vmul.f32 0.0625, %v7343_v43  ;;  %v2047_v55 = vmul.f32 0.0625, %v7354_v62  ;;  %v6234_v63 = vld [vmem:[%s6806_s27 + $0x2a0] sm:$0xff]   ;;  %v4016_v10 = vsel %vm3840_vm5, %v4015_v0, %v4014_v57  ;;  %v2901_v43 = vld [vmem:[#allocation10 + $0x5d0] sm:$0xff] }
 0x1fe   : > { %4591 = vmatpush.msra.mxu3 %v2905_v42  ;;  %4631 = vmatpush.msrb.mxu1 %v2969_v52  ;;  %v9341_v33 = vld [vmem:[#allocation64_spill] sm:$0xff]  ;;  %v2038_v23 = vmul.f32 0.0625, %v9342_v37  ;;  %v2711_v44 = vadd.f32 %v2707_v16, %v2704_v41  ;;  %v2965_v62 = vld [vmem:[#allocation10 + $0x7d0] sm:$0xff]  ;;  %v7902_v1 = vmul.f32 0.0625, %v7341_v40  ;;  %v4069_v39 = vperm.slane %v2064_v7, %v7204_v47 }
 0x1ff   : > { %v7894_v3 = vmul.f32 0.0625, %v9341_v33  ;;  %1487 = vadd.xlane.f32.xlu0 %v1486_v25  ;;  %v7897_v49 = vpop.xlane.xlu2 %1367  ;;  %v7899_v4 = vpop.xlane.xlu1 %1364  ;;  %v4068_v0 = vperm.slane %v2063_v58, %v7195_v61  ;;  %v2066_v12 = vmul.f32 0.0625, %v7743_v26  ;;  %v4071_v16 = vperm.slane %v7880_v20, %v7216_v59  ;;  %v2873_v57 = vld [vmem:[#allocation10 + $0x4f0] sm:$0xff]  ;;  %v2899_v25 = vld [vmem:[#allocation10 + $0x5c0] sm:$0xff] }
 0x200   : > { %4592 = vmatpush.msra.mxu3 %v2903_v6  ;;  %4632 = vmatpush.msrb.mxu1 %v2967_v50  ;;  %v2713_v42 = vmax.f32 %v2711_v44, 0.0  ;;  %v7909_v52 = vpop.xlane.xlu0 %1361  ;;  %v5853_v45 = vunpack.c.l.bf16 %v7889_v17  ;;  %v5850_v40 = vunpack.c.h.bf16 %v6234_v63  ;;  %v4038_v41 = vperm.slane %v2048_v19, %v7204_v47  ;;  %v2937_v26 = vld [vmem:[#allocation10 + $0x6f0] sm:$0xff]  ;;  %v2963_v6 = vld [vmem:[#allocation10 + $0x7c0] sm:$0xff] }
 0x201   : > { %v4037_v7 = vperm.slane %v2047_v55, %v7195_v61  ;;  %v7915_v58 = vmul.f32 0.0625, %v7421_v38  ;;  %v5849_v20 = vunpack.c.l.bf16 %v6234_v63  ;;  %v9343_v50 = vld [vmem:[#allocation63_spill] sm:$0xff]  ;;  %v4018_v37 = vsel %vm3844_vm6, %v4017_v54, %v4016_v10  ;;  %v2897_v38 = vld [vmem:[#allocation10 + $0x5b0] sm:$0xff] }
 0x202   : > { %4593 = vmatpush.msra.mxu3 %v2901_v43  ;;  %4633 = vmatpush.msrb.mxu1 %v2965_v62  ;;  %v7918_v33 = vmul.f32 0.0625, %v9343_v50  ;;  %v4019_v44 = vperm.slane %v2038_v23, %v7265_v60  ;;  %v7923_v51 = vmul.f32 0.0625, %v7741_v9  ;;  %v2871_v19 = vld [vmem:[#allocation10 + $0x4e0] sm:$0xff]  ;;  %v4040_v55 = vperm.slane %v7902_v1, %v7216_v59  ;;  %v2961_v10 = vld [vmem:[#allocation10 + $0x7b0] sm:$0xff] }
 0x203   : > { %3435 = vmatmul.f32.vlgmr.msra.gmra.mxu2 %v2713_v42  ;;  %3475 = vmatmul.f32.vlgmr.msrb.gmra.mxu0 %v2713_v42  ;;  %v4070_v43 = vsel %vm3824_vm1, %v4069_v39, %v4068_v0  ;;  %v4073_v63 = vperm.slane %v2066_v12, %v7220_v35  ;;  %v7930_v62 = vmul.f32 0.0625, %v7819_v11  ;;  %v2935_v54 = vld [vmem:[#allocation10 + $0x6e0] sm:$0xff]  ;;  %v7933_v9 = vmul.f32 0.0625, %v7411_v48 }
 0x204   : > { %4571 = vmatpush.msra.mxu2 %v2873_v57  ;;  %4594 = vmatpush.msra.mxu3 %v2899_v25  ;;  %v4072_v23 = vsel %vm3828_vm2, %v4071_v16, %v4070_v43  ;;  %v1501_v1 = vsel %vm990_vm0, %v5853_v45, 0.0  ;;  %v1498_v39 = vsel %vm990_vm0, %v5850_v40, 0.0  ;;  %v4021_v0 = vperm.slane %v7894_v3, %v7274_v36  ;;  %v2869_v3 = vld [vmem:[#allocation10 + $0x4d0] sm:$0xff]  ;;  %v9346_v50 = vld [vmem:[#allocation51_spill] sm:$0xff] }
 0x205   : > { %4611 = vmatpush.msrb.mxu0 %v2937_v26  ;;  %4634 = vmatpush.msrb.mxu1 %v2963_v6  ;;  %v4039_v11 = vsel %vm3824_vm1, %v4038_v41, %v4037_v7  ;;  %v4042_v12 = vperm.slane %v7915_v58, %v7220_v35  ;;  %v1495_v48 = vsel %vm990_vm0, %v5849_v20, 0.0  ;;  %v3996_v16 = vperm.slane %v7877_v15, %v7325_v46  ;;  %v9344_v41 = vld [vmem:[#allocation68_spill] sm:$0xff]  ;;  %v9345_v58 = vld [vmem:[#allocation74_spill] sm:$0xff] }
 0x206   : > { %4572 = vmatpush.msra.mxu2 %v2871_v19  ;;  %4595 = vmatpush.msra.mxu3 %v2897_v38  ;;  %v4020_v42 = vsel %vm3848_vm7, %v4019_v44, %v4018_v37  ;;  %v4075_v57 = vperm.slane %v7923_v51, %v7234_v22  ;;  %v7950_v25 = vmul.f32 0.0625, %v7804_v2  ;;  %v7957_v7 = vmul.f32 0.0625, %v9344_v41  ;;  %v2895_v51 = vld [vmem:[#allocation10 + $0x5a0] sm:$0xff]  ;;  %v2933_v20 = vld [vmem:[#allocation10 + $0x6d0] sm:$0xff] }
 0x207   : > { %4612 = vmatpush.msrb.mxu0 %v2935_v54  ;;  %4635 = vmatpush.msrb.mxu1 %v2961_v10  ;;  %v7952_v45 = vpop.xlane.xlu2 %1376  ;;  %v7954_v40 = vpop.xlane.xlu1 %1373  ;;  %v7960_v26 = vmul.f32 0.0625, %v9345_v58  ;;  %v4074_v6 = vsel %vm3832_vm3, %v4073_v63, %v4072_v23  ;;  %v4077_v2 = vperm.slane %v7930_v62, %v7239_v14  ;;  %v7966_v37 = vmul.f32 0.0625, %v9346_v50  ;;  %v2959_v43 = vld [vmem:[#allocation10 + $0x7a0] sm:$0xff]  ;;  %v6236_v54 = vld [vmem:[%s6806_s27 + $0x2b0] sm:$0xff]  }
 0x208   : > { %1502 = vadd.xlane.f32.xlu2 %v1501_v1  ;;  %1499 = vadd.xlane.f32.xlu1 %v1498_v39  ;;  %v4023_v44 = vperm.slane %v7918_v33, %v7301_v30  ;;  %v4044_v19 = vperm.slane %v7933_v9, %v7234_v22  ;;  %v4041_v38 = vsel %vm3828_vm2, %v4040_v55, %v4039_v11  ;;  %v7974_v63 = vpop.xlane.xlu0 %1370  ;;  %v2867_v62 = vld [vmem:[#allocation10 + $0x4c0] sm:$0xff]  ;;  %v2053_v1 = vmul.f32 0.0625, %v7481_v21  ;;  %v2893_v55 = vld [vmem:[#allocation10 + $0x590] sm:$0xff] }
 0x209   : > { %1496 = vadd.xlane.f32.xlu0 %v1495_v48  ;;  %4527 = vmatmul.f32.vlgmr.msrb.gmra.mxu3 %v7798_v56  ;;  %v4022_v10 = vsel %vm3852_vm8, %v4021_v0, %v4020_v42  ;;  %v4043_v23 = vsel %vm3832_vm3, %v4042_v12, %v4041_v38  ;;  %v7981_v33 = vmul.f32 0.0625, %v7802_v24  ;;  %v2931_v9 = vld [vmem:[#allocation10 + $0x6c0] sm:$0xff]  ;;  %v4079_v48 = vperm.slane %v7950_v25, %v7248_v34  ;;  %v2957_v24 = vld [vmem:[#allocation10 + $0x790] sm:$0xff] }
 0x20a   : > { %4567 = vmatmul.f32.vlgmr.msra.gmra.mxu1 %v7842_v27  ;;  %4573 = vmatpush.msra.mxu2 %v2869_v3  ;;  %v9347_v39 = vld [vmem:[#allocation67_spill] sm:$0xff]  ;;  %v4076_v0 = vsel %vm3836_vm4, %v4075_v57, %v4074_v6  ;;  %v7991_v12 = vmul.f32 0.0625, %v7855_v31  ;;  %v4025_v21 = vperm.slane %v7957_v7, %v7311_v28  ;;  %v4046_v42 = vperm.slane %v7960_v26, %v7239_v14  ;;  %v2865_v41 = vld [vmem:[#allocation10 + $0x4b0] sm:$0xff] }
 0x20b   : > { %v7985_v11 = vmul.f32 0.0625, %v9347_v39  ;;  %4596 = vmatpush.msra.mxu3 %v2895_v51  ;;  %4613 = vmatpush.msrb.mxu0 %v2933_v20  ;;  %v4078_v3 = vsel %vm3840_vm5, %v4077_v2, %v4076_v0  ;;  %v5858_v25 = vunpack.c.h.bf16 %v6236_v54  ;;  %v4045_v57 = vsel %vm3836_vm4, %v4044_v19, %v4043_v23  ;;  %v2891_v58 = vld [vmem:[#allocation10 + $0x580] sm:$0xff]  ;;  %v2929_v6 = vld [vmem:[#allocation10 + $0x6b0] sm:$0xff] }
 0x20c   : > { %4636 = vmatpush.msrb.mxu1 %v2959_v43  ;;  %4574 = vmatpush.msra.mxu2 %v2867_v62  ;;  %v8000_v31 = vmul.f32 0.0625, %v7470_v5  ;;  %v5857_v51 = vunpack.c.l.bf16 %v6236_v54  ;;  %v5854_v7 = vunpack.c.h.bf16 %v7889_v17  ;;  %v4024_v26 = vsel %vm3856_vm9, %v4023_v44, %v4022_v10  ;;  %v2955_v5 = vld [vmem:[#allocation10 + $0x780] sm:$0xff]  ;;  %v9348_v38 = vld [vmem:[#allocation66_spill] sm:$0xff]  ;;  %v9349_v54 = vld [vmem:[#allocation21_spill] sm:$0xff] }
 0x20d   : > { %4597 = vmatpush.msra.mxu3 %v2893_v55  ;;  %4614 = vmatpush.msrb.mxu0 %v2931_v9  ;;  %v4048_v2 = vperm.slane %v2053_v1, %v7248_v34  ;;  %v4081_v20 = vperm.slane %v7981_v33, %v7265_v60  ;;  %v8008_v50 = vmul.f32 0.0625, %v7849_v29  ;;  %v2863_v19 = vld [vmem:[#allocation10 + $0x4a0] sm:$0xff]  ;;  %v8012_v43 = vmul.f32 0.0625, %v9348_v38  ;;  %v2889_v29 = vld [vmem:[#allocation10 + $0x570] sm:$0xff] }
 0x20e   : > { %4637 = vmatpush.msrb.mxu1 %v2957_v24  ;;  %4507 = vmatmul.f32.vlgmr.msrb.gmra.mxu2 %v7636_v53  ;;  %v4027_v17 = vperm.slane %v7985_v11, %v7325_v46  ;;  %v4080_v44 = vsel %vm3844_vm6, %v4079_v48, %v4078_v3  ;;  %v4083_v62 = vperm.slane %v7991_v12, %v7274_v36  ;;  %v2927_v10 = vld [vmem:[#allocation10 + $0x6a0] sm:$0xff]  ;;  %v2953_v11 = vld [vmem:[#allocation10 + $0x770] sm:$0xff]  ;;  %v1510_v48 = vsel %vm990_vm0, %v5858_v25, 0.0 }
 0x20f   : > { %4547 = vmatmul.f32.vlgmr.msra.gmra.mxu0 %v9349_v54  ;;  %4575 = vmatpush.msra.mxu2 %v2865_v41  ;;  %v8020_v23 = vpop.xlane.xlu2 %1385  ;;  %v8022_v1 = vpop.xlane.xlu1 %1382  ;;  %v4026_v33 = vsel %vm3860_vm10, %v4025_v21, %v4024_v26  ;;  %v9350_v55 = vld [vmem:[#allocation75_spill] sm:$0xff]  ;;  %v4047_v39 = vsel %vm3840_vm5, %v4046_v42, %v4045_v57  ;;  %v4050_v0 = vperm.slane %v8000_v31, %v7265_v60  ;;  %v8033_v12 = vmul.f32 0.0625, %v7847_v8  ;;  %v2861_v57 = vld [vmem:[#allocation10 + $0x490] sm:$0xff] }
 0x210   : > { %v8026_v9 = vmul.f32 0.0625, %v9350_v55  ;;  %4598 = vmatpush.msra.mxu3 %v2891_v58  ;;  %4615 = vmatpush.msrb.mxu0 %v2929_v6  ;;  %v1507_v24 = vsel %vm990_vm0, %v5857_v51, 0.0  ;;  %v1504_v21 = vsel %vm990_vm0, %v5854_v7, 0.0  ;;  %v8037_v3 = vpop.xlane.xlu0 %1379  ;;  %v4049_v42 = vsel %vm3844_vm6, %v4048_v2, %v4047_v39  ;;  %v2887_v31 = vld [vmem:[#allocation10 + $0x560] sm:$0xff]  ;;  %v2925_v58 = vld [vmem:[#allocation10 + $0x690] sm:$0xff] }
 0x211   : > { %4638 = vmatpush.msrb.mxu1 %v2955_v5  ;;  %4576 = vmatpush.msra.mxu2 %v2863_v19  ;;  %v4085_v41 = vperm.slane %v8008_v50, %v7301_v30  ;;  %v4082_v25 = vsel %vm3848_vm7, %v4081_v20, %v4080_v44  ;;  %v8044_v8 = vmul.f32 0.0625, %v7909_v52  ;;  %v4029_v6 = vperm.slane %v8012_v43, %v7332_v13  ;;  %v9351_v51 = vld [vmem:[#allocation71_spill] sm:$0xff]  ;;  %v9352_v26 = vld [vmem:[#allocation30_spill] sm:$0xff] }
 0x212   : > { %4599 = vmatpush.msra.mxu3 %v2889_v29  ;;  %4616 = vmatpush.msrb.mxu0 %v2927_v10  ;;  %v8049_v7 = vmul.f32 0.0625, %v9351_v51  ;;  %v8052_v2 = vmul.f32 0.0625, %v9352_v26  ;;  %v4084_v50 = vsel %vm3852_vm8, %v4083_v62, %v4082_v25  ;;  %v2951_v52 = vld [vmem:[#allocation10 + $0x760] sm:$0xff]  ;;  %v8059_v5 = vld [vmem:[%s6806_s27 + $0x2b8] sm:$0xff]   ;;  %v8066_v19 = vsel %vm3864_vm11, %v3996_v16, %v7874_v32  ;;  %v9356_v51 = vld [vmem:[#allocation69_spill] sm:$0xff] }
 0x213   : > { %4639 = vmatpush.msrb.mxu1 %v2953_v11  ;;  %1511 = vadd.xlane.f32.xlu2 %v1510_v48  ;;  %v8056_v20 = vld [vmem:[%s6806_s27 + $0x2c0] sm:$0xff]   ;;  %v4028_v38 = vsel %vm3864_vm11, %v4027_v17, %v4026_v33  ;;  %v9353_v43 = vld [vmem:[#allocation70_spill] sm:$0xff]  ;;  %v4052_v62 = vperm.slane %v8026_v9, %v7274_v36  ;;  %v4051_v55 = vsel %vm3848_vm7, %v4050_v0, %v4049_v42  ;;  %v8081_v15 = vmul.f32 0.0625, %v7899_v4 }
 0x214   : > { %v8070_v44 = vmul.f32 0.0625, %v9353_v43  ;;  %1508 = vadd.xlane.f32.xlu1 %v1507_v24  ;;  %1505 = vadd.xlane.f32.xlu0 %v1504_v21  ;;  %v2859_v29 = vld [vmem:[#allocation10 + $0x480] sm:$0xff]  ;;  %v2885_v10 = vld [vmem:[#allocation10 + $0x550] sm:$0xff]  ;;  %v4087_v32 = vperm.slane %v8033_v12, %v7311_v28  ;;  %v4086_v33 = vsel %vm3856_vm9, %v4085_v41, %v4084_v50  ;;  %v4089_v9 = vperm.slane %v8044_v8, %v7325_v46 }
 0x215   : > { %v9354_v39 = vld [vmem:[#allocation18_spill] sm:$0xff]  ;;  %4577 = vmatpush.msra.mxu2 %v2861_v57  ;;  %4600 = vmatpush.msra.mxu3 %v2887_v31  ;;  %v2923_v16 = vld [vmem:[#allocation10 + $0x680] sm:$0xff]  ;;  %v5865_v24 = vunpack.c.l.bf16 %v8056_v20  ;;  %v5862_v12 = vunpack.c.h.bf16 %v8059_v5  ;;  %v9355_v21 = vld [vmem:[#allocation73_spill] sm:$0xff]  ;;  %v4054_v42 = vperm.slane %v8052_v2, %v7301_v30  ;;  %v5861_v8 = vunpack.c.l.bf16 %v8059_v5 }
 0x216   : > { %v8076_v11 = vmul.f32 0.0625, %v9354_v39  ;;  %v2949_v17 = vld [vmem:[#allocation10 + $0x750] sm:$0xff]  ;;  %4617 = vmatpush.msrb.mxu0 %v2925_v58  ;;  %4640 = vmatpush.msrb.mxu1 %v2951_v52  ;;  %v2883_v0 = vld [vmem:[#allocation10 + $0x540] sm:$0xff]  ;;  %v4031_v4 = vperm.slane %v8049_v7, %v9355_v21  ;;  %v4030_v58 = vsel %vm3868_vm12, %v4029_v6, %v4028_v38  ;;  %v8099_v26 = vmul.f32 0.0625, %v9356_v51 }
 0x217   : > { %v2857_v48 = vld [vmem:[#allocation10 + $0x470] sm:$0xff]  ;;  %4578 = vmatpush.msra.mxu2 %v2859_v29  ;;  %4601 = vmatpush.msra.mxu3 %v2885_v10  ;;  %v2947_v25 = vld [vmem:[#allocation10 + $0x740] sm:$0xff]  ;;  %v8093_v57 = vpop.xlane.xlu2 %1394  ;;  %v8095_v31 = vpop.xlane.xlu1 %1391  ;;  %v4053_v2 = vsel %vm3852_vm8, %v4052_v62, %v4051_v55  ;;  %v8105_v52 = vmul.f32 0.0625, %v7897_v49  ;;  %v4091_v6 = vperm.slane %v8081_v15, %v7332_v13  ;;  %v4088_v38 = vsel %vm3860_vm10, %v4087_v32, %v4086_v33 }
 0x218   : > { %v2921_v41 = vld [vmem:[#allocation10 + $0x670] sm:$0xff]  ;;  %v9357_v50 = vld [vmem:[#allocation72_spill] sm:$0xff]  ;;  %4618 = vmatpush.msrb.mxu0 %v2923_v16  ;;  %4641 = vmatpush.msrb.mxu1 %v2949_v17  ;;  %v8114_v39 = vmul.f32 0.0625, %v7974_v63  ;;  %v8116_v62 = vpop.xlane.xlu0 %1388  ;;  %v4056_v55 = vperm.slane %v8076_v11, %v7311_v28  ;;  %v4090_v16 = vsel %vm3864_vm11, %v4089_v9, %v4088_v38  ;;  %v1519_v15 = vsel %vm990_vm0, %v5865_v24, 0.0 }
 0x219   : > { %v4033_v7 = vperm.slane %v8070_v44, %v9357_v50  ;;  %v2855_v5 = vld [vmem:[#allocation10 + $0x460] sm:$0xff]  ;;  %v2881_v43 = vld [vmem:[#allocation10 + $0x530] sm:$0xff]  ;;  %4579 = vmatpush.msra.mxu2 %v2857_v48  ;;  %4602 = vmatpush.msra.mxu3 %v2883_v0  ;;  %v1516_v32 = vsel %vm990_vm0, %v5862_v12, 0.0  ;;  %v4055_v63 = vsel %vm3856_vm9, %v4054_v42, %v4053_v2  ;;  %v1513_v48 = vsel %vm990_vm0, %v5861_v8, 0.0 }
 0x21a   : > { %v9358_v29 = vld [vmem:[#allocation16_spill] sm:$0xff]  ;;  %v2945_v49 = vld [vmem:[#allocation10 + $0x730] sm:$0xff]  ;;  %4619 = vmatpush.msrb.mxu0 %v2921_v41  ;;  %4642 = vmatpush.msrb.mxu1 %v2947_v25  ;;  %v4032_v9 = vsel %vm3872_vm13, %v4031_v4, %v4030_v58  ;;  %v4093_v12 = vperm.slane %v8105_v52, %v9355_v21  ;;  %v8134_v41 = vmul.f32 0.0625, %v7954_v40  ;;  %v9360_v4 = vperm.slane %v7861_v18, %v7332_v13 }
 0x21b   : > { %v8108_v10 = vmul.f32 0.0625, %v9358_v29  ;;  %v2919_v44 = vld [vmem:[#allocation10 + $0x660] sm:$0xff]  ;;  %v9359_v17 = vld [vmem:[#allocation29_spill] sm:$0xff]  ;;  %4580 = vmatpush.msra.mxu2 %v2855_v5  ;;  %4603 = vmatpush.msra.mxu3 %v2881_v43  ;;  %v4095_v5 = vperm.slane %v8114_v39, %v9357_v50  ;;  %v4092_v38 = vsel %vm3868_vm12, %v4091_v6, %v4090_v16  ;;  %v4034_v39 = vsel %vm3876_vm14, %v4033_v7, %v4032_v9 }
 0x21c   : > { %v8125_v33 = vmul.f32 0.0625, %v9359_v17  ;;  %v2853_v11 = vld [vmem:[#allocation10 + $0x450] sm:$0xff]  ;;  %v2879_v0 = vld [vmem:[#allocation10 + $0x520] sm:$0xff]  ;;  %4620 = vmatpush.msrb.mxu0 %v2919_v44  ;;  %4643 = vmatpush.msrb.mxu1 %v2945_v49  ;;  %v8147_v8 = vsel %vm3868_vm12, %v9360_v4, %v8066_v19  ;;  %v4057_v19 = vsel %vm3860_vm10, %v4056_v55, %v4055_v63 }
 0x21d   : > { %v2917_v42 = vld [vmem:[#allocation10 + $0x650] sm:$0xff]  ;;  %v8137_v25 = vld [vmem:[%s6806_s27 + $0x308] sm:$0xff]   ;;  %v8140_v51 = vld [vmem:[%s6806_s27 + $0x300] sm:$0xff]   ;;  %1520 = vadd.xlane.f32.xlu2 %v1519_v15  ;;  %1517 = vadd.xlane.f32.xlu1 %v1516_v32  ;;  %v4058_v18 = vperm.slane %v8108_v10, %v7325_v46 }
 0x21e   : > { %v9361_v58 = vld [vmem:[#allocation56_spill] sm:$0xff]  ;;  %v9363_v44 = vld [vmem:[#allocation17_spill] sm:$0xff]  ;;  %1514 = vadd.xlane.f32.xlu0 %v1513_v48  ;;  %4581 = vmatpush.msra.mxu2 %v2853_v11  ;;  %v4060_v15 = vperm.slane %v8125_v33, %v7332_v13  ;;  %v5901_v10 = vunpack.c.l.bf16 %v8137_v25  ;;  %v5898_v55 = vunpack.c.h.bf16 %v8140_v51  ;;  %v5897_v32 = vunpack.c.l.bf16 %v8140_v51  ;;  %v9364_v4 = vld [vmem:[#allocation55_spill] sm:$0xff] }
 0x21f   : > { %v8150_v2 = vmul.f32 0.0625, %v9361_v58  ;;  %v9362_v52 = vld [vmem:[#allocation76_spill] sm:$0xff]  ;;  %v8161_v49 = vmul.f32 0.0625, %v9363_v44  ;;  %4604 = vmatpush.msra.mxu3 %v2879_v0  ;;  %4621 = vmatpush.msrb.mxu0 %v2917_v42  ;;  %v2941_v6 = vld [vmem:[#allocation10 + $0x710] sm:$0xff]  ;;  %v8169_v63 = vpop.xlane.xlu2 %1403  ;;  %v8171_v48 = vpop.xlane.xlu1 %1400  ;;  %v2079_v11 = vmul.f32 0.0625, %v7952_v45  ;;  %v2080_v33 = vmul.f32 0.0625, %v8037_v3 }
 0x220   : > { %v4035_v40 = vperm.slane %v8099_v26, %v9362_v52  ;;  %v2943_v43 = vld [vmem:[#allocation10 + $0x720] sm:$0xff]  ;;  %v2877_v26 = vld [vmem:[#allocation10 + $0x510] sm:$0xff]  ;;  %v4097_v7 = vperm.slane %v8134_v41, %v9362_v52  ;;  %v4094_v42 = vsel %vm3872_vm13, %v4093_v12, %v4092_v38  ;;  %v8179_v58 = vmul.f32 0.0625, %v9364_v4  ;;  %v8185_v3 = vpop.xlane.xlu0 %1397 }
 0x221   : > { %v2851_v29 = vld [vmem:[#allocation10 + $0x440] sm:$0xff]  ;;  %v2849_v16 = vld [vmem:[#allocation10 + $0x430] sm:$0xff]  ;;  %4644 = vmatpush.msrb.mxu1 %v2943_v43  ;;  %v4002_v51 = vperm.slane %v8150_v2, %v9357_v50  ;;  %4605 = vmatpush.msra.mxu3 %v2877_v26  ;;  %v4096_v41 = vsel %vm3876_vm14, %v4095_v5, %v4094_v42  ;;  %v4062_v43 = vperm.slane %v8161_v49, %v9355_v21  ;;  %v2081_v5 = vmul.f32 0.0625, %v8022_v1 }
 0x222   : > { %v2915_v17 = vld [vmem:[#allocation10 + $0x640] sm:$0xff]  ;;  %4582 = vmatpush.msra.mxu2 %v2851_v29  ;;  %v2913_v9 = vld [vmem:[#allocation10 + $0x630] sm:$0xff]  ;;  %v4059_v12 = vsel %vm3864_vm11, %v4058_v18, %v4057_v19  ;;  %v8192_v2 = vsel %vm3880_vm15, %v4035_v40, %v4034_v39  ;;  %v1573_v49 = vsel %vm990_vm0, %v5901_v10, 0.0  ;;  %v1570_v18 = vsel %vm990_vm0, %v5898_v55, 0.0 }
 0x223   : > { %v2875_v0 = vld [vmem:[#allocation10 + $0x500] sm:$0xff]  ;;  %v9365_v44 = vld [vmem:[#allocation22_spill] sm:$0xff]  ;;  %4622 = vmatpush.msrb.mxu0 %v2915_v17  ;;  %v9366_v29 = vld [vmem:[#allocation33_spill] sm:$0xff]  ;;  %4645 = vmatpush.msrb.mxu1 %v2941_v6  ;;  %v4061_v17 = vsel %vm3868_vm12, %v4060_v15, %v4059_v12  ;;  %v4099_v19 = vperm.slane %v2079_v11, %v7195_v61  ;;  %v4100_v6 = vperm.slane %v2080_v33, %v7204_v47  ;;  %v1567_v39 = vsel %vm990_vm0, %v5897_v32, 0.0 }
 0x224   : > { %v2061_v24 = vmul.f32 0.0625, %v9365_v44  ;;  %v2939_v45 = vld [vmem:[#allocation10 + $0x700] sm:$0xff]  ;;  %v2062_v38 = vmul.f32 0.0625, %v9366_v29  ;;  %4583 = vmatpush.msra.mxu2 %v2849_v16  ;;  %4606 = vmatpush.msra.mxu3 %v2875_v0  ;;  %v8202_v40 = vsel %vm3880_vm15, %v4097_v7, %v4096_v41  ;;  %v2845_v16 = vld [vmem:[#allocation10 + $0x410] sm:$0xff]  ;;  %v9367_v55 = vperm.slane %v7966_v37, %v9355_v21 }
 0x225   : > { %v2847_v26 = vld [vmem:[#allocation10 + $0x420] sm:$0xff]  ;;  %4623 = vmatpush.msrb.mxu0 %v2913_v9  ;;  %4646 = vmatpush.msrb.mxu1 %v2939_v45  ;;  %v2909_v10 = vld [vmem:[#allocation10 + $0x610] sm:$0xff]  ;;  %v4004_v7 = vperm.slane %v8179_v58, %v9362_v52  ;;  %v2082_v32 = vmul.f32 0.0625, %v8020_v23  ;;  %v4102_v0 = vperm.slane %v2081_v5, %v7216_v59  ;;  %v2083_v9 = vmul.f32 0.0625, %v8116_v62 }
 0x226   : > { %v2911_v42 = vld [vmem:[#allocation10 + $0x620] sm:$0xff]  ;;  %4607 = vmatmul.f32.vlgmr.msra.gmra.mxu3 %v8192_v2  ;;  %v4064_v15 = vperm.slane %v2061_v24, %v9357_v50  ;;  %4647 = vmatmul.f32.vlgmr.msrb.gmra.mxu1 %v8202_v40  ;;  %v4001_v11 = vsel %vm3872_vm13, %v9367_v55, %v8147_v8  ;;  %v4066_v33 = vperm.slane %v2062_v38, %v9362_v52  ;;  %v3001_v12 = vld [vmem:[#allocation10 + $0x8f0] sm:$0xff] }
 0x227   : > { %v6254_v1 = vld [vmem:[%s6806_s27 + $0x340] sm:$0xff]   ;;  %4584 = vmatpush.msra.mxu2 %v2847_v26  ;;  %4624 = vmatpush.msrb.mxu0 %v2911_v42  ;;  %v4063_v24 = vsel %vm3872_vm13, %v4062_v43, %v4061_v17  ;;  %v4003_v8 = vsel %vm3876_vm14, %v4002_v51, %v4001_v11  ;;  %v8221_v58 = vpop.xlane.xlu2 %1412  ;;  %v8223_v45 = vpop.xlane.xlu1 %1409  ;;  %v4101_v23 = vsel %vm3824_vm1, %v4100_v6, %v4099_v19  ;;  %v5902_v43 = vunpack.c.h.bf16 %v8137_v25  ;;  %v2997_v6 = vld [vmem:[#allocation10 + $0x8d0] sm:$0xff] }
 0x228   : > { %1574 = vadd.xlane.f32.xlu2 %v1573_v49  ;;  %1571 = vadd.xlane.f32.xlu1 %v1570_v18  ;;  %v2843_v37 = vld [vmem:[#allocation10 + $0x400] sm:$0xff]  ;;  %v5930_v44 = vunpack.c.h.bf16 %v6254_v1  ;;  %v5929_v41 = vunpack.c.l.bf16 %v6254_v1  ;;  %v4065_v62 = vsel %vm3876_vm14, %v4064_v15, %v4063_v24  ;;  %v1407_v29 = vpop.xlane.xlu0 %1406  ;;  %v4104_v38 = vperm.slane %v2082_v32, %v7220_v35  ;;  %v8248_v1 = vld [vmem:[%s6806_s27 + $0x310] sm:$0xff]  }
 0x229   : > { %1568 = vadd.xlane.f32.xlu0 %v1567_v39  ;;  %v2907_v4 = vld [vmem:[#allocation10 + $0x600] sm:$0xff]  ;;  %4585 = vmatpush.msra.mxu2 %v2845_v16  ;;  %v2084_v51 = vmul.f32 0.0625, %v8095_v31  ;;  %v8231_v26 = vsel %vm3880_vm15, %v4004_v7, %v4003_v8  ;;  %v8234_v17 = vsel %vm3880_vm15, %v4066_v33, %v4065_v62  ;;  %v4103_v25 = vsel %vm3828_vm2, %v4102_v0, %v4101_v23  ;;  %v3033_v32 = vld [vmem:[#allocation10 + $0x9f0] sm:$0xff] }
 0x22a   : > { %4625 = vmatpush.msrb.mxu0 %v2909_v10  ;;  %v4106_v5 = vperm.slane %v2083_v9, %v7234_v22  ;;  %v2999_v42 = vld [vmem:[#allocation10 + $0x8e0] sm:$0xff]  ;;  %v1618_v31 = vsel %vm990_vm0, %v5930_v44, 0.0  ;;  %v1615_v49 = vsel %vm990_vm0, %v5929_v41, 0.0  ;;  %v1576_v18 = vsel %vm990_vm0, %v5902_v43, 0.0  ;;  %4671 = vmatpush.msrb.mxu3 %v3033_v32  ;;  %v2985_v32 = vld [vmem:[#allocation10 + $0x870] sm:$0xff] }
 0x22b   : > { %4586 = vmatpush.msra.mxu2 %v2843_v37  ;;  %v2085_v19 = vmul.f32 0.0625, %v8093_v57  ;;  %v8245_v39 = vld [vmem:[%s6806_s27 + $0x348] sm:$0xff]   ;;  %v4108_v15 = vperm.slane %v2084_v51, %v7239_v14  ;;  %v4105_v16 = vsel %vm3832_vm3, %v4104_v38, %v4103_v25  ;;  %v2086_v10 = vmul.f32 0.0625, %v8185_v3 }
 0x22c   : > { %4626 = vmatpush.msrb.mxu0 %v2907_v4  ;;  %4587 = vmatmul.f32.vlgmr.msra.gmra.mxu2 %v8231_v26  ;;  %v4107_v55 = vsel %vm3836_vm4, %v4106_v5, %v4105_v16  ;;  %v2995_v11 = vld [vmem:[#allocation10 + $0x8c0] sm:$0xff]  ;;  %v5866_v57 = vunpack.c.h.bf16 %v8056_v20  ;;  %v5933_v0 = vunpack.c.l.bf16 %v8245_v39  ;;  %v5905_v3 = vunpack.c.l.bf16 %v8248_v1  ;;  %v2993_v4 = vld [vmem:[#allocation10 + $0x8b0] sm:$0xff] }
 0x22d   : > { %4627 = vmatmul.f32.vlgmr.msrb.gmra.mxu0 %v8234_v17  ;;  %4651 = vmatpush.msrb.mxu2 %v3001_v12  ;;  %v3031_v24 = vld [vmem:[#allocation10 + $0x9e0] sm:$0xff]  ;;  %v4110_v9 = vperm.slane %v2085_v19, %v7248_v34  ;;  %v2087_v37 = vmul.f32 0.0625, %v8171_v48  ;;  %v3029_v20 = vld [vmem:[#allocation10 + $0x9d0] sm:$0xff]  ;;  %v4109_v44 = vsel %vm3840_vm5, %v4108_v15, %v4107_v55  ;;  %v4112_v23 = vperm.slane %v2086_v10, %v7265_v60 }
 0x22e   : > { %4672 = vmatpush.msrb.mxu3 %v3031_v24  ;;  %v2991_v41 = vld [vmem:[#allocation10 + $0x8a0] sm:$0xff]  ;;  %v1522_v43 = vsel %vm990_vm0, %v5866_v57, 0.0  ;;  %v2088_v62 = vmul.f32 0.0625, %v8169_v63  ;;  %v1621_v12 = vsel %vm990_vm0, %v5933_v0, 0.0  ;;  %v1579_v38 = vsel %vm990_vm0, %v5905_v3, 0.0  ;;  %v3025_v16 = vld [vmem:[#allocation10 + $0x9b0] sm:$0xff] }
 0x22f   : > { %4652 = vmatpush.msrb.mxu2 %v2999_v42  ;;  %v8255_v7 = vpop.xlane.xlu2 %1421  ;;  %v8257_v33 = vpop.xlane.xlu1 %1418  ;;  %v8270_v48 = vld [vmem:[%s6806_s27 + $0x2c8] sm:$0xff]   ;;  %v4114_v51 = vperm.slane %v2087_v37, %v7274_v36  ;;  %v4111_v25 = vsel %vm3844_vm6, %v4110_v9, %v4109_v44  ;;  %v2089_v5 = vmul.f32 0.0625, %v1407_v29  ;;  %v2989_v42 = vld [vmem:[#allocation10 + $0x890] sm:$0xff]  ;;  %v5934_v19 = vunpack.c.h.bf16 %v8245_v39 }
 0x230   : > { %1619 = vadd.xlane.f32.xlu2 %v1618_v31  ;;  %1616 = vadd.xlane.f32.xlu1 %v1615_v49  ;;  %v1416_v8 = vpop.xlane.xlu0 %1415  ;;  %v4113_v31 = vsel %vm3848_vm7, %v4112_v23, %v4111_v25  ;;  %v3027_v49 = vld [vmem:[#allocation10 + $0x9c0] sm:$0xff]  ;;  %v4116_v10 = vperm.slane %v2088_v62, %v7301_v30  ;;  %v2090_v29 = vmul.f32 0.0625, %v8223_v45  ;;  %v5906_v55 = vunpack.c.h.bf16 %v8248_v1  ;;  %v2981_v44 = vld [vmem:[#allocation10 + $0x850] sm:$0xff] }
 0x231   : > { %1577 = vadd.xlane.f32.xlu0 %v1576_v18  ;;  %4653 = vmatpush.msrb.mxu2 %v2997_v6  ;;  %v2987_v63 = vld [vmem:[#allocation10 + $0x880] sm:$0xff]  ;;  %v5869_v18 = vunpack.c.l.bf16 %v8270_v48  ;;  %v4118_v57 = vperm.slane %v2089_v5, %v7311_v28  ;;  %v2091_v39 = vmul.f32 0.0625, %v8221_v58  ;;  %v1624_v9 = vsel %vm990_vm0, %v5934_v19, 0.0  ;;  %v8293_v58 = vld [vmem:[%s6806_s27 + $0x318] sm:$0xff]  }
 0x232   : > { %4673 = vmatpush.msrb.mxu3 %v3029_v20  ;;  %v3023_v0 = vld [vmem:[#allocation10 + $0x9a0] sm:$0xff]  ;;  %v4120_v1 = vperm.slane %v2090_v29, %v7325_v46  ;;  %v1582_v20 = vsel %vm990_vm0, %v5906_v55, 0.0  ;;  %v5870_v25 = vunpack.c.h.bf16 %v8270_v48  ;;  %v5909_v19 = vunpack.c.l.bf16 %v8293_v58 }
 0x233   : > { %4654 = vmatpush.msrb.mxu2 %v2995_v11  ;;  %v4115_v11 = vsel %vm3852_vm8, %v4114_v51, %v4113_v31  ;;  %v2983_v3 = vld [vmem:[#allocation10 + $0x860] sm:$0xff]  ;;  %v1525_v45 = vsel %vm990_vm0, %v5869_v18, 0.0  ;;  %v2094_v48 = vmul.f32 0.0625, %v8255_v7 }
 0x234   : > { %4674 = vmatpush.msrb.mxu3 %v3027_v49  ;;  %v4117_v37 = vsel %vm3856_vm9, %v4116_v10, %v4115_v11  ;;  %v2979_v51 = vld [vmem:[#allocation10 + $0x840] sm:$0xff]  ;;  %v3017_v10 = vld [vmem:[#allocation10 + $0x970] sm:$0xff] }
 0x235   : > { %4655 = vmatpush.msrb.mxu2 %v2993_v4  ;;  %v2092_v4 = vmul.f32 0.0625, %v1416_v8  ;;  %v4119_v23 = vsel %vm3860_vm10, %v4118_v57, %v4117_v37  ;;  %v2093_v8 = vmul.f32 0.0625, %v8257_v33  ;;  %v3019_v31 = vld [vmem:[#allocation10 + $0x980] sm:$0xff]  ;;  %v2977_v33 = vld [vmem:[#allocation10 + $0x830] sm:$0xff] }
 0x236   : > { %4675 = vmatpush.msrb.mxu3 %v3025_v16  ;;  %v4121_v49 = vsel %vm3864_vm11, %v4120_v1, %v4119_v23  ;;  %v3015_v37 = vld [vmem:[#allocation10 + $0x960] sm:$0xff] }
 0x237   : > { %4656 = vmatpush.msrb.mxu2 %v2991_v41  ;;  %v1431_v6 = vpop.xlane.xlu2 %1430  ;;  %v1428_v15 = vpop.xlane.xlu1 %1427  ;;  %v8290_v41 = vld [vmem:[%s6806_s27 + $0x350] sm:$0xff]   ;;  %v4126_v57 = vperm.slane %v2093_v8, %v9357_v50  ;;  %v2971_v23 = vld [vmem:[#allocation10 + $0x800] sm:$0xff] }
 0x238   : > { %1523 = vadd.xlane.f32.xlu2 %v1522_v43  ;;  %1622 = vadd.xlane.f32.xlu1 %v1621_v12  ;;  %v1425_v24 = vpop.xlane.xlu0 %1424  ;;  %v3021_v43 = vld [vmem:[#allocation10 + $0x990] sm:$0xff]  ;;  %v2096_v62 = vmul.f32 0.0625, %v1428_v15  ;;  %v5937_v18 = vunpack.c.l.bf16 %v8290_v41  ;;  %v2097_v15 = vmul.f32 0.0625, %v1431_v6 }
 0x239   : > { %1580 = vadd.xlane.f32.xlu0 %v1579_v38  ;;  %4657 = vmatpush.msrb.mxu2 %v2989_v42  ;;  %v2095_v12 = vmul.f32 0.0625, %v1425_v24  ;;  %v4122_v38 = vperm.slane %v2091_v39, %v7332_v13  ;;  %v1528_v24 = vsel %vm990_vm0, %v5870_v25, 0.0  ;;  %v1585_v39 = vsel %vm990_vm0, %v5909_v19, 0.0  ;;  %v3013_v8 = vld [vmem:[#allocation10 + $0x950] sm:$0xff] }
 0x23a   : > { %4676 = vmatpush.msrb.mxu3 %v3023_v0  ;;  %v4131_v29 = vperm.slane %v2096_v62, %v7204_v47  ;;  %v1627_v0 = vsel %vm990_vm0, %v5937_v18, 0.0  ;;  %v5938_v25 = vunpack.c.h.bf16 %v8290_v41  ;;  %v3011_v18 = vld [vmem:[#allocation10 + $0x940] sm:$0xff] }
 0x23b   : > { %4658 = vmatpush.msrb.mxu2 %v2987_v63  ;;  %v4124_v63 = vperm.slane %v2092_v4, %v9355_v21  ;;  %v4130_v55 = vperm.slane %v2095_v12, %v7195_v61  ;;  %v4123_v6 = vsel %vm3868_vm12, %v4122_v38, %v4121_v49  ;;  %v4128_v4 = vperm.slane %v2094_v48, %v9362_v52 }
 0x23c   : > { %4677 = vmatpush.msrb.mxu3 %v3021_v43 }
 0x23d   : > { %4659 = vmatpush.msrb.mxu2 %v2985_v32  ;;  %v2975_v32 = vld [vmem:[#allocation10 + $0x820] sm:$0xff]  ;;  %v4125_v7 = vsel %vm3872_vm13, %v4124_v63, %v4123_v6 }
 0x23e   : > { %4678 = vmatpush.msrb.mxu3 %v3019_v31  ;;  %v4127_v43 = vsel %vm3876_vm14, %v4126_v57, %v4125_v7  ;;  %v6250_v57 = vld [vmem:[%s6806_s27 + $0x320] sm:$0xff]   ;;  %v3005_v7 = vld [vmem:[#allocation10 + $0x910] sm:$0xff] }
 0x23f   : > { %4660 = vmatpush.msrb.mxu2 %v2983_v3  ;;  %v1440_v5 = vpop.xlane.xlu2 %1439  ;;  %v1437_v42 = vpop.xlane.xlu1 %1436  ;;  %v8312_v3 = vld [vmem:[%s6806_s27 + $0x2d0] sm:$0xff]  }
 0x240   : > { %1526 = vadd.xlane.f32.xlu2 %v1525_v45  ;;  %1625 = vadd.xlane.f32.xlu1 %v1624_v9  ;;  %v1434_v16 = vpop.xlane.xlu0 %1433  ;;  %v4133_v45 = vperm.slane %v2097_v15, %v7216_v59  ;;  %v2973_v9 = vld [vmem:[#allocation10 + $0x810] sm:$0xff]  ;;  %v2099_v1 = vmul.f32 0.0625, %v1437_v42  ;;  %v5873_v62 = vunpack.c.l.bf16 %v8312_v3  ;;  %v5910_v42 = vunpack.c.h.bf16 %v8293_v58 }
 0x241   : > { %1583 = vadd.xlane.f32.xlu0 %v1582_v20  ;;  %4661 = vmatpush.msrb.mxu2 %v2981_v44  ;;  %v2098_v11 = vmul.f32 0.0625, %v1434_v16  ;;  %v4132_v20 = vsel %vm3824_vm1, %v4131_v29, %v4130_v55  ;;  %v8326_v15 = vsel %vm3880_vm15, %v4128_v4, %v4127_v43  ;;  %v3009_v58 = vld [vmem:[#allocation10 + $0x930] sm:$0xff]  ;;  %v1630_v16 = vsel %vm990_vm0, %v5938_v25, 0.0 }
 0x242   : > { %4679 = vmatpush.msrb.mxu3 %v3017_v10  ;;  %v4137_v31 = vperm.slane %v2099_v1, %v7234_v22  ;;  %v4134_v49 = vsel %vm3828_vm2, %v4133_v45, %v4132_v20  ;;  %v1531_v41 = vsel %vm990_vm0, %v5873_v62, 0.0  ;;  %v1588_v10 = vsel %vm990_vm0, %v5910_v42, 0.0  ;;  %v6241_v25 = vld [vmem:[%s6806_s27 + $0x2d8] sm:$0xff]  }
 0x243   : > { %4662 = vmatpush.msrb.mxu2 %v2979_v51  ;;  %v4135_v44 = vperm.slane %v2098_v11, %v7220_v35  ;;  %v2100_v51 = vmul.f32 0.0625, %v1440_v5  ;;  %v6257_v11 = vld [vmem:[%s6806_s27 + $0x358] sm:$0xff]   ;;  %v5874_v6 = vunpack.c.h.bf16 %v8312_v3 }
 0x244   : > { %4680 = vmatpush.msrb.mxu3 %v3015_v37  ;;  %v5941_v1 = vunpack.c.l.bf16 %v6257_v11  ;;  %v5913_v37 = vunpack.c.l.bf16 %v6250_v57 }
 0x245   : > { %4663 = vmatpush.msrb.mxu2 %v2977_v33  ;;  %v4136_v19 = vsel %vm3832_vm3, %v4135_v44, %v4134_v49  ;;  %v4139_v33 = vperm.slane %v2100_v51, %v7239_v14  ;;  %v3003_v44 = vld [vmem:[#allocation10 + $0x900] sm:$0xff]  ;;  %v1534_v3 = vsel %vm990_vm0, %v5874_v6, 0.0 }
 0x246   : > { %4681 = vmatpush.msrb.mxu3 %v3013_v8  ;;  %v4138_v29 = vsel %vm3836_vm4, %v4137_v31, %v4136_v19  ;;  %v1591_v8 = vsel %vm990_vm0, %v5913_v37, 0.0 }
 0x247   : > { %4664 = vmatpush.msrb.mxu2 %v2975_v32  ;;  %v1449_v12 = vpop.xlane.xlu2 %1448  ;;  %v1446_v38 = vpop.xlane.xlu1 %1445  ;;  %v3007_v32 = vld [vmem:[#allocation10 + $0x920] sm:$0xff] }
 0x248   : > { %1529 = vadd.xlane.f32.xlu2 %v1528_v24  ;;  %1628 = vadd.xlane.f32.xlu1 %v1627_v0  ;;  %v1443_v63 = vpop.xlane.xlu0 %1442  ;;  %v2102_v48 = vmul.f32 0.0625, %v1446_v38  ;;  %v2103_v24 = vmul.f32 0.0625, %v1449_v12  ;;  %v1633_v38 = vsel %vm990_vm0, %v5941_v1, 0.0 }
 0x249   : > { %1586 = vadd.xlane.f32.xlu0 %v1585_v39  ;;  %4665 = vmatpush.msrb.mxu2 %v2973_v9  ;;  %v2101_v5 = vmul.f32 0.0625, %v1443_v63  ;;  %v4140_v9 = vsel %vm3840_vm5, %v4139_v33, %v4138_v29  ;;  %v5877_v63 = vunpack.c.l.bf16 %v6241_v25  ;;  %v5914_v33 = vunpack.c.h.bf16 %v6250_v57 }
 0x24a   : > { %4682 = vmatpush.msrb.mxu3 %v3011_v18  ;;  %v4143_v45 = vperm.slane %v2102_v48, %v7265_v60  ;;  %v4145_v43 = vperm.slane %v2103_v24, %v7274_v36  ;;  %v3061_v48 = vld [vmem:[#allocation10 + $0xad0] sm:$0xff] }
 0x24b   : > { %4666 = vmatpush.msrb.mxu2 %v2971_v23  ;;  %v4141_v55 = vperm.slane %v2101_v5, %v7248_v34  ;;  %v3065_v5 = vld [vmem:[#allocation10 + $0xaf0] sm:$0xff]  ;;  %v1537_v6 = vsel %vm990_vm0, %v5877_v63, 0.0 }
 0x24c   : > { %4667 = vmatmul.f32.vlgmr.msrb.gmra.mxu2 %v8326_v15  ;;  %4683 = vmatpush.msrb.mxu3 %v3009_v58  ;;  %v5942_v58 = vunpack.c.h.bf16 %v6257_v11  ;;  %v1594_v11 = vsel %vm990_vm0, %v5914_v33, 0.0  ;;  %v3051_v33 = vld [vmem:[#allocation10 + $0xa80] sm:$0xff] }
 0x24d   : > { %v4142_v4 = vsel %vm3844_vm6, %v4141_v55, %v4140_v9  ;;  %4691 = vmatpush.msra.mxu0 %v3065_v5 }
 0x24e   : > { %4684 = vmatpush.msrb.mxu3 %v3007_v32  ;;  %v4144_v12 = vsel %vm3848_vm7, %v4143_v45, %v4142_v4  ;;  %v6251_v45 = vld [vmem:[%s6806_s27 + $0x328] sm:$0xff]   ;;  %v5878_v4 = vunpack.c.h.bf16 %v6241_v25 }
 0x24f   : > { %v1458_v0 = vpop.xlane.xlu2 %1457  ;;  %v1455_v39 = vpop.xlane.xlu1 %1454  ;;  %v4146_v49 = vsel %vm3852_vm8, %v4145_v43, %v4144_v12  ;;  %v3057_v43 = vld [vmem:[#allocation10 + $0xab0] sm:$0xff] }
 0x250   : > { %1532 = vadd.xlane.f32.xlu2 %v1531_v41  ;;  %1631 = vadd.xlane.f32.xlu1 %v1630_v16  ;;  %v1452_v20 = vpop.xlane.xlu0 %1451  ;;  %v2105_v62 = vmul.f32 0.0625, %v1455_v39  ;;  %v2106_v42 = vmul.f32 0.0625, %v1458_v0  ;;  %v3063_v16 = vld [vmem:[#allocation10 + $0xae0] sm:$0xff]  ;;  %v1636_v0 = vsel %vm990_vm0, %v5942_v58, 0.0 }
 0x251   : > { %1589 = vadd.xlane.f32.xlu0 %v1588_v10  ;;  %v2104_v23 = vmul.f32 0.0625, %v1452_v20  ;;  %4685 = vmatpush.msrb.mxu3 %v3005_v7  ;;  %v6258_v7 = vld [vmem:[%s6806_s27 + $0x360] sm:$0xff]  }
 0x252   : > { %v4149_v31 = vperm.slane %v2105_v62, %v7311_v28  ;;  %v4151_v29 = vperm.slane %v2106_v42, %v7325_v46  ;;  %4692 = vmatpush.msra.mxu0 %v3063_v16  ;;  %v5917_v62 = vunpack.c.l.bf16 %v6251_v45  ;;  %v3055_v42 = vld [vmem:[#allocation10 + $0xaa0] sm:$0xff]  ;;  %v5946_v16 = vunpack.c.h.bf16 %v6258_v7 }
 0x253   : > { %v4147_v51 = vperm.slane %v2104_v23, %v7301_v30  ;;  %4686 = vmatpush.msrb.mxu3 %v3003_v44  ;;  %v3059_v23 = vld [vmem:[#allocation10 + $0xac0] sm:$0xff] }
 0x254   : > { %4693 = vmatpush.msra.mxu0 %v3061_v48  ;;  %v1597_v63 = vsel %vm990_vm0, %v5917_v62, 0.0 }
 0x255   : > { %v4148_v41 = vsel %vm3856_vm9, %v4147_v51, %v4146_v49  ;;  %v3053_v49 = vld [vmem:[#allocation10 + $0xa90] sm:$0xff] }
 0x256   : > { %v4150_v24 = vsel %vm3860_vm10, %v4149_v31, %v4148_v41  ;;  %4694 = vmatpush.msra.mxu0 %v3059_v23  ;;  %v1540_v31 = vsel %vm990_vm0, %v5878_v4, 0.0 }
 0x257   : > { %v1467_v18 = vpop.xlane.xlu2 %1466  ;;  %v1464_v19 = vpop.xlane.xlu1 %1463  ;;  %v4152_v1 = vsel %vm3864_vm11, %v4151_v29, %v4150_v24 }
 0x258   : > { %1535 = vadd.xlane.f32.xlu2 %v1534_v3  ;;  %1634 = vadd.xlane.f32.xlu1 %v1633_v38  ;;  %v1461_v10 = vpop.xlane.xlu0 %1460  ;;  %v2108_v55 = vmul.f32 0.0625, %v1464_v19  ;;  %v2109_v39 = vmul.f32 0.0625, %v1467_v18  ;;  %v5945_v3 = vunpack.c.l.bf16 %v6258_v7  ;;  %v6262_v19 = vld [vmem:[%s6806_s27 + $0x380] sm:$0xff]  }
 0x259   : > { %1592 = vadd.xlane.f32.xlu0 %v1591_v8  ;;  %v2107_v32 = vmul.f32 0.0625, %v1461_v10  ;;  %4695 = vmatpush.msra.mxu0 %v3057_v43  ;;  %v5961_v58 = vunpack.c.l.bf16 %v6262_v19  ;;  %v5918_v10 = vunpack.c.h.bf16 %v6251_v45  ;;  %v6242_v7 = vld [vmem:[%s6806_s27 + $0x2e0] sm:$0xff]   ;;  %v3041_v43 = vld [vmem:[#allocation10 + $0xa30] sm:$0xff] }
 0x25a   : > { %v4155_v9 = vperm.slane %v2108_v55, %v9355_v21  ;;  %v4157_v12 = vperm.slane %v2109_v39, %v9357_v50  ;;  %v1639_v25 = vsel %vm990_vm0, %v5945_v3, 0.0  ;;  %v3045_v39 = vld [vmem:[#allocation10 + $0xa50] sm:$0xff] }
 0x25b   : > { %v4153_v57 = vperm.slane %v2107_v32, %v7332_v13  ;;  %4696 = vmatpush.msra.mxu0 %v3055_v42  ;;  %v3049_v32 = vld [vmem:[#allocation10 + $0xa70] sm:$0xff]  ;;  %v1663_v24 = vsel %vm990_vm0, %v5961_v58, 0.0  ;;  %v3035_v58 = vld [vmem:[#allocation10 + $0xa00] sm:$0xff] }
 0x25d   : > { %v4154_v37 = vsel %vm3868_vm12, %v4153_v57, %v4152_v1  ;;  %4697 = vmatpush.msra.mxu0 %v3053_v49  ;;  %v8378_v57 = vld [vmem:[%s6806_s27 + $0x330] sm:$0xff]   ;;  %v5881_v1 = vunpack.c.l.bf16 %v6242_v7 }
 0x25e   : > { %v4156_v51 = vsel %vm3872_vm13, %v4155_v9, %v4154_v37  ;;  %v5921_v45 = vunpack.c.l.bf16 %v8378_v57  ;;  %v3043_v9 = vld [vmem:[#allocation10 + $0xa40] sm:$0xff]  ;;  %v5962_v37 = vunpack.c.h.bf16 %v6262_v19  ;;  %v3037_v49 = vld [vmem:[#allocation10 + $0xa10] sm:$0xff] }
 0x25f   : > { %v1476_v20 = vpop.xlane.xlu2 %1475  ;;  %v1473_v44 = vpop.xlane.xlu1 %1472  ;;  %v4158_v5 = vsel %vm3876_vm14, %v4157_v12, %v4156_v51  ;;  %4698 = vmatpush.msra.mxu0 %v3051_v33  ;;  %v3039_v51 = vld [vmem:[#allocation10 + $0xa20] sm:$0xff]  ;;  %v1543_v42 = vsel %vm990_vm0, %v5881_v1, 0.0 }
 0x260   : > { %1538 = vadd.xlane.f32.xlu2 %v1537_v6  ;;  %1637 = vadd.xlane.f32.xlu1 %v1636_v0  ;;  %v1470_v38 = vpop.xlane.xlu0 %1469  ;;  %v3047_v6 = vld [vmem:[#allocation10 + $0xa60] sm:$0xff]  ;;  %v1642_v0 = vsel %vm990_vm0, %v5946_v16, 0.0  ;;  %v2112_v4 = vmul.f32 0.0625, %v1476_v20  ;;  %v2111_v23 = vmul.f32 0.0625, %v1473_v44  ;;  %v1603_v12 = vsel %vm990_vm0, %v5921_v45, 0.0 }
 0x261   : > { %1595 = vadd.xlane.f32.xlu0 %v1594_v11  ;;  %v2110_v8 = vmul.f32 0.0625, %v1470_v38  ;;  %4699 = vmatpush.msra.mxu0 %v3049_v32  ;;  %v1600_v11 = vsel %vm990_vm0, %v5918_v10, 0.0 }
 0x262   : > { %v4162_v20 = vperm.slane %v2112_v4, %v7204_v47  ;;  %v4161_v44 = vperm.slane %v2111_v23, %v7195_v61 }
 0x263   : > { %v4159_v18 = vperm.slane %v2110_v8, %v9362_v52  ;;  %4700 = vmatpush.msra.mxu0 %v3047_v6 }
 0x265   : > { %v8371_v41 = vsel %vm3880_vm15, %v4159_v18, %v4158_v5  ;;  %4701 = vmatpush.msra.mxu0 %v3045_v39  ;;  %v6259_v18 = vld [vmem:[%s6806_s27 + $0x368] sm:$0xff]   ;;  %v5882_v5 = vunpack.c.h.bf16 %v6242_v7 }
 0x266   : > { %4687 = vmatmul.f32.vlgmr.msrb.gmra.mxu3 %v8371_v41  ;;  %v5949_v10 = vunpack.c.l.bf16 %v6259_v18 }
 0x267   : > { %v1485_v48 = vpop.xlane.xlu2 %1484  ;;  %v1482_v29 = vpop.xlane.xlu1 %1481  ;;  %4702 = vmatpush.msra.mxu0 %v3043_v9  ;;  %v1546_v6 = vsel %vm990_vm0, %v5882_v5, 0.0  ;;  %v8412_v5 = vld [vmem:[%s6806_s27 + $0x2e8] sm:$0xff]  }
 0x268   : > { %1541 = vadd.xlane.f32.xlu2 %v1540_v31  ;;  %1640 = vadd.xlane.f32.xlu1 %v1639_v25  ;;  %v1479_v55 = vpop.xlane.xlu0 %1478  ;;  %v1666_v31 = vsel %vm990_vm0, %v5962_v37, 0.0  ;;  %v2114_v25 = vmul.f32 0.0625, %v1482_v29  ;;  %v2115_v33 = vmul.f32 0.0625, %v1485_v48  ;;  %v1645_v7 = vsel %vm990_vm0, %v5949_v10, 0.0 }
 0x269   : > { %1598 = vadd.xlane.f32.xlu0 %v1597_v63  ;;  %v2113_v3 = vmul.f32 0.0625, %v1479_v55  ;;  %4703 = vmatpush.msra.mxu0 %v3041_v43  ;;  %v6263_v63 = vld [vmem:[%s6806_s27 + $0x388] sm:$0xff]   ;;  %v4163_v55 = vsel %vm3824_vm1, %v4162_v20, %v4161_v44  ;;  %v5950_v43 = vunpack.c.h.bf16 %v6259_v18 }
 0x26a   : > { %v5965_v16 = vunpack.c.l.bf16 %v6263_v63  ;;  %v4166_v32 = vperm.slane %v2114_v25, %v7220_v35  ;;  %v5966_v23 = vunpack.c.h.bf16 %v6263_v63 }
 0x26b   : > { %4704 = vmatpush.msra.mxu0 %v3039_v51  ;;  %v4164_v19 = vperm.slane %v2113_v3, %v7216_v59  ;;  %v5922_v51 = vunpack.c.h.bf16 %v8378_v57  ;;  %v1648_v18 = vsel %vm990_vm0, %v5950_v43, 0.0  ;;  %v6270_v57 = vld [vmem:[%s6806_s27 + $0x3c0] sm:$0xff]   ;;  %v8429_v43 = vld [vmem:[%s6806_s27 + $0x370] sm:$0xff]  }
 0x26c   : > { %v1669_v39 = vsel %vm990_vm0, %v5965_v16, 0.0  ;;  %v1672_v44 = vsel %vm990_vm0, %v5966_v23, 0.0 }
 0x26d   : > { %4705 = vmatpush.msra.mxu0 %v3037_v49  ;;  %v4165_v29 = vsel %vm3828_vm2, %v4164_v19, %v4163_v55  ;;  %v1606_v19 = vsel %vm990_vm0, %v5922_v51, 0.0 }
 0x26e   : > { %v4167_v45 = vsel %vm3832_vm3, %v4166_v32, %v4165_v29 }
 0x26f   : > { %v1494_v62 = vpop.xlane.xlu2 %1493  ;;  %v1491_v38 = vpop.xlane.xlu1 %1490  ;;  %4706 = vmatpush.msra.mxu0 %v3035_v58 }
 0x270   : > { %1664 = vadd.xlane.f32.xlu2 %v1663_v24  ;;  %1643 = vadd.xlane.f32.xlu1 %v1642_v0  ;;  %v4168_v0 = vperm.slane %v2115_v33, %v7234_v22  ;;  %v2118_v4 = vmul.f32 0.0625, %v1494_v62 }
 0x271   : > { %1601 = vadd.xlane.f32.xlu0 %v1600_v11  ;;  %v2117_v11 = vmul.f32 0.0625, %v1491_v38 }
 0x272   : > { %v1488_v8 = vpop.xlane.xlu0 %1487  ;;  %v4174_v62 = vperm.slane %v2118_v4, %v7265_v60  ;;  %v8426_v4 = vld [vmem:[%s6806_s27 + $0x390] sm:$0xff]  }
 0x273   : > { %v2116_v24 = vmul.f32 0.0625, %v1488_v8  ;;  %v4172_v3 = vperm.slane %v2117_v11, %v7248_v34  ;;  %v5993_v11 = vunpack.c.l.bf16 %v6270_v57  ;;  %v5969_v51 = vunpack.c.l.bf16 %v8426_v4 }
 0x275   : > { %v4170_v9 = vperm.slane %v2116_v24, %v7239_v14  ;;  %v5885_v24 = vunpack.c.l.bf16 %v8412_v5 }
 0x278   : > { %1604 = vadd.xlane.f32.xlu2 %v1603_v12  ;;  %1544 = vadd.xlane.f32.xlu1 %v1543_v42  ;;  %v4169_v12 = vsel %vm3836_vm4, %v4168_v0, %v4167_v45  ;;  %v5994_v0 = vunpack.c.h.bf16 %v6270_v57 }
 0x279   : > { %1667 = vadd.xlane.f32.xlu0 %v1666_v31  ;;  %v4171_v31 = vsel %vm3840_vm5, %v4170_v9, %v4169_v12  ;;  %v1549_v9 = vsel %vm990_vm0, %v5885_v24, 0.0 }
 0x27a   : > { %v3496_v8 = vpop.f32.mrf.mxu1  ;;  %v4173_v25 = vsel %vm3844_vm6, %v4172_v3, %v4171_v31  ;;  %v6253_v3 = vld [vmem:[%s6806_s27 + $0x338] sm:$0xff]  }
 0x27b   : > { %v1503_v48 = vpop.xlane.xlu2 %1502  ;;  %v1500_v1 = vpop.xlane.xlu1 %1499  ;;  %v4175_v10 = vsel %vm3848_vm7, %v4174_v62, %v4173_v25  ;;  %v5953_v62 = vunpack.c.l.bf16 %v8429_v43 }
 0x27c   : > { %v1497_v37 = vpop.xlane.xlu0 %1496  ;;  %v2120_v20 = vmul.f32 0.0625, %v1500_v1  ;;  %v2121_v58 = vmul.f32 0.0625, %v1503_v48  ;;  %v1714_v1 = vsel %vm990_vm0, %v5994_v0, 0.0  ;;  %v5886_v0 = vunpack.c.h.bf16 %v8412_v5 }
 0x27d   : > { %v2119_v38 = vmul.f32 0.0625, %v1497_v37  ;;  %v1711_v37 = vsel %vm990_vm0, %v5993_v11, 0.0 }
 0x27e   : > { %v4178_v16 = vperm.slane %v2120_v20, %v7301_v30  ;;  %v5925_v20 = vunpack.c.l.bf16 %v6253_v3 }
 0x27f   : > { %v4176_v63 = vperm.slane %v2119_v38, %v7274_v36 }
 0x280   : > { %1547 = vadd.xlane.f32.xlu2 %v1546_v6  ;;  %1670 = vadd.xlane.f32.xlu1 %v1669_v39  ;;  %v3476_v42 = vpop.f32.mrf.mxu0  ;;  %v4180_v39 = vperm.slane %v2121_v58, %v7311_v28  ;;  %v1675_v58 = vsel %vm990_vm0, %v5969_v51, 0.0 }
 0x281   : > { %1646 = vadd.xlane.f32.xlu0 %v1645_v7  ;;  %v8403_v49 = vadd.f32 %v3496_v8, %v3476_v42  ;;  %v4177_v29 = vsel %vm3852_vm8, %v4176_v63, %v4175_v10  ;;  %v1609_v10 = vsel %vm990_vm0, %v5925_v20, 0.0  ;;  %v5954_v20 = vunpack.c.h.bf16 %v8429_v43 }
 0x282   : > { %v4179_v48 = vsel %vm3856_vm9, %v4178_v16, %v4177_v29  ;;  %v1651_v16 = vsel %vm990_vm0, %v5953_v62, 0.0  ;;  %v5970_v62 = vunpack.c.h.bf16 %v8426_v4 }
 0x283   : > { %9368 = vst [vmem:[#allocation25_spill] sm:$0xff] %v8403_v49  ;;  %v4181_v38 = vsel %vm3860_vm10, %v4180_v39, %v4179_v48  ;;  %v3201_v49 = vld [vmem:[#allocation10 + $0xf30] sm:$0xff] }
 0x286   : > { %v1512_v33 = vpop.xlane.xlu2 %1511 }
 0x287   : > { %v1509_v55 = vpop.xlane.xlu1 %1508  ;;  %v1506_v32 = vpop.xlane.xlu0 %1505  ;;  %v2124_v23 = vmul.f32 0.0625, %v1512_v33 }
 0x288   : > { %1673 = vadd.xlane.f32.xlu2 %v1672_v44  ;;  %1649 = vadd.xlane.f32.xlu1 %v1648_v18  ;;  %v2122_v6 = vmul.f32 0.0625, %v1506_v32  ;;  %v2123_v7 = vmul.f32 0.0625, %v1509_v55  ;;  %v6271_v32 = vld [vmem:[%s6806_s27 + $0x3c8] sm:$0xff]  }
 0x289   : > { %1607 = vadd.xlane.f32.xlu0 %v1606_v19  ;;  %v4186_v44 = vperm.slane %v2124_v23, %v9355_v21  ;;  %v5997_v11 = vunpack.c.l.bf16 %v6271_v32  ;;  %v5998_v51 = vunpack.c.h.bf16 %v6271_v32  ;;  %v6261_v32 = vld [vmem:[%s6806_s27 + $0x378] sm:$0xff]  }
 0x28a   : > { %v4182_v45 = vperm.slane %v2122_v6, %v7325_v46  ;;  %v4184_v12 = vperm.slane %v2123_v7, %v7332_v13  ;;  %v5926_v6 = vunpack.c.h.bf16 %v6253_v3 }
 0x28c   : > { %v4183_v8 = vsel %vm3864_vm11, %v4182_v45, %v4181_v38  ;;  %v1717_v38 = vsel %vm990_vm0, %v5997_v11, 0.0 }
 0x28d   : > { %v4185_v19 = vsel %vm3868_vm12, %v4184_v12, %v4183_v8  ;;  %v1552_v12 = vsel %vm990_vm0, %v5886_v0, 0.0 }
 0x28e   : > { %v4187_v55 = vsel %vm3872_vm13, %v4186_v44, %v4185_v19 }
 0x290   : > { %1550 = vadd.xlane.f32.xlu2 %v1549_v9  ;;  %1715 = vadd.xlane.f32.xlu1 %v1714_v1  ;;  %v8436_v42 = vpop.xlane.xlu2 %1520  ;;  %v1518_v31 = vpop.xlane.xlu1 %1517 }
 0x291   : > { %1712 = vadd.xlane.f32.xlu0 %v1711_v37  ;;  %v2126_v25 = vmul.f32 0.0625, %v1518_v31  ;;  %v1515_v63 = vpop.xlane.xlu0 %1514  ;;  %v1612_v37 = vsel %vm990_vm0, %v5926_v6, 0.0 }
 0x292   : > { %v2125_v18 = vmul.f32 0.0625, %v1515_v63 }
 0x293   : > { %v4190_v57 = vperm.slane %v2126_v25, %v9362_v52 }
 0x294   : > { %v4188_v33 = vperm.slane %v2125_v18, %v9357_v50 }
 0x296   : > { %v4189_v24 = vsel %vm3876_vm14, %v4188_v33, %v4187_v55  ;;  %v8469_v55 = vld [vmem:[%s6806_s27 + $0x398] sm:$0xff]  }
 0x297   : > { %v8450_v29 = vsel %vm3880_vm15, %v4190_v57, %v4189_v24  ;;  %v6244_v24 = vld [vmem:[%s6806_s27 + $0x2f0] sm:$0xff]   ;;  %v5973_v11 = vunpack.c.l.bf16 %v8469_v55 }
 0x298   : > { %1676 = vadd.xlane.f32.xlu2 %v1675_v58  ;;  %1652 = vadd.xlane.f32.xlu1 %v1651_v16  ;;  %v1720_v58 = vsel %vm990_vm0, %v5998_v51, 0.0  ;;  %v1678_v16 = vsel %vm990_vm0, %v5970_v62, 0.0  ;;  %v6272_v62 = vld [vmem:[%s6806_s27 + $0x3d0] sm:$0xff]  }
 0x299   : > { %1610 = vadd.xlane.f32.xlu0 %v1609_v10  ;;  %4707 = vmatmul.f32.vlgmr.msra.gmra.mxu0 %v8450_v29  ;;  %v1654_v10 = vsel %vm990_vm0, %v5954_v20, 0.0 }
 0x29b   : > { %v1575_v39 = vpop.xlane.xlu2 %1574  ;;  %v1572_v48 = vpop.xlane.xlu1 %1571 }
 0x29c   : > { %v2145_v7 = vmul.f32 0.0625, %v1575_v39  ;;  %v1569_v45 = vpop.xlane.xlu0 %1568  ;;  %v2144_v9 = vmul.f32 0.0625, %v1572_v48  ;;  %v2127_v39 = vmul.f32 0.0625, %v8436_v42  ;;  %v5889_v48 = vunpack.c.l.bf16 %v6244_v24 }
 0x29d   : > { %v2143_v1 = vmul.f32 0.0625, %v1569_v45 }
 0x29e   : > { %v4226_v23 = vperm.slane %v2145_v7, %v7216_v59  ;;  %v4224_v3 = vperm.slane %v2144_v9, %v7204_v47  ;;  %v5957_v7 = vunpack.c.l.bf16 %v6261_v32  ;;  %v1555_v51 = vsel %vm990_vm0, %v5889_v48, 0.0 }
 0x29f   : > { %v4223_v8 = vperm.slane %v2143_v1, %v7195_v61 }
 0x2a0   : > { %1613 = vadd.xlane.f32.xlu2 %v1612_v37  ;;  %1553 = vadd.xlane.f32.xlu1 %v1552_v12 }
 0x2a1   : > { %v4225_v5 = vsel %vm3824_vm1, %v4224_v3, %v4223_v8  ;;  %1718 = vadd.xlane.f32.xlu0 %v1717_v38  ;;  %v1681_v38 = vsel %vm990_vm0, %v5973_v11, 0.0  ;;  %v4192_v3 = vperm.slane %v2127_v39, %v7195_v61  ;;  %v6245_v39 = vld [vmem:[%s6806_s27 + $0x2f8] sm:$0xff]  }
 0x2a2   : > { %v4227_v31 = vsel %vm3828_vm2, %v4226_v23, %v4225_v5  ;;  %v1657_v5 = vsel %vm990_vm0, %v5957_v7, 0.0 }
 0x2a3   : > { %v1620_v44 = vpop.xlane.xlu2 %1619  ;;  %v1617_v63 = vpop.xlane.xlu1 %1616 }
 0x2a4   : > { %v2160_v25 = vmul.f32 0.0625, %v1620_v44  ;;  %v1578_v18 = vpop.xlane.xlu0 %1577  ;;  %v2159_v19 = vmul.f32 0.0625, %v1617_v63  ;;  %v5958_v63 = vunpack.c.h.bf16 %v6261_v32 }
 0x2a5   : > { %v2146_v57 = vmul.f32 0.0625, %v1578_v18  ;;  %v5890_v18 = vunpack.c.h.bf16 %v6244_v24 }
 0x2a6   : > { %v4255_v33 = vperm.slane %v2160_v25, %v7204_v47  ;;  %v4254_v4 = vperm.slane %v2159_v19, %v7195_v61  ;;  %v6001_v19 = vunpack.c.l.bf16 %v6272_v62 }
 0x2a7   : > { %v4228_v43 = vperm.slane %v2146_v57, %v7220_v35 }
 0x2a8   : > { %1721 = vadd.xlane.f32.xlu2 %v1720_v58  ;;  %v4256_v6 = vsel %vm3824_vm1, %v4255_v33, %v4254_v4  ;;  %1679 = vadd.xlane.f32.xlu1 %v1678_v16 }
 0x2a9   : > { %v4229_v0 = vsel %vm3832_vm3, %v4228_v43, %v4227_v31  ;;  %1655 = vadd.xlane.f32.xlu0 %v1654_v10  ;;  %v1660_v43 = vsel %vm990_vm0, %v5958_v63, 0.0 }
 0x2ab   : > { %v1524_v45 = vpop.xlane.xlu2 %1523  ;;  %v1623_v1 = vpop.xlane.xlu1 %1622 }
 0x2ac   : > { %v2128_v9 = vmul.f32 0.0625, %v1524_v45  ;;  %v1581_v37 = vpop.xlane.xlu0 %1580  ;;  %v2161_v23 = vmul.f32 0.0625, %v1623_v1  ;;  %v6002_v1 = vunpack.c.h.bf16 %v6272_v62 }
 0x2ad   : > { %v2147_v12 = vmul.f32 0.0625, %v1581_v37  ;;  %v5974_v37 = vunpack.c.h.bf16 %v8469_v55  ;;  %v6266_v55 = vld [vmem:[%s6806_s27 + $0x3a0] sm:$0xff]  }
 0x2ae   : > { %v4193_v8 = vperm.slane %v2128_v9, %v7204_v47  ;;  %v4257_v42 = vperm.slane %v2161_v23, %v7216_v59  ;;  %v5893_v9 = vunpack.c.l.bf16 %v6245_v39 }
 0x2af   : > { %v4230_v31 = vperm.slane %v2147_v12, %v7234_v22 }
 0x2b0   : > { %v4194_v20 = vsel %vm3824_vm1, %v4193_v8, %v4192_v3  ;;  %1682 = vadd.xlane.f32.xlu2 %v1681_v38  ;;  %v4258_v44 = vsel %vm3828_vm2, %v4257_v42, %v4256_v6  ;;  %1658 = vadd.xlane.f32.xlu1 %v1657_v5  ;;  %v1558_v6 = vsel %vm990_vm0, %v5890_v18, 0.0 }
 0x2b1   : > { %v4231_v25 = vsel %vm3836_vm4, %v4230_v31, %v4229_v0  ;;  %1556 = vadd.xlane.f32.xlu0 %v1555_v51  ;;  %v1723_v0 = vsel %vm990_vm0, %v6001_v19, 0.0  ;;  %v1561_v51 = vsel %vm990_vm0, %v5893_v9, 0.0  ;;  %v1726_v31 = vsel %vm990_vm0, %v6002_v1, 0.0 }
 0x2b3   : > { %v1527_v57 = vpop.xlane.xlu2 %1526  ;;  %v1626_v33 = vpop.xlane.xlu1 %1625 }
 0x2b4   : > { %v2129_v58 = vmul.f32 0.0625, %v1527_v57  ;;  %v1584_v16 = vpop.xlane.xlu0 %1583  ;;  %v2162_v10 = vmul.f32 0.0625, %v1626_v33  ;;  %v5894_v57 = vunpack.c.h.bf16 %v6245_v39  ;;  %v5977_v33 = vunpack.c.l.bf16 %v6266_v55 }
 0x2b5   : > { %v2148_v4 = vmul.f32 0.0625, %v1584_v16 }
 0x2b6   : > { %v4195_v11 = vperm.slane %v2129_v58, %v7216_v59  ;;  %v4259_v7 = vperm.slane %v2162_v10, %v7220_v35 }
 0x2b7   : > { %v4232_v32 = vperm.slane %v2148_v4, %v7239_v14 }
 0x2b8   : > { %v4196_v24 = vsel %vm3828_vm2, %v4195_v11, %v4194_v20  ;;  %1661 = vadd.xlane.f32.xlu2 %v1660_v43  ;;  %v4260_v48 = vsel %vm3832_vm3, %v4259_v7, %v4258_v44  ;;  %1559 = vadd.xlane.f32.xlu1 %v1558_v6  ;;  %v1684_v20 = vsel %vm990_vm0, %v5974_v37, 0.0 }
 0x2b9   : > { %v4233_v45 = vsel %vm3840_vm5, %v4232_v32, %v4231_v25  ;;  %1724 = vadd.xlane.f32.xlu0 %v1723_v0  ;;  %v6273_v25 = vld [vmem:[%s6806_s27 + $0x3d8] sm:$0xff]   ;;  %v1564_v0 = vsel %vm990_vm0, %v5894_v57, 0.0 }
 0x2ba   : > { %v6005_v58 = vunpack.c.l.bf16 %v6273_v25 }
 0x2bb   : > { %v1530_v23 = vpop.xlane.xlu2 %1529  ;;  %v1629_v38 = vpop.xlane.xlu1 %1628 }
 0x2bc   : > { %v2130_v12 = vmul.f32 0.0625, %v1530_v23  ;;  %v1587_v3 = vpop.xlane.xlu0 %1586  ;;  %v2163_v8 = vmul.f32 0.0625, %v1629_v38  ;;  %v1729_v32 = vsel %vm990_vm0, %v6005_v58, 0.0  ;;  %v5978_v38 = vunpack.c.h.bf16 %v6266_v55 }
 0x2bd   : > { %v2149_v5 = vmul.f32 0.0625, %v1587_v3 }
 0x2be   : > { %v4197_v42 = vperm.slane %v2130_v12, %v7220_v35  ;;  %v4261_v44 = vperm.slane %v2163_v8, %v7234_v22  ;;  %v6006_v12 = vunpack.c.h.bf16 %v6273_v25 }
 0x2bf   : > { %v4234_v62 = vperm.slane %v2149_v5, %v7248_v34 }
 0x2c0   : > { %v4198_v63 = vsel %vm3832_vm3, %v4197_v42, %v4196_v24  ;;  %1562 = vadd.xlane.f32.xlu2 %v1561_v51  ;;  %v4262_v18 = vsel %vm3836_vm4, %v4261_v44, %v4260_v48  ;;  %1727 = vadd.xlane.f32.xlu1 %v1726_v31  ;;  %v1687_v24 = vsel %vm990_vm0, %v5977_v33, 0.0  ;;  %v6267_v48 = vld [vmem:[%s6806_s27 + $0x3a8] sm:$0xff]  }
 0x2c1   : > { %v4235_v19 = vsel %vm3844_vm6, %v4234_v62, %v4233_v45  ;;  %1685 = vadd.xlane.f32.xlu0 %v1684_v20  ;;  %v5981_v23 = vunpack.c.l.bf16 %v6267_v48  ;;  %v1732_v62 = vsel %vm990_vm0, %v6006_v12, 0.0  ;;  %v3129_v12 = vld [vmem:[#allocation10 + $0xcf0] sm:$0xff] }
 0x2c2   : > { %4731 = vmatpush.msra.mxu2 %v3129_v12  ;;  %v3117_v12 = vld [vmem:[#allocation10 + $0xc90] sm:$0xff] }
 0x2c3   : > { %v1533_v16 = vpop.xlane.xlu2 %1532  ;;  %v1632_v4 = vpop.xlane.xlu1 %1631  ;;  %v1693_v20 = vsel %vm990_vm0, %v5981_v23, 0.0 }
 0x2c4   : > { %v2131_v10 = vmul.f32 0.0625, %v1533_v16  ;;  %v1590_v43 = vpop.xlane.xlu0 %1589  ;;  %v2164_v11 = vmul.f32 0.0625, %v1632_v4  ;;  %v5982_v16 = vunpack.c.h.bf16 %v6267_v48 }
 0x2c5   : > { %v2150_v6 = vmul.f32 0.0625, %v1590_v43 }
 0x2c6   : > { %v4199_v7 = vperm.slane %v2131_v10, %v7234_v22  ;;  %v4263_v45 = vperm.slane %v2164_v11, %v7239_v14 }
 0x2c7   : > { %v4236_v39 = vperm.slane %v2150_v6, %v7265_v60 }
 0x2c8   : > { %v4200_v9 = vsel %vm3836_vm4, %v4199_v7, %v4198_v63  ;;  %1565 = vadd.xlane.f32.xlu2 %v1564_v0  ;;  %v4264_v1 = vsel %vm3840_vm5, %v4263_v45, %v4262_v18  ;;  %1730 = vadd.xlane.f32.xlu1 %v1729_v32  ;;  %v1690_v63 = vsel %vm990_vm0, %v5978_v38, 0.0  ;;  %v6274_v18 = vld [vmem:[%s6806_s27 + $0x3e0] sm:$0xff]  }
 0x2c9   : > { %v4237_v37 = vsel %vm3848_vm7, %v4236_v39, %v4235_v19  ;;  %1688 = vadd.xlane.f32.xlu0 %v1687_v24  ;;  %v6010_v33 = vunpack.c.h.bf16 %v6274_v18  ;;  %v6009_v10 = vunpack.c.l.bf16 %v6274_v18  ;;  %v1696_v24 = vsel %vm990_vm0, %v5982_v16, 0.0  ;;  %v6268_v39 = vld [vmem:[%s6806_s27 + $0x3b0] sm:$0xff]   ;;  %v3123_v16 = vld [vmem:[#allocation10 + $0xcc0] sm:$0xff] }
 0x2ca   : > { %v5986_v23 = vunpack.c.h.bf16 %v6268_v39 }
 0x2cb   : > { %v1536_v3 = vpop.xlane.xlu2 %1535  ;;  %v1635_v5 = vpop.xlane.xlu1 %1634  ;;  %v1738_v7 = vsel %vm990_vm0, %v6010_v33, 0.0  ;;  %v1735_v45 = vsel %vm990_vm0, %v6009_v10, 0.0 }
 0x2cc   : > { %v2132_v8 = vmul.f32 0.0625, %v1536_v3  ;;  %v1593_v51 = vpop.xlane.xlu0 %1592  ;;  %v2165_v42 = vmul.f32 0.0625, %v1635_v5  ;;  %v5985_v3 = vunpack.c.l.bf16 %v6268_v39 }
 0x2cd   : > { %v2151_v31 = vmul.f32 0.0625, %v1593_v51 }
 0x2ce   : > { %v4201_v44 = vperm.slane %v2132_v8, %v7239_v14  ;;  %v4265_v19 = vperm.slane %v2165_v42, %v7248_v34  ;;  %v1699_v18 = vsel %vm990_vm0, %v5985_v3, 0.0 }
 0x2cf   : > { %v4238_v25 = vperm.slane %v2151_v31, %v7274_v36  ;;  %v3127_v31 = vld [vmem:[#allocation10 + $0xce0] sm:$0xff] }
 0x2d0   : > { %v4202_v55 = vsel %vm3840_vm5, %v4201_v44, %v4200_v9  ;;  %1694 = vadd.xlane.f32.xlu2 %v1693_v20  ;;  %v4266_v57 = vsel %vm3844_vm6, %v4265_v19, %v4264_v1  ;;  %1733 = vadd.xlane.f32.xlu1 %v1732_v62  ;;  %v6275_v1 = vld [vmem:[%s6806_s27 + $0x3e8] sm:$0xff]   ;;  %v1702_v44 = vsel %vm990_vm0, %v5986_v23, 0.0  ;;  %v6276_v19 = vld [vmem:[%s6806_s27 + $0x3f0] sm:$0xff]   ;;  %v6278_v23 = vld [vmem:[%s6806_s27 + $0x400] sm:$0xff]  }
 0x2d1   : > { %v8532_v58 = vsel %vm3852_vm8, %v4238_v25, %v4237_v37  ;;  %1691 = vadd.xlane.f32.xlu0 %v1690_v63  ;;  %v6013_v38 = vunpack.c.l.bf16 %v6275_v1  ;;  %4732 = vmatpush.msra.mxu2 %v3127_v31  ;;  %v3125_v25 = vld [vmem:[#allocation10 + $0xcd0] sm:$0xff]  ;;  %v6018_v31 = vunpack.c.h.bf16 %v6276_v19 }
 0x2d3   : > { %v1539_v4 = vpop.xlane.xlu2 %1538  ;;  %v1638_v11 = vpop.xlane.xlu1 %1637  ;;  %v1741_v63 = vsel %vm990_vm0, %v6013_v38, 0.0  ;;  %4733 = vmatpush.msra.mxu2 %v3125_v25 }
 0x2d4   : > { %v2133_v43 = vmul.f32 0.0625, %v1539_v4  ;;  %v8534_v6 = vpop.xlane.xlu0 %1595  ;;  %v2166_v0 = vmul.f32 0.0625, %v1638_v11  ;;  %v6017_v4 = vunpack.c.l.bf16 %v6276_v19  ;;  %v6279_v19 = vld [vmem:[%s6806_s27 + $0x408] sm:$0xff]  }
 0x2d5   : > { %4734 = vmatpush.msra.mxu2 %v3123_v16 }
 0x2d6   : > { %v4203_v32 = vperm.slane %v2133_v43, %v7248_v34  ;;  %v4267_v9 = vperm.slane %v2166_v0, %v7265_v60  ;;  %v3121_v43 = vld [vmem:[#allocation10 + $0xcb0] sm:$0xff]  ;;  %v6014_v0 = vunpack.c.h.bf16 %v6275_v1  ;;  %v3115_v1 = vld [vmem:[#allocation10 + $0xc80] sm:$0xff] }
 0x2d7   : > { %4735 = vmatpush.msra.mxu2 %v3121_v43 }
 0x2d8   : > { %v4204_v48 = vsel %vm3844_vm6, %v4203_v32, %v4202_v55  ;;  %1739 = vadd.xlane.f32.xlu2 %v1738_v7  ;;  %v4268_v37 = vsel %vm3848_vm7, %v4267_v9, %v4266_v57  ;;  %1697 = vadd.xlane.f32.xlu1 %v1696_v24  ;;  %v6269_v57 = vld [vmem:[%s6806_s27 + $0x3b8] sm:$0xff]   ;;  %v1747_v9 = vsel %vm990_vm0, %v6017_v4, 0.0  ;;  %v1750_v4 = vsel %vm990_vm0, %v6018_v31, 0.0  ;;  %v3103_v31 = vld [vmem:[#allocation10 + $0xc20] sm:$0xff] }
 0x2d9   : > { %1736 = vadd.xlane.f32.xlu0 %v1735_v45  ;;  %v5989_v11 = vunpack.c.l.bf16 %v6269_v57  ;;  %v3119_v45 = vld [vmem:[#allocation10 + $0xca0] sm:$0xff] }
 0x2da   : > { %4736 = vmatpush.msra.mxu2 %v3119_v45 }
 0x2db   : > { %v1542_v8 = vpop.xlane.xlu2 %1541  ;;  %v1641_v51 = vpop.xlane.xlu1 %1640 }
 0x2dc   : > { %v2134_v5 = vmul.f32 0.0625, %v1542_v8  ;;  %v8545_v42 = vpop.xlane.xlu0 %1598  ;;  %v2167_v20 = vmul.f32 0.0625, %v1641_v51  ;;  %4737 = vmatpush.msra.mxu2 %v3117_v12  ;;  %v3113_v51 = vld [vmem:[#allocation10 + $0xc70] sm:$0xff] }
 0x2de   : > { %v4205_v62 = vperm.slane %v2134_v5, %v7265_v60  ;;  %v4269_v55 = vperm.slane %v2167_v20, %v7274_v36  ;;  %v6025_v5 = vunpack.c.l.bf16 %v6278_v23  ;;  %v5990_v20 = vunpack.c.h.bf16 %v6269_v57  ;;  %4738 = vmatpush.msra.mxu2 %v3115_v1  ;;  %v3109_v57 = vld [vmem:[#allocation10 + $0xc50] sm:$0xff] }
 0x2e0   : > { %v4206_v33 = vsel %vm3848_vm7, %v4205_v62, %v4204_v48  ;;  %1703 = vadd.xlane.f32.xlu2 %v1702_v44  ;;  %v4270_v10 = vsel %vm3852_vm8, %v4269_v55, %v4268_v37  ;;  %1742 = vadd.xlane.f32.xlu1 %v1741_v63  ;;  %v1705_v48 = vsel %vm990_vm0, %v5989_v11, 0.0  ;;  %v1744_v37 = vsel %vm990_vm0, %v6014_v0, 0.0 }
 0x2e1   : > { %1700 = vadd.xlane.f32.xlu0 %v1699_v18  ;;  %4739 = vmatpush.msra.mxu2 %v3113_v51  ;;  %v3111_v18 = vld [vmem:[#allocation10 + $0xc60] sm:$0xff]  ;;  %v1708_v43 = vsel %vm990_vm0, %v5990_v20, 0.0 }
 0x2e3   : > { %v1665_v7 = vpop.xlane.xlu2 %1664  ;;  %v1644_v32 = vpop.xlane.xlu1 %1643  ;;  %4740 = vmatpush.msra.mxu2 %v3111_v18 }
 0x2e4   : > { %v8556_v24 = vpop.xlane.xlu0 %1601  ;;  %v2168_v39 = vmul.f32 0.0625, %v1644_v32  ;;  %v2175_v3 = vmul.f32 0.0625, %v1665_v7  ;;  %v6277_v7 = vld [vmem:[%s6806_s27 + $0x3f8] sm:$0xff]   ;;  %v3107_v32 = vld [vmem:[#allocation10 + $0xc40] sm:$0xff] }
 0x2e5   : > { %4741 = vmatpush.msra.mxu2 %v3109_v57  ;;  %v6021_v12 = vunpack.c.l.bf16 %v6277_v7  ;;  %v3155_v57 = vld [vmem:[#allocation10 + $0xdc0] sm:$0xff] }
 0x2e6   : > { %v4271_v38 = vperm.slane %v2168_v39, %v7301_v30  ;;  %v4285_v25 = vperm.slane %v2175_v3, %v7195_v61 }
 0x2e7   : > { %4742 = vmatpush.msra.mxu2 %v3107_v32  ;;  %v1753_v18 = vsel %vm990_vm0, %v6021_v12, 0.0  ;;  %v6030_v32 = vunpack.c.h.bf16 %v6279_v19 }
 0x2e8   : > { %1748 = vadd.xlane.f32.xlu2 %v1747_v9  ;;  %v8564_v8 = vsel %vm3856_vm9, %v4271_v38, %v4270_v10  ;;  %1706 = vadd.xlane.f32.xlu1 %v1705_v48  ;;  %v1759_v10 = vsel %vm990_vm0, %v6025_v5, 0.0  ;;  %v6029_v9 = vunpack.c.l.bf16 %v6279_v19  ;;  %v3105_v48 = vld [vmem:[#allocation10 + $0xc30] sm:$0xff]  ;;  %v6026_v38 = vunpack.c.h.bf16 %v6278_v23 }
 0x2e9   : > { %1745 = vadd.xlane.f32.xlu0 %v1744_v37  ;;  %v3161_v37 = vld [vmem:[#allocation10 + $0xdf0] sm:$0xff]  ;;  %4743 = vmatpush.msra.mxu2 %v3105_v48 }
 0x2ea   : > { %4751 = vmatpush.msra.mxu3 %v3161_v37  ;;  %v1762_v23 = vsel %vm990_vm0, %v6026_v38, 0.0  ;;  %v3153_v48 = vld [vmem:[#allocation10 + $0xdb0] sm:$0xff] }
 0x2eb   : > { %v8566_v44 = vpop.xlane.xlu2 %1604  ;;  %v1545_v62 = vpop.xlane.xlu1 %1544  ;;  %4744 = vmatpush.msra.mxu2 %v3103_v31  ;;  %v3149_v31 = vld [vmem:[#allocation10 + $0xd90] sm:$0xff] }
 0x2ec   : > { %v1668_v63 = vpop.xlane.xlu0 %1667  ;;  %v2135_v55 = vmul.f32 0.0625, %v1545_v62  ;;  %v1765_v62 = vsel %vm990_vm0, %v6029_v9, 0.0  ;;  %v6022_v9 = vunpack.c.h.bf16 %v6277_v7  ;;  %v8599_v7 = vld [vmem:[%s6806_s27 + $0x448] sm:$0xff]  }
 0x2ed   : > { %v2176_v16 = vmul.f32 0.0625, %v1668_v63 }
 0x2ee   : > { %v4207_v11 = vperm.slane %v2135_v55, %v7274_v36  ;;  %v3101_v55 = vld [vmem:[#allocation10 + $0xc10] sm:$0xff]  ;;  %v1756_v19 = vsel %vm990_vm0, %v6022_v9, 0.0 }
 0x2ef   : > { %v4286_v0 = vperm.slane %v2176_v16, %v7204_v47  ;;  %v3157_v16 = vld [vmem:[#allocation10 + $0xdd0] sm:$0xff]  ;;  %4745 = vmatpush.msra.mxu2 %v3101_v55 }
 0x2f0   : > { %1760 = vadd.xlane.f32.xlu2 %v1759_v10  ;;  %v4208_v45 = vsel %vm3852_vm8, %v4207_v11, %v4206_v33  ;;  %1751 = vadd.xlane.f32.xlu1 %v1750_v4  ;;  %v3159_v33 = vld [vmem:[#allocation10 + $0xde0] sm:$0xff] }
 0x2f1   : > { %v4287_v39 = vsel %vm3824_vm1, %v4286_v0, %v4285_v25  ;;  %1709 = vadd.xlane.f32.xlu0 %v1708_v43  ;;  %4752 = vmatpush.msra.mxu3 %v3159_v33  ;;  %v6286_v25 = vld [vmem:[%s6806_s27 + $0x440] sm:$0xff]   ;;  %v8602_v33 = vld [vmem:[%s6806_s27 + $0x410] sm:$0xff]  }
 0x2f2   : > { %v3099_v43 = vld [vmem:[#allocation10 + $0xc00] sm:$0xff]  ;;  %v6057_v0 = vunpack.c.l.bf16 %v6286_v25  ;;  %v6033_v55 = vunpack.c.l.bf16 %v8602_v33 }
 0x2f3   : > { %v1548_v1 = vpop.xlane.xlu2 %1547  ;;  %v1671_v5 = vpop.xlane.xlu1 %1670  ;;  %4753 = vmatpush.msra.mxu3 %v3157_v16  ;;  %4746 = vmatpush.msra.mxu2 %v3099_v43  ;;  %v6058_v16 = vunpack.c.h.bf16 %v6286_v25  ;;  %v3093_v25 = vld [vmem:[#allocation10 + $0xbd0] sm:$0xff] }
 0x2f4   : > { %v2136_v3 = vmul.f32 0.0625, %v1548_v1  ;;  %v8578_v51 = vpop.xlane.xlu0 %1646  ;;  %v2177_v20 = vmul.f32 0.0625, %v1671_v5  ;;  %v3151_v1 = vld [vmem:[#allocation10 + $0xda0] sm:$0xff]  ;;  %v1768_v5 = vsel %vm990_vm0, %v6030_v32, 0.0 }
 0x2f5   : > { %4754 = vmatpush.msra.mxu3 %v3155_v57 }
 0x2f6   : > { %v4209_v63 = vperm.slane %v2136_v3, %v7301_v30  ;;  %v4288_v10 = vperm.slane %v2177_v20, %v7216_v59 }
 0x2f7   : > { %4755 = vmatpush.msra.mxu3 %v3153_v48 }
 0x2f8   : > { %v8587_v4 = vsel %vm3856_vm9, %v4209_v63, %v4208_v45  ;;  %1766 = vadd.xlane.f32.xlu2 %v1765_v62  ;;  %v4289_v11 = vsel %vm3828_vm2, %v4288_v10, %v4287_v39  ;;  %1754 = vadd.xlane.f32.xlu1 %v1753_v18  ;;  %v1807_v39 = vsel %vm990_vm0, %v6057_v0, 0.0  ;;  %v3147_v62 = vld [vmem:[#allocation10 + $0xd80] sm:$0xff]  ;;  %v6061_v63 = vunpack.c.l.bf16 %v8599_v7  ;;  %v3097_v18 = vld [vmem:[#allocation10 + $0xbf0] sm:$0xff] }
 0x2f9   : > { %1763 = vadd.xlane.f32.xlu0 %v1762_v23  ;;  %4756 = vmatpush.msra.mxu3 %v3151_v1  ;;  %v3145_v23 = vld [vmem:[#allocation10 + $0xd70] sm:$0xff]  ;;  %v3143_v0 = vld [vmem:[#allocation10 + $0xd60] sm:$0xff] }
 0x2fa   : > { %4711 = vmatpush.msra.mxu1 %v3097_v18  ;;  %v1813_v48 = vsel %vm990_vm0, %v6061_v63, 0.0  ;;  %v8615_v1 = vld [vmem:[%s6806_s27 + $0x418] sm:$0xff]  }
 0x2fb   : > { %v1674_v37 = vpop.xlane.xlu2 %1673  ;;  %v8590_v45 = vpop.xlane.xlu1 %1649  ;;  %4757 = vmatpush.msra.mxu3 %v3149_v31  ;;  %v3139_v31 = vld [vmem:[#allocation10 + $0xd40] sm:$0xff]  ;;  %v6037_v18 = vunpack.c.l.bf16 %v8615_v1 }
 0x2fc   : > { %v2178_v12 = vmul.f32 0.0625, %v1674_v37  ;;  %v8592_v38 = vpop.xlane.xlu0 %1607  ;;  %v1771_v37 = vsel %vm990_vm0, %v6033_v55, 0.0  ;;  %v3137_v55 = vld [vmem:[#allocation10 + $0xd30] sm:$0xff] }
 0x2fd   : > { %4758 = vmatpush.msra.mxu3 %v3147_v62  ;;  %v2152_v62 = vmul.f32 0.0625, %v8534_v6  ;;  %v2154_v6 = vmul.f32 0.0625, %v8556_v24 }
 0x2fe   : > { %v4290_v3 = vperm.slane %v2178_v12, %v7220_v35  ;;  %v1810_v12 = vsel %vm990_vm0, %v6058_v16, 0.0  ;;  %v6062_v16 = vunpack.c.h.bf16 %v8599_v7 }
 0x2ff   : > { %4759 = vmatpush.msra.mxu3 %v3145_v23  ;;  %v3089_v23 = vld [vmem:[#allocation10 + $0xbb0] sm:$0xff]  ;;  %v4240_v7 = vperm.slane %v2152_v62, %v7301_v30 }
 0x300   : > { %v8605_v20 = vsel %vm3832_vm3, %v4290_v3, %v4289_v11  ;;  %1808 = vadd.xlane.f32.xlu2 %v1807_v39  ;;  %1769 = vadd.xlane.f32.xlu1 %v1768_v5  ;;  %v3095_v11 = vld [vmem:[#allocation10 + $0xbe0] sm:$0xff]  ;;  %v3141_v39 = vld [vmem:[#allocation10 + $0xd50] sm:$0xff]  ;;  %v1816_v24 = vsel %vm990_vm0, %v6062_v16, 0.0 }
 0x301   : > { %1757 = vadd.xlane.f32.xlu0 %v1756_v19  ;;  %4712 = vmatpush.msra.mxu1 %v3095_v11  ;;  %v3091_v19 = vld [vmem:[#allocation10 + $0xbc0] sm:$0xff]  ;;  %v3133_v62 = vld [vmem:[#allocation10 + $0xd10] sm:$0xff] }
 0x302   : > { %4760 = vmatpush.msra.mxu3 %v3143_v0  ;;  %v3131_v16 = vld [vmem:[#allocation10 + $0xd00] sm:$0xff] }
 0x303   : > { %v8609_v10 = vpop.xlane.xlu2 %1550  ;;  %v1716_v43 = vpop.xlane.xlu1 %1715  ;;  %4713 = vmatpush.msra.mxu1 %v3093_v25 }
 0x304   : > { %v1713_v57 = vpop.xlane.xlu0 %1712  ;;  %v2192_v32 = vmul.f32 0.0625, %v1716_v43  ;;  %4761 = vmatpush.msra.mxu3 %v3141_v39  ;;  %v6034_v43 = vunpack.c.h.bf16 %v8602_v33  ;;  %v2155_v33 = vmul.f32 0.0625, %v8566_v44  ;;  %v4244_v44 = vperm.slane %v2154_v6, %v7325_v46 }
 0x305   : > { %v2191_v9 = vmul.f32 0.0625, %v1713_v57  ;;  %4714 = vmatpush.msra.mxu1 %v3091_v19  ;;  %v2153_v57 = vmul.f32 0.0625, %v8545_v42  ;;  %v2156_v42 = vmul.f32 0.0625, %v8592_v38  ;;  %v3083_v38 = vld [vmem:[#allocation10 + $0xb80] sm:$0xff] }
 0x306   : > { %v4317_v3 = vperm.slane %v2192_v32, %v7204_v47  ;;  %4762 = vmatpush.msra.mxu3 %v3139_v31  ;;  %v1774_v39 = vsel %vm990_vm0, %v6034_v43, 0.0  ;;  %v4241_v43 = vsel %vm3856_vm9, %v4240_v7, %v8532_v58 }
 0x307   : > { %v4316_v5 = vperm.slane %v2191_v9, %v7195_v61  ;;  %4715 = vmatpush.msra.mxu1 %v3089_v23  ;;  %v4242_v19 = vperm.slane %v2153_v57, %v7311_v28  ;;  %v4246_v23 = vperm.slane %v2155_v33, %v7332_v13  ;;  %v4248_v57 = vperm.slane %v2156_v42, %v9355_v21 }
 0x308   : > { %1814 = vadd.xlane.f32.xlu2 %v1813_v48  ;;  %1772 = vadd.xlane.f32.xlu1 %v1771_v37  ;;  %v3087_v48 = vld [vmem:[#allocation10 + $0xba0] sm:$0xff] }
 0x309   : > { %v8621_v63 = vsel %vm3824_vm1, %v4317_v3, %v4316_v5  ;;  %1811 = vadd.xlane.f32.xlu0 %v1810_v12  ;;  %4763 = vmatpush.msra.mxu3 %v3137_v55  ;;  %v3135_v37 = vld [vmem:[#allocation10 + $0xd20] sm:$0xff]  ;;  %v1777_v12 = vsel %vm990_vm0, %v6037_v18, 0.0  ;;  %v6288_v3 = vld [vmem:[%s6806_s27 + $0x450] sm:$0xff]  }
 0x30a   : > { %4716 = vmatpush.msra.mxu1 %v3087_v48  ;;  %v3085_v5 = vld [vmem:[#allocation10 + $0xb90] sm:$0xff]  ;;  %v6066_v55 = vunpack.c.h.bf16 %v6288_v3  ;;  %v6065_v6 = vunpack.c.l.bf16 %v6288_v3 }
 0x30b   : > { %v1677_v11 = vpop.xlane.xlu2 %1676  ;;  %v8628_v32 = vpop.xlane.xlu1 %1652  ;;  %4764 = vmatpush.msra.mxu3 %v3135_v37 }
 0x30c   : > { %v2179_v0 = vmul.f32 0.0625, %v1677_v11  ;;  %v1611_v9 = vpop.xlane.xlu0 %1610  ;;  %4717 = vmatpush.msra.mxu1 %v3085_v5  ;;  %v6038_v11 = vunpack.c.h.bf16 %v8615_v1  ;;  %v3079_v1 = vld [vmem:[#allocation10 + $0xb60] sm:$0xff]  ;;  %v1819_v5 = vsel %vm990_vm0, %v6065_v6, 0.0 }
 0x30d   : > { %v2157_v31 = vmul.f32 0.0625, %v1611_v9  ;;  %4765 = vmatpush.msra.mxu3 %v3133_v62 }
 0x30e   : > { %v4292_v25 = vperm.slane %v2179_v0, %v7234_v22  ;;  %4718 = vmatpush.msra.mxu1 %v3083_v38  ;;  %v4243_v0 = vsel %vm3860_vm10, %v4242_v19, %v4241_v43  ;;  %v1780_v3 = vsel %vm990_vm0, %v6038_v11, 0.0  ;;  %v6282_v19 = vld [vmem:[%s6806_s27 + $0x420] sm:$0xff]   ;;  %v6289_v38 = vld [vmem:[%s6806_s27 + $0x458] sm:$0xff]  }
 0x30f   : > { %v4250_v9 = vperm.slane %v2157_v31, %v9357_v50  ;;  %v4245_v37 = vsel %vm3864_vm11, %v4244_v44, %v4243_v0  ;;  %4766 = vmatpush.msra.mxu3 %v3131_v16  ;;  %v3077_v31 = vld [vmem:[#allocation10 + $0xb50] sm:$0xff]  ;;  %v6042_v43 = vunpack.c.h.bf16 %v6282_v19  ;;  %v6069_v11 = vunpack.c.l.bf16 %v6289_v38 }
 0x310   : > { %v8642_v18 = vsel %vm3836_vm4, %v4292_v25, %v8605_v20  ;;  %1778 = vadd.xlane.f32.xlu2 %v1777_v12  ;;  %1817 = vadd.xlane.f32.xlu1 %v1816_v24  ;;  %v3081_v20 = vld [vmem:[#allocation10 + $0xb70] sm:$0xff]  ;;  %v4247_v7 = vsel %vm3868_vm12, %v4246_v23, %v4245_v37  ;;  %v1822_v25 = vsel %vm990_vm0, %v6066_v55, 0.0  ;;  %v3075_v55 = vld [vmem:[#allocation10 + $0xb40] sm:$0xff]  ;;  %v6041_v6 = vunpack.c.l.bf16 %v6282_v19 }
 0x311   : > { %1775 = vadd.xlane.f32.xlu0 %v1774_v39  ;;  %4719 = vmatpush.msra.mxu1 %v3081_v20  ;;  %v4249_v24 = vsel %vm3872_vm13, %v4248_v57, %v4247_v7  ;;  %v3073_v57 = vld [vmem:[#allocation10 + $0xb30] sm:$0xff]  ;;  %v3071_v37 = vld [vmem:[#allocation10 + $0xb20] sm:$0xff]  ;;  %v6070_v19 = vunpack.c.h.bf16 %v6289_v38 }
 0x312   : > { %v4251_v44 = vsel %vm3876_vm14, %v4250_v9, %v4249_v24  ;;  %v6290_v7 = vld [vmem:[%s6806_s27 + $0x460] sm:$0xff]  }
 0x313   : > { %v1614_v48 = vpop.xlane.xlu2 %1613  ;;  %v8652_v12 = vpop.xlane.xlu1 %1553  ;;  %4720 = vmatpush.msra.mxu1 %v3079_v1  ;;  %v1783_v1 = vsel %vm990_vm0, %v6041_v6, 0.0 }
 0x314   : > { %v2158_v33 = vmul.f32 0.0625, %v1614_v48  ;;  %v1719_v58 = vpop.xlane.xlu0 %1718 }
 0x315   : > { %v2193_v42 = vmul.f32 0.0625, %v1719_v58  ;;  %4721 = vmatpush.msra.mxu1 %v3077_v31  ;;  %v1825_v58 = vsel %vm990_vm0, %v6069_v11, 0.0  ;;  %v2169_v31 = vmul.f32 0.0625, %v8578_v51 }
 0x316   : > { %v4252_v39 = vperm.slane %v2158_v33, %v9362_v52 }
 0x317   : > { %v4319_v62 = vperm.slane %v2193_v42, %v7216_v59  ;;  %4722 = vmatpush.msra.mxu1 %v3075_v55  ;;  %v3069_v42 = vld [vmem:[#allocation10 + $0xb10] sm:$0xff]  ;;  %v4273_v38 = vperm.slane %v2169_v31, %v7311_v28 }
 0x318   : > { %1823 = vadd.xlane.f32.xlu2 %v1822_v25  ;;  %v8665_v23 = vsel %vm3880_vm15, %v4252_v39, %v4251_v44  ;;  %1781 = vadd.xlane.f32.xlu1 %v1780_v3  ;;  %v6283_v25 = vld [vmem:[%s6806_s27 + $0x428] sm:$0xff]   ;;  %v6073_v3 = vunpack.c.l.bf16 %v6290_v7  ;;  %v2170_v44 = vmul.f32 0.0625, %v8590_v45 }
 0x319   : > { %v4320_v16 = vsel %vm3828_vm2, %v4319_v62, %v8621_v63  ;;  %1820 = vadd.xlane.f32.xlu0 %v1819_v5  ;;  %4747 = vmatmul.f32.vlgmr.msra.gmra.mxu2 %v8665_v23  ;;  %v1786_v63 = vsel %vm990_vm0, %v6042_v43, 0.0  ;;  %v3067_v39 = vld [vmem:[#allocation10 + $0xb00] sm:$0xff]  ;;  %v6045_v5 = vunpack.c.l.bf16 %v6283_v25 }
 0x31a   : > { %4723 = vmatpush.msra.mxu1 %v3073_v57  ;;  %v1831_v57 = vsel %vm990_vm0, %v6073_v3, 0.0  ;;  %v4275_v51 = vperm.slane %v2170_v44, %v7325_v46  ;;  %v3191_v44 = vld [vmem:[#allocation10 + $0xee0] sm:$0xff] }
 0x31b   : > { %v1722_v20 = vpop.xlane.xlu2 %1721  ;;  %v8670_v9 = vpop.xlane.xlu1 %1679  ;;  %v1789_v6 = vsel %vm990_vm0, %v6045_v5, 0.0 }
 0x31c   : > { %v2194_v0 = vmul.f32 0.0625, %v1722_v20  ;;  %v1656_v48 = vpop.xlane.xlu0 %1655  ;;  %4724 = vmatpush.msra.mxu1 %v3071_v37  ;;  %v1828_v20 = vsel %vm990_vm0, %v6070_v19, 0.0 }
 0x31d   : > { %v2172_v11 = vmul.f32 0.0625, %v1656_v48  ;;  %v6074_v48 = vunpack.c.h.bf16 %v6290_v7 }
 0x31e   : > { %v4321_v33 = vperm.slane %v2194_v0, %v7220_v35  ;;  %4725 = vmatpush.msra.mxu1 %v3069_v42  ;;  %v6294_v0 = vld [vmem:[%s6806_s27 + $0x480] sm:$0xff]  }
 0x320   : > { %v8679_v24 = vsel %vm3832_vm3, %v4321_v33, %v4320_v16  ;;  %1787 = vadd.xlane.f32.xlu2 %v1786_v63  ;;  %1826 = vadd.xlane.f32.xlu1 %v1825_v58  ;;  %v2171_v16 = vmul.f32 0.0625, %v8628_v32  ;;  %v6089_v63 = vunpack.c.l.bf16 %v6294_v0  ;;  %v3193_v32 = vld [vmem:[#allocation10 + $0xef0] sm:$0xff]  ;;  %v4279_v33 = vperm.slane %v2172_v11, %v9355_v21  ;;  %v6291_v11 = vld [vmem:[%s6806_s27 + $0x468] sm:$0xff]  }
 0x321   : > { %1784 = vadd.xlane.f32.xlu0 %v1783_v1  ;;  %4726 = vmatpush.msra.mxu1 %v3067_v39  ;;  %v6046_v58 = vunpack.c.h.bf16 %v6283_v25  ;;  %v4274_v1 = vsel %vm3860_vm10, %v4273_v38, %v8564_v8  ;;  %v6284_v38 = vld [vmem:[%s6806_s27 + $0x430] sm:$0xff]  }
 0x322   : > { %v4277_v45 = vperm.slane %v2171_v16, %v7332_v13  ;;  %4771 = vmatpush.msrb.mxu0 %v3193_v32  ;;  %v4276_v3 = vsel %vm3864_vm11, %v4275_v51, %v4274_v1  ;;  %v1855_v7 = vsel %vm990_vm0, %v6089_v63, 0.0  ;;  %v1834_v16 = vsel %vm990_vm0, %v6074_v48, 0.0  ;;  %v3187_v51 = vld [vmem:[#allocation10 + $0xec0] sm:$0xff]  ;;  %v3185_v63 = vld [vmem:[#allocation10 + $0xeb0] sm:$0xff] }
 0x323   : > { %v8682_v62 = vpop.xlane.xlu2 %1682  ;;  %v1659_v55 = vpop.xlane.xlu1 %1658  ;;  %v6049_v32 = vunpack.c.l.bf16 %v6284_v38  ;;  %v2137_v48 = vmul.f32 0.0625, %v8609_v10  ;;  %v2138_v1 = vmul.f32 0.0625, %v8652_v12  ;;  %v3181_v10 = vld [vmem:[#allocation10 + $0xe90] sm:$0xff]  ;;  %v8724_v12 = vld [vmem:[%s6806_s27 + $0x488] sm:$0xff]  }
 0x324   : > { %v1557_v43 = vpop.xlane.xlu0 %1556  ;;  %v2173_v37 = vmul.f32 0.0625, %v1659_v55  ;;  %v4278_v55 = vsel %vm3868_vm12, %v4277_v45, %v4276_v3  ;;  %4772 = vmatpush.msrb.mxu0 %v3191_v44  ;;  %v6077_v45 = vunpack.c.l.bf16 %v6291_v11  ;;  %v3183_v3 = vld [vmem:[#allocation10 + $0xea0] sm:$0xff] }
 0x325   : > { %v4280_v25 = vsel %vm3872_vm13, %v4279_v33, %v4278_v55  ;;  %v6090_v33 = vunpack.c.h.bf16 %v6294_v0 }
 0x326   : > { %v4281_v42 = vperm.slane %v2173_v37, %v9357_v50  ;;  %v1837_v44 = vsel %vm990_vm0, %v6077_v45, 0.0  ;;  %v6050_v45 = vunpack.c.h.bf16 %v6284_v38  ;;  %v3175_v38 = vld [vmem:[#allocation10 + $0xe60] sm:$0xff] }
 0x327   : > { %v1858_v0 = vsel %vm990_vm0, %v6090_v33, 0.0 }
 0x328   : > { %1832 = vadd.xlane.f32.xlu2 %v1831_v57  ;;  %1790 = vadd.xlane.f32.xlu1 %v1789_v6  ;;  %v1792_v57 = vsel %vm990_vm0, %v6046_v58, 0.0  ;;  %v3189_v6 = vld [vmem:[#allocation10 + $0xed0] sm:$0xff] }
 0x329   : > { %1829 = vadd.xlane.f32.xlu0 %v1828_v20  ;;  %v4282_v20 = vsel %vm3876_vm14, %v4281_v42, %v4280_v25  ;;  %4773 = vmatpush.msrb.mxu0 %v3189_v6  ;;  %v4211_v25 = vperm.slane %v2137_v48, %v7311_v28  ;;  %v3177_v6 = vld [vmem:[#allocation10 + $0xe70] sm:$0xff] }
 0x32b   : > { %v1662_v39 = vpop.xlane.xlu2 %1661  ;;  %v1560_v19 = vpop.xlane.xlu1 %1559  ;;  %4774 = vmatpush.msrb.mxu0 %v3187_v51 }
 0x32c   : > { %v2174_v5 = vmul.f32 0.0625, %v1662_v39  ;;  %v8698_v31 = vpop.xlane.xlu0 %1724  ;;  %v2140_v55 = vmul.f32 0.0625, %v1560_v19  ;;  %v6078_v19 = vunpack.c.h.bf16 %v6291_v11 }
 0x32d   : > { %4775 = vmatpush.msrb.mxu0 %v3185_v63  ;;  %v6093_v63 = vunpack.c.l.bf16 %v8724_v12 }
 0x32e   : > { %v4283_v8 = vperm.slane %v2174_v5, %v9362_v52  ;;  %v2139_v5 = vmul.f32 0.0625, %v1557_v43  ;;  %v4217_v51 = vperm.slane %v2140_v55, %v9355_v21  ;;  %v1840_v55 = vsel %vm990_vm0, %v6078_v19, 0.0  ;;  %v3171_v19 = vld [vmem:[#allocation10 + $0xe40] sm:$0xff] }
 0x32f   : > { %4776 = vmatpush.msrb.mxu0 %v3183_v3 }
 0x330   : > { %1856 = vadd.xlane.f32.xlu2 %v1855_v7  ;;  %v8710_v37 = vsel %vm3880_vm15, %v4283_v8, %v4282_v20  ;;  %1835 = vadd.xlane.f32.xlu1 %v1834_v16  ;;  %v1795_v7 = vsel %vm990_vm0, %v6049_v32, 0.0  ;;  %v4213_v16 = vperm.slane %v2138_v1, %v7325_v46  ;;  %v4215_v43 = vperm.slane %v2139_v5, %v7332_v13  ;;  %v3225_v20 = vld [vmem:[#allocation10 + $0xff0] sm:$0xff]  ;;  %v3223_v5 = vld [vmem:[#allocation10 + $0xfe0] sm:$0xff] }
 0x331   : > { %1793 = vadd.xlane.f32.xlu0 %v1792_v57  ;;  %4767 = vmatmul.f32.vlgmr.msra.gmra.mxu3 %v8710_v37  ;;  %v3179_v57 = vld [vmem:[#allocation10 + $0xe80] sm:$0xff]  ;;  %v4212_v32 = vsel %vm3860_vm10, %v4211_v25, %v8587_v4 }
 0x332   : > { %4777 = vmatpush.msrb.mxu0 %v3181_v10  ;;  %4791 = vmatpush.msrb.mxu1 %v3225_v20  ;;  %v1861_v10 = vsel %vm990_vm0, %v6093_v63, 0.0  ;;  %v6302_v25 = vld [vmem:[%s6806_s27 + $0x4c0] sm:$0xff]   ;;  %v6094_v63 = vunpack.c.h.bf16 %v8724_v12 }
 0x333   : > { %v1563_v58 = vpop.xlane.xlu2 %1562  ;;  %v8715_v42 = vpop.xlane.xlu1 %1727  ;;  %v6122_v20 = vunpack.c.h.bf16 %v6302_v25 }
 0x334   : > { %v8717_v39 = vpop.xlane.xlu0 %1685  ;;  %v2141_v8 = vmul.f32 0.0625, %v1563_v58  ;;  %4778 = vmatpush.msrb.mxu0 %v3179_v57  ;;  %v4214_v58 = vsel %vm3864_vm11, %v4213_v16, %v4212_v32  ;;  %4792 = vmatpush.msrb.mxu1 %v3223_v5  ;;  %v3221_v16 = vld [vmem:[#allocation10 + $0xfd0] sm:$0xff]  ;;  %v1864_v12 = vsel %vm990_vm0, %v6094_v63, 0.0 }
 0x335   : > { %v3217_v32 = vld [vmem:[#allocation10 + $0xfb0] sm:$0xff]  ;;  %v1906_v5 = vsel %vm990_vm0, %v6122_v20, 0.0 }
 0x336   : > { %v4219_v33 = vperm.slane %v2141_v8, %v9357_v50  ;;  %4779 = vmatpush.msrb.mxu0 %v3177_v6  ;;  %v3173_v8 = vld [vmem:[#allocation10 + $0xe50] sm:$0xff]  ;;  %4793 = vmatpush.msrb.mxu1 %v3221_v16  ;;  %v3219_v6 = vld [vmem:[#allocation10 + $0xfc0] sm:$0xff] }
 0x337   : > { %v3211_v16 = vld [vmem:[#allocation10 + $0xf80] sm:$0xff]  ;;  %v3209_v20 = vld [vmem:[#allocation10 + $0xf70] sm:$0xff] }
 0x338   : > { %1838 = vadd.xlane.f32.xlu2 %v1837_v44  ;;  %1796 = vadd.xlane.f32.xlu1 %v1795_v7  ;;  %v4216_v44 = vsel %vm3868_vm12, %v4215_v43, %v4214_v58 }
 0x339   : > { %1859 = vadd.xlane.f32.xlu0 %v1858_v0  ;;  %v4218_v4 = vsel %vm3872_vm13, %v4217_v51, %v4216_v44  ;;  %v1798_v0 = vsel %vm990_vm0, %v6050_v45, 0.0  ;;  %4780 = vmatpush.msrb.mxu0 %v3175_v38  ;;  %v3169_v51 = vld [vmem:[#allocation10 + $0xe30] sm:$0xff]  ;;  %v6121_v45 = vunpack.c.l.bf16 %v6302_v25  ;;  %v3215_v38 = vld [vmem:[#allocation10 + $0xfa0] sm:$0xff] }
 0x33a   : > { %v4220_v57 = vsel %vm3876_vm14, %v4219_v33, %v4218_v4  ;;  %4794 = vmatpush.msrb.mxu1 %v3219_v6  ;;  %v3165_v4 = vld [vmem:[#allocation10 + $0xe10] sm:$0xff]  ;;  %v3163_v25 = vld [vmem:[#allocation10 + $0xe00] sm:$0xff] }
 0x33b   : > { %v1566_v48 = vpop.xlane.xlu2 %1565  ;;  %v8734_v11 = vpop.xlane.xlu1 %1730  ;;  %4781 = vmatpush.msrb.mxu0 %v3173_v8  ;;  %v1903_v44 = vsel %vm990_vm0, %v6121_v45, 0.0 }
 0x33c   : > { %v2142_v1 = vmul.f32 0.0625, %v1566_v48  ;;  %v8736_v3 = vpop.xlane.xlu0 %1688  ;;  %4795 = vmatpush.msrb.mxu1 %v3217_v32  ;;  %v3207_v32 = vld [vmem:[#allocation10 + $0xf60] sm:$0xff] }
 0x33d   : > { %4782 = vmatpush.msrb.mxu0 %v3171_v19 }
 0x33e   : > { %v4221_v7 = vperm.slane %v2142_v1, %v9362_v52  ;;  %v3167_v1 = vld [vmem:[#allocation10 + $0xe20] sm:$0xff]  ;;  %4796 = vmatpush.msrb.mxu1 %v3215_v38 }
 0x33f   : > { %4783 = vmatpush.msrb.mxu0 %v3169_v51 }
 0x340   : > { %1841 = vadd.xlane.f32.xlu2 %v1840_v55  ;;  %v8747_v43 = vsel %vm3880_vm15, %v4221_v7, %v4220_v57  ;;  %1799 = vadd.xlane.f32.xlu1 %v1798_v0  ;;  %v8761_v55 = vld [vmem:[%s6806_s27 + $0x490] sm:$0xff]   ;;  %v6285_v0 = vld [vmem:[%s6806_s27 + $0x438] sm:$0xff]  }
 0x341   : > { %9369 = vst [vmem:[#allocation32_spill] sm:$0xff] %v8747_v43  ;;  %1862 = vadd.xlane.f32.xlu0 %v1861_v10  ;;  %4727 = vmatmul.f32.vlgmr.msra.gmra.mxu1 %v8747_v43  ;;  %v6292_v7 = vld [vmem:[%s6806_s27 + $0x470] sm:$0xff]   ;;  %v6097_v8 = vunpack.c.l.bf16 %v8761_v55  ;;  %v6053_v19 = vunpack.c.l.bf16 %v6285_v0 }
 0x342   : > { %4784 = vmatpush.msrb.mxu0 %v3167_v1  ;;  %v3213_v10 = vld [vmem:[#allocation10 + $0xf90] sm:$0xff]  ;;  %v6081_v57 = vunpack.c.l.bf16 %v6292_v7 }
 0x343   : > { %v8751_v33 = vpop.xlane.xlu2 %1694  ;;  %v8753_v48 = vpop.xlane.xlu1 %1733  ;;  %4797 = vmatpush.msrb.mxu1 %v3213_v10  ;;  %v1867_v63 = vsel %vm990_vm0, %v6097_v8, 0.0  ;;  %v1801_v38 = vsel %vm990_vm0, %v6053_v19, 0.0  ;;  %v6054_v10 = vunpack.c.h.bf16 %v6285_v0  ;;  %v2180_v8 = vmul.f32 0.0625, %v8670_v9  ;;  %v6293_v9 = vld [vmem:[%s6806_s27 + $0x478] sm:$0xff]  }
 0x344   : > { %v8755_v58 = vpop.xlane.xlu0 %1691  ;;  %4785 = vmatpush.msrb.mxu0 %v3165_v4  ;;  %v1843_v1 = vsel %vm990_vm0, %v6081_v57, 0.0  ;;  %v3203_v4 = vld [vmem:[#allocation10 + $0xf40] sm:$0xff]  ;;  %v2181_v57 = vmul.f32 0.0625, %v8682_v62  ;;  %v2183_v0 = vmul.f32 0.0625, %v8736_v3  ;;  %v3197_v43 = vld [vmem:[#allocation10 + $0xf10] sm:$0xff]  ;;  %v6085_v3 = vunpack.c.l.bf16 %v6293_v9 }
 0x345   : > { %4798 = vmatpush.msrb.mxu1 %v3211_v16  ;;  %v2184_v62 = vmul.f32 0.0625, %v8755_v58 }
 0x346   : > { %4786 = vmatpush.msrb.mxu0 %v3163_v25 }
 0x347   : > { %4799 = vmatpush.msrb.mxu1 %v3209_v20 }
 0x348   : > { %1907 = vadd.xlane.f32.xlu2 %v1906_v5  ;;  %1904 = vadd.xlane.f32.xlu1 %v1903_v44  ;;  %v6303_v5 = vld [vmem:[%s6806_s27 + $0x4c8] sm:$0xff]   ;;  %v3205_v44 = vld [vmem:[#allocation10 + $0xf50] sm:$0xff] }
 0x349   : > { %1865 = vadd.xlane.f32.xlu0 %v1864_v12  ;;  %4800 = vmatpush.msrb.mxu1 %v3207_v32  ;;  %v6082_v12 = vunpack.c.h.bf16 %v6292_v7  ;;  %v6125_v25 = vunpack.c.l.bf16 %v6303_v5  ;;  %v3199_v7 = vld [vmem:[#allocation10 + $0xf20] sm:$0xff] }
 0x34b   : > { %v8766_v6 = vpop.xlane.xlu2 %1739  ;;  %v1698_v51 = vpop.xlane.xlu1 %1697  ;;  %4801 = vmatpush.msrb.mxu1 %v3205_v44  ;;  %v1846_v32 = vsel %vm990_vm0, %v6082_v12, 0.0  ;;  %v4294_v44 = vperm.slane %v2180_v8, %v7239_v14  ;;  %v3195_v12 = vld [vmem:[#allocation10 + $0xf00] sm:$0xff]  ;;  %v6098_v8 = vunpack.c.h.bf16 %v8761_v55 }
 0x34c   : > { %v8768_v45 = vpop.xlane.xlu0 %1736 }
 0x34d   : > { %4802 = vmatpush.msrb.mxu1 %v3203_v4  ;;  %v4296_v4 = vperm.slane %v2181_v57, %v7248_v34  ;;  %v4295_v58 = vsel %vm3840_vm5, %v4294_v44, %v8642_v18  ;;  %v4302_v57 = vperm.slane %v2184_v62, %v7301_v30  ;;  %v2195_v44 = vmul.f32 0.0625, %v8698_v31 }
 0x34f   : > { %4803 = vmatpush.msrb.mxu1 %v3201_v49  ;;  %v6126_v49 = vunpack.c.h.bf16 %v6303_v5  ;;  %v1870_v5 = vsel %vm990_vm0, %v6098_v8, 0.0 }
 0x350   : > { %1868 = vadd.xlane.f32.xlu2 %v1867_v63  ;;  %1844 = vadd.xlane.f32.xlu1 %v1843_v1  ;;  %v2182_v63 = vmul.f32 0.0625, %v8717_v39  ;;  %v1804_v1 = vsel %vm990_vm0, %v6054_v10, 0.0  ;;  %v4300_v10 = vperm.slane %v2183_v0, %v7274_v36 }
 0x351   : > { %1802 = vadd.xlane.f32.xlu0 %v1801_v38  ;;  %v1909_v38 = vsel %vm990_vm0, %v6125_v25, 0.0  ;;  %4804 = vmatpush.msrb.mxu1 %v3199_v7  ;;  %v2185_v25 = vmul.f32 0.0625, %v8751_v33 }
 0x352   : > { %v4298_v39 = vperm.slane %v2182_v63, %v7265_v60  ;;  %v4297_v63 = vsel %vm3844_vm6, %v4296_v4, %v4295_v58  ;;  %v6297_v58 = vld [vmem:[%s6806_s27 + $0x498] sm:$0xff]  }
 0x353   : > { %v1704_v16 = vpop.xlane.xlu2 %1703  ;;  %v8776_v19 = vpop.xlane.xlu1 %1742  ;;  %4805 = vmatpush.msrb.mxu1 %v3197_v43  ;;  %v1849_v43 = vsel %vm990_vm0, %v6085_v3, 0.0  ;;  %v4304_v18 = vperm.slane %v2185_v25, %v7311_v28  ;;  %v2196_v25 = vmul.f32 0.0625, %v8715_v42  ;;  %v6101_v31 = vunpack.c.l.bf16 %v6297_v58 }
 0x354   : > { %v1701_v20 = vpop.xlane.xlu0 %1700  ;;  %v4299_v33 = vsel %vm3848_vm7, %v4298_v39, %v4297_v63  ;;  %v2188_v4 = vmul.f32 0.0625, %v1704_v16  ;;  %v2197_v16 = vmul.f32 0.0625, %v8734_v11  ;;  %v2199_v11 = vmul.f32 0.0625, %v8768_v45 }
 0x355   : > { %4806 = vmatpush.msrb.mxu1 %v3195_v12  ;;  %v4301_v55 = vsel %vm3852_vm8, %v4300_v10, %v4299_v33  ;;  %v6304_v12 = vld [vmem:[%s6806_s27 + $0x4d0] sm:$0xff]   ;;  %v6086_v10 = vunpack.c.h.bf16 %v6293_v9 }
 0x356   : > { %v4303_v62 = vsel %vm3856_vm9, %v4302_v57, %v4301_v55  ;;  %v6129_v8 = vunpack.c.l.bf16 %v6304_v12  ;;  %v4323_v57 = vperm.slane %v2195_v44, %v7234_v22  ;;  %v4310_v63 = vperm.slane %v2188_v4, %v9355_v21 }
 0x357   : > { %v1873_v44 = vsel %vm990_vm0, %v6101_v31, 0.0 }
 0x358   : > { %1847 = vadd.xlane.f32.xlu2 %v1846_v32  ;;  %1805 = vadd.xlane.f32.xlu1 %v1804_v1  ;;  %v2186_v32 = vmul.f32 0.0625, %v1698_v51  ;;  %v2187_v1 = vmul.f32 0.0625, %v1701_v20  ;;  %v1912_v51 = vsel %vm990_vm0, %v6126_v49, 0.0  ;;  %v4305_v49 = vsel %vm3860_vm10, %v4304_v18, %v4303_v62  ;;  %v8824_v62 = vld [vmem:[%s6806_s27 + $0x4a0] sm:$0xff]  }
 0x359   : > { %1910 = vadd.xlane.f32.xlu0 %v1909_v38  ;;  %v1852_v18 = vsel %vm990_vm0, %v6086_v10, 0.0  ;;  %v2200_v10 = vmul.f32 0.0625, %v8766_v6  ;;  %v6105_v31 = vunpack.c.l.bf16 %v8824_v62 }
 0x35a   : > { %v4306_v20 = vperm.slane %v2186_v32, %v7325_v46  ;;  %v4308_v39 = vperm.slane %v2187_v1, %v7332_v13 }
 0x35b   : > { %v8794_v7 = vpop.xlane.xlu2 %1748  ;;  %v1707_v0 = vpop.xlane.xlu1 %1706 }
 0x35c   : > { %v1746_v38 = vpop.xlane.xlu0 %1745  ;;  %v2189_v3 = vmul.f32 0.0625, %v1707_v0  ;;  %v4307_v32 = vsel %vm3864_vm11, %v4306_v20, %v4305_v49  ;;  %v2198_v0 = vmul.f32 0.0625, %v8753_v48  ;;  %v4324_v48 = vsel %vm3836_vm4, %v4323_v57, %v8679_v24 }
 0x35d   : > { %v4309_v9 = vsel %vm3868_vm12, %v4308_v39, %v4307_v32  ;;  %v4327_v20 = vperm.slane %v2197_v16, %v7248_v34  ;;  %v6102_v24 = vunpack.c.h.bf16 %v6297_v58  ;;  %v4331_v16 = vperm.slane %v2199_v11, %v7274_v36 }
 0x35e   : > { %v4312_v42 = vperm.slane %v2189_v3, %v9357_v50  ;;  %v4311_v39 = vsel %vm3872_vm13, %v4310_v63, %v4309_v9  ;;  %v4329_v3 = vperm.slane %v2198_v0, %v7265_v60  ;;  %v2201_v32 = vmul.f32 0.0625, %v8776_v19 }
 0x35f   : > { %v4333_v0 = vperm.slane %v2200_v10, %v7301_v30  ;;  %v1876_v19 = vsel %vm990_vm0, %v6102_v24, 0.0 }
 0x360   : > { %1850 = vadd.xlane.f32.xlu2 %v1849_v43  ;;  %1913 = vadd.xlane.f32.xlu1 %v1912_v51  ;;  %v4325_v51 = vperm.slane %v2196_v25, %v7239_v14  ;;  %v4313_v45 = vsel %vm3876_vm14, %v4312_v42, %v4311_v39  ;;  %v6130_v25 = vunpack.c.h.bf16 %v6304_v12  ;;  %v2202_v12 = vmul.f32 0.0625, %v1746_v38 }
 0x361   : > { %1871 = vadd.xlane.f32.xlu0 %v1870_v5  ;;  %v1915_v5 = vsel %vm990_vm0, %v6129_v8, 0.0  ;;  %v4335_v11 = vperm.slane %v2201_v32, %v7311_v28 }
 0x362   : > { %v4326_v57 = vsel %vm3840_vm5, %v4325_v51, %v4324_v48  ;;  %v1879_v51 = vsel %vm990_vm0, %v6105_v31, 0.0  ;;  %v6305_v48 = vld [vmem:[%s6806_s27 + $0x4d8] sm:$0xff]  }
 0x363   : > { %v1761_v1 = vpop.xlane.xlu2 %1760  ;;  %v1752_v33 = vpop.xlane.xlu1 %1751  ;;  %v4328_v6 = vsel %vm3844_vm6, %v4327_v20, %v4326_v57  ;;  %v4337_v20 = vperm.slane %v2202_v12, %v7325_v46 }
 0x364   : > { %v1710_v43 = vpop.xlane.xlu0 %1709  ;;  %v2207_v49 = vmul.f32 0.0625, %v1761_v1  ;;  %v4330_v1 = vsel %vm3848_vm7, %v4329_v3, %v4328_v6  ;;  %v3257_v6 = vld [vmem:[#allocation10 + $0x10f0] sm:$0xff] }
 0x365   : > { %v2190_v55 = vmul.f32 0.0625, %v1710_v43  ;;  %v1918_v43 = vsel %vm990_vm0, %v6130_v25, 0.0  ;;  %v4332_v38 = vsel %vm3852_vm8, %v4331_v16, %v4330_v1  ;;  %v6106_v25 = vunpack.c.h.bf16 %v8824_v62  ;;  %4811 = vmatpush.msrb.mxu2 %v3257_v6  ;;  %v3247_v6 = vld [vmem:[#allocation10 + $0x10a0] sm:$0xff] }
 0x366   : > { %v4334_v10 = vsel %vm3856_vm9, %v4333_v0, %v4332_v38 }
 0x367   : > { %v4314_v4 = vperm.slane %v2190_v55, %v9362_v52  ;;  %v4347_v55 = vperm.slane %v2207_v49, %v7195_v61  ;;  %v6134_v49 = vunpack.c.h.bf16 %v6305_v48 }
 0x368   : > { %1853 = vadd.xlane.f32.xlu2 %v1852_v18  ;;  %1916 = vadd.xlane.f32.xlu1 %v1915_v5  ;;  %v2203_v5 = vmul.f32 0.0625, %v8794_v7  ;;  %v4336_v7 = vsel %vm3860_vm10, %v4335_v11, %v4334_v10  ;;  %v8874_v11 = vld [vmem:[%s6806_s27 + $0x4e0] sm:$0xff]  }
 0x369   : > { %1874 = vadd.xlane.f32.xlu0 %v1873_v44  ;;  %v8835_v8 = vsel %vm3880_vm15, %v4314_v4, %v4313_v45  ;;  %v2204_v4 = vmul.f32 0.0625, %v1752_v33  ;;  %v6133_v33 = vunpack.c.l.bf16 %v6305_v48  ;;  %v4338_v57 = vsel %vm3864_vm11, %v4337_v20, %v4336_v7 }
 0x36a   : > { %4787 = vmatmul.f32.vlgmr.msrb.gmra.mxu0 %v8835_v8  ;;  %v4339_v24 = vperm.slane %v2203_v5, %v7332_v13  ;;  %v3253_v5 = vld [vmem:[#allocation10 + $0x10d0] sm:$0xff]  ;;  %v6137_v10 = vunpack.c.l.bf16 %v8874_v11 }
 0x36b   : > { %v1767_v63 = vpop.xlane.xlu2 %1766  ;;  %v1755_v9 = vpop.xlane.xlu1 %1754  ;;  %v4341_v16 = vperm.slane %v2204_v4, %v9355_v21 }
 0x36c   : > { %v2209_v58 = vmul.f32 0.0625, %v1767_v63  ;;  %v1764_v42 = vpop.xlane.xlu0 %1763  ;;  %v2205_v3 = vmul.f32 0.0625, %v1755_v9  ;;  %v3255_v9 = vld [vmem:[#allocation10 + $0x10e0] sm:$0xff] }
 0x36d   : > { %v2208_v18 = vmul.f32 0.0625, %v1764_v42  ;;  %v4340_v42 = vsel %vm3868_vm12, %v4339_v24, %v4338_v57  ;;  %4812 = vmatpush.msrb.mxu2 %v3255_v9  ;;  %v8894_v9 = vld [vmem:[%s6806_s27 + $0x4b0] sm:$0xff]  }
 0x36e   : > { %v4350_v44 = vperm.slane %v2209_v58, %v7216_v59  ;;  %v4343_v12 = vperm.slane %v2205_v3, %v9357_v50  ;;  %v1924_v58 = vsel %vm990_vm0, %v6134_v49, 0.0  ;;  %v3251_v3 = vld [vmem:[#allocation10 + $0x10c0] sm:$0xff]  ;;  %v3249_v49 = vld [vmem:[#allocation10 + $0x10b0] sm:$0xff] }
 0x36f   : > { %v4348_v39 = vperm.slane %v2208_v18, %v7204_v47  ;;  %v6299_v18 = vld [vmem:[%s6806_s27 + $0x4a8] sm:$0xff]   ;;  %4813 = vmatpush.msrb.mxu2 %v3253_v5  ;;  %v6138_v5 = vunpack.c.h.bf16 %v8874_v11 }
 0x370   : > { %1880 = vadd.xlane.f32.xlu2 %v1879_v51  ;;  %1919 = vadd.xlane.f32.xlu1 %v1918_v43  ;;  %v1882_v43 = vsel %vm990_vm0, %v6106_v25, 0.0 }
 0x371   : > { %v4349_v45 = vsel %vm3824_vm1, %v4348_v39, %v4347_v55  ;;  %1877 = vadd.xlane.f32.xlu0 %v1876_v19  ;;  %v1921_v55 = vsel %vm990_vm0, %v6133_v33, 0.0  ;;  %v4342_v19 = vsel %vm3872_vm13, %v4341_v16, %v4340_v42  ;;  %v6110_v39 = vunpack.c.h.bf16 %v6299_v18  ;;  %4814 = vmatpush.msrb.mxu2 %v3251_v3  ;;  %v3245_v42 = vld [vmem:[#allocation10 + $0x1090] sm:$0xff] }
 0x372   : > { %v4351_v31 = vsel %vm3828_vm2, %v4350_v44, %v4349_v45  ;;  %v4344_v44 = vsel %vm3876_vm14, %v4343_v12, %v4342_v19  ;;  %v6109_v45 = vunpack.c.l.bf16 %v6299_v18  ;;  %v3243_v19 = vld [vmem:[#allocation10 + $0x1080] sm:$0xff] }
 0x373   : > { %v1809_v32 = vpop.xlane.xlu2 %1808  ;;  %v1770_v63 = vpop.xlane.xlu1 %1769  ;;  %4815 = vmatpush.msrb.mxu2 %v3249_v49 }
 0x374   : > { %v1758_v62 = vpop.xlane.xlu0 %1757  ;;  %v2210_v1 = vmul.f32 0.0625, %v1770_v63  ;;  %v2223_v48 = vmul.f32 0.0625, %v1809_v32  ;;  %v1888_v32 = vsel %vm990_vm0, %v6110_v39, 0.0  ;;  %v1927_v63 = vsel %vm990_vm0, %v6137_v10, 0.0  ;;  %v3289_v39 = vld [vmem:[#allocation10 + $0x11f0] sm:$0xff] }
 0x375   : > { %v2206_v0 = vmul.f32 0.0625, %v1758_v62  ;;  %v1885_v62 = vsel %vm990_vm0, %v6109_v45, 0.0  ;;  %4816 = vmatpush.msrb.mxu2 %v3247_v6  ;;  %4831 = vmatpush.msrb.mxu3 %v3289_v39  ;;  %v3237_v6 = vld [vmem:[#allocation10 + $0x1050] sm:$0xff] }
 0x376   : > { %v4352_v51 = vperm.slane %v2210_v1, %v7220_v35  ;;  %v4378_v33 = vperm.slane %v2223_v48, %v7195_v61  ;;  %v8889_v1 = vld [vmem:[%s6806_s27 + $0x4e8] sm:$0xff]   ;;  %v3241_v48 = vld [vmem:[#allocation10 + $0x1070] sm:$0xff] }
 0x377   : > { %v4345_v38 = vperm.slane %v2206_v0, %v9362_v52  ;;  %4817 = vmatpush.msrb.mxu2 %v3245_v42  ;;  %v6141_v18 = vunpack.c.l.bf16 %v8889_v1  ;;  %v3283_v42 = vld [vmem:[#allocation10 + $0x11c0] sm:$0xff] }
 0x378   : > { %1925 = vadd.xlane.f32.xlu2 %v1924_v58  ;;  %v4353_v20 = vsel %vm3832_vm3, %v4352_v51, %v4351_v31  ;;  %1883 = vadd.xlane.f32.xlu1 %v1882_v43 }
 0x379   : > { %1922 = vadd.xlane.f32.xlu0 %v1921_v55  ;;  %v8879_v4 = vsel %vm3880_vm15, %v4345_v38, %v4344_v44  ;;  %v6113_v38 = vunpack.c.l.bf16 %v8894_v9  ;;  %4818 = vmatpush.msrb.mxu2 %v3243_v19  ;;  %v1933_v49 = vsel %vm990_vm0, %v6141_v18, 0.0  ;;  %v6142_v18 = vunpack.c.h.bf16 %v8889_v1 }
 0x37a   : > { %4807 = vmatmul.f32.vlgmr.msrb.gmra.mxu1 %v8879_v4  ;;  %v6114_v19 = vunpack.c.h.bf16 %v8894_v9 }
 0x37b   : > { %v1815_v25 = vpop.xlane.xlu2 %1814  ;;  %v1773_v24 = vpop.xlane.xlu1 %1772  ;;  %4819 = vmatpush.msrb.mxu2 %v3241_v48  ;;  %v1891_v11 = vsel %vm990_vm0, %v6113_v38, 0.0  ;;  %v1936_v9 = vsel %vm990_vm0, %v6142_v18, 0.0  ;;  %v2744_v18 = vld [vmem:[#allocation10 + $0xe8] sm:$0xff] }
 0x37c   : > { %v2225_v7 = vmul.f32 0.0625, %v1815_v25  ;;  %v1812_v31 = vpop.xlane.xlu0 %1811  ;;  %v2211_v57 = vmul.f32 0.0625, %v1773_v24  ;;  %v3287_v24 = vld [vmem:[#allocation10 + $0x11e0] sm:$0xff] }
 0x37d   : > { %v2224_v16 = vmul.f32 0.0625, %v1812_v31  ;;  %4832 = vmatpush.msrb.mxu3 %v3287_v24  ;;  %v3277_v24 = vld [vmem:[#allocation10 + $0x1190] sm:$0xff] }
 0x37e   : > { %v4381_v12 = vperm.slane %v2225_v7, %v7216_v59  ;;  %v4354_v0 = vperm.slane %v2211_v57, %v7234_v22  ;;  %v3239_v7 = vld [vmem:[#allocation10 + $0x1060] sm:$0xff]  ;;  %v8907_v57 = vld [vmem:[%s6806_s27 + $0x4b8] sm:$0xff]  }
 0x37f   : > { %v4379_v58 = vperm.slane %v2224_v16, %v7204_v47  ;;  %4820 = vmatpush.msrb.mxu2 %v3239_v7  ;;  %v3229_v7 = vld [vmem:[#allocation10 + $0x1010] sm:$0xff] }
 0x380   : > { %1889 = vadd.xlane.f32.xlu2 %v1888_v32  ;;  %v4355_v43 = vsel %vm3836_vm4, %v4354_v0, %v4353_v20  ;;  %1928 = vadd.xlane.f32.xlu1 %v1927_v63  ;;  %v6117_v0 = vunpack.c.l.bf16 %v8907_v57 }
 0x381   : > { %v4380_v55 = vsel %vm3824_vm1, %v4379_v58, %v4378_v33  ;;  %1886 = vadd.xlane.f32.xlu0 %v1885_v62  ;;  %v1930_v33 = vsel %vm990_vm0, %v6138_v5, 0.0  ;;  %4821 = vmatpush.msrb.mxu2 %v3237_v6  ;;  %v3235_v58 = vld [vmem:[#allocation10 + $0x1040] sm:$0xff]  ;;  %v3281_v5 = vld [vmem:[#allocation10 + $0x11b0] sm:$0xff]  ;;  %v6118_v6 = vunpack.c.h.bf16 %v8907_v57 }
 0x382   : > { %v4382_v51 = vsel %vm3828_vm2, %v4381_v12, %v4380_v55  ;;  %v3285_v12 = vld [vmem:[#allocation10 + $0x11d0] sm:$0xff] }
 0x383   : > { %v1779_v44 = vpop.xlane.xlu2 %1778  ;;  %v1818_v20 = vpop.xlane.xlu1 %1817  ;;  %4833 = vmatpush.msrb.mxu3 %v3285_v12  ;;  %4822 = vmatpush.msrb.mxu2 %v3235_v58  ;;  %v3273_v58 = vld [vmem:[#allocation10 + $0x1170] sm:$0xff]  ;;  %v1900_v57 = vsel %vm990_vm0, %v6118_v6, 0.0  ;;  %v2732_v6 = vld [vmem:[#allocation10 + $0x88] sm:$0xff] }
 0x384   : > { %v2213_v3 = vmul.f32 0.0625, %v1779_v44  ;;  %v1776_v10 = vpop.xlane.xlu0 %1775  ;;  %v2226_v45 = vmul.f32 0.0625, %v1818_v20  ;;  %v3231_v20 = vld [vmem:[#allocation10 + $0x1020] sm:$0xff] }
 0x385   : > { %v2212_v25 = vmul.f32 0.0625, %v1776_v10  ;;  %4834 = vmatpush.msrb.mxu3 %v3283_v42  ;;  %v3279_v10 = vld [vmem:[#allocation10 + $0x11a0] sm:$0xff] }
 0x386   : > { %v4358_v31 = vperm.slane %v2213_v3, %v7248_v34  ;;  %v4383_v16 = vperm.slane %v2226_v45, %v7220_v35  ;;  %v1897_v3 = vsel %vm990_vm0, %v6117_v0, 0.0  ;;  %v1894_v45 = vsel %vm990_vm0, %v6114_v19, 0.0 }
 0x387   : > { %v4356_v32 = vperm.slane %v2212_v25, %v7239_v14  ;;  %v6308_v25 = vld [vmem:[%s6806_s27 + $0x4f0] sm:$0xff]   ;;  %4835 = vmatpush.msrb.mxu3 %v3281_v5  ;;  %v6309_v5 = vld [vmem:[%s6806_s27 + $0x4f8] sm:$0xff]  }
 0x388   : > { %1934 = vadd.xlane.f32.xlu2 %v1933_v49  ;;  %v4384_v63 = vsel %vm3832_vm3, %v4383_v16, %v4382_v51  ;;  %1892 = vadd.xlane.f32.xlu1 %v1891_v11  ;;  %v3233_v51 = vld [vmem:[#allocation10 + $0x1030] sm:$0xff]  ;;  %v6146_v11 = vunpack.c.h.bf16 %v6308_v25  ;;  %v3275_v16 = vld [vmem:[#allocation10 + $0x1180] sm:$0xff]  ;;  %v6145_v12 = vunpack.c.l.bf16 %v6308_v25 }
 0x389   : > { %v4357_v62 = vsel %vm3840_vm5, %v4356_v32, %v4355_v43  ;;  %1931 = vadd.xlane.f32.xlu0 %v1930_v33  ;;  %4823 = vmatpush.msrb.mxu2 %v3233_v51  ;;  %v3227_v33 = vld [vmem:[#allocation10 + $0x1000] sm:$0xff] }
 0x38a   : > { %v8915_v55 = vsel %vm3844_vm6, %v4358_v31, %v4357_v62  ;;  %4836 = vmatpush.msrb.mxu3 %v3279_v10  ;;  %v2746_v62 = vld [vmem:[#allocation10 + $0xf8] sm:$0xff]  ;;  %v1942_v19 = vsel %vm990_vm0, %v6146_v11, 0.0  ;;  %v1939_v51 = vsel %vm990_vm0, %v6145_v12, 0.0  ;;  %v6150_v10 = vunpack.c.h.bf16 %v6309_v5  ;;  %v3259_v12 = vld [vmem:[#allocation10 + $0x1100] sm:$0xff] }
 0x38b   : > { %v1824_v38 = vpop.xlane.xlu2 %1823  ;;  %v8919_v44 = vpop.xlane.xlu1 %1781  ;;  %4824 = vmatpush.msrb.mxu2 %v3231_v20  ;;  %v6149_v20 = vunpack.c.l.bf16 %v6309_v5  ;;  %v2774_v5 = vld [vmem:[#allocation10 + $0x1d8] sm:$0xff] }
 0x38c   : > { %v2228_v43 = vmul.f32 0.0625, %v1824_v38  ;;  %v1821_v48 = vpop.xlane.xlu0 %1820  ;;  %4837 = vmatpush.msrb.mxu3 %v3277_v24  ;;  %v3271_v38 = vld [vmem:[#allocation10 + $0x1160] sm:$0xff]  ;;  %v1948_v11 = vsel %vm990_vm0, %v6150_v10, 0.0 }
 0x38d   : > { %v2227_v39 = vmul.f32 0.0625, %v1821_v48  ;;  %4825 = vmatpush.msrb.mxu2 %v3229_v7  ;;  %v3269_v48 = vld [vmem:[#allocation10 + $0x1150] sm:$0xff]  ;;  %v2736_v7 = vld [vmem:[#allocation10 + $0xa8] sm:$0xff]  ;;  %v3263_v24 = vld [vmem:[#allocation10 + $0x1120] sm:$0xff] }
 0x38e   : > { %v4387_v1 = vperm.slane %v2228_v43, %v7239_v14  ;;  %4838 = vmatpush.msrb.mxu3 %v3275_v16  ;;  %v2742_v43 = vld [vmem:[#allocation10 + $0xd8] sm:$0xff]  ;;  %v3261_v16 = vld [vmem:[#allocation10 + $0x1110] sm:$0xff] }
 0x38f   : > { %v4385_v49 = vperm.slane %v2227_v39, %v7234_v22  ;;  %4826 = vmatpush.msrb.mxu2 %v3227_v33  ;;  %v2740_v39 = vld [vmem:[#allocation10 + $0xc8] sm:$0xff]  ;;  %v2734_v33 = vld [vmem:[#allocation10 + $0x98] sm:$0xff] }
 0x390   : > { %1898 = vadd.xlane.f32.xlu2 %v1897_v3  ;;  %1937 = vadd.xlane.f32.xlu1 %v1936_v9  ;;  %v3267_v3 = vld [vmem:[#allocation10 + $0x1140] sm:$0xff]  ;;  %v2738_v9 = vld [vmem:[#allocation10 + $0xb8] sm:$0xff] }
 0x391   : > { %v4386_v31 = vsel %vm3836_vm4, %v4385_v49, %v4384_v63  ;;  %1895 = vadd.xlane.f32.xlu0 %v1894_v45  ;;  %4891 = vmatpush.msra.mxu2 %v2746_v62  ;;  %v3265_v45 = vld [vmem:[#allocation10 + $0x1130] sm:$0xff]  ;;  %v2778_v62 = vld [vmem:[#allocation10 + $0x1f8] sm:$0xff] }
 0x392   : > { %v8929_v32 = vsel %vm3840_vm5, %v4387_v1, %v4386_v31  ;;  %4839 = vmatpush.msrb.mxu3 %v3273_v58  ;;  %v1945_v31 = vsel %vm990_vm0, %v6149_v20, 0.0  ;;  %v2770_v20 = vld [vmem:[#allocation10 + $0x1b8] sm:$0xff] }
 0x393   : > { %v8932_v0 = vpop.xlane.xlu2 %1787  ;;  %v8934_v42 = vpop.xlane.xlu1 %1826  ;;  %4892 = vmatpush.msra.mxu2 %v2744_v18  ;;  %v2730_v18 = vld [vmem:[#allocation10 + $0x78] sm:$0xff] }
 0x394   : > { %v8936_v63 = vpop.xlane.xlu0 %1784  ;;  %4840 = vmatpush.msrb.mxu3 %v3271_v38 }
 0x395   : > { %4893 = vmatpush.msra.mxu2 %v2742_v43  ;;  %v2726_v43 = vld [vmem:[#allocation10 + $0x58] sm:$0xff] }
 0x396   : > { %4841 = vmatpush.msrb.mxu3 %v3269_v48  ;;  %v2772_v48 = vld [vmem:[#allocation10 + $0x1c8] sm:$0xff] }
 0x397   : > { %4894 = vmatpush.msra.mxu2 %v2740_v39 }
 0x398   : > { %1943 = vadd.xlane.f32.xlu2 %v1942_v19  ;;  %1901 = vadd.xlane.f32.xlu1 %v1900_v57  ;;  %v2776_v57 = vld [vmem:[#allocation10 + $0x1e8] sm:$0xff] }
 0x399   : > { %1940 = vadd.xlane.f32.xlu0 %v1939_v51  ;;  %4842 = vmatpush.msrb.mxu3 %v3267_v3  ;;  %v2728_v51 = vld [vmem:[#allocation10 + $0x68] sm:$0xff] }
 0x39a   : > { %4895 = vmatpush.msra.mxu2 %v2738_v9  ;;  %v2724_v3 = vld [vmem:[#allocation10 + $0x48] sm:$0xff]  ;;  %v2722_v9 = vld [vmem:[#allocation10 + $0x38] sm:$0xff] }
 0x39b   : > { %v8942_v1 = vpop.xlane.xlu2 %1832  ;;  %v8944_v25 = vpop.xlane.xlu1 %1790  ;;  %4843 = vmatpush.msrb.mxu3 %v3265_v45 }
 0x39c   : > { %v8946_v49 = vpop.xlane.xlu0 %1829  ;;  %4896 = vmatpush.msra.mxu2 %v2736_v7 }
 0x39d   : > { %4844 = vmatpush.msrb.mxu3 %v3263_v24  ;;  %v2768_v24 = vld [vmem:[#allocation10 + $0x1a8] sm:$0xff] }
 0x39e   : > { %4897 = vmatpush.msra.mxu2 %v2734_v33  ;;  %v2720_v33 = vld [vmem:[#allocation10 + $0x28] sm:$0xff] }
 0x39f   : > { %4845 = vmatpush.msrb.mxu3 %v3261_v16  ;;  %v2766_v16 = vld [vmem:[#allocation10 + $0x198] sm:$0xff] }
 0x3a0   : > { %1949 = vadd.xlane.f32.xlu1 %v1948_v11  ;;  %4898 = vmatpush.msra.mxu2 %v2732_v6 }
 0x3a1   : > { %1946 = vadd.xlane.f32.xlu0 %v1945_v31  ;;  %4846 = vmatpush.msrb.mxu3 %v3259_v12  ;;  %v2718_v12 = vld [vmem:[#allocation10 + $0x18] sm:$0xff] }
 0x3a2   : > { %4899 = vmatpush.msra.mxu2 %v2730_v18  ;;  %v2716_v18 = vld [vmem:[#allocation10 + $0x8] sm:$0xff] }
 0x3a3   : > { %v1857_v58 = vpop.xlane.xlu2 %1856  ;;  %v8950_v19 = vpop.xlane.xlu1 %1835  ;;  %4911 = vmatpush.msra.mxu3 %v2778_v62  ;;  %v2764_v62 = vld [vmem:[#allocation10 + $0x188] sm:$0xff] }
 0x3a4   : > { %v8952_v38 = vpop.xlane.xlu0 %1793  ;;  %4900 = vmatpush.msra.mxu2 %v2728_v51  ;;  %v2239_v39 = vmul.f32 0.0625, %v1857_v58  ;;  %v2762_v51 = vld [vmem:[#allocation10 + $0x178] sm:$0xff] }
 0x3a5   : > { %4912 = vmatpush.msra.mxu3 %v2776_v57 }
 0x3a6   : > { %4901 = vmatpush.msra.mxu2 %v2726_v43  ;;  %v4409_v31 = vperm.slane %v2239_v39, %v7195_v61 }
 0x3a7   : > { %4913 = vmatpush.msra.mxu3 %v2774_v5 }
 0x3a8   : > { %4902 = vmatpush.msra.mxu2 %v2724_v3  ;;  %v2760_v3 = vld [vmem:[#allocation10 + $0x168] sm:$0xff] }
 0x3a9   : > { %4914 = vmatpush.msra.mxu3 %v2772_v48  ;;  %v3321_v48 = vld [vmem:[#allocation10 + $0x12f0] sm:$0xff] }
 0x3aa   : > { %4903 = vmatpush.msra.mxu2 %v2722_v9  ;;  %4851 = vmatpush.msra.mxu0 %v3321_v48 }
 0x3ab   : > { %v8954_v10 = vpop.xlane.xlu2 %1838  ;;  %v8956_v45 = vpop.xlane.xlu1 %1796  ;;  %4915 = vmatpush.msra.mxu3 %v2770_v20  ;;  %v3319_v20 = vld [vmem:[#allocation10 + $0x12e0] sm:$0xff] }
 0x3ac   : > { %v1860_v7 = vpop.xlane.xlu0 %1859  ;;  %4904 = vmatpush.msra.mxu2 %v2720_v33  ;;  %4852 = vmatpush.msra.mxu0 %v3319_v20  ;;  %v3315_v33 = vld [vmem:[#allocation10 + $0x12c0] sm:$0xff] }
 0x3ad   : > { %v2240_v11 = vmul.f32 0.0625, %v1860_v7  ;;  %4916 = vmatpush.msra.mxu3 %v2768_v24  ;;  %v2758_v7 = vld [vmem:[#allocation10 + $0x158] sm:$0xff]  ;;  %v3317_v24 = vld [vmem:[#allocation10 + $0x12d0] sm:$0xff]  ;;  %v3311_v20 = vld [vmem:[#allocation10 + $0x12a0] sm:$0xff] }
 0x3ae   : > { %4905 = vmatpush.msra.mxu2 %v2718_v12  ;;  %4853 = vmatpush.msra.mxu0 %v3317_v24 }
 0x3af   : > { %v4410_v6 = vperm.slane %v2240_v11, %v7204_v47  ;;  %4917 = vmatpush.msra.mxu3 %v2766_v16  ;;  %v2756_v11 = vld [vmem:[#allocation10 + $0x148] sm:$0xff] }
 0x3b0   : > { %4906 = vmatpush.msra.mxu2 %v2716_v18  ;;  %4854 = vmatpush.msra.mxu0 %v3315_v33  ;;  %v2750_v33 = vld [vmem:[#allocation10 + $0x118] sm:$0xff] }
 0x3b1   : > { %v4411_v58 = vsel %vm3824_vm1, %v4410_v6, %v4409_v31  ;;  %4918 = vmatpush.msra.mxu3 %v2764_v62  ;;  %v2754_v6 = vld [vmem:[#allocation10 + $0x138] sm:$0xff] }
 0x3b3   : > { %v8961_v57 = vpop.xlane.xlu2 %1841  ;;  %v8963_v5 = vpop.xlane.xlu1 %1799  ;;  %4919 = vmatpush.msra.mxu3 %v2762_v51  ;;  %v3313_v51 = vld [vmem:[#allocation10 + $0x12b0] sm:$0xff] }
 0x3b4   : > { %v1863_v43 = vpop.xlane.xlu0 %1862  ;;  %4855 = vmatpush.msra.mxu0 %v3313_v51  ;;  %v2216_v51 = vmul.f32 0.0625, %v8932_v0  ;;  %v2219_v0 = vmul.f32 0.0625, %v8956_v45 }
 0x3b5   : > { %v2241_v39 = vmul.f32 0.0625, %v1863_v43  ;;  %4920 = vmatpush.msra.mxu3 %v2760_v3  ;;  %v2752_v3 = vld [vmem:[#allocation10 + $0x128] sm:$0xff] }
 0x3b6   : > { %4856 = vmatpush.msra.mxu0 %v3311_v20  ;;  %v2218_v20 = vmul.f32 0.0625, %v8952_v38 }
 0x3b7   : > { %v4412_v9 = vperm.slane %v2241_v39, %v7216_v59  ;;  %4921 = vmatpush.msra.mxu3 %v2758_v7  ;;  %v3353_v39 = vld [vmem:[#allocation10 + $0x13f0] sm:$0xff] }
 0x3b8   : > { %4871 = vmatpush.msra.mxu1 %v3353_v39  ;;  %v4368_v45 = vperm.slane %v2218_v20, %v7325_v46  ;;  %v3297_v20 = vld [vmem:[#allocation10 + $0x1230] sm:$0xff] }
 0x3b9   : > { %v4413_v31 = vsel %vm3828_vm2, %v4412_v9, %v4411_v58  ;;  %4922 = vmatpush.msra.mxu3 %v2756_v11  ;;  %v2214_v9 = vmul.f32 0.0625, %v8919_v44  ;;  %v3351_v11 = vld [vmem:[#allocation10 + $0x13e0] sm:$0xff]  ;;  %v3349_v44 = vld [vmem:[#allocation10 + $0x13d0] sm:$0xff] }
 0x3ba   : > { %4872 = vmatpush.msra.mxu1 %v3351_v11  ;;  %v4364_v11 = vperm.slane %v2216_v51, %v7301_v30 }
 0x3bb   : > { %v1908_v16 = vpop.xlane.xlu2 %1907  ;;  %v1905_v62 = vpop.xlane.xlu1 %1904  ;;  %4923 = vmatpush.msra.mxu3 %v2754_v6  ;;  %v3309_v6 = vld [vmem:[#allocation10 + $0x1290] sm:$0xff] }
 0x3bc   : > { %v2256_v12 = vmul.f32 0.0625, %v1908_v16  ;;  %v1866_v18 = vpop.xlane.xlu0 %1865  ;;  %v2255_v43 = vmul.f32 0.0625, %v1905_v62  ;;  %v2215_v16 = vmul.f32 0.0625, %v8936_v63  ;;  %4857 = vmatpush.msra.mxu0 %v3309_v6  ;;  %4873 = vmatpush.msra.mxu1 %v3349_v44  ;;  %v3347_v63 = vld [vmem:[#allocation10 + $0x13c0] sm:$0xff]  ;;  %v3301_v44 = vld [vmem:[#allocation10 + $0x1250] sm:$0xff] }
 0x3bd   : > { %v2242_v48 = vmul.f32 0.0625, %v1866_v18  ;;  %4924 = vmatpush.msra.mxu3 %v2752_v3  ;;  %v4360_v18 = vperm.slane %v2214_v9, %v7265_v60  ;;  %v3345_v9 = vld [vmem:[#allocation10 + $0x13b0] sm:$0xff] }
 0x3be   : > { %v4441_v58 = vperm.slane %v2256_v12, %v7204_v47  ;;  %v4440_v7 = vperm.slane %v2255_v43, %v7195_v61  ;;  %v2748_v61 = vld [vmem:[#allocation10 + $0x108] sm:$0xff]  ;;  %v3307_v12 = vld [vmem:[#allocation10 + $0x1280] sm:$0xff]  ;;  %4874 = vmatpush.msra.mxu1 %v3347_v63 }
 0x3bf   : > { %v4414_v24 = vperm.slane %v2242_v48, %v7220_v35  ;;  %4925 = vmatpush.msra.mxu3 %v2750_v33  ;;  %4858 = vmatpush.msra.mxu0 %v3307_v12  ;;  %v4362_v48 = vperm.slane %v2215_v16, %v7274_v36  ;;  %v3343_v33 = vld [vmem:[#allocation10 + $0x13a0] sm:$0xff]  ;;  %v4370_v12 = vperm.slane %v2219_v0, %v7332_v13 }
 0x3c0   : > { %v8973_v62 = vsel %vm3824_vm1, %v4441_v58, %v4440_v7  ;;  %v3305_v58 = vld [vmem:[#allocation10 + $0x1270] sm:$0xff]  ;;  %4875 = vmatpush.msra.mxu1 %v3345_v9  ;;  %v3303_v7 = vld [vmem:[#allocation10 + $0x1260] sm:$0xff]  ;;  %v2229_v9 = vmul.f32 0.0625, %v8934_v42  ;;  %v2874_v42 = vld [vmem:[#allocation10 + $0x4f8] sm:$0xff] }
 0x3c1   : > { %v8976_v47 = vsel %vm3832_vm3, %v4414_v24, %v4413_v31  ;;  %4926 = vmatpush.msra.mxu3 %v2748_v61  ;;  %v2217_v31 = vmul.f32 0.0625, %v8944_v25  ;;  %4859 = vmatpush.msra.mxu0 %v3305_v58  ;;  %v4361_v24 = vsel %vm3848_vm7, %v4360_v18, %v8915_v55  ;;  %v2220_v25 = vmul.f32 0.0625, %v8963_v5  ;;  %v3341_v61 = vld [vmem:[#allocation10 + $0x1390] sm:$0xff]  ;;  %v3299_v55 = vld [vmem:[#allocation10 + $0x1240] sm:$0xff] }
 0x3c2   : > { %v4363_v16 = vsel %vm3852_vm8, %v4362_v48, %v4361_v24  ;;  %4876 = vmatpush.msra.mxu1 %v3343_v33  ;;  %v3339_v63 = vld [vmem:[#allocation10 + $0x1380] sm:$0xff]  ;;  %v3337_v24 = vld [vmem:[#allocation10 + $0x1370] sm:$0xff] }
 0x3c3   : > { %v8980_v43 = vpop.xlane.xlu2 %1868  ;;  %v8984_v39 = vpop.xlane.xlu1 %1844  ;;  %4860 = vmatpush.msra.mxu0 %v3303_v7  ;;  %v4366_v6 = vperm.slane %v2217_v31, %v7311_v28  ;;  %v4365_v18 = vsel %vm3856_vm9, %v4364_v11, %v4363_v16  ;;  %v4372_v5 = vperm.slane %v2220_v25, %v9355_v21  ;;  %v2230_v11 = vmul.f32 0.0625, %v8946_v49  ;;  %v3295_v33 = vld [vmem:[#allocation10 + $0x1220] sm:$0xff] }
 0x3c4   : > { %v1803_v3 = vpop.xlane.xlu0 %1802  ;;  %4877 = vmatpush.msra.mxu1 %v3341_v61  ;;  %v4389_v61 = vperm.slane %v2229_v9, %v7248_v34 }
 0x3c5   : > { %v2221_v38 = vmul.f32 0.0625, %v1803_v3  ;;  %4861 = vmatpush.msra.mxu0 %v3301_v44  ;;  %v4367_v48 = vsel %vm3860_vm10, %v4366_v6, %v4365_v18  ;;  %v4391_v18 = vperm.slane %v2230_v11, %v7265_v60 }
 0x3c6   : > { %4878 = vmatpush.msra.mxu1 %v3339_v63  ;;  %v4369_v0 = vsel %vm3864_vm11, %v4368_v45, %v4367_v48  ;;  %v3293_v45 = vld [vmem:[#allocation10 + $0x1210] sm:$0xff]  ;;  %v2872_v63 = vld [vmem:[#allocation10 + $0x4e8] sm:$0xff]  ;;  %v2233_v48 = vmul.f32 0.0625, %v8954_v10  ;;  %v2235_v10 = vmul.f32 0.0625, %v8984_v39  ;;  %v3327_v39 = vld [vmem:[#allocation10 + $0x1320] sm:$0xff] }
 0x3c7   : > { %4862 = vmatpush.msra.mxu0 %v3299_v55  ;;  %v4374_v31 = vperm.slane %v2221_v38, %v9357_v50  ;;  %v4371_v25 = vsel %vm3868_vm12, %v4370_v12, %v4369_v0  ;;  %v3335_v38 = vld [vmem:[#allocation10 + $0x1360] sm:$0xff]  ;;  %v2231_v55 = vmul.f32 0.0625, %v8942_v1  ;;  %v3333_v12 = vld [vmem:[#allocation10 + $0x1350] sm:$0xff]  ;;  %v2234_v1 = vmul.f32 0.0625, %v8961_v57 }
 0x3c8   : > { %4879 = vmatpush.msra.mxu1 %v3337_v24  ;;  %v4373_v16 = vsel %vm3872_vm13, %v4372_v5, %v4371_v25  ;;  %v2232_v5 = vmul.f32 0.0625, %v8950_v19  ;;  %v2810_v19 = vld [vmem:[#allocation10 + $0x2f8] sm:$0xff]  ;;  %v4390_v24 = vsel %vm3844_vm6, %v4389_v61, %v8929_v32 }
 0x3c9   : > { %4863 = vmatpush.msra.mxu0 %v3297_v20  ;;  %v4375_v44 = vsel %vm3876_vm14, %v4374_v31, %v4373_v16  ;;  %v3331_v20 = vld [vmem:[#allocation10 + $0x1340] sm:$0xff]  ;;  %v4393_v11 = vperm.slane %v2231_v55, %v7274_v36  ;;  %v4392_v25 = vsel %vm3848_vm7, %v4391_v18, %v4390_v24  ;;  %v2868_v16 = vld [vmem:[#allocation10 + $0x4c8] sm:$0xff]  ;;  %v4399_v32 = vperm.slane %v2234_v1, %v7325_v46  ;;  %v2806_v61 = vld [vmem:[#allocation10 + $0x2d8] sm:$0xff] }
 0x3ca   : > { %4880 = vmatpush.msra.mxu1 %v3335_v38  ;;  %v4395_v57 = vperm.slane %v2232_v5, %v7301_v30  ;;  %v2808_v38 = vld [vmem:[#allocation10 + $0x2e8] sm:$0xff]  ;;  %v3323_v1 = vld [vmem:[#allocation10 + $0x1300] sm:$0xff] }
 0x3cb   : > { %v1848_v51 = vpop.xlane.xlu2 %1847  ;;  %v1806_v3 = vpop.xlane.xlu1 %1805  ;;  %4864 = vmatpush.msra.mxu0 %v3295_v33  ;;  %v4394_v55 = vsel %vm3852_vm8, %v4393_v11, %v4392_v25  ;;  %v2864_v5 = vld [vmem:[#allocation10 + $0x4a8] sm:$0xff] }
 0x3cc   : > { %v9000_v58 = vpop.xlane.xlu0 %1910  ;;  %v2222_v7 = vmul.f32 0.0625, %v1806_v3  ;;  %4881 = vmatpush.msra.mxu1 %v3333_v12  ;;  %v3291_v3 = vld [vmem:[#allocation10 + $0x1200] sm:$0xff]  ;;  %v2236_v33 = vmul.f32 0.0625, %v1848_v51  ;;  %v4401_v12 = vperm.slane %v2235_v10, %v7332_v13  ;;  %v4396_v51 = vsel %vm3856_vm9, %v4395_v57, %v4394_v55  ;;  %v2842_v57 = vld [vmem:[#allocation10 + $0x3f8] sm:$0xff]  ;;  %v2904_v55 = vld [vmem:[#allocation10 + $0x5e8] sm:$0xff] }
 0x3cd   : > { %4865 = vmatpush.msra.mxu0 %v3293_v45  ;;  %v2866_v45 = vld [vmem:[#allocation10 + $0x4b8] sm:$0xff] }
 0x3ce   : > { %v4376_v6 = vperm.slane %v2222_v7, %v9362_v52  ;;  %v2870_v7 = vld [vmem:[#allocation10 + $0x4d8] sm:$0xff]  ;;  %4882 = vmatpush.msra.mxu1 %v3331_v20  ;;  %v4403_v18 = vperm.slane %v2236_v33, %v9355_v21 }
 0x3cf   : > { %4866 = vmatpush.msra.mxu0 %v3291_v3 }
 0x3d0   : > { %v9012_v49 = vsel %vm3880_vm15, %v4376_v6, %v4375_v44  ;;  %v3329_v6 = vld [vmem:[#allocation10 + $0x1330] sm:$0xff]  ;;  %v4397_v44 = vperm.slane %v2233_v48, %v7311_v28  ;;  %v2804_v48 = vld [vmem:[#allocation10 + $0x2c8] sm:$0xff] }
 0x3d1   : > { %4827 = vmatmul.f32.vlgmr.msrb.gmra.mxu2 %v9012_v49  ;;  %4931 = vmatpush.msrb.mxu0 %v2810_v19 }
 0x3d2   : > { %4971 = vmatpush.msrb.mxu2 %v2874_v42  ;;  %4883 = vmatpush.msra.mxu1 %v3329_v6  ;;  %v2860_v6 = vld [vmem:[#allocation10 + $0x488] sm:$0xff] }
 0x3d3   : > { %v1851_v31 = vpop.xlane.xlu2 %1850  ;;  %v9019_v9 = vpop.xlane.xlu1 %1913  ;;  %4932 = vmatpush.msrb.mxu0 %v2808_v38  ;;  %v2800_v38 = vld [vmem:[#allocation10 + $0x2a8] sm:$0xff] }
 0x3d4   : > { %v9021_v0 = vpop.xlane.xlu0 %1871  ;;  %4972 = vmatpush.msrb.mxu2 %v2872_v63  ;;  %v2237_v42 = vmul.f32 0.0625, %v1851_v31  ;;  %4884 = vmatpush.msra.mxu1 %v3327_v39  ;;  %v3325_v63 = vld [vmem:[#allocation10 + $0x1310] sm:$0xff]  ;;  %v4398_v31 = vsel %vm3860_vm10, %v4397_v44, %v4396_v51  ;;  %v2858_v39 = vld [vmem:[#allocation10 + $0x478] sm:$0xff]  ;;  %v2856_v51 = vld [vmem:[#allocation10 + $0x468] sm:$0xff] }
 0x3d5   : > { %4933 = vmatpush.msrb.mxu0 %v2806_v61  ;;  %v4400_v19 = vsel %vm3864_vm11, %v4399_v32, %v4398_v31  ;;  %v2840_v32 = vld [vmem:[#allocation10 + $0x3e8] sm:$0xff]  ;;  %v2798_v61 = vld [vmem:[#allocation10 + $0x298] sm:$0xff] }
 0x3d6   : > { %4973 = vmatpush.msrb.mxu2 %v2870_v7  ;;  %v4405_v3 = vperm.slane %v2237_v42, %v9357_v50  ;;  %4885 = vmatpush.msra.mxu1 %v3325_v63  ;;  %v2802_v7 = vld [vmem:[#allocation10 + $0x2b8] sm:$0xff]  ;;  %v4402_v25 = vsel %vm3868_vm12, %v4401_v12, %v4400_v19 }
 0x3d7   : > { %4934 = vmatpush.msrb.mxu0 %v2804_v48  ;;  %v4404_v33 = vsel %vm3872_vm13, %v4403_v18, %v4402_v25  ;;  %v2906_v42 = vld [vmem:[#allocation10 + $0x5f8] sm:$0xff]  ;;  %v2796_v18 = vld [vmem:[#allocation10 + $0x288] sm:$0xff] }
 0x3d8   : > { %4974 = vmatpush.msrb.mxu2 %v2868_v16  ;;  %4886 = vmatpush.msra.mxu1 %v3323_v1  ;;  %v4406_v44 = vsel %vm3876_vm14, %v4405_v3, %v4404_v33  ;;  %v2838_v12 = vld [vmem:[#allocation10 + $0x3d8] sm:$0xff]  ;;  %v2836_v48 = vld [vmem:[#allocation10 + $0x3c8] sm:$0xff] }
 0x3d9   : > { %4907 = vmatmul.f32.vlgmr.msra.gmra.mxu2 %v7636_v53  ;;  %v2862_v53 = vld [vmem:[#allocation10 + $0x498] sm:$0xff]  ;;  %4935 = vmatpush.msrb.mxu0 %v2802_v7  ;;  %v2900_v7 = vld [vmem:[#allocation10 + $0x5c8] sm:$0xff] }
 0x3da   : > { %4975 = vmatpush.msrb.mxu2 %v2866_v45  ;;  %4951 = vmatpush.msrb.mxu1 %v2842_v57  ;;  %v2902_v63 = vld [vmem:[#allocation10 + $0x5d8] sm:$0xff]  ;;  %v2832_v57 = vld [vmem:[#allocation10 + $0x3a8] sm:$0xff] }
 0x3db   : > { %v1854_v20 = vpop.xlane.xlu2 %1853  ;;  %v9039_v11 = vpop.xlane.xlu1 %1916  ;;  %4936 = vmatpush.msrb.mxu0 %v2800_v38  ;;  %v2794_v31 = vld [vmem:[#allocation10 + $0x278] sm:$0xff] }
 0x3dc   : > { %v2238_v24 = vmul.f32 0.0625, %v1854_v20  ;;  %v9041_v10 = vpop.xlane.xlu0 %1874  ;;  %4976 = vmatpush.msrb.mxu2 %v2864_v5  ;;  %4952 = vmatpush.msrb.mxu1 %v2840_v32  ;;  %v2854_v1 = vld [vmem:[#allocation10 + $0x458] sm:$0xff] }
 0x3dd   : > { %4937 = vmatpush.msrb.mxu0 %v2798_v61  ;;  %v2834_v19 = vld [vmem:[#allocation10 + $0x3b8] sm:$0xff]  ;;  %v2828_v61 = vld [vmem:[#allocation10 + $0x388] sm:$0xff] }
 0x3de   : > { %v4407_v16 = vperm.slane %v2238_v24, %v9362_v52  ;;  %4977 = vmatpush.msrb.mxu2 %v2862_v53  ;;  %4953 = vmatpush.msrb.mxu1 %v2838_v12  ;;  %v2852_v24 = vld [vmem:[#allocation10 + $0x448] sm:$0xff]  ;;  %v2898_v25 = vld [vmem:[#allocation10 + $0x5b8] sm:$0xff] }
 0x3df   : > { %4938 = vmatpush.msrb.mxu0 %v2796_v18  ;;  %v2792_v53 = vld [vmem:[#allocation10 + $0x268] sm:$0xff]  ;;  %v2850_v33 = vld [vmem:[#allocation10 + $0x438] sm:$0xff] }
 0x3e0   : > { %v9048_v45 = vsel %vm3880_vm15, %v4407_v16, %v4406_v44  ;;  %4978 = vmatpush.msrb.mxu2 %v2860_v6  ;;  %4954 = vmatpush.msrb.mxu1 %v2836_v48  ;;  %v2790_v16 = vld [vmem:[#allocation10 + $0x258] sm:$0xff]  ;;  %v2896_v6 = vld [vmem:[#allocation10 + $0x5a8] sm:$0xff] }
 0x3e1   : > { %4847 = vmatmul.f32.vlgmr.msrb.gmra.mxu3 %v9048_v45  ;;  %4939 = vmatpush.msrb.mxu0 %v2794_v31  ;;  %v2830_v38 = vld [vmem:[#allocation10 + $0x398] sm:$0xff]  ;;  %v2848_v44 = vld [vmem:[#allocation10 + $0x428] sm:$0xff] }
 0x3e2   : > { %4991 = vmatpush.msrb.mxu3 %v2906_v42  ;;  %4979 = vmatpush.msrb.mxu2 %v2858_v39  ;;  %v2788_v42 = vld [vmem:[#allocation10 + $0x248] sm:$0xff]  ;;  %v2894_v39 = vld [vmem:[#allocation10 + $0x598] sm:$0xff] }
 0x3e3   : > { %v9051_v5 = vpop.xlane.xlu2 %1880  ;;  %v9053_v3 = vpop.xlane.xlu1 %1919  ;;  %4955 = vmatpush.msrb.mxu1 %v2834_v19  ;;  %4940 = vmatpush.msrb.mxu0 %v2792_v53  ;;  %v2892_v18 = vld [vmem:[#allocation10 + $0x588] sm:$0xff]  ;;  %v2782_v53 = vld [vmem:[#allocation10 + $0x218] sm:$0xff] }
 0x3e4   : > { %4992 = vmatpush.msrb.mxu3 %v2904_v55  ;;  %v9055_v20 = vpop.xlane.xlu0 %1877  ;;  %4980 = vmatpush.msrb.mxu2 %v2856_v51  ;;  %v2846_v51 = vld [vmem:[#allocation10 + $0x418] sm:$0xff]  ;;  %v2844_v48 = vld [vmem:[#allocation10 + $0x408] sm:$0xff] }
 0x3e5   : > { %4956 = vmatpush.msrb.mxu1 %v2832_v57  ;;  %4941 = vmatpush.msrb.mxu0 %v2790_v16  ;;  %v2784_v31 = vld [vmem:[#allocation10 + $0x228] sm:$0xff]  ;;  %v2822_v57 = vld [vmem:[#allocation10 + $0x358] sm:$0xff] }
 0x3e6   : > { %4993 = vmatpush.msrb.mxu3 %v2902_v63  ;;  %4981 = vmatpush.msrb.mxu2 %v2854_v1  ;;  %v2826_v63 = vld [vmem:[#allocation10 + $0x378] sm:$0xff]  ;;  %v2824_v19 = vld [vmem:[#allocation10 + $0x368] sm:$0xff] }
 0x3e7   : > { %4957 = vmatpush.msrb.mxu1 %v2830_v38  ;;  %4942 = vmatpush.msrb.mxu0 %v2788_v42  ;;  %v2890_v1 = vld [vmem:[#allocation10 + $0x578] sm:$0xff] }
 0x3e8   : > { %4994 = vmatpush.msrb.mxu3 %v2900_v7  ;;  %4982 = vmatpush.msrb.mxu2 %v2852_v24  ;;  %v3002_v7 = vld [vmem:[#allocation10 + $0x8f8] sm:$0xff]  ;;  %v2888_v24 = vld [vmem:[#allocation10 + $0x568] sm:$0xff] }
 0x3e9   : > { %4927 = vmatmul.f32.vlgmr.msra.gmra.mxu3 %v7798_v56  ;;  %v2786_v56 = vld [vmem:[#allocation10 + $0x238] sm:$0xff]  ;;  %4958 = vmatpush.msrb.mxu1 %v2828_v61  ;;  %v2884_v61 = vld [vmem:[#allocation10 + $0x548] sm:$0xff] }
 0x3ea   : > { %4995 = vmatpush.msrb.mxu3 %v2898_v25  ;;  %4983 = vmatpush.msrb.mxu2 %v2850_v33  ;;  %v3000_v25 = vld [vmem:[#allocation10 + $0x8e8] sm:$0xff]  ;;  %v2886_v16 = vld [vmem:[#allocation10 + $0x558] sm:$0xff] }
 0x3eb   : > { %v9058_v32 = vpop.xlane.xlu2 %1925  ;;  %v9060_v55 = vpop.xlane.xlu1 %1883  ;;  %4943 = vmatpush.msrb.mxu0 %v2786_v56  ;;  %4959 = vmatpush.msrb.mxu1 %v2826_v63  ;;  %v2998_v42 = vld [vmem:[#allocation10 + $0x8d8] sm:$0xff] }
 0x3ec   : > { %4996 = vmatpush.msrb.mxu3 %v2896_v6  ;;  %v9062_v12 = vpop.xlane.xlu0 %1922  ;;  %4984 = vmatpush.msrb.mxu2 %v2848_v44  ;;  %v2780_v6 = vld [vmem:[#allocation10 + $0x208] sm:$0xff]  ;;  %v2882_v56 = vld [vmem:[#allocation10 + $0x538] sm:$0xff] }
 0x3ed   : > { %4944 = vmatpush.msrb.mxu0 %v2784_v31  ;;  %4960 = vmatpush.msrb.mxu1 %v2824_v19  ;;  %v2994_v63 = vld [vmem:[#allocation10 + $0x8b8] sm:$0xff]  ;;  %v2244_v31 = vmul.f32 0.0625, %v9021_v0  ;;  %v2992_v19 = vld [vmem:[#allocation10 + $0x8a8] sm:$0xff] }
 0x3ee   : > { %4997 = vmatpush.msrb.mxu3 %v2894_v39  ;;  %4985 = vmatpush.msrb.mxu2 %v2846_v51  ;;  %v2820_v39 = vld [vmem:[#allocation10 + $0x348] sm:$0xff]  ;;  %v2818_v51 = vld [vmem:[#allocation10 + $0x338] sm:$0xff] }
 0x3ef   : > { %4945 = vmatpush.msrb.mxu0 %v2782_v53  ;;  %4961 = vmatpush.msrb.mxu1 %v2822_v57  ;;  %v2246_v53 = vmul.f32 0.0625, %v9055_v20  ;;  %v2878_v57 = vld [vmem:[#allocation10 + $0x518] sm:$0xff]  ;;  %v2258_v20 = vmul.f32 0.0625, %v9019_v9 }
 0x3f0   : > { %4998 = vmatpush.msrb.mxu3 %v2892_v18  ;;  %4986 = vmatpush.msrb.mxu2 %v2844_v48  ;;  %v2243_v18 = vmul.f32 0.0625, %v8980_v43  ;;  %v2816_v48 = vld [vmem:[#allocation10 + $0x328] sm:$0xff] }
 0x3f1   : > { %4987 = vmatmul.f32.vlgmr.msrb.gmra.mxu2 %v8231_v26  ;;  %v2996_v26 = vld [vmem:[#allocation10 + $0x8c8] sm:$0xff]  ;;  %4946 = vmatpush.msrb.mxu0 %v2780_v6  ;;  %v2990_v6 = vld [vmem:[#allocation10 + $0x898] sm:$0xff] }
 0x3f2   : > { %4999 = vmatpush.msrb.mxu3 %v2890_v1  ;;  %5051 = vmatpush.msra.mxu2 %v3002_v7  ;;  %v2880_v1 = vld [vmem:[#allocation10 + $0x528] sm:$0xff]  ;;  %v2245_v7 = vmul.f32 0.0625, %v9041_v10  ;;  %v4416_v43 = vperm.slane %v2243_v18, %v7234_v22  ;;  %v2257_v10 = vmul.f32 0.0625, %v9000_v58  ;;  %v4422_v18 = vperm.slane %v2246_v53, %v7265_v60 }
 0x3f3   : > { %v9065_v33 = vpop.xlane.xlu2 %1889  ;;  %v9067_v38 = vpop.xlane.xlu1 %1928  ;;  %4962 = vmatpush.msrb.mxu1 %v2820_v39  ;;  %v4418_v39 = vperm.slane %v2244_v31, %v7239_v14  ;;  %v2260_v53 = vmul.f32 0.0625, %v9053_v3 }
 0x3f4   : > { %5000 = vmatpush.msrb.mxu3 %v2888_v24  ;;  %v1887_v44 = vpop.xlane.xlu0 %1886  ;;  %5052 = vmatpush.msra.mxu2 %v3000_v25  ;;  %v2814_v24 = vld [vmem:[#allocation10 + $0x318] sm:$0xff]  ;;  %v4417_v58 = vsel %vm3836_vm4, %v4416_v43, %v8976_v47  ;;  %v4443_v9 = vperm.slane %v2257_v10, %v7216_v59  ;;  %v2250_v43 = vmul.f32 0.0625, %v9065_v33 }
 0x3f5   : > { %4963 = vmatpush.msrb.mxu1 %v2818_v51  ;;  %v2247_v51 = vmul.f32 0.0625, %v9051_v5  ;;  %v2249_v31 = vmul.f32 0.0625, %v1887_v44  ;;  %v2259_v5 = vmul.f32 0.0625, %v9039_v11  ;;  %v2984_v44 = vld [vmem:[#allocation10 + $0x868] sm:$0xff]  ;;  %v2261_v11 = vmul.f32 0.0625, %v9062_v12 }
 0x3f6   : > { %5001 = vmatpush.msrb.mxu3 %v2886_v16  ;;  %5053 = vmatpush.msra.mxu2 %v2998_v42  ;;  %v2812_v42 = vld [vmem:[#allocation10 + $0x308] sm:$0xff] }
 0x3f7   : > { %4964 = vmatpush.msrb.mxu1 %v2816_v48  ;;  %v3034_v48 = vld [vmem:[#allocation10 + $0x9f8] sm:$0xff]  ;;  %v4424_v47 = vperm.slane %v2247_v51, %v7274_v36  ;;  %v3028_v12 = vld [vmem:[#allocation10 + $0x9c8] sm:$0xff]  ;;  %v4449_v51 = vperm.slane %v2260_v53, %v7239_v14 }
 0x3f8   : > { %5002 = vmatpush.msrb.mxu3 %v2884_v61  ;;  %5054 = vmatpush.msra.mxu2 %v2996_v26  ;;  %v2876_v61 = vld [vmem:[#allocation10 + $0x508] sm:$0xff]  ;;  %v4420_v26 = vperm.slane %v2245_v7, %v7248_v34  ;;  %v4419_v7 = vsel %vm3840_vm5, %v4418_v39, %v4417_v58  ;;  %v2982_v39 = vld [vmem:[#allocation10 + $0x858] sm:$0xff] }
 0x3f9   : > { %4965 = vmatpush.msrb.mxu1 %v2814_v24  ;;  %v3026_v58 = vld [vmem:[#allocation10 + $0x9b8] sm:$0xff] }
 0x3fa   : > { %5003 = vmatpush.msrb.mxu3 %v2882_v56  ;;  %5055 = vmatpush.msra.mxu2 %v2994_v63  ;;  %v2988_v56 = vld [vmem:[#allocation10 + $0x888] sm:$0xff]  ;;  %v2248_v63 = vmul.f32 0.0625, %v9060_v55  ;;  %v4445_v55 = vperm.slane %v2258_v20, %v7220_v35  ;;  %v4421_v24 = vsel %vm3844_vm6, %v4420_v26, %v4419_v7  ;;  %v4428_v35 = vperm.slane %v2249_v31, %v7311_v28 }
 0x3fb   : > { %v9073_v25 = vpop.xlane.xlu2 %1934  ;;  %v1893_v16 = vpop.xlane.xlu1 %1892  ;;  %4966 = vmatpush.msrb.mxu1 %v2812_v42  ;;  %v4423_v59 = vsel %vm3848_vm7, %v4422_v18, %v4421_v24  ;;  %v4447_v20 = vperm.slane %v2259_v5, %v7234_v22  ;;  %v2980_v18 = vld [vmem:[#allocation10 + $0x848] sm:$0xff]  ;;  %v4430_v22 = vperm.slane %v2250_v43, %v7325_v46 }
 0x3fc   : > { %5004 = vmatpush.msrb.mxu3 %v2880_v1  ;;  %v9076_v0 = vpop.xlane.xlu0 %1931  ;;  %5056 = vmatpush.msra.mxu2 %v2992_v19  ;;  %v2986_v1 = vld [vmem:[#allocation10 + $0x878] sm:$0xff]  ;;  %v3032_v19 = vld [vmem:[#allocation10 + $0x9e8] sm:$0xff]  ;;  %v2251_v42 = vmul.f32 0.0625, %v1893_v16  ;;  %v2262_v16 = vmul.f32 0.0625, %v9058_v32 }
 0x3fd   : > { %v2978_v32 = vld [vmem:[#allocation10 + $0x838] sm:$0xff] }
 0x3fe   : > { %5005 = vmatpush.msrb.mxu3 %v2878_v57  ;;  %5057 = vmatpush.msra.mxu2 %v2990_v6  ;;  %v4426_v57 = vperm.slane %v2248_v63, %v7301_v30  ;;  %v3030_v6 = vld [vmem:[#allocation10 + $0x9d8] sm:$0xff]  ;;  %v4432_v14 = vperm.slane %v2251_v42, %v7332_v13 }
 0x400   : > { %5006 = vmatpush.msrb.mxu3 %v2876_v61  ;;  %5058 = vmatpush.msra.mxu2 %v2988_v56  ;;  %v4444_v61 = vsel %vm3828_vm2, %v4443_v9, %v8973_v62  ;;  %v4425_v56 = vsel %vm3852_vm8, %v4424_v47, %v4423_v59  ;;  %v2263_v62 = vmul.f32 0.0625, %v9067_v38  ;;  %v2265_v47 = vmul.f32 0.0625, %v9073_v25  ;;  %v3020_v25 = vld [vmem:[#allocation10 + $0x988] sm:$0xff] }
 0x401   : > { %5007 = vmatmul.f32.vlgmr.msrb.gmra.mxu3 %v8192_v2  ;;  %v4446_v33 = vsel %vm3832_vm3, %v4445_v55, %v4444_v61  ;;  %v4427_v63 = vsel %vm3856_vm9, %v4426_v57, %v4425_v56  ;;  %v2976_v55 = vld [vmem:[#allocation10 + $0x828] sm:$0xff]  ;;  %v3130_v56 = vld [vmem:[#allocation10 + $0xcf8] sm:$0xff] }
 0x402   : > { %5071 = vmatpush.msra.mxu3 %v3034_v48  ;;  %5059 = vmatpush.msra.mxu2 %v2986_v1  ;;  %v4451_v48 = vperm.slane %v2261_v11, %v7248_v34  ;;  %v4429_v31 = vsel %vm3860_vm10, %v4428_v35, %v4427_v63  ;;  %v2264_v1 = vmul.f32 0.0625, %v9076_v0  ;;  %v4448_v7 = vsel %vm3836_vm4, %v4447_v20, %v4446_v33  ;;  %v3024_v34 = vld [vmem:[#allocation10 + $0x9a8] sm:$0xff] }
 0x403   : > { %v1899_v2 = vpop.xlane.xlu2 %1898  ;;  %v1938_v3 = vpop.xlane.xlu1 %1937  ;;  %v4450_v38 = vsel %vm3840_vm5, %v4449_v51, %v4448_v7  ;;  %v4455_v53 = vperm.slane %v2263_v62, %v7274_v36  ;;  %v4431_v0 = vsel %vm3864_vm11, %v4430_v22, %v4429_v31  ;;  %v2972_v61 = vld [vmem:[#allocation10 + $0x808] sm:$0xff] }
 0x404   : > { %5072 = vmatpush.msra.mxu3 %v3032_v19  ;;  %v1896_v10 = vpop.xlane.xlu0 %1895  ;;  %5060 = vmatpush.msra.mxu2 %v2984_v44  ;;  %v2253_v9 = vmul.f32 0.0625, %v1899_v2  ;;  %v4453_v19 = vperm.slane %v2262_v16, %v7265_v60  ;;  %v4452_v24 = vsel %vm3844_vm6, %v4451_v48, %v4450_v38  ;;  %v3022_v44 = vld [vmem:[#allocation10 + $0x998] sm:$0xff]  ;;  %v4433_v59 = vsel %vm3868_vm12, %v4432_v14, %v4431_v0  ;;  %v3016_v48 = vld [vmem:[#allocation10 + $0x968] sm:$0xff] }
 0x405   : > { %v2252_v26 = vmul.f32 0.0625, %v1896_v10  ;;  %v4457_v57 = vperm.slane %v2264_v1, %v7301_v30  ;;  %v2266_v11 = vmul.f32 0.0625, %v1938_v3  ;;  %v4459_v3 = vperm.slane %v2265_v47, %v7311_v28  ;;  %v2938_v28 = vld [vmem:[#allocation10 + $0x6f8] sm:$0xff]  ;;  %v3128_v62 = vld [vmem:[#allocation10 + $0xce8] sm:$0xff] }
 0x406   : > { %5073 = vmatpush.msra.mxu3 %v3030_v6  ;;  %5061 = vmatpush.msra.mxu2 %v2982_v39  ;;  %v4436_v43 = vperm.slane %v2253_v9, %v9357_v50  ;;  %v2974_v6 = vld [vmem:[#allocation10 + $0x818] sm:$0xff]  ;;  %v4454_v39 = vsel %vm3848_vm7, %v4453_v19, %v4452_v24  ;;  %v3124_v38 = vld [vmem:[#allocation10 + $0xcc8] sm:$0xff] }
 0x407   : > { %v4434_v5 = vperm.slane %v2252_v26, %v9355_v21  ;;  %v4456_v30 = vsel %vm3852_vm8, %v4455_v53, %v4454_v39  ;;  %v3018_v26 = vld [vmem:[#allocation10 + $0x978] sm:$0xff]  ;;  %v4461_v33 = vperm.slane %v2266_v11, %v7325_v46  ;;  %v2936_v46 = vld [vmem:[#allocation10 + $0x6e8] sm:$0xff] }
 0x408   : > { %5074 = vmatpush.msra.mxu3 %v3028_v12  ;;  %5062 = vmatpush.msra.mxu2 %v2980_v18  ;;  %v4458_v12 = vsel %vm3856_vm9, %v4457_v57, %v4456_v30  ;;  %v3126_v14 = vld [vmem:[#allocation10 + $0xcd8] sm:$0xff]  ;;  %v2928_v11 = vld [vmem:[#allocation10 + $0x6a8] sm:$0xff] }
 0x409   : > { %v4435_v35 = vsel %vm3872_vm13, %v4434_v5, %v4433_v59  ;;  %v4460_v22 = vsel %vm3860_vm10, %v4459_v3, %v4458_v12  ;;  %v2934_v5 = vld [vmem:[#allocation10 + $0x6d8] sm:$0xff]  ;;  %v3120_v59 = vld [vmem:[#allocation10 + $0xca8] sm:$0xff] }
 0x40a   : > { %5075 = vmatpush.msra.mxu3 %v3026_v58  ;;  %5063 = vmatpush.msra.mxu2 %v2978_v32  ;;  %v4437_v16 = vsel %vm3876_vm14, %v4436_v43, %v4435_v35  ;;  %v3014_v58 = vld [vmem:[#allocation10 + $0x958] sm:$0xff]  ;;  %v4462_v31 = vsel %vm3864_vm11, %v4461_v33, %v4460_v22  ;;  %v3116_v35 = vld [vmem:[#allocation10 + $0xc88] sm:$0xff] }
 0x40b   : > { %v1902_v60 = vpop.xlane.xlu1 %1901  ;;  %v1944_v10 = vpop.xlane.xlu2 %1943  ;;  %v3010_v24 = vld [vmem:[#allocation10 + $0x938] sm:$0xff]  ;;  %v2964_v39 = vld [vmem:[#allocation10 + $0x7c8] sm:$0xff] }
 0x40c   : > { %5076 = vmatpush.msra.mxu3 %v3024_v34  ;;  %v1941_v2 = vpop.xlane.xlu0 %1940  ;;  %5064 = vmatpush.msra.mxu2 %v2976_v55  ;;  %v2254_v36 = vmul.f32 0.0625, %v1902_v60  ;;  %v2268_v51 = vmul.f32 0.0625, %v1944_v10  ;;  %v3012_v34 = vld [vmem:[#allocation10 + $0x948] sm:$0xff]  ;;  %v3122_v0 = vld [vmem:[#allocation10 + $0xcb8] sm:$0xff] }
 0x40d   : > { %v2267_v42 = vmul.f32 0.0625, %v1941_v2  ;;  %v2932_v55 = vld [vmem:[#allocation10 + $0x6c8] sm:$0xff]  ;;  %v2930_v47 = vld [vmem:[#allocation10 + $0x6b8] sm:$0xff] }
 0x40e   : > { %5077 = vmatpush.msra.mxu3 %v3022_v44  ;;  %v4438_v20 = vperm.slane %v2254_v36, %v9362_v52  ;;  %5065 = vmatpush.msra.mxu2 %v2974_v6  ;;  %v3118_v43 = vld [vmem:[#allocation10 + $0xc98] sm:$0xff]  ;;  %v2968_v60 = vld [vmem:[#allocation10 + $0x7e8] sm:$0xff] }
 0x40f   : > { %v4463_v18 = vperm.slane %v2267_v42, %v7332_v13  ;;  %v4465_v13 = vperm.slane %v2268_v51, %v9355_v21  ;;  %v3006_v2 = vld [vmem:[#allocation10 + $0x918] sm:$0xff]  ;;  %v3004_v42 = vld [vmem:[#allocation10 + $0x908] sm:$0xff] }
 0x410   : > { %5078 = vmatpush.msra.mxu3 %v3020_v25  ;;  %5066 = vmatpush.msra.mxu2 %v2972_v61  ;;  %v9135_v63 = vsel %vm3880_vm15, %v4438_v20, %v4437_v16  ;;  %v2926_v6 = vld [vmem:[#allocation10 + $0x698] sm:$0xff]  ;;  %v2924_v10 = vld [vmem:[#allocation10 + $0x688] sm:$0xff] }
 0x411   : > { %5067 = vmatmul.f32.vlgmr.msra.gmra.mxu2 %v8326_v15  ;;  %4867 = vmatmul.f32.vlgmr.msra.gmra.mxu0 %v9135_v63  ;;  %v4464_v15 = vsel %vm3868_vm12, %v4463_v18, %v4462_v31  ;;  %v2966_v36 = vld [vmem:[#allocation10 + $0x7d8] sm:$0xff]  ;;  %v3112_v30 = vld [vmem:[#allocation10 + $0xc68] sm:$0xff] }
 0x412   : > { %5079 = vmatpush.msra.mxu3 %v3018_v26  ;;  %5131 = vmatpush.msrb.mxu2 %v3130_v56  ;;  %v4466_v53 = vsel %vm3872_vm13, %v4465_v13, %v4464_v15  ;;  %v3162_v25 = vld [vmem:[#allocation10 + $0xdf8] sm:$0xff]  ;;  %v3160_v3 = vld [vmem:[#allocation10 + $0xde8] sm:$0xff] }
 0x413   : > { %5011 = vmatpush.msra.mxu0 %v2938_v28  ;;  %v1950_v9 = vpop.xlane.xlu1 %1949  ;;  %v2922_v61 = vld [vmem:[#allocation10 + $0x678] sm:$0xff]  ;;  %v2920_v26 = vld [vmem:[#allocation10 + $0x668] sm:$0xff] }
 0x414   : > { %5080 = vmatpush.msra.mxu3 %v3016_v48  ;;  %v1947_v1 = vpop.xlane.xlu0 %1946  ;;  %5132 = vmatpush.msrb.mxu2 %v3128_v62  ;;  %v2270_v7 = vmul.f32 0.0625, %v1950_v9  ;;  %v2962_v20 = vld [vmem:[#allocation10 + $0x7b8] sm:$0xff]  ;;  %v2960_v51 = vld [vmem:[#allocation10 + $0x7a8] sm:$0xff] }
 0x415   : > { %v2269_v32 = vmul.f32 0.0625, %v1947_v1  ;;  %5012 = vmatpush.msra.mxu0 %v2936_v46  ;;  %v3110_v12 = vld [vmem:[#allocation10 + $0xc58] sm:$0xff]  ;;  %v3108_v16 = vld [vmem:[#allocation10 + $0xc48] sm:$0xff] }
 0x416   : > { %5081 = vmatpush.msra.mxu3 %v3014_v58  ;;  %5133 = vmatpush.msrb.mxu2 %v3126_v14  ;;  %v4469_v21 = vperm.slane %v2270_v7, %v9362_v52  ;;  %v3008_v52 = vld [vmem:[#allocation10 + $0x928] sm:$0xff]  ;;  %v3158_v33 = vld [vmem:[#allocation10 + $0xdd8] sm:$0xff] }
 0x417   : > { %v4467_v19 = vperm.slane %v2269_v32, %v9357_v50  ;;  %5013 = vmatpush.msra.mxu0 %v2934_v5  ;;  %v2970_v50 = vld [vmem:[#allocation10 + $0x7f8] sm:$0xff]  ;;  %v3156_v18 = vld [vmem:[#allocation10 + $0xdc8] sm:$0xff] }
 0x418   : > { %5082 = vmatpush.msra.mxu3 %v3012_v34  ;;  %5134 = vmatpush.msrb.mxu2 %v3124_v38  ;;  %v2918_v56 = vld [vmem:[#allocation10 + $0x658] sm:$0xff]  ;;  %v2916_v28 = vld [vmem:[#allocation10 + $0x648] sm:$0xff] }
 0x419   : > { %v4468_v44 = vsel %vm3876_vm14, %v4467_v19, %v4466_v53  ;;  %5014 = vmatpush.msra.mxu0 %v2932_v55  ;;  %v3106_v48 = vld [vmem:[#allocation10 + $0xc38] sm:$0xff]  ;;  %v2956_v22 = vld [vmem:[#allocation10 + $0x788] sm:$0xff] }
 0x41a   : > { %5083 = vmatpush.msra.mxu3 %v3010_v24  ;;  %v9148_v57 = vsel %vm3880_vm15, %v4469_v21, %v4468_v44  ;;  %5135 = vmatpush.msrb.mxu2 %v3122_v0  ;;  %v3154_v62 = vld [vmem:[#allocation10 + $0xdb8] sm:$0xff]  ;;  %v3152_v58 = vld [vmem:[#allocation10 + $0xda8] sm:$0xff] }
 0x41b   : > { %4947 = vmatmul.f32.vlgmr.msrb.gmra.mxu0 %v9349_v54  ;;  %4887 = vmatmul.f32.vlgmr.msra.gmra.mxu1 %v9148_v57  ;;  %v3114_v54 = vld [vmem:[#allocation10 + $0xc78] sm:$0xff]  ;;  %v2912_v13 = vld [vmem:[#allocation10 + $0x628] sm:$0xff] }
 0x41c   : > { %5015 = vmatpush.msra.mxu0 %v2930_v47  ;;  %5136 = vmatpush.msrb.mxu2 %v3120_v59  ;;  %v2914_v46 = vld [vmem:[#allocation10 + $0x638] sm:$0xff]  ;;  %v2952_v9 = vld [vmem:[#allocation10 + $0x768] sm:$0xff] }
 0x41d   : > { %5031 = vmatpush.msra.mxu1 %v2970_v50  ;;  %5084 = vmatpush.msra.mxu3 %v3008_v52  ;;  %v2954_v31 = vld [vmem:[#allocation10 + $0x778] sm:$0xff]  ;;  %v3100_v32 = vld [vmem:[#allocation10 + $0xc08] sm:$0xff] }
 0x41e   : > { %5016 = vmatpush.msra.mxu0 %v2928_v11  ;;  %5137 = vmatpush.msrb.mxu2 %v3118_v43  ;;  %v3102_v14 = vld [vmem:[#allocation10 + $0xc18] sm:$0xff]  ;;  %v3148_v7 = vld [vmem:[#allocation10 + $0xd88] sm:$0xff] }
 0x41f   : > { %5032 = vmatpush.msra.mxu1 %v2968_v60  ;;  %5085 = vmatpush.msra.mxu3 %v3006_v2  ;;  %v3150_v1 = vld [vmem:[#allocation10 + $0xd98] sm:$0xff]  ;;  %v2908_v38 = vld [vmem:[#allocation10 + $0x608] sm:$0xff] }
 0x420   : > { %5017 = vmatpush.msra.mxu0 %v2926_v6  ;;  %5138 = vmatpush.msrb.mxu2 %v3116_v35  ;;  %v2910_v15 = vld [vmem:[#allocation10 + $0x618] sm:$0xff]  ;;  %v2948_v21 = vld [vmem:[#allocation10 + $0x748] sm:$0xff] }
 0x421   : > { %5033 = vmatpush.msra.mxu1 %v2966_v36  ;;  %5086 = vmatpush.msra.mxu3 %v3004_v42  ;;  %v2950_v5 = vld [vmem:[#allocation10 + $0x758] sm:$0xff]  ;;  %v3256_v24 = vld [vmem:[#allocation10 + $0x10e8] sm:$0xff] }
 0x422   : > { %5018 = vmatpush.msra.mxu0 %v2924_v10  ;;  %5087 = vmatmul.f32.vlgmr.msra.gmra.mxu3 %v8371_v41  ;;  %v2958_v41 = vld [vmem:[#allocation10 + $0x798] sm:$0xff]  ;;  %v3144_v53 = vld [vmem:[#allocation10 + $0xd68] sm:$0xff] }
 0x423   : > { %5139 = vmatpush.msrb.mxu2 %v3114_v54  ;;  %5151 = vmatpush.msrb.mxu3 %v3162_v25  ;;  %v3258_v34 = vld [vmem:[#allocation10 + $0x10f8] sm:$0xff]  ;;  %v3064_v47 = vld [vmem:[#allocation10 + $0xae8] sm:$0xff] }
 0x424   : > { %5034 = vmatpush.msra.mxu1 %v2964_v39  ;;  %5019 = vmatpush.msra.mxu0 %v2922_v61  ;;  %v3146_v19 = vld [vmem:[#allocation10 + $0xd78] sm:$0xff]  ;;  %v2944_v50 = vld [vmem:[#allocation10 + $0x728] sm:$0xff] }
 0x425   : > { %5140 = vmatpush.msrb.mxu2 %v3112_v30  ;;  %5152 = vmatpush.msrb.mxu3 %v3160_v3  ;;  %v3066_v55 = vld [vmem:[#allocation10 + $0xaf8] sm:$0xff]  ;;  %v3140_v11 = vld [vmem:[#allocation10 + $0xd48] sm:$0xff] }
 0x426   : > { %4967 = vmatmul.f32.vlgmr.msrb.gmra.mxu1 %v7842_v27  ;;  %5020 = vmatpush.msra.mxu0 %v2920_v26  ;;  %v3104_v27 = vld [vmem:[#allocation10 + $0xc28] sm:$0xff]  ;;  %v2946_v0 = vld [vmem:[#allocation10 + $0x738] sm:$0xff] }
 0x427   : > { %5035 = vmatpush.msra.mxu1 %v2962_v20  ;;  %5141 = vmatpush.msrb.mxu2 %v3110_v12  ;;  %v3254_v44 = vld [vmem:[#allocation10 + $0x10d8] sm:$0xff]  ;;  %v3060_v60 = vld [vmem:[#allocation10 + $0xac8] sm:$0xff] }
 0x428   : > { %5153 = vmatpush.msrb.mxu3 %v3158_v33  ;;  %5021 = vmatpush.msra.mxu0 %v2918_v56  ;;  %v3142_v59 = vld [vmem:[#allocation10 + $0xd58] sm:$0xff]  ;;  %v2940_v6 = vld [vmem:[#allocation10 + $0x708] sm:$0xff] }
 0x429   : > { %5036 = vmatpush.msra.mxu1 %v2960_v51  ;;  %5142 = vmatpush.msrb.mxu2 %v3108_v16  ;;  %v3062_v52 = vld [vmem:[#allocation10 + $0xad8] sm:$0xff]  ;;  %v3248_v36 = vld [vmem:[#allocation10 + $0x10a8] sm:$0xff] }
 0x42a   : > { %5154 = vmatpush.msrb.mxu3 %v3156_v18  ;;  %5022 = vmatpush.msra.mxu0 %v2916_v28  ;;  %v2942_v43 = vld [vmem:[#allocation10 + $0x718] sm:$0xff]  ;;  %v3136_v10 = vld [vmem:[#allocation10 + $0xd28] sm:$0xff] }
 0x42b   : > { %5037 = vmatpush.msra.mxu1 %v2958_v41  ;;  %5143 = vmatpush.msrb.mxu2 %v3106_v48  ;;  %v3138_v2 = vld [vmem:[#allocation10 + $0xd38] sm:$0xff]  ;;  %v3056_v54 = vld [vmem:[#allocation10 + $0xaa8] sm:$0xff] }
 0x42c   : > { %5155 = vmatpush.msrb.mxu3 %v3154_v62  ;;  %5023 = vmatpush.msra.mxu0 %v2914_v46  ;;  %v3058_v35 = vld [vmem:[#allocation10 + $0xab8] sm:$0xff]  ;;  %v3096_v39 = vld [vmem:[#allocation10 + $0xbe8] sm:$0xff] }
 0x42d   : > { %5038 = vmatpush.msra.mxu1 %v2956_v22  ;;  %5144 = vmatpush.msrb.mxu2 %v3104_v27  ;;  %v3098_v42 = vld [vmem:[#allocation10 + $0xbf8] sm:$0xff]  ;;  %v3244_v3 = vld [vmem:[#allocation10 + $0x1088] sm:$0xff] }
 0x42e   : > { %5156 = vmatpush.msrb.mxu3 %v3152_v58  ;;  %5024 = vmatpush.msra.mxu0 %v2912_v13  ;;  %v3246_v25 = vld [vmem:[#allocation10 + $0x1098] sm:$0xff]  ;;  %v3132_v26 = vld [vmem:[#allocation10 + $0xd08] sm:$0xff] }
 0x42f   : > { %5039 = vmatpush.msra.mxu1 %v2954_v31  ;;  %5145 = vmatpush.msrb.mxu2 %v3102_v14  ;;  %v3134_v61 = vld [vmem:[#allocation10 + $0xd18] sm:$0xff]  ;;  %v3052_v12 = vld [vmem:[#allocation10 + $0xa88] sm:$0xff] }
 0x430   : > { %5157 = vmatpush.msrb.mxu3 %v3150_v1  ;;  %5025 = vmatpush.msra.mxu0 %v2910_v15  ;;  %v3054_v30 = vld [vmem:[#allocation10 + $0xa98] sm:$0xff]  ;;  %v3240_v16 = vld [vmem:[#allocation10 + $0x1068] sm:$0xff] }
 0x431   : > { %5040 = vmatpush.msra.mxu1 %v2952_v9  ;;  %5146 = vmatpush.msrb.mxu2 %v3100_v32  ;;  %v3094_v20 = vld [vmem:[#allocation10 + $0xbd8] sm:$0xff]  ;;  %v3288_v18 = vld [vmem:[#allocation10 + $0x11e8] sm:$0xff] }
 0x432   : > { %5158 = vmatpush.msrb.mxu3 %v3148_v7  ;;  %5147 = vmatmul.f32.vlgmr.msrb.gmra.mxu2 %v8665_v23  ;;  %v3252_v23 = vld [vmem:[#allocation10 + $0x10c8] sm:$0xff]  ;;  %v3242_v33 = vld [vmem:[#allocation10 + $0x1078] sm:$0xff] }
 0x433   : > { %5041 = vmatpush.msra.mxu1 %v2950_v5  ;;  %5211 = vmatpush.msra.mxu2 %v3258_v34  ;;  %v3290_v51 = vld [vmem:[#allocation10 + $0x11f8] sm:$0xff]  ;;  %v3048_v28 = vld [vmem:[#allocation10 + $0xa68] sm:$0xff] }
 0x434   : > { %5026 = vmatpush.msra.mxu0 %v2908_v38  ;;  %5159 = vmatpush.msrb.mxu3 %v3146_v19  ;;  %v3050_v56 = vld [vmem:[#allocation10 + $0xa78] sm:$0xff]  ;;  %v3088_v22 = vld [vmem:[#allocation10 + $0xba8] sm:$0xff] }
 0x435   : > { %5027 = vmatmul.f32.vlgmr.msra.gmra.mxu0 %v8234_v17  ;;  %5042 = vmatpush.msra.mxu1 %v2948_v21  ;;  %v3250_v17 = vld [vmem:[#allocation10 + $0x10b8] sm:$0xff]  ;;  %v3236_v27 = vld [vmem:[#allocation10 + $0x1048] sm:$0xff] }
 0x436   : > { %5091 = vmatpush.msrb.mxu0 %v3066_v55  ;;  %5212 = vmatpush.msra.mxu2 %v3256_v24  ;;  %v3090_v41 = vld [vmem:[#allocation10 + $0xbb8] sm:$0xff]  ;;  %v3284_v58 = vld [vmem:[#allocation10 + $0x11c8] sm:$0xff] }
 0x437   : > { %5160 = vmatpush.msrb.mxu3 %v3144_v53  ;;  %5043 = vmatpush.msra.mxu1 %v2946_v0  ;;  %v3238_v48 = vld [vmem:[#allocation10 + $0x1058] sm:$0xff]  ;;  %v3044_v31 = vld [vmem:[#allocation10 + $0xa48] sm:$0xff] }
 0x438   : > { %5092 = vmatpush.msrb.mxu0 %v3064_v47  ;;  %5213 = vmatpush.msra.mxu2 %v3254_v44  ;;  %v3286_v62 = vld [vmem:[#allocation10 + $0x11d8] sm:$0xff]  ;;  %v3084_v1 = vld [vmem:[#allocation10 + $0xb88] sm:$0xff] }
 0x439   : > { %5161 = vmatpush.msrb.mxu3 %v3142_v59  ;;  %5044 = vmatpush.msra.mxu1 %v2944_v50  ;;  %v3046_v46 = vld [vmem:[#allocation10 + $0xa58] sm:$0xff]  ;;  %v3232_v15 = vld [vmem:[#allocation10 + $0x1028] sm:$0xff] }
 0x43a   : > { %5093 = vmatpush.msrb.mxu0 %v3062_v52  ;;  %5214 = vmatpush.msra.mxu2 %v3252_v23  ;;  %v3234_v13 = vld [vmem:[#allocation10 + $0x1038] sm:$0xff]  ;;  %v3280_v32 = vld [vmem:[#allocation10 + $0x11a8] sm:$0xff]  ;;  %v3436_v23 = vpop.f32.mrf.mxu2 }
 0x43b   : > { %5162 = vmatpush.msrb.mxu3 %v3140_v11  ;;  %5045 = vmatpush.msra.mxu1 %v2942_v43  ;;  %v3282_v14 = vld [vmem:[#allocation10 + $0x11b8] sm:$0xff]  ;;  %v3040_v5 = vld [vmem:[#allocation10 + $0xa28] sm:$0xff] }
 0x43c   : > { %5094 = vmatpush.msrb.mxu0 %v3060_v60  ;;  %5215 = vmatpush.msra.mxu2 %v3250_v17  ;;  %v3042_v9 = vld [vmem:[#allocation10 + $0xa38] sm:$0xff]  ;;  %v3080_v19 = vld [vmem:[#allocation10 + $0xb68] sm:$0xff] }
 0x43d   : > { %5163 = vmatpush.msrb.mxu3 %v3138_v2  ;;  %5046 = vmatpush.msra.mxu1 %v2940_v6  ;;  %v3082_v7 = vld [vmem:[#allocation10 + $0xb78] sm:$0xff]  ;;  %v3228_v55 = vld [vmem:[#allocation10 + $0x1008] sm:$0xff] }
 0x43e   : > { %5095 = vmatpush.msrb.mxu0 %v3058_v35  ;;  %5216 = vmatpush.msra.mxu2 %v3248_v36  ;;  %v3230_v34 = vld [vmem:[#allocation10 + $0x1018] sm:$0xff]  ;;  %v3276_v24 = vld [vmem:[#allocation10 + $0x1188] sm:$0xff] }
 0x43f   : > { %5047 = vmatmul.f32.vlgmr.msra.gmra.mxu1 %v8202_v40  ;;  %5164 = vmatpush.msrb.mxu3 %v3136_v10  ;;  %v3092_v40 = vld [vmem:[#allocation10 + $0xbc8] sm:$0xff]  ;;  %v3278_v38 = vld [vmem:[#allocation10 + $0x1198] sm:$0xff] }
 0x440   : > { %5111 = vmatpush.msrb.mxu1 %v3098_v42  ;;  %5096 = vmatpush.msrb.mxu0 %v3056_v54  ;;  %v3038_v21 = vld [vmem:[#allocation10 + $0xa18] sm:$0xff]  ;;  %v3036_v0 = vld [vmem:[#allocation10 + $0xa08] sm:$0xff]  ;;  %v3456_v42 = vpop.f32.mrf.mxu3 }
 0x441   : > { %5217 = vmatpush.msra.mxu2 %v3246_v25  ;;  %5165 = vmatpush.msrb.mxu3 %v3134_v61  ;;  %v3078_v53 = vld [vmem:[#allocation10 + $0xb58] sm:$0xff]  ;;  %v3076_v44 = vld [vmem:[#allocation10 + $0xb48] sm:$0xff] }
 0x442   : > { %5112 = vmatpush.msrb.mxu1 %v3096_v39  ;;  %5097 = vmatpush.msrb.mxu0 %v3054_v30  ;;  %v3274_v47 = vld [vmem:[#allocation10 + $0x1178] sm:$0xff]  ;;  %v3272_v50 = vld [vmem:[#allocation10 + $0x1168] sm:$0xff]  ;;  %v3457_v39 = vadd.f32 %v3456_v42, %v3436_v23  ;;  %v5303_v42 = vld [vmem:[#allocation8 + $0x650] sm:$0xff] }
 0x443   : > { %5218 = vmatpush.msra.mxu2 %v3244_v3  ;;  %5166 = vmatpush.msrb.mxu3 %v3132_v26  ;;  %v3194_v59 = vld [vmem:[#allocation10 + $0xef8] sm:$0xff]  ;;  %v3192_v11 = vld [vmem:[#allocation10 + $0xee8] sm:$0xff] }
 0x444   : > { %5113 = vmatpush.msrb.mxu1 %v3094_v20  ;;  %5098 = vmatpush.msrb.mxu0 %v3052_v12  ;;  %v3074_v52 = vld [vmem:[#allocation10 + $0xb38] sm:$0xff]  ;;  %v3072_v60 = vld [vmem:[#allocation10 + $0xb28] sm:$0xff]  ;;  %v4508_v20 = vpop.f32.mrf.mxu2 }
 0x445   : > { %5167 = vmatmul.f32.vlgmr.msrb.gmra.mxu3 %v8710_v37  ;;  %5219 = vmatpush.msra.mxu2 %v3242_v33  ;;  %v3086_v37 = vld [vmem:[#allocation10 + $0xb98] sm:$0xff]  ;;  %v3268_v2 = vld [vmem:[#allocation10 + $0x1148] sm:$0xff] }
 0x446   : > { %5231 = vmatpush.msra.mxu3 %v3290_v51  ;;  %5114 = vmatpush.msrb.mxu1 %v3092_v40  ;;  %v3270_v43 = vld [vmem:[#allocation10 + $0x1158] sm:$0xff]  ;;  %v3188_v6 = vld [vmem:[#allocation10 + $0xec8] sm:$0xff]  ;;  %v4509_v40 = vadd.f32 %v4508_v20, %v3457_v39 }
 0x447   : > { %5099 = vmatpush.msrb.mxu0 %v3050_v56  ;;  %5220 = vmatpush.msra.mxu2 %v3240_v16  ;;  %v3190_v17 = vld [vmem:[#allocation10 + $0xed8] sm:$0xff]  ;;  %v3068_v36 = vld [vmem:[#allocation10 + $0xb08] sm:$0xff] }
 0x448   : > { %5232 = vmatpush.msra.mxu3 %v3288_v18  ;;  %5115 = vmatpush.msrb.mxu1 %v3090_v41  ;;  %v3266_v35 = vld [vmem:[#allocation10 + $0x1138] sm:$0xff]  ;;  %v3264_v54 = vld [vmem:[#allocation10 + $0x1128] sm:$0xff]  ;;  %v5313_v41 = vld [vmem:[#allocation8 + $0x6f0] sm:$0xff] }
 0x449   : > { %5100 = vmatpush.msrb.mxu0 %v3048_v28  ;;  %5221 = vmatpush.msra.mxu2 %v3238_v48  ;;  %v3226_v10 = vld [vmem:[#allocation10 + $0xff8] sm:$0xff]  ;;  %v3184_v25 = vld [vmem:[#allocation10 + $0xea8] sm:$0xff]  ;;  %v4528_v28 = vpop.f32.mrf.mxu3 }
 0x44a   : > { %5233 = vmatpush.msra.mxu3 %v3286_v62  ;;  %5116 = vmatpush.msrb.mxu1 %v3088_v22  ;;  %v9370_v61 = vld [vmem:[#allocation32_spill] sm:$0xff]  ;;  %v3262_v3 = vld [vmem:[#allocation10 + $0x1118] sm:$0xff]  ;;  %v4529_v62 = vadd.f32 %v4528_v28, %v4509_v40 }
 0x44b   : > { %5101 = vmatpush.msrb.mxu0 %v3046_v46  ;;  %5222 = vmatpush.msra.mxu2 %v3236_v27  ;;  %v3224_v30 = vld [vmem:[#allocation10 + $0xfe8] sm:$0xff]  ;;  %v3182_v26 = vld [vmem:[#allocation10 + $0xe98] sm:$0xff]  ;;  %v5312_v46 = vld [vmem:[#allocation8 + $0x6e0] sm:$0xff] }
 0x44c   : > { %5234 = vmatpush.msra.mxu3 %v3284_v58  ;;  %5117 = vmatpush.msrb.mxu1 %v3086_v37  ;;  %v3222_v12 = vld [vmem:[#allocation10 + $0xfd8] sm:$0xff]  ;;  %v3260_v33 = vld [vmem:[#allocation10 + $0x1108] sm:$0xff]  ;;  %v5311_v37 = vld [vmem:[#allocation8 + $0x6d0] sm:$0xff] }
 0x44d   : > { %5102 = vmatpush.msrb.mxu0 %v3044_v31  ;;  %5223 = vmatpush.msra.mxu2 %v3234_v13  ;;  %v3180_v51 = vld [vmem:[#allocation10 + $0xe88] sm:$0xff]  ;;  %v3178_v16 = vld [vmem:[#allocation10 + $0xe78] sm:$0xff]  ;;  %v4548_v31 = vpop.f32.mrf.mxu0 }
 0x44e   : > { %5235 = vmatpush.msra.mxu3 %v3282_v14  ;;  %5118 = vmatpush.msrb.mxu1 %v3084_v1  ;;  %v3220_v56 = vld [vmem:[#allocation10 + $0xfc8] sm:$0xff]  ;;  %v3218_v18 = vld [vmem:[#allocation10 + $0xfb8] sm:$0xff]  ;;  %v5310_v1 = vld [vmem:[#allocation8 + $0x6c0] sm:$0xff] }
 0x44f   : > { %5103 = vmatpush.msrb.mxu0 %v3042_v9  ;;  %5224 = vmatpush.msra.mxu2 %v3232_v15  ;;  %v3176_v48 = vld [vmem:[#allocation10 + $0xe68] sm:$0xff]  ;;  %v3174_v27 = vld [vmem:[#allocation10 + $0xe58] sm:$0xff] }
 0x450   : > { %5236 = vmatpush.msra.mxu3 %v3280_v32  ;;  %5119 = vmatpush.msrb.mxu1 %v3082_v7  ;;  %v3216_v22 = vld [vmem:[#allocation10 + $0xfa8] sm:$0xff]  ;;  %v3214_v58 = vld [vmem:[#allocation10 + $0xf98] sm:$0xff]  ;;  %v5309_v32 = vld [vmem:[#allocation8 + $0x6b0] sm:$0xff]  ;;  %v4568_v7 = vpop.f32.mrf.mxu1 }
 0x451   : > { %5104 = vmatpush.msrb.mxu0 %v3040_v5  ;;  %5225 = vmatpush.msra.mxu2 %v3230_v34  ;;  %v3172_v13 = vld [vmem:[#allocation10 + $0xe48] sm:$0xff]  ;;  %v3170_v9 = vld [vmem:[#allocation10 + $0xe38] sm:$0xff]  ;;  %v4588_v5 = vpop.f32.mrf.mxu2 }
 0x452   : > { %5237 = vmatpush.msra.mxu3 %v3278_v38  ;;  %5120 = vmatpush.msrb.mxu1 %v3080_v19  ;;  %v3212_v14 = vld [vmem:[#allocation10 + $0xf88] sm:$0xff]  ;;  %v3210_v15 = vld [vmem:[#allocation10 + $0xf78] sm:$0xff] }
 0x453   : > { %5105 = vmatpush.msrb.mxu0 %v3038_v21  ;;  %5226 = vmatpush.msra.mxu2 %v3228_v55  ;;  %v3168_v34 = vld [vmem:[#allocation10 + $0xe28] sm:$0xff]  ;;  %v5308_v21 = vld [vmem:[#allocation8 + $0x6a0] sm:$0xff]  ;;  %v3166_v55 = vld [vmem:[#allocation10 + $0xe18] sm:$0xff] }
 0x454   : > { %5238 = vmatpush.msra.mxu3 %v3276_v24  ;;  %5121 = vmatpush.msrb.mxu1 %v3078_v53  ;;  %v3208_v19 = vld [vmem:[#allocation10 + $0xf68] sm:$0xff]  ;;  %v3206_v53 = vld [vmem:[#allocation10 + $0xf58] sm:$0xff] }
 0x455   : > { %5227 = vmatmul.f32.vlgmr.msra.gmra.mxu2 %v9012_v49  ;;  %5106 = vmatpush.msrb.mxu0 %v3036_v0  ;;  %v3070_v49 = vld [vmem:[#allocation10 + $0xb18] sm:$0xff]  ;;  %v5307_v0 = vld [vmem:[#allocation8 + $0x690] sm:$0xff] }
 0x456   : > { %5239 = vmatpush.msra.mxu3 %v3274_v47  ;;  %5107 = vmatmul.f32.vlgmr.msrb.gmra.mxu0 %v8450_v29  ;;  %v3186_v29 = vld [vmem:[#allocation10 + $0xeb8] sm:$0xff]  ;;  %v3164_v47 = vld [vmem:[#allocation10 + $0xe08] sm:$0xff] }
 0x457   : > { %5122 = vmatpush.msrb.mxu1 %v3076_v44  ;;  %5171 = vmatpush.msra.mxu0 %v3194_v59  ;;  %v3204_v44 = vld [vmem:[#allocation10 + $0xf48] sm:$0xff]  ;;  %v5306_v59 = vld [vmem:[#allocation8 + $0x680] sm:$0xff]  ;;  %v3314_v39 = vld [vmem:[#allocation10 + $0x12b8] sm:$0xff] }
 0x458   : > { %5240 = vmatpush.msra.mxu3 %v3272_v50  ;;  %5330 = vmatpush.msrb.mxu2 %v5313_v41  ;;  %v4608_v50 = vpop.f32.mrf.mxu3  ;;  %v5299_v41 = vld [vmem:[#allocation8 + $0x610] sm:$0xff] }
 0x459   : > { %5123 = vmatpush.msrb.mxu1 %v3074_v52  ;;  %5172 = vmatpush.msra.mxu0 %v3192_v11  ;;  %v3322_v52 = vld [vmem:[#allocation10 + $0x12f8] sm:$0xff] }
 0x45a   : > { %5241 = vmatpush.msra.mxu3 %v3270_v43  ;;  %5331 = vmatpush.msrb.mxu2 %v5312_v46  ;;  %v3202_v11 = vld [vmem:[#allocation10 + $0xf38] sm:$0xff]  ;;  %v5305_v43 = vld [vmem:[#allocation8 + $0x670] sm:$0xff]  ;;  %v5298_v46 = vld [vmem:[#allocation8 + $0x600] sm:$0xff] }
 0x45b   : > { %5124 = vmatpush.msrb.mxu1 %v3072_v60  ;;  %5173 = vmatpush.msra.mxu0 %v3190_v17  ;;  %v3320_v60 = vld [vmem:[#allocation10 + $0x12e8] sm:$0xff] }
 0x45c   : > { %5242 = vmatpush.msra.mxu3 %v3268_v2  ;;  %5332 = vmatpush.msrb.mxu2 %v5311_v37  ;;  %v3200_v17 = vld [vmem:[#allocation10 + $0xf28] sm:$0xff]  ;;  %v5304_v2 = vld [vmem:[#allocation8 + $0x660] sm:$0xff] }
 0x45d   : > { %5125 = vmatpush.msrb.mxu1 %v3070_v49  ;;  %5174 = vmatpush.msra.mxu0 %v3188_v6  ;;  %v4628_v49 = vpop.f32.mrf.mxu0  ;;  %v3318_v6 = vld [vmem:[#allocation10 + $0x12d8] sm:$0xff]  ;;  %v3304_v37 = vld [vmem:[#allocation10 + $0x1268] sm:$0xff] }
 0x45e   : > { %5243 = vmatpush.msra.mxu3 %v3266_v35  ;;  %5333 = vmatpush.msrb.mxu2 %v5310_v1  ;;  %v3342_v1 = vld [vmem:[#allocation10 + $0x1398] sm:$0xff] }
 0x45f   : > { %5126 = vmatpush.msrb.mxu1 %v3068_v36  ;;  %5175 = vmatpush.msra.mxu0 %v3186_v29  ;;  %v3198_v36 = vld [vmem:[#allocation10 + $0xf18] sm:$0xff]  ;;  %v4648_v29 = vpop.f32.mrf.mxu1 }
 0x460   : > { %5127 = vmatmul.f32.vlgmr.msrb.gmra.mxu1 %v9370_v61  ;;  %5244 = vmatpush.msra.mxu3 %v3264_v54  ;;  %v3196_v54 = vld [vmem:[#allocation10 + $0xf08] sm:$0xff]  ;;  %v4688_v20 = vpop.f32.mrf.mxu3 }
 0x461   : > { %5191 = vmatpush.msra.mxu1 %v3226_v10  ;;  %5176 = vmatpush.msra.mxu0 %v3184_v25  ;;  %v3316_v10 = vld [vmem:[#allocation10 + $0x12c8] sm:$0xff]  ;;  %v4668_v25 = vpop.f32.mrf.mxu2 }
 0x462   : > { %5245 = vmatpush.msra.mxu3 %v3262_v3  ;;  %5334 = vmatpush.msrb.mxu2 %v5309_v32  ;;  %v5301_v3 = vld [vmem:[#allocation8 + $0x630] sm:$0xff]  ;;  %v3340_v32 = vld [vmem:[#allocation10 + $0x1388] sm:$0xff] }
 0x463   : > { %5192 = vmatpush.msra.mxu1 %v3224_v30  ;;  %5177 = vmatpush.msra.mxu0 %v3182_v26  ;;  %v3354_v30 = vld [vmem:[#allocation10 + $0x13f8] sm:$0xff]  ;;  %v3312_v26 = vld [vmem:[#allocation10 + $0x12a8] sm:$0xff] }
 0x464   : > { %5246 = vmatpush.msra.mxu3 %v3260_v33  ;;  %5335 = vmatpush.msrb.mxu2 %v5308_v21  ;;  %v3352_v33 = vld [vmem:[#allocation10 + $0x13e8] sm:$0xff] }
 0x465   : > { %5193 = vmatpush.msra.mxu1 %v3222_v12  ;;  %5178 = vmatpush.msra.mxu0 %v3180_v51  ;;  %v5300_v51 = vld [vmem:[#allocation8 + $0x620] sm:$0xff]  ;;  %v4708_v40 = vpop.f32.mrf.mxu0  ;;  %v3296_v21 = vld [vmem:[#allocation10 + $0x1228] sm:$0xff] }
 0x466   : > { %5247 = vmatmul.f32.vlgmr.msra.gmra.mxu3 %v9048_v45  ;;  %v4549_v45 = vadd.f32 %v4548_v31, %v4529_v62  ;;  %5336 = vmatpush.msrb.mxu2 %v5307_v0  ;;  %v3344_v31 = vld [vmem:[#allocation10 + $0x13a8] sm:$0xff]  ;;  %v3294_v0 = vld [vmem:[#allocation10 + $0x1218] sm:$0xff] }
 0x467   : > { %5194 = vmatpush.msra.mxu1 %v3220_v56  ;;  %5179 = vmatpush.msra.mxu0 %v3178_v16  ;;  %v3310_v56 = vld [vmem:[#allocation10 + $0x1298] sm:$0xff]  ;;  %v4728_v28 = vpop.f32.mrf.mxu1 }
 0x468   : > { %v4569_v38 = vadd.f32 %v4568_v7, %v4549_v45  ;;  %5337 = vmatpush.msrb.mxu2 %v5306_v59  ;;  %v3302_v45 = vld [vmem:[#allocation10 + $0x1258] sm:$0xff] }
 0x469   : > { %5195 = vmatpush.msra.mxu1 %v3218_v18  ;;  %5180 = vmatpush.msra.mxu0 %v3176_v48  ;;  %v3350_v18 = vld [vmem:[#allocation10 + $0x13d8] sm:$0xff]  ;;  %v3308_v48 = vld [vmem:[#allocation10 + $0x1288] sm:$0xff] }
 0x46a   : > { %v4589_v24 = vadd.f32 %v4588_v5, %v4569_v38  ;;  %5338 = vmatpush.msrb.mxu2 %v5305_v43  ;;  %v3298_v5 = vld [vmem:[#allocation10 + $0x1238] sm:$0xff] }
 0x46b   : > { %5196 = vmatpush.msra.mxu1 %v3216_v22  ;;  %5181 = vmatpush.msra.mxu0 %v3174_v27  ;;  %v3348_v22 = vld [vmem:[#allocation10 + $0x13c8] sm:$0xff]  ;;  %v3338_v38 = vld [vmem:[#allocation10 + $0x1378] sm:$0xff] }
 0x46c   : > { %v4609_v23 = vadd.f32 %v4608_v50, %v4589_v24  ;;  %5339 = vmatpush.msrb.mxu2 %v5304_v2  ;;  %v3336_v24 = vld [vmem:[#allocation10 + $0x1368] sm:$0xff]  ;;  %v9164_v43 = vld [vmem:[#allocation5 + $0x11] ss:$8 sm:$0x3] }
 0x46d   : > { %5197 = vmatpush.msra.mxu1 %v3214_v58  ;;  %5182 = vmatpush.msra.mxu0 %v3172_v13  ;;  %v3346_v58 = vld [vmem:[#allocation10 + $0x13b8] sm:$0xff]  ;;  %v4748_v13 = vpop.f32.mrf.mxu2  ;;  %v4788_v7 = vpop.f32.mrf.mxu0  ;;  %v3292_v50 = vld [vmem:[#allocation10 + $0x1208] sm:$0xff] }
 0x46e   : > { %v4629_v35 = vadd.f32 %v4628_v49, %v4609_v23  ;;  %5340 = vmatpush.msrb.mxu2 %v5303_v42  ;;  %v3332_v23 = vld [vmem:[#allocation10 + $0x1348] sm:$0xff] }
 0x46f   : > { %5198 = vmatpush.msra.mxu1 %v3212_v14  ;;  %5183 = vmatpush.msra.mxu0 %v3170_v9  ;;  %v4768_v9 = vpop.f32.mrf.mxu3  ;;  %v3328_v49 = vld [vmem:[#allocation10 + $0x1328] sm:$0xff] }
 0x470   : > { %v4649_v61 = vadd.f32 %v4648_v29, %v4629_v35  ;;  %v3324_v29 = vld [vmem:[#allocation10 + $0x1308] sm:$0xff] }
 0x471   : > { %5199 = vmatpush.msra.mxu1 %v3210_v15  ;;  %5184 = vmatpush.msra.mxu0 %v3168_v34  ;;  %v3300_v15 = vld [vmem:[#allocation10 + $0x1248] sm:$0xff] }
 0x472   : > { %v4669_v12 = vadd.f32 %v4668_v25, %v4649_v61  ;;  %v5326_v25 = vld [vmem:[#allocation8 + $0x7c0] sm:$0xff]  ;;  %v5325_v61 = vld [vmem:[#allocation8 + $0x7b0] sm:$0xff] }
 0x473   : > { %5200 = vmatpush.msra.mxu1 %v3208_v19  ;;  %5185 = vmatpush.msra.mxu0 %v3166_v55  ;;  %v4808_v19 = vpop.f32.mrf.mxu1 }
 0x474   : > { %v4689_v16 = vadd.f32 %v4688_v20, %v4669_v12 }
 0x475   : > { %5201 = vmatpush.msra.mxu1 %v3206_v53  ;;  %5186 = vmatpush.msra.mxu0 %v3164_v47  ;;  %v4828_v53 = vpop.f32.mrf.mxu2 }
 0x476   : > { %5187 = vmatmul.f32.vlgmr.msra.gmra.mxu0 %v8835_v8  ;;  %v5302_v8 = vld [vmem:[#allocation8 + $0x640] sm:$0xff]  ;;  %v4709_v62 = vadd.f32 %v4708_v40, %v4689_v16 }
 0x477   : > { %5202 = vmatpush.msra.mxu1 %v3204_v44  ;;  %5251 = vmatpush.msrb.mxu0 %v3322_v52  ;;  %v3334_v44 = vld [vmem:[#allocation10 + $0x1358] sm:$0xff]  ;;  %v4848_v59 = vpop.f32.mrf.mxu3 }
 0x478   : > { %5341 = vmatpush.msrb.mxu2 %v5302_v8  ;;  %v4729_v27 = vadd.f32 %v4728_v28, %v4709_v62  ;;  %v5328_v8 = vld [vmem:[#allocation8 + $0x7e0] sm:$0xff] }
 0x479   : > { %5203 = vmatpush.msra.mxu1 %v3202_v11  ;;  %5252 = vmatpush.msrb.mxu0 %v3320_v60 }
 0x47a   : > { %5342 = vmatpush.msrb.mxu2 %v5301_v3  ;;  %v4749_v14 = vadd.f32 %v4748_v13, %v4729_v27  ;;  %v9371_v3 = vld [vmem:[#allocation25_spill] sm:$0xff]  ;;  %v5318_v27 = vld [vmem:[#allocation8 + $0x740] sm:$0xff] }
 0x47b   : > { %5204 = vmatpush.msra.mxu1 %v3200_v17  ;;  %5253 = vmatpush.msrb.mxu0 %v3318_v6  ;;  %v3330_v17 = vld [vmem:[#allocation10 + $0x1338] sm:$0xff]  ;;  %v5292_v6 = vperm.slane %v9164_v43, 0 }
 0x47c   : > { %5343 = vmatpush.msrb.mxu2 %v5300_v51  ;;  %v4769_v34 = vadd.f32 %v4768_v9, %v4749_v14  ;;  %v5323_v51 = vld [vmem:[#allocation8 + $0x790] sm:$0xff] }
 0x47d   : > { %5205 = vmatpush.msra.mxu1 %v3198_v36  ;;  %5254 = vmatpush.msrb.mxu0 %v3316_v10  ;;  %v3326_v36 = vld [vmem:[#allocation10 + $0x1318] sm:$0xff]  ;;  %v5315_v9 = vld [vmem:[#allocation8 + $0x710] sm:$0xff] }
 0x47e   : > { %5344 = vmatpush.msrb.mxu2 %v5299_v41  ;;  %v4789_v55 = vadd.f32 %v4788_v7, %v4769_v34 }
 0x47f   : > { %5206 = vmatpush.msra.mxu1 %v3196_v54  ;;  %5255 = vmatpush.msrb.mxu0 %v3314_v39  ;;  %v5329_v54 = vld [vmem:[#allocation8 + $0x7f0] sm:$0xff]  ;;  %v4908_v39 = vpop.f32.mrf.mxu2 }
 0x480   : > { %5207 = vmatmul.f32.vlgmr.msra.gmra.mxu1 %v8879_v4  ;;  %v3306_v4 = vld [vmem:[#allocation10 + $0x1278] sm:$0xff]  ;;  %5345 = vmatpush.msrb.mxu2 %v5298_v46  ;;  %v4809_v47 = vadd.f32 %v4808_v19, %v4789_v55  ;;  %v4909_v20 = vadd.f32 %v4908_v39, %v9371_v3  ;;  %v5319_v46 = vld [vmem:[#allocation8 + $0x750] sm:$0xff] }
 0x481   : > { %5271 = vmatpush.msrb.mxu1 %v3354_v30  ;;  %5256 = vmatpush.msrb.mxu0 %v3312_v26  ;;  %v4928_v30 = vpop.f32.mrf.mxu3  ;;  %v5324_v26 = vld [vmem:[#allocation8 + $0x7a0] sm:$0xff] }
 0x482   : > { %v4829_v52 = vadd.f32 %v4828_v53, %v4809_v47  ;;  %5350 = vmatpush.msrb.mxu3 %v5329_v54 }
 0x483   : > { %5272 = vmatpush.msrb.mxu1 %v3352_v33  ;;  %5257 = vmatpush.msrb.mxu0 %v3310_v56  ;;  %v4929_v33 = vadd.f32 %v4928_v30, %v4909_v20  ;;  %v5322_v56 = vld [vmem:[#allocation8 + $0x780] sm:$0xff] }
 0x484   : > { %v4849_v60 = vadd.f32 %v4848_v59, %v4829_v52  ;;  %5351 = vmatpush.msrb.mxu3 %v5328_v8 }
 0x485   : > { %5273 = vmatpush.msrb.mxu1 %v3350_v18  ;;  %5258 = vmatpush.msrb.mxu0 %v3308_v48  ;;  %v5321_v18 = vld [vmem:[#allocation8 + $0x770] sm:$0xff]  ;;  %v5320_v48 = vld [vmem:[#allocation8 + $0x760] sm:$0xff] }
 0x487   : > { %5274 = vmatpush.msrb.mxu1 %v3348_v22  ;;  %5259 = vmatpush.msrb.mxu0 %v3306_v4  ;;  %v4988_v41 = vpop.f32.mrf.mxu2 }
 0x489   : > { %5275 = vmatpush.msrb.mxu1 %v3346_v58  ;;  %5260 = vmatpush.msrb.mxu0 %v3304_v37  ;;  %v5008_v62 = vpop.f32.mrf.mxu3 }
 0x48b   : > { %5276 = vmatpush.msrb.mxu1 %v3344_v31  ;;  %5261 = vmatpush.msrb.mxu0 %v3302_v45  ;;  %v5317_v31 = vld [vmem:[#allocation8 + $0x730] sm:$0xff]  ;;  %v5316_v45 = vld [vmem:[#allocation8 + $0x720] sm:$0xff] }
 0x48d   : > { %5277 = vmatpush.msrb.mxu1 %v3342_v1  ;;  %5262 = vmatpush.msrb.mxu0 %v3300_v15  ;;  %v5314_v15 = vld [vmem:[#allocation8 + $0x700] sm:$0xff] }
 0x48e   : > { %v4868_v11 = vpop.f32.mrf.mxu0 }
 0x48f   : > { %5278 = vmatpush.msrb.mxu1 %v3340_v32  ;;  %5263 = vmatpush.msrb.mxu0 %v3298_v5  ;;  %v4869_v2 = vadd.f32 %v4868_v11, %v4849_v60 }
 0x491   : > { %5279 = vmatpush.msrb.mxu1 %v3338_v38  ;;  %5264 = vmatpush.msrb.mxu0 %v3296_v21 }
 0x493   : > { %5280 = vmatpush.msrb.mxu1 %v3336_v24  ;;  %5265 = vmatpush.msrb.mxu0 %v3294_v0 }
 0x494   : > { %v5068_v14 = vpop.f32.mrf.mxu2 }
 0x495   : > { %5281 = vmatpush.msrb.mxu1 %v3334_v44  ;;  %5266 = vmatpush.msrb.mxu0 %v3292_v50 }
 0x496   : > { %5267 = vmatmul.f32.vlgmr.msrb.gmra.mxu0 %v9135_v63  ;;  %v5327_v63 = vld [vmem:[#allocation8 + $0x7d0] sm:$0xff] }
 0x497   : > { %5282 = vmatpush.msrb.mxu1 %v3332_v23  ;;  %5352 = vmatpush.msrb.mxu3 %v5327_v63 }
 0x498   : > { %v4888_v35 = vpop.f32.mrf.mxu1  ;;  %v4948_v12 = vpop.f32.mrf.mxu0 }
 0x499   : > { %5283 = vmatpush.msrb.mxu1 %v3330_v17  ;;  %v4889_v42 = vadd.f32 %v4888_v35, %v4869_v2  ;;  %5353 = vmatpush.msrb.mxu3 %v5326_v25  ;;  %v5293_v2 = vperm.slane %v9164_v43, 1 }
 0x49b   : > { %5284 = vmatpush.msrb.mxu1 %v3328_v49  ;;  %v5296_v10 = vadd.f32 %v5292_v6, %v4889_v42  ;;  %5354 = vmatpush.msrb.mxu3 %v5325_v61 }
 0x49d   : > { %5285 = vmatpush.msrb.mxu1 %v3326_v36  ;;  %5346 = vmatmul.f32.vlgmr.msrb.gmra.mxu2 %v5296_v10  ;;  %v2291_v36 = vld [vmem:[#allocation5 + $0x12] ss:$0 sm:$0xff] }
 0x49e   : > { %5355 = vmatpush.msrb.mxu3 %v5324_v26 }
 0x49f   : > { %5286 = vmatpush.msrb.mxu1 %v3324_v29 }
 0x4a0   : > { %5287 = vmatmul.f32.vlgmr.msrb.gmra.mxu1 %v9148_v57  ;;  %v4949_v57 = vadd.f32 %v4948_v12, %v4929_v33  ;;  %5356 = vmatpush.msrb.mxu3 %v5323_v51 }
 0x4a2   : > { %5357 = vmatpush.msrb.mxu3 %v5322_v56 }
 0x4a3   : > { %v4968_v40 = vpop.f32.mrf.mxu1 }
 0x4a4   : > { %v4969_v16 = vadd.f32 %v4968_v40, %v4949_v57  ;;  %5358 = vmatpush.msrb.mxu3 %v5321_v18 }
 0x4a5   : > { %v5088_v32 = vpop.f32.mrf.mxu3 }
 0x4a6   : > { %v4989_v28 = vadd.f32 %v4988_v41, %v4969_v16  ;;  %5359 = vmatpush.msrb.mxu3 %v5320_v48 }
 0x4a8   : > { %v5009_v4 = vadd.f32 %v5008_v62, %v4989_v28  ;;  %5360 = vmatpush.msrb.mxu3 %v5319_v46 }
 0x4aa   : > { %5361 = vmatpush.msrb.mxu3 %v5318_v27 }
 0x4ac   : > { %5362 = vmatpush.msrb.mxu3 %v5317_v31 }
 0x4ae   : > { %5363 = vmatpush.msrb.mxu3 %v5316_v45 }
 0x4b0   : > { %5364 = vmatpush.msrb.mxu3 %v5315_v9 }
 0x4b2   : > { %v5028_v22 = vpop.f32.mrf.mxu0  ;;  %5365 = vmatpush.msrb.mxu3 %v5314_v15 }
 0x4b3   : > { %v5029_v37 = vadd.f32 %v5028_v22, %v5009_v4 }
 0x4b5   : > { %v5148_v21 = vpop.f32.mrf.mxu2 }
 0x4bc   : > { %v5048_v58 = vpop.f32.mrf.mxu1 }
 0x4bd   : > { %v5049_v13 = vadd.f32 %v5048_v58, %v5029_v37 }
 0x4bf   : > { %v5069_v1 = vadd.f32 %v5068_v14, %v5049_v13 }
 0x4c1   : > { %v5089_v5 = vadd.f32 %v5088_v32, %v5069_v1 }
 0x4c8   : > { %v5168_v24 = vpop.f32.mrf.mxu3 }
 0x4d3   : > { %v5108_v7 = vpop.f32.mrf.mxu0 }
 0x4d4   : > { %v5109_v38 = vadd.f32 %v5108_v7, %v5089_v5 }
 0x4d8   : > { %v5228_v50 = vpop.f32.mrf.mxu2 }
 0x4dd   : > { %v5128_v34 = vpop.f32.mrf.mxu1 }
 0x4de   : > { %v5129_v19 = vadd.f32 %v5128_v34, %v5109_v38 }
 0x4e0   : > { %v5149_v55 = vadd.f32 %v5148_v21, %v5129_v19 }
 0x4e2   : > { %v5169_v0 = vadd.f32 %v5168_v24, %v5149_v55 }
 0x4e9   : > { %v5248_v23 = vpop.f32.mrf.mxu3 }
 0x4f3   : > { %v5188_v53 = vpop.f32.mrf.mxu0 }
 0x4f4   : > { %v5189_v44 = vadd.f32 %v5188_v53, %v5169_v0 }
 0x4fd   : > { %v5208_v47 = vpop.f32.mrf.mxu1 }
 0x4fe   : > { %v5209_v59 = vadd.f32 %v5208_v47, %v5189_v44 }
 0x500   : > { %v5229_v52 = vadd.f32 %v5228_v50, %v5209_v59 }
 0x502   : > { %v5249_v60 = vadd.f32 %v5248_v23, %v5229_v52 }
 0x513   : > { %v5268_v11 = vpop.f32.mrf.mxu0 }
 0x514   : > { %v5269_v17 = vadd.f32 %v5268_v11, %v5249_v60 }
 0x51d   : > { %v5288_v49 = vpop.f32.mrf.mxu1 }
 0x51e   : > { %v5289_v6 = vadd.f32 %v5288_v49, %v5269_v17 }
 0x520   : > { %v5297_v35 = vadd.f32 %v5293_v2, %v5289_v6  ;;  %v5347_v42 = vpop.f32.mrf.mxu2 }
 0x521   : > { %v5348_v29 = vadd.f32 %v5347_v42, %v2291_v36 }
 0x522   : > { %5366 = vmatmul.f32.vlgmr.msrb.gmra.mxu3 %v5297_v35 }
 0x5a5   : > { %v5367_v10 = vpop.f32.mrf.mxu3 }
 0x5a6   : > { %v5368_v54 = vadd.f32 %v5367_v10, %v5348_v29 }
 0x5a8   : > { %5370 = vst [vmem:[%s344_s18] sm:$0x1] %v5368_v54 }
 0x5a9   : > { %6577 = shalt.err (!%p6574_p10)
}
 0x5aa   : > { %6329 = dma.vmem_to_hbm [thread:$0]  (%p6754_p4), %s5383_s19, 16, %s5385_s20, %s5372_s14  }
 0x5ab PF: > { %s5396_s15 = sand.u32 1, %s6612_s21   ;;  %p9372_p13 = scmp.ge.s32.totalorder %s6624_s24, 2 }
 0x5ac   : > { %s5397_s27 = scalar_lea.sflag [#allocation4], %s5396_s15 }
 0x5ad   : > { %p6349_p11 = pnand %p9372_p13, %p6758_p6 }
 0x5af   : > { %p6350_p0 = pneg %p6349_p11 }
 0x5b1   : > { %6607 = dma.done.wait (%p6350_p0), %s5397_s27, 16  }
 0x5b2   : > { %6609 = vsyncadd (%p6350_p0), %s5397_s27, 4294967280  ;;  %p21_p2 = scmp.ge.s32.totalorder %s6728_s9, 4   ;;  %s9373_s21 = smov %s6616_s22 }
 0x5b3   : > { %s9374_s22 = smov %s6620_s23  ;;  %s9375_s23 = smov %s6739_s13 }
 0x5b4   : > { %s9376_s24 = smov %s6728_s9  ;;  %23 = sbr.rel (!%p21_p2) target bundleno = 7 (0x7), region = 117 }
 0x5b9   :  { %5402 = vsyncpa [#allocation3], 1 }
 0x5ba   :  { %5404 = vsyncpa [#allocation3 + $0x1], 1 }
 0x5bb   :  { %5405 = vsyncpa [#allocation6], 1 }
 0x5bc   :  { %5406 = vsyncpa [#allocation9], 1 }
 0x5bd   :  { %5407 = vsyncpa [#allocation4], 1 }
 0x5be   :  { %5409 = vsyncpa [#allocation4 + $0x1], 1 }

</bundles_post_ra>
